<compile_context>
chip_gen: v5e
topology: v5e:2x2
jax: 0.10.0
libtpu: 0.0.40
codegen_flags: <defaults>
</compile_context>

<pallas_src>
import functools

import jax
import jax.numpy as jnp
from jax.experimental import pallas as pl
from jax.experimental.pallas import tpu as pltpu

LANE = 128
CONV_COUT = (32, 64, 128, 256)     # true output channels per conv layer
CONV_TM = (1024, 512, 256, 64)     # M-tile per conv layer (M = B*Ho*Wo)


def _round_up(x, m):
    return (x + m - 1) // m * m


# ---------------------------------------------------------------------------
# Pallas kernel: full-K matmul with fused bias add + optional ReLU.
# bf16 operands, f32 accumulation on the MXU, f32 epilogue, cast at the store.
# ---------------------------------------------------------------------------
def matmul_bias_act_kernel(a_ref, b_ref, bias_ref, o_ref, *, relu):
    r = jnp.dot(a_ref[...], b_ref[...], preferred_element_type=jnp.float32)
    r = r + bias_ref[...]
    if relu:
        r = jnp.maximum(r, 0.0)
    o_ref[...] = r.astype(o_ref.dtype)


def matmul_bias_act(a, b, bias, *, relu, tm, out_dtype):
    """act(a @ b + bias) -> (M, Np).

    a:    (M, K)  bf16, K a multiple of 128
    b:    (K, Np) bf16, Np a multiple of 128 (weights pre-padded offline)
    bias: (1, Np) f32
    M is tiled by `tm` (multiple of 16, <= M); the final block may be ragged --
    Pallas masks the out-of-bounds rows on the output store.
    """
    M, K = a.shape
    _, Np = b.shape
    tn = Np                                # N <= 256 here: one lane-dense block
    grid = (pl.cdiv(M, tm), Np // tn)
    kernel = functools.partial(matmul_bias_act_kernel, relu=relu)
    return pl.pallas_call(
        kernel,
        out_shape=jax.ShapeDtypeStruct((M, Np), out_dtype),
        grid_spec=pltpu.PrefetchScalarGridSpec(
            num_scalar_prefetch=0,
            grid=grid,
            in_specs=[
                pl.BlockSpec((tm, K), lambda i, j: (i, 0)),
                pl.BlockSpec((K, tn), lambda i, j: (0, j)),
                pl.BlockSpec((1, tn), lambda i, j: (0, j)),
            ],
            out_specs=pl.BlockSpec((tm, tn), lambda i, j: (i, j)),
        ),
        compiler_params=pltpu.CompilerParams(
            dimension_semantics=("parallel", "parallel")),
    )(a, b, bias)


# ---------------------------------------------------------------------------
# im2col glue (XLA) + conv layer built on the fused Pallas matmul kernel.
# TODO(synk): patch extraction is materialized in XLA; it could be folded into
# the kernel via (kh, kw) grid axes over a strided NHWC block for further HBM
# savings, but these layers are already overhead-dominated at this size.
# ---------------------------------------------------------------------------
def _im2col(x, ksize=4, stride=2):
    B, H, W, C = x.shape
    Ho = (H - ksize) // stride + 1
    Wo = (W - ksize) // stride + 1
    cols = []
    for kh in range(ksize):
        for kw in range(ksize):
            cols.append(x[:, kh:kh + stride * (Ho - 1) + 1:stride,
                            kw:kw + stride * (Wo - 1) + 1:stride, :])
    p = jnp.stack(cols, axis=3)                       # (B, Ho, Wo, k*k, C)
    return p.reshape(B, Ho, Wo, ksize * ksize * C), Ho, Wo


def conv4x4_s2(x_nhwc, w_mat, bias_row, n_out, *, tm):
    B = x_nhwc.shape[0]
    patches, Ho, Wo = _im2col(x_nhwc)
    a = patches.reshape(B * Ho * Wo, patches.shape[-1])
    out = matmul_bias_act(a, w_mat, bias_row, relu=True, tm=tm,
                          out_dtype=jnp.bfloat16)
    return out[:, :n_out].reshape(B, Ho, Wo, n_out)


# ---------------------------------------------------------------------------
# One-time parameter preprocessing (outside the per-forward path).
# ---------------------------------------------------------------------------
def preprocess_params(params):
    """PyTorch-layout params -> kernel layout.

    Conv weights OIHW -> (kh*kw*Cin_pad, Cout_pad) matching the im2col unroll,
    cast to bf16; the /255 input scaling is folded into conv1's weights.
    Biases stay f32, padded and shaped (1, Cout_pad).
    """
    pp = {}
    for i in range(4):
        w = params[f"w{i}"].astype(jnp.float32)       # (Cout, Cin, 4, 4)
        if i == 0:
            w = w / 255.0                             # fold x/255 scaling
        cout, cin = w.shape[0], w.shape[1]
        cin_p = _round_up(cin * 16, LANE) // 16       # makes K = 16*cin_p % 128 == 0
        cout_p = _round_up(cout, LANE)
        w = jnp.transpose(w, (2, 3, 1, 0))            # (kh, kw, Cin, Cout)
        w = jnp.pad(w, ((0, 0), (0, 0), (0, cin_p - cin), (0, cout_p - cout)))
        pp[f"w{i}"] = w.reshape(16 * cin_p, cout_p).astype(jnp.bfloat16)
        b = jnp.pad(params[f"b{i}"].astype(jnp.float32), (0, cout_p - cout))
        pp[f"b{i}"] = b.reshape(1, cout_p)
    latent = params["w_mu"].shape[0]
    lat_p = _round_up(latent, LANE)
    pp["w_mu"] = jnp.pad(params["w_mu"].astype(jnp.float32).T,
                         ((0, 0), (0, lat_p - latent))).astype(jnp.bfloat16)
    pp["b_mu"] = jnp.pad(params["b_mu"].astype(jnp.float32),
                         (0, lat_p - latent)).reshape(1, lat_p)
    return pp


@functools.partial(jax.jit, static_argnames=("latent",))
def encoder_forward(x_nchw, pp, latent=32):
    # NCHW -> NHWC, pad Cin 3 -> 8 (so conv1's K = 128), cast to bf16.
    # No /255 here: it is folded into the conv1 weights.
    x = jnp.transpose(x_nchw, (0, 2, 3, 1)).astype(jnp.bfloat16)
    cin = x.shape[-1]
    cin_p = _round_up(cin * 16, LANE) // 16
    x = jnp.pad(x, ((0, 0), (0, 0), (0, 0), (0, cin_p - cin)))
    for i in range(4):
        x = conv4x4_s2(x, pp[f"w{i}"], pp[f"b{i}"], CONV_COUT[i],
                       tm=CONV_TM[i])
    # PyTorch flatten of an NCHW tensor: (C, H, W) order.
    B = x.shape[0]
    feat = jnp.transpose(x, (0, 3, 1, 2)).reshape(B, -1)       # (B, 9216) bf16
    Mp = max(_round_up(B, 16), 16)                             # bf16 sublane tile
    feat = jnp.pad(feat, ((0, Mp - B), (0, 0)))
    mu = matmul_bias_act(feat, pp["w_mu"], pp["b_mu"], relu=False,
                         tm=Mp, out_dtype=jnp.float32)
    return mu[:B, :latent]


# ---------------------------------------------------------------------------
# Pure-JAX reference (for correctness check only).
# ---------------------------------------------------------------------------
def reference_forward(x_nchw, params):
    x = x_nchw.astype(jnp.float32) / 255.0
    for i in range(4):
        x = jax.lax.conv_general_dilated(
            x, params[f"w{i}"], window_strides=(2, 2), padding="VALID",
            dimension_numbers=("NCHW", "OIHW", "NCHW"))
        x = jnp.maximum(x + params[f"b{i}"][None, :, None, None], 0.0)
    B = x.shape[0]
    feat = x.reshape(B, -1)
    return feat @ params["w_mu"].T + params["b_mu"]


if __name__ == "__main__":
    latent_size = 32
    input_channel = 3
    key = jax.random.PRNGKey(0)
    keys = jax.random.split(key, 11)

    chans = [input_channel, 32, 64, 128, 256]
    params = {}
    for i in range(4):
        params[f"w{i}"] = 0.05 * jax.random.normal(
            keys[2 * i], (chans[i + 1], chans[i], 4, 4), jnp.float32)
        params[f"b{i}"] = 0.01 * jax.random.normal(
            keys[2 * i + 1], (chans[i + 1],), jnp.float32)
    params["w_mu"] = 0.01 * jax.random.normal(
        keys[8], (latent_size, 9216), jnp.float32)
    params["b_mu"] = 0.01 * jax.random.normal(
        keys[9], (latent_size,), jnp.float32)

    # batch=2; spatial 128x128 is forced by Linear(9216) = 256*6*6
    x = jax.random.uniform(keys[10], (2, input_channel, 128, 128),
                           jnp.float32, 0.0, 255.0)

    pp = preprocess_params(params)          # one-time weight layout conversion

    mu = jax.block_until_ready(encoder_forward(x, pp, latent=latent_size))
    ref = jax.block_until_ready(reference_forward(x, params))

    assert mu.shape == (2, latent_size), mu.shape
    assert jnp.allclose(mu, ref, rtol=2e-2, atol=2e-2), (
        float(jnp.max(jnp.abs(mu - ref))))
    print("KERNEL_OK")
</pallas_src>

<mosaic_0001>
module attributes {stable_mosaic.version = 11 : i64} {
  func.func @matmul_bias_act_kernel(%arg0: i32, %arg1: i32, %arg2: memref<1024x128xbf16, #tpu.memory_space<vmem>>, %arg3: memref<128x128xbf16, #tpu.memory_space<vmem>>, %arg4: memref<1x128xf32, #tpu.memory_space<vmem>>, %arg5: memref<1024x128xbf16, #tpu.memory_space<vmem>>) attributes {dimension_semantics = [#tpu.dimension_semantics<parallel>, #tpu.dimension_semantics<parallel>], iteration_bounds = array<i64: 8, 1>, scalar_prefetch = 0 : i64, scratch_operands = 0 : i64, tpu.core_type = #tpu.core_type<tc>, window_params = [{transform_indices = @transform_0, window_bounds = array<i64: 1024, 128>}, {transform_indices = @transform_1, window_bounds = array<i64: 128, 128>}, {transform_indices = @transform_2, window_bounds = array<i64: 1, 128>}, {transform_indices = @transform_3, window_bounds = array<i64: 1024, 128>}]} {
    %c0 = arith.constant 0 : index
    %c0_0 = arith.constant 0 : index
    %0 = vector.load %arg2[%c0, %c0_0] : memref<1024x128xbf16, #tpu.memory_space<vmem>>, vector<1024x128xbf16>
    %c0_1 = arith.constant 0 : index
    %c0_2 = arith.constant 0 : index
    %1 = vector.load %arg3[%c0_1, %c0_2] : memref<128x128xbf16, #tpu.memory_space<vmem>>, vector<128x128xbf16>
    %cst = arith.constant dense<0.000000e+00> : vector<1024x128xf32>
    %2 = tpu.matmul %0, %1, %cst {dimension_numbers = #tpu.dot_dimension_numbers<[1], [0], [0], [1], [0, 0, 1, 1], [], []>} : vector<1024x128xbf16>, vector<128x128xbf16>, vector<1024x128xf32> -> vector<1024x128xf32>
    %c0_3 = arith.constant 0 : index
    %c0_4 = arith.constant 0 : index
    %3 = vector.load %arg4[%c0_3, %c0_4] : memref<1x128xf32, #tpu.memory_space<vmem>>, vector<1x128xf32>
    %4 = vector.broadcast %3 : vector<1x128xf32> to vector<1024x128xf32>
    %5 = arith.addf %2, %4 : vector<1024x128xf32>
    %cst_5 = arith.constant 0.000000e+00 : f32
    %6 = vector.broadcast %cst_5 : f32 to vector<1024x128xf32>
    %7 = arith.maximumf %5, %6 : vector<1024x128xf32>
    %8 = arith.truncf %7 : vector<1024x128xf32> to vector<1024x128xbf16>
    %c0_6 = arith.constant 0 : index
    %c0_7 = arith.constant 0 : index
    %9 = vector.load %arg5[%c0_6, %c0_7] : memref<1024x128xbf16, #tpu.memory_space<vmem>>, vector<1024x128xbf16>
    tpu.vector_store %arg5[%c0_6, %c0_7], %8 {strides = array<i32>} : memref<1024x128xbf16, #tpu.memory_space<vmem>>, vector<1024x128xbf16>,
    return
  }
  func.func @transform_0(%arg0: i32, %arg1: i32) -> (i32, i32) {
    %c0_i32 = arith.constant 0 : i32
    %c0_i32_0 = arith.constant 0 : i32
    return %arg0, %c0_i32 : i32, i32
  }
  func.func @transform_1(%arg0: i32, %arg1: i32) -> (i32, i32) {
    %c0_i32 = arith.constant 0 : i32
    %c0_i32_0 = arith.constant 0 : i32
    return %c0_i32, %arg1 : i32, i32
  }
  func.func @transform_2(%arg0: i32, %arg1: i32) -> (i32, i32) {
    %c0_i32 = arith.constant 0 : i32
    %c0_i32_0 = arith.constant 0 : i32
    return %c0_i32, %arg1 : i32, i32
  }
  func.func @transform_3(%arg0: i32, %arg1: i32) -> (i32, i32) {
    %c0_i32 = arith.constant 0 : i32
    return %arg0, %arg1 : i32, i32
  }
}

module attributes {stable_mosaic.version = 11 : i64} {
  func.func @matmul_bias_act_kernel(%arg0: i32, %arg1: i32, %arg2: memref<512x512xbf16, #tpu.memory_space<vmem>>, %arg3: memref<512x128xbf16, #tpu.memory_space<vmem>>, %arg4: memref<1x128xf32, #tpu.memory_space<vmem>>, %arg5: memref<512x128xbf16, #tpu.memory_space<vmem>>) attributes {dimension_semantics = [#tpu.dimension_semantics<parallel>, #tpu.dimension_semantics<parallel>], iteration_bounds = array<i64: 4, 1>, scalar_prefetch = 0 : i64, scratch_operands = 0 : i64, tpu.core_type = #tpu.core_type<tc>, window_params = [{transform_indices = @transform_0, window_bounds = array<i64: 512, 512>}, {transform_indices = @transform_1, window_bounds = array<i64: 512, 128>}, {transform_indices = @transform_2, window_bounds = array<i64: 1, 128>}, {transform_indices = @transform_3, window_bounds = array<i64: 512, 128>}]} {
    %c0 = arith.constant 0 : index
    %c0_0 = arith.constant 0 : index
    %0 = vector.load %arg2[%c0, %c0_0] : memref<512x512xbf16, #tpu.memory_space<vmem>>, vector<512x512xbf16>
    %c0_1 = arith.constant 0 : index
    %c0_2 = arith.constant 0 : index
    %1 = vector.load %arg3[%c0_1, %c0_2] : memref<512x128xbf16, #tpu.memory_space<vmem>>, vector<512x128xbf16>
    %cst = arith.constant dense<0.000000e+00> : vector<512x128xf32>
    %2 = tpu.matmul %0, %1, %cst {dimension_numbers = #tpu.dot_dimension_numbers<[1], [0], [0], [1], [0, 0, 1, 1], [], []>} : vector<512x512xbf16>, vector<512x128xbf16>, vector<512x128xf32> -> vector<512x128xf32>
    %c0_3 = arith.constant 0 : index
    %c0_4 = arith.constant 0 : index
    %3 = vector.load %arg4[%c0_3, %c0_4] : memref<1x128xf32, #tpu.memory_space<vmem>>, vector<1x128xf32>
    %4 = vector.broadcast %3 : vector<1x128xf32> to vector<512x128xf32>
    %5 = arith.addf %2, %4 : vector<512x128xf32>
    %cst_5 = arith.constant 0.000000e+00 : f32
    %6 = vector.broadcast %cst_5 : f32 to vector<512x128xf32>
    %7 = arith.maximumf %5, %6 : vector<512x128xf32>
    %8 = arith.truncf %7 : vector<512x128xf32> to vector<512x128xbf16>
    %c0_6 = arith.constant 0 : index
    %c0_7 = arith.constant 0 : index
    %9 = vector.load %arg5[%c0_6, %c0_7] : memref<512x128xbf16, #tpu.memory_space<vmem>>, vector<512x128xbf16>
    tpu.vector_store %arg5[%c0_6, %c0_7], %8 {strides = array<i32>} : memref<512x128xbf16, #tpu.memory_space<vmem>>, vector<512x128xbf16>,
    return
  }
  func.func @transform_0(%arg0: i32, %arg1: i32) -> (i32, i32) {
    %c0_i32 = arith.constant 0 : i32
    %c0_i32_0 = arith.constant 0 : i32
    return %arg0, %c0_i32 : i32, i32
  }
  func.func @transform_1(%arg0: i32, %arg1: i32) -> (i32, i32) {
    %c0_i32 = arith.constant 0 : i32
    %c0_i32_0 = arith.constant 0 : i32
    return %c0_i32, %arg1 : i32, i32
  }
  func.func @transform_2(%arg0: i32, %arg1: i32) -> (i32, i32) {
    %c0_i32 = arith.constant 0 : i32
    %c0_i32_0 = arith.constant 0 : i32
    return %c0_i32, %arg1 : i32, i32
  }
  func.func @transform_3(%arg0: i32, %arg1: i32) -> (i32, i32) {
    %c0_i32 = arith.constant 0 : i32
    return %arg0, %arg1 : i32, i32
  }
}

module attributes {stable_mosaic.version = 11 : i64} {
  func.func @matmul_bias_act_kernel(%arg0: i32, %arg1: i32, %arg2: memref<256x1024xbf16, #tpu.memory_space<vmem>>, %arg3: memref<1024x128xbf16, #tpu.memory_space<vmem>>, %arg4: memref<1x128xf32, #tpu.memory_space<vmem>>, %arg5: memref<256x128xbf16, #tpu.memory_space<vmem>>) attributes {dimension_semantics = [#tpu.dimension_semantics<parallel>, #tpu.dimension_semantics<parallel>], iteration_bounds = array<i64: 2, 1>, scalar_prefetch = 0 : i64, scratch_operands = 0 : i64, tpu.core_type = #tpu.core_type<tc>, window_params = [{transform_indices = @transform_0, window_bounds = array<i64: 256, 1024>}, {transform_indices = @transform_1, window_bounds = array<i64: 1024, 128>}, {transform_indices = @transform_2, window_bounds = array<i64: 1, 128>}, {transform_indices = @transform_3, window_bounds = array<i64: 256, 128>}]} {
    %c0 = arith.constant 0 : index
    %c0_0 = arith.constant 0 : index
    %0 = vector.load %arg2[%c0, %c0_0] : memref<256x1024xbf16, #tpu.memory_space<vmem>>, vector<256x1024xbf16>
    %c0_1 = arith.constant 0 : index
    %c0_2 = arith.constant 0 : index
    %1 = vector.load %arg3[%c0_1, %c0_2] : memref<1024x128xbf16, #tpu.memory_space<vmem>>, vector<1024x128xbf16>
    %cst = arith.constant dense<0.000000e+00> : vector<256x128xf32>
    %2 = tpu.matmul %0, %1, %cst {dimension_numbers = #tpu.dot_dimension_numbers<[1], [0], [0], [1], [0, 0, 1, 1], [], []>} : vector<256x1024xbf16>, vector<1024x128xbf16>, vector<256x128xf32> -> vector<256x128xf32>
    %c0_3 = arith.constant 0 : index
    %c0_4 = arith.constant 0 : index
    %3 = vector.load %arg4[%c0_3, %c0_4] : memref<1x128xf32, #tpu.memory_space<vmem>>, vector<1x128xf32>
    %4 = vector.broadcast %3 : vector<1x128xf32> to vector<256x128xf32>
    %5 = arith.addf %2, %4 : vector<256x128xf32>
    %cst_5 = arith.constant 0.000000e+00 : f32
    %6 = vector.broadcast %cst_5 : f32 to vector<256x128xf32>
    %7 = arith.maximumf %5, %6 : vector<256x128xf32>
    %8 = arith.truncf %7 : vector<256x128xf32> to vector<256x128xbf16>
    %c0_6 = arith.constant 0 : index
    %c0_7 = arith.constant 0 : index
    %9 = vector.load %arg5[%c0_6, %c0_7] : memref<256x128xbf16, #tpu.memory_space<vmem>>, vector<256x128xbf16>
    tpu.vector_store %arg5[%c0_6, %c0_7], %8 {strides = array<i32>} : memref<256x128xbf16, #tpu.memory_space<vmem>>, vector<256x128xbf16>,
    return
  }
  func.func @transform_0(%arg0: i32, %arg1: i32) -> (i32, i32) {
    %c0_i32 = arith.constant 0 : i32
    %c0_i32_0 = arith.constant 0 : i32
    return %arg0, %c0_i32 : i32, i32
  }
  func.func @transform_1(%arg0: i32, %arg1: i32) -> (i32, i32) {
    %c0_i32 = arith.constant 0 : i32
    %c0_i32_0 = arith.constant 0 : i32
    return %c0_i32, %arg1 : i32, i32
  }
  func.func @transform_2(%arg0: i32, %arg1: i32) -> (i32, i32) {
    %c0_i32 = arith.constant 0 : i32
    %c0_i32_0 = arith.constant 0 : i32
    return %c0_i32, %arg1 : i32, i32
  }
  func.func @transform_3(%arg0: i32, %arg1: i32) -> (i32, i32) {
    %c0_i32 = arith.constant 0 : i32
    return %arg0, %arg1 : i32, i32
  }
}

module attributes {stable_mosaic.version = 11 : i64} {
  func.func @matmul_bias_act_kernel(%arg0: i32, %arg1: i32, %arg2: memref<64x2048xbf16, #tpu.memory_space<vmem>>, %arg3: memref<2048x256xbf16, #tpu.memory_space<vmem>>, %arg4: memref<1x256xf32, #tpu.memory_space<vmem>>, %arg5: memref<64x256xbf16, #tpu.memory_space<vmem>>) attributes {dimension_semantics = [#tpu.dimension_semantics<parallel>, #tpu.dimension_semantics<parallel>], iteration_bounds = array<i64: 2, 1>, scalar_prefetch = 0 : i64, scratch_operands = 0 : i64, tpu.core_type = #tpu.core_type<tc>, window_params = [{transform_indices = @transform_0, window_bounds = array<i64: 64, 2048>}, {transform_indices = @transform_1, window_bounds = array<i64: 2048, 256>}, {transform_indices = @transform_2, window_bounds = array<i64: 1, 256>}, {transform_indices = @transform_3, window_bounds = array<i64: 64, 256>}]} {
    %c0 = arith.constant 0 : index
    %c0_0 = arith.constant 0 : index
    %0 = vector.load %arg2[%c0, %c0_0] : memref<64x2048xbf16, #tpu.memory_space<vmem>>, vector<64x2048xbf16>
    %c0_1 = arith.constant 0 : index
    %c0_2 = arith.constant 0 : index
    %1 = vector.load %arg3[%c0_1, %c0_2] : memref<2048x256xbf16, #tpu.memory_space<vmem>>, vector<2048x256xbf16>
    %cst = arith.constant dense<0.000000e+00> : vector<64x256xf32>
    %2 = tpu.matmul %0, %1, %cst {dimension_numbers = #tpu.dot_dimension_numbers<[1], [0], [0], [1], [0, 0, 1, 1], [], []>} : vector<64x2048xbf16>, vector<2048x256xbf16>, vector<64x256xf32> -> vector<64x256xf32>
    %c0_3 = arith.constant 0 : index
    %c0_4 = arith.constant 0 : index
    %3 = vector.load %arg4[%c0_3, %c0_4] : memref<1x256xf32, #tpu.memory_space<vmem>>, vector<1x256xf32>
    %4 = vector.broadcast %3 : vector<1x256xf32> to vector<64x256xf32>
    %5 = arith.addf %2, %4 : vector<64x256xf32>
    %cst_5 = arith.constant 0.000000e+00 : f32
    %6 = vector.broadcast %cst_5 : f32 to vector<64x256xf32>
    %7 = arith.maximumf %5, %6 : vector<64x256xf32>
    %8 = arith.truncf %7 : vector<64x256xf32> to vector<64x256xbf16>
    %c0_6 = arith.constant 0 : index
    %c0_7 = arith.constant 0 : index
    %9 = vector.load %arg5[%c0_6, %c0_7] : memref<64x256xbf16, #tpu.memory_space<vmem>>, vector<64x256xbf16>
    tpu.vector_store %arg5[%c0_6, %c0_7], %8 {strides = array<i32>} : memref<64x256xbf16, #tpu.memory_space<vmem>>, vector<64x256xbf16>,
    return
  }
  func.func @transform_0(%arg0: i32, %arg1: i32) -> (i32, i32) {
    %c0_i32 = arith.constant 0 : i32
    %c0_i32_0 = arith.constant 0 : i32
    return %arg0, %c0_i32 : i32, i32
  }
  func.func @transform_1(%arg0: i32, %arg1: i32) -> (i32, i32) {
    %c0_i32 = arith.constant 0 : i32
    %c0_i32_0 = arith.constant 0 : i32
    return %c0_i32, %arg1 : i32, i32
  }
  func.func @transform_2(%arg0: i32, %arg1: i32) -> (i32, i32) {
    %c0_i32 = arith.constant 0 : i32
    %c0_i32_0 = arith.constant 0 : i32
    return %c0_i32, %arg1 : i32, i32
  }
  func.func @transform_3(%arg0: i32, %arg1: i32) -> (i32, i32) {
    %c0_i32 = arith.constant 0 : i32
    return %arg0, %arg1 : i32, i32
  }
}

module attributes {stable_mosaic.version = 11 : i64} {
  func.func @matmul_bias_act_kernel(%arg0: i32, %arg1: i32, %arg2: memref<16x9216xbf16, #tpu.memory_space<vmem>>, %arg3: memref<9216x128xbf16, #tpu.memory_space<vmem>>, %arg4: memref<1x128xf32, #tpu.memory_space<vmem>>, %arg5: memref<16x128xf32, #tpu.memory_space<vmem>>) attributes {dimension_semantics = [#tpu.dimension_semantics<parallel>, #tpu.dimension_semantics<parallel>], iteration_bounds = array<i64: 1, 1>, scalar_prefetch = 0 : i64, scratch_operands = 0 : i64, tpu.core_type = #tpu.core_type<tc>, window_params = [{transform_indices = @transform_0, window_bounds = array<i64: 16, 9216>}, {transform_indices = @transform_1, window_bounds = array<i64: 9216, 128>}, {transform_indices = @transform_2, window_bounds = array<i64: 1, 128>}, {transform_indices = @transform_3, window_bounds = array<i64: 16, 128>}]} {
    %c0 = arith.constant 0 : index
    %c0_0 = arith.constant 0 : index
    %0 = vector.load %arg2[%c0, %c0_0] : memref<16x9216xbf16, #tpu.memory_space<vmem>>, vector<16x9216xbf16>
    %c0_1 = arith.constant 0 : index
    %c0_2 = arith.constant 0 : index
    %1 = vector.load %arg3[%c0_1, %c0_2] : memref<9216x128xbf16, #tpu.memory_space<vmem>>, vector<9216x128xbf16>
    %cst = arith.constant dense<0.000000e+00> : vector<16x128xf32>
    %2 = tpu.matmul %0, %1, %cst {dimension_numbers = #tpu.dot_dimension_numbers<[1], [0], [0], [1], [0, 0, 1, 1], [], []>} : vector<16x9216xbf16>, vector<9216x128xbf16>, vector<16x128xf32> -> vector<16x128xf32>
    %c0_3 = arith.constant 0 : index
    %c0_4 = arith.constant 0 : index
    %3 = vector.load %arg4[%c0_3, %c0_4] : memref<1x128xf32, #tpu.memory_space<vmem>>, vector<1x128xf32>
    %4 = vector.broadcast %3 : vector<1x128xf32> to vector<16x128xf32>
    %5 = arith.addf %2, %4 : vector<16x128xf32>
    %c0_5 = arith.constant 0 : index
    %c0_6 = arith.constant 0 : index
    %6 = vector.load %arg5[%c0_5, %c0_6] : memref<16x128xf32, #tpu.memory_space<vmem>>, vector<16x128xf32>
    tpu.vector_store %arg5[%c0_5, %c0_6], %5 {strides = array<i32>} : memref<16x128xf32, #tpu.memory_space<vmem>>, vector<16x128xf32>,
    return
  }
  func.func @transform_0(%arg0: i32, %arg1: i32) -> (i32, i32) {
    %c0_i32 = arith.constant 0 : i32
    %c0_i32_0 = arith.constant 0 : i32
    return %arg0, %c0_i32 : i32, i32
  }
  func.func @transform_1(%arg0: i32, %arg1: i32) -> (i32, i32) {
    %c0_i32 = arith.constant 0 : i32
    %c0_i32_0 = arith.constant 0 : i32
    return %c0_i32, %arg1 : i32, i32
  }
  func.func @transform_2(%arg0: i32, %arg1: i32) -> (i32, i32) {
    %c0_i32 = arith.constant 0 : i32
    %c0_i32_0 = arith.constant 0 : i32
    return %c0_i32, %arg1 : i32, i32
  }
  func.func @transform_3(%arg0: i32, %arg1: i32) -> (i32, i32) {
    %c0_i32 = arith.constant 0 : i32
    return %arg0, %arg1 : i32, i32
  }
}

</mosaic_0001>

<bundles_post_ra>
// kernel: encoder_forward.5
= control target key start
LH: loop header
LB: loop body
LE: loop exit
PB: predicated region body
PF: predicated region fallthrough
CT: control target
= control target key end

     0   :  { %s2935_s12 = smov 0   ;;  %s2937_s13 = smov 0   ;;  %s3410_s0 = inlined_call_operand.vmem [shape: bf16[7938,128], index: 0, kind: input, shape index: {}]   ;;  %s3411_s1 = inlined_call_operand.vmem [shape: bf16[128,128], index: 1, kind: input, shape index: {}]   ;;  %s3412_s2 = inlined_call_operand.vmem [shape: f32[1,128], index: 2, kind: input, shape index: {}]   ;;  %s3413_s3 = inlined_call_operand.vmem [shape: bf16[7938,128], index: 3, kind: output, shape index: {}]  }
   0x1   :  { %s2939_s14 = smov 0   ;;  %s2941_s15 = smov 0  }
   0x2   :  { %s2943_s16 = smov 0  }
   0x3 LB: > { %s1908_s17 = sadd.s32 4294967295, %s2881_s16   ;;  %s25_s18 = sadd.s32 1, %s2877_s15  ;;  %s2881_s16 = sphi %s2943_s16, %s13_s16   ;;  %s2877_s15 = sphi %s2941_s15, %s3423_s15   ;;  %s2873_s14 = sphi %s2939_s14, %s3422_s14   ;;  %s2869_s13 = sphi %s2937_s13, %s3421_s13   ;;  %s2865_s12 = sphi %s2935_s12, %s3420_s12  }
   0x4   : > { %p27_p0 = scmp.ge.s32.totalorder %s25_s18, 8  ;;  %s112_s19 = sadd.s32 1, %s2869_s13 }
   0x5   : > { %p122_p1 = scmp.ne.s32.totalorder %s2869_s13, %s2865_s12  ;;  %p123_p2 = scmp.eq.s32.totalorder %s1908_s17, 7 }
   0x6   : > { %s3425_s18 = smov (%p27_p0, %s25_s18), 0  ;;  %p1914_p4 = scmp.ge.s32.totalorder %s2881_s16, 1 }
   0x7   : > { %p2967_p3 = por %p123_p2, %p122_p1  ;;  %s107_s21 = ssub.s32 %s2877_s15, %s3425_s18 }
   0x8   : > { %p177_p5 = scmp.lt.s32.totalorder %s2881_s16, 9  ;;  %p110_p6 = scmp.eq.s32.totalorder %s107_s21, 0 }
   0xa   : > { %p178_p7 = pnand %p1914_p4, %p177_p5 }
   0xb   : > { %s2976_s22 = scalar_select %p110_p6, %s2869_s13, %s112_s19  }
   0xc   : > { %181 = sbr.rel (%p178_p7) target bundleno = 502 (0x1f6), region = 32  ;;  %s2991_s4 = sshll.u32 (!%p178_p7), %s2873_s14, 7 }
   0xd   : > { %p216_p8 = scmp.lt.s32.totalorder (!%p178_p7), %s2991_s4, 992  ;;  %s208_s28 = sand.u32 (!%p178_p7), 1, %s2865_s12  }
   0xe   : > { %s1915_s29 = sshll.u32 (!%p178_p7), %s208_s28, 9 }
   0xf   : > { %s3060_s12 = scalar_lea.vmem (!%p178_p7), [#allocation2], %s1915_s29  }
  0x11   : > { %v2294_v0 = vld [vmem:[%s3411_s1 + $0x38] sm:$0xff]  ;;  %v2293_v1 = vld [vmem:[%s3411_s1 + $0x30] sm:$0xff]  ;;  %v2292_v2 = vld [vmem:[%s3411_s1 + $0x28] sm:$0xff]  ;;  %s217_s9 = scalar_select %p216_p8, %s2991_s4, 992 }
  0x12   : > { %817 = vmatpush.bf16.msra.mxu0 %v2294_v0  ;;  %2681 = vmatpush.bf16.msra.mxu1 %v2294_v0  ;;  %v2291_v3 = vld [vmem:[%s3411_s1 + $0x20] sm:$0xff]  ;;  %v2290_v4 = vld [vmem:[%s3411_s1 + $0x18] sm:$0xff]  ;;  %v2289_v5 = vld [vmem:[%s3411_s1 + $0x10] sm:$0xff]  ;;  %s1538_s6 = ssub.s32 (%p2967_p3), 993, %s2991_s4  ;;  %s2295_s7 = sshll.u32 (%p2967_p3), %s2873_s14, 9 }
  0x13   : > { %2682 = vmatpush.bf16.msra.mxu2 %v2294_v0  ;;  %2683 = vmatpush.bf16.msra.mxu3 %v2294_v0  ;;  %v2288_v6 = vld [vmem:[%s3411_s1 + $0x8] sm:$0xff]  ;;  %s1917_s17 = sshll.u32 %s217_s9, 2  ;;  %v2287_v7 = vld [vmem:[%s3411_s1] sm:$0xff]  ;;  %p1539_p9 = scmp.lt.s32.totalorder (%p2967_p3), %s1538_s6, 128 }
  0x14   : > { %s3010_s25 = scalar_lea.vmem %s3410_s0, %s1917_s17  ;;  %v3051_v46 = vld [vmem:[%s3412_s2] ss:$0 sm:$0xff]  ;;  %s3270_s10 = scalar_lea.vmem (%p2967_p3), %s3413_s3, %s2295_s7  }
  0x15   : > { %v2223_v8 = vld [vmem:[%s3010_s25] sm:$0xff]  ;;  %v2224_v12 = vld [vmem:[%s3010_s25 + $0x8] sm:$0xff]  ;;  %v2225_v16 = vld [vmem:[%s3010_s25 + $0x10] sm:$0xff] }
  0x16   : > { %818 = vmatpush.bf16.msra.mxu0 %v2293_v1  ;;  %2684 = vmatpush.bf16.msra.mxu1 %v2293_v1  ;;  %v2239_v9 = vld [vmem:[%s3010_s25 + $0x80] sm:$0xff]  ;;  %v2240_v13 = vld [vmem:[%s3010_s25 + $0x88] sm:$0xff]  ;;  %v2241_v17 = vld [vmem:[%s3010_s25 + $0x90] sm:$0xff] }
  0x17   : > { %2685 = vmatpush.bf16.msra.mxu2 %v2293_v1  ;;  %2686 = vmatpush.bf16.msra.mxu3 %v2293_v1  ;;  %v2255_v10 = vld [vmem:[%s3010_s25 + $0x100] sm:$0xff]  ;;  %v2256_v14 = vld [vmem:[%s3010_s25 + $0x108] sm:$0xff]  ;;  %v2257_v18 = vld [vmem:[%s3010_s25 + $0x110] sm:$0xff] }
  0x18   : > { %v2271_v11 = vld [vmem:[%s3010_s25 + $0x180] sm:$0xff]  ;;  %v2272_v15 = vld [vmem:[%s3010_s25 + $0x188] sm:$0xff]  ;;  %v2273_v19 = vld [vmem:[%s3010_s25 + $0x190] sm:$0xff] }
  0x19   : > { %v2226_v20 = vld [vmem:[%s3010_s25 + $0x18] sm:$0xff]  ;;  %v2227_v24 = vld [vmem:[%s3010_s25 + $0x20] sm:$0xff]  ;;  %v2228_v28 = vld [vmem:[%s3010_s25 + $0x28] sm:$0xff] }
  0x1a   : > { %819 = vmatpush.bf16.msra.mxu0 %v2292_v2  ;;  %2687 = vmatpush.bf16.msra.mxu1 %v2292_v2  ;;  %v2242_v21 = vld [vmem:[%s3010_s25 + $0x98] sm:$0xff]  ;;  %v2243_v25 = vld [vmem:[%s3010_s25 + $0xa0] sm:$0xff]  ;;  %v2244_v29 = vld [vmem:[%s3010_s25 + $0xa8] sm:$0xff] }
  0x1b   : > { %2688 = vmatpush.bf16.msra.mxu2 %v2292_v2  ;;  %2689 = vmatpush.bf16.msra.mxu3 %v2292_v2  ;;  %v2258_v22 = vld [vmem:[%s3010_s25 + $0x118] sm:$0xff]  ;;  %v2259_v26 = vld [vmem:[%s3010_s25 + $0x120] sm:$0xff]  ;;  %v2260_v30 = vld [vmem:[%s3010_s25 + $0x128] sm:$0xff] }
  0x1c   : > { %v2274_v23 = vld [vmem:[%s3010_s25 + $0x198] sm:$0xff]  ;;  %v2275_v27 = vld [vmem:[%s3010_s25 + $0x1a0] sm:$0xff]  ;;  %v2276_v31 = vld [vmem:[%s3010_s25 + $0x1a8] sm:$0xff] }
  0x1d   : > { %v2229_v32 = vld [vmem:[%s3010_s25 + $0x30] sm:$0xff]  ;;  %v2230_v36 = vld [vmem:[%s3010_s25 + $0x38] sm:$0xff]  ;;  %v2231_v40 = vld [vmem:[%s3010_s25 + $0x40] sm:$0xff] }
  0x1e   : > { %820 = vmatpush.bf16.msra.mxu0 %v2291_v3  ;;  %2690 = vmatpush.bf16.msra.mxu1 %v2291_v3  ;;  %v2245_v33 = vld [vmem:[%s3010_s25 + $0xb0] sm:$0xff]  ;;  %v2246_v37 = vld [vmem:[%s3010_s25 + $0xb8] sm:$0xff]  ;;  %v2247_v41 = vld [vmem:[%s3010_s25 + $0xc0] sm:$0xff] }
  0x1f   : > { %2691 = vmatpush.bf16.msra.mxu2 %v2291_v3  ;;  %2692 = vmatpush.bf16.msra.mxu3 %v2291_v3  ;;  %v2261_v34 = vld [vmem:[%s3010_s25 + $0x130] sm:$0xff]  ;;  %v2262_v38 = vld [vmem:[%s3010_s25 + $0x138] sm:$0xff]  ;;  %v2263_v44 = vld [vmem:[%s3010_s25 + $0x140] sm:$0xff] }
  0x20   : > { %v2277_v35 = vld [vmem:[%s3010_s25 + $0x1b0] sm:$0xff]  ;;  %v2278_v39 = vld [vmem:[%s3010_s25 + $0x1b8] sm:$0xff]  ;;  %v2279_v45 = vld [vmem:[%s3010_s25 + $0x1c0] sm:$0xff] }
  0x21   : > { %v2232_v1 = vld [vmem:[%s3010_s25 + $0x48] sm:$0xff] }
  0x22   : > { %821 = vmatpush.bf16.msra.mxu0 %v2290_v4  ;;  %2693 = vmatpush.bf16.msra.mxu1 %v2290_v4  ;;  %v2248_v2 = vld [vmem:[%s3010_s25 + $0xc8] sm:$0xff] }
  0x23   : > { %2694 = vmatpush.bf16.msra.mxu2 %v2290_v4  ;;  %2695 = vmatpush.bf16.msra.mxu3 %v2290_v4 }
  0x26   : > { %822 = vmatpush.bf16.msra.mxu0 %v2289_v5  ;;  %2696 = vmatpush.bf16.msra.mxu1 %v2289_v5 }
  0x27   : > { %2697 = vmatpush.bf16.msra.mxu2 %v2289_v5  ;;  %2698 = vmatpush.bf16.msra.mxu3 %v2289_v5 }
  0x2a   : > { %823 = vmatpush.bf16.msra.mxu0 %v2288_v6  ;;  %2699 = vmatpush.bf16.msra.mxu1 %v2288_v6 }
  0x2b   : > { %2700 = vmatpush.bf16.msra.mxu2 %v2288_v6  ;;  %2701 = vmatpush.bf16.msra.mxu3 %v2288_v6 }
  0x2e   : > { %824 = vmatpush.bf16.msra.mxu0 %v2287_v7  ;;  %2702 = vmatpush.bf16.msra.mxu1 %v2287_v7 }
  0x2f   : > { %2703 = vmatpush.bf16.msra.mxu2 %v2287_v7  ;;  %2704 = vmatpush.bf16.msra.mxu3 %v2287_v7  ;;  %v2264_v7 = vld [vmem:[%s3010_s25 + $0x148] sm:$0xff] }
  0x31   : > { %825 = vmatmul.bf16.vlgmr.msra.gmra.mxu0 %v2223_v8  ;;  %905 = vmatmul.bf16.vlgmr.msra.gmra.mxu1 %v2239_v9  ;;  %v2280_v8 = vld [vmem:[%s3010_s25 + $0x1c8] sm:$0xff] }
  0x32   : > { %985 = vmatmul.bf16.vlgmr.msra.gmra.mxu2 %v2255_v10  ;;  %1065 = vmatmul.bf16.vlgmr.msra.gmra.mxu3 %v2271_v11 }
  0x41   : > { %830 = vmatmul.bf16.gmra.mxu0 %v2224_v12  ;;  %910 = vmatmul.bf16.gmra.mxu1 %v2240_v13 }
  0x42   : > { %990 = vmatmul.bf16.gmra.mxu2 %v2256_v14  ;;  %1070 = vmatmul.bf16.gmra.mxu3 %v2272_v15 }
  0x51   : > { %835 = vmatmul.bf16.gmra.mxu0 %v2225_v16  ;;  %915 = vmatmul.bf16.gmra.mxu1 %v2241_v17 }
  0x52   : > { %995 = vmatmul.bf16.gmra.mxu2 %v2257_v18  ;;  %1075 = vmatmul.bf16.gmra.mxu3 %v2273_v19 }
  0x61   : > { %840 = vmatmul.bf16.gmra.mxu0 %v2226_v20  ;;  %920 = vmatmul.bf16.gmra.mxu1 %v2242_v21 }
  0x62   : > { %1000 = vmatmul.bf16.gmra.mxu2 %v2258_v22  ;;  %1080 = vmatmul.bf16.gmra.mxu3 %v2274_v23 }
  0x71   : > { %845 = vmatmul.bf16.gmra.mxu0 %v2227_v24  ;;  %925 = vmatmul.bf16.gmra.mxu1 %v2243_v25 }
  0x72   : > { %1005 = vmatmul.bf16.gmra.mxu2 %v2259_v26  ;;  %1085 = vmatmul.bf16.gmra.mxu3 %v2275_v27 }
  0x81   : > { %850 = vmatmul.bf16.gmra.mxu0 %v2228_v28  ;;  %930 = vmatmul.bf16.gmra.mxu1 %v2244_v29 }
  0x82   : > { %1010 = vmatmul.bf16.gmra.mxu2 %v2260_v30  ;;  %1090 = vmatmul.bf16.gmra.mxu3 %v2276_v31 }
  0x91   : > { %855 = vmatmul.bf16.gmra.mxu0 %v2229_v32  ;;  %935 = vmatmul.bf16.gmra.mxu1 %v2245_v33  ;;  %v2233_v33 = vld [vmem:[%s3010_s25 + $0x50] sm:$0xff] }
  0x92   : > { %1015 = vmatmul.bf16.gmra.mxu2 %v2261_v34  ;;  %1095 = vmatmul.bf16.gmra.mxu3 %v2277_v35  ;;  %v2249_v34 = vld [vmem:[%s3010_s25 + $0xd0] sm:$0xff] }
  0xa1   : > { %860 = vmatmul.bf16.gmra.mxu0 %v2230_v36  ;;  %940 = vmatmul.bf16.gmra.mxu1 %v2246_v37 }
  0xa2   : > { %1020 = vmatmul.bf16.gmra.mxu2 %v2262_v38  ;;  %1100 = vmatmul.bf16.gmra.mxu3 %v2278_v39  ;;  %v2265_v39 = vld [vmem:[%s3010_s25 + $0x150] sm:$0xff] }
  0xae   : > { %v826_v42 = vpop.f32.mrf.mxu0  ;;  %v906_v43 = vpop.f32.mrf.mxu1 }
  0xaf   : > { %v827_v47 = vadd.f32 %v3051_v46, %v826_v42  ;;  %v907_v48 = vadd.f32 %v3051_v46, %v906_v43 }
  0xb1   : > { %865 = vmatmul.bf16.gmra.mxu0 %v2231_v40  ;;  %945 = vmatmul.bf16.gmra.mxu1 %v2247_v41  ;;  %v1146_v55 = vmax.f32 %v827_v47, 0.0  ;;  %v1178_v56 = vmax.f32 %v907_v48, 0.0  ;;  %v2281_v40 = vld [vmem:[%s3010_s25 + $0x1d0] sm:$0xff] }
  0xb2   : > { %1025 = vmatmul.bf16.gmra.mxu2 %v2263_v44  ;;  %1105 = vmatmul.bf16.gmra.mxu3 %v2279_v45 }
  0xb5   : > { %v986_v49 = vpop.f32.mrf.mxu2  ;;  %v1066_v50 = vpop.f32.mrf.mxu3 }
  0xb6   : > { %v828_v51 = vpop.f32.mrf.mxu0  ;;  %v908_v52 = vpop.f32.mrf.mxu1  ;;  %v987_v61 = vadd.f32 %v3051_v46, %v986_v49  ;;  %v1067_v62 = vadd.f32 %v3051_v46, %v1066_v50 }
  0xb7   : > { %v829_v53 = vadd.f32 %v3051_v46, %v828_v51  ;;  %v909_v54 = vadd.f32 %v3051_v46, %v908_v52 }
  0xb8   : > { %v1210_v9 = vmax.f32 %v987_v61, 0.0  ;;  %v1242_v10 = vmax.f32 %v1067_v62, 0.0 }
  0xb9   : > { %v1147_v57 = vmax.f32 %v829_v53, 0.0  ;;  %v1179_v58 = vmax.f32 %v909_v54, 0.0 }
  0xbb   : > { %v2301_v59 = vpack.c.bf16 %v1147_v57, %v1146_v55  ;;  %v2381_v60 = vpack.c.bf16 %v1179_v58, %v1178_v56 }
  0xbd   : > { %2302 = vst [vmem:[%s3060_s12] sm:$0xff] %v2301_v59   ;;  %v988_v63 = vpop.f32.mrf.mxu2  ;;  %v1068_v0 = vpop.f32.mrf.mxu3 }
  0xbe   : > { %2633 = vst [vmem:[%s3060_s12 + $0x80] sm:$0xff] %v2381_v60   ;;  %v989_v3 = vadd.f32 %v3051_v46, %v988_v63  ;;  %v1069_v4 = vadd.f32 %v3051_v46, %v1068_v0  ;;  %v831_v5 = vpop.f32.mrf.mxu0  ;;  %v911_v6 = vpop.f32.mrf.mxu1 }
  0xbf   : > { %v832_v15 = vadd.f32 %v3051_v46, %v831_v5  ;;  %v912_v16 = vadd.f32 %v3051_v46, %v911_v6 }
  0xc0   : > { %v1211_v11 = vmax.f32 %v989_v3, 0.0  ;;  %v1243_v12 = vmax.f32 %v1069_v4, 0.0  ;;  %v2250_v3 = vld [vmem:[%s3010_s25 + $0xd8] sm:$0xff] }
  0xc1   : > { %870 = vmatmul.bf16.gmra.mxu0 %v2232_v1  ;;  %950 = vmatmul.bf16.gmra.mxu1 %v2248_v2  ;;  %v1148_v23 = vmax.f32 %v832_v15, 0.0  ;;  %v1180_v24 = vmax.f32 %v912_v16, 0.0  ;;  %v2234_v2 = vld [vmem:[%s3010_s25 + $0x58] sm:$0xff] }
  0xc2   : > { %v2461_v13 = vpack.c.bf16 %v1211_v11, %v1210_v9  ;;  %v2541_v14 = vpack.c.bf16 %v1243_v12, %v1242_v10  ;;  %1030 = vmatmul.bf16.gmra.mxu2 %v2264_v7  ;;  %1110 = vmatmul.bf16.gmra.mxu3 %v2280_v8  ;;  %v2266_v8 = vld [vmem:[%s3010_s25 + $0x158] sm:$0xff] }
  0xc3   : > { %v2282_v9 = vld [vmem:[%s3010_s25 + $0x1d8] sm:$0xff] }
  0xc4   : > { %2649 = vst [vmem:[%s3060_s12 + $0x100] sm:$0xff] %v2461_v13  }
  0xc5   : > { %2665 = vst [vmem:[%s3060_s12 + $0x180] sm:$0xff] %v2541_v14   ;;  %v991_v17 = vpop.f32.mrf.mxu2  ;;  %v1071_v18 = vpop.f32.mrf.mxu3 }
  0xc6   : > { %v833_v19 = vpop.f32.mrf.mxu0  ;;  %v913_v20 = vpop.f32.mrf.mxu1  ;;  %v992_v29 = vadd.f32 %v3051_v46, %v991_v17  ;;  %v1072_v30 = vadd.f32 %v3051_v46, %v1071_v18 }
  0xc7   : > { %v834_v21 = vadd.f32 %v3051_v46, %v833_v19  ;;  %v914_v22 = vadd.f32 %v3051_v46, %v913_v20 }
  0xc8   : > { %v1212_v41 = vmax.f32 %v992_v29, 0.0  ;;  %v1244_v42 = vmax.f32 %v1072_v30, 0.0 }
  0xc9   : > { %v1149_v25 = vmax.f32 %v834_v21, 0.0  ;;  %v1181_v26 = vmax.f32 %v914_v22, 0.0 }
  0xcb   : > { %v2306_v27 = vpack.c.bf16 %v1149_v25, %v1148_v23  ;;  %v2386_v28 = vpack.c.bf16 %v1181_v26, %v1180_v24 }
  0xcd   : > { %2618 = vst [vmem:[%s3060_s12 + $0x8] sm:$0xff] %v2306_v27   ;;  %v993_v31 = vpop.f32.mrf.mxu2  ;;  %v1073_v32 = vpop.f32.mrf.mxu3 }
  0xce   : > { %2634 = vst [vmem:[%s3060_s12 + $0x88] sm:$0xff] %v2386_v28   ;;  %v994_v35 = vadd.f32 %v3051_v46, %v993_v31  ;;  %v1074_v36 = vadd.f32 %v3051_v46, %v1073_v32  ;;  %v836_v37 = vpop.f32.mrf.mxu0  ;;  %v916_v38 = vpop.f32.mrf.mxu1 }
  0xcf   : > { %v837_v48 = vadd.f32 %v3051_v46, %v836_v37  ;;  %v917_v49 = vadd.f32 %v3051_v46, %v916_v38 }
  0xd0   : > { %v1213_v43 = vmax.f32 %v994_v35, 0.0  ;;  %v1245_v44 = vmax.f32 %v1074_v36, 0.0  ;;  %v2251_v35 = vld [vmem:[%s3010_s25 + $0xe0] sm:$0xff] }
  0xd1   : > { %875 = vmatmul.bf16.gmra.mxu0 %v2233_v33  ;;  %955 = vmatmul.bf16.gmra.mxu1 %v2249_v34  ;;  %v1150_v56 = vmax.f32 %v837_v48, 0.0  ;;  %v1182_v57 = vmax.f32 %v917_v49, 0.0  ;;  %v2235_v34 = vld [vmem:[%s3010_s25 + $0x60] sm:$0xff] }
  0xd2   : > { %v2466_v45 = vpack.c.bf16 %v1213_v43, %v1212_v41  ;;  %v2546_v47 = vpack.c.bf16 %v1245_v44, %v1244_v42  ;;  %1035 = vmatmul.bf16.gmra.mxu2 %v2265_v39  ;;  %1115 = vmatmul.bf16.gmra.mxu3 %v2281_v40  ;;  %v2267_v40 = vld [vmem:[%s3010_s25 + $0x160] sm:$0xff] }
  0xd3   : > { %v2283_v41 = vld [vmem:[%s3010_s25 + $0x1e0] sm:$0xff] }
  0xd4   : > { %2650 = vst [vmem:[%s3060_s12 + $0x108] sm:$0xff] %v2466_v45  }
  0xd5   : > { %2666 = vst [vmem:[%s3060_s12 + $0x188] sm:$0xff] %v2546_v47   ;;  %v996_v50 = vpop.f32.mrf.mxu2  ;;  %v1076_v51 = vpop.f32.mrf.mxu3 }
  0xd6   : > { %v838_v52 = vpop.f32.mrf.mxu0  ;;  %v918_v53 = vpop.f32.mrf.mxu1  ;;  %v997_v62 = vadd.f32 %v3051_v46, %v996_v50  ;;  %v1077_v63 = vadd.f32 %v3051_v46, %v1076_v51 }
  0xd7   : > { %v839_v54 = vadd.f32 %v3051_v46, %v838_v52  ;;  %v919_v55 = vadd.f32 %v3051_v46, %v918_v53 }
  0xd8   : > { %v1214_v10 = vmax.f32 %v997_v62, 0.0  ;;  %v1246_v11 = vmax.f32 %v1077_v63, 0.0 }
  0xd9   : > { %v1151_v58 = vmax.f32 %v839_v54, 0.0  ;;  %v1183_v59 = vmax.f32 %v919_v55, 0.0 }
  0xdb   : > { %v2311_v60 = vpack.c.bf16 %v1151_v58, %v1150_v56  ;;  %v2391_v61 = vpack.c.bf16 %v1183_v59, %v1182_v57 }
  0xdd   : > { %2619 = vst [vmem:[%s3060_s12 + $0x10] sm:$0xff] %v2311_v60   ;;  %v998_v0 = vpop.f32.mrf.mxu2  ;;  %v1078_v1 = vpop.f32.mrf.mxu3 }
  0xde   : > { %2635 = vst [vmem:[%s3060_s12 + $0x90] sm:$0xff] %v2391_v61   ;;  %v999_v4 = vadd.f32 %v3051_v46, %v998_v0  ;;  %v1079_v5 = vadd.f32 %v3051_v46, %v1078_v1  ;;  %v841_v6 = vpop.f32.mrf.mxu0  ;;  %v921_v7 = vpop.f32.mrf.mxu1 }
  0xdf   : > { %v842_v16 = vadd.f32 %v3051_v46, %v841_v6  ;;  %v922_v17 = vadd.f32 %v3051_v46, %v921_v7 }
  0xe0   : > { %v1215_v12 = vmax.f32 %v999_v4, 0.0  ;;  %v1247_v13 = vmax.f32 %v1079_v5, 0.0  ;;  %v2252_v4 = vld [vmem:[%s3010_s25 + $0xe8] sm:$0xff] }
  0xe1   : > { %880 = vmatmul.bf16.gmra.mxu0 %v2234_v2  ;;  %960 = vmatmul.bf16.gmra.mxu1 %v2250_v3  ;;  %v1152_v24 = vmax.f32 %v842_v16, 0.0  ;;  %v1184_v25 = vmax.f32 %v922_v17, 0.0  ;;  %v2236_v3 = vld [vmem:[%s3010_s25 + $0x68] sm:$0xff] }
  0xe2   : > { %v2471_v14 = vpack.c.bf16 %v1215_v12, %v1214_v10  ;;  %v2551_v15 = vpack.c.bf16 %v1247_v13, %v1246_v11  ;;  %1040 = vmatmul.bf16.gmra.mxu2 %v2266_v8  ;;  %1120 = vmatmul.bf16.gmra.mxu3 %v2282_v9  ;;  %v2268_v9 = vld [vmem:[%s3010_s25 + $0x168] sm:$0xff] }
  0xe3   : > { %v2284_v10 = vld [vmem:[%s3010_s25 + $0x1e8] sm:$0xff] }
  0xe4   : > { %2651 = vst [vmem:[%s3060_s12 + $0x110] sm:$0xff] %v2471_v14  }
  0xe5   : > { %2667 = vst [vmem:[%s3060_s12 + $0x190] sm:$0xff] %v2551_v15   ;;  %v1001_v18 = vpop.f32.mrf.mxu2  ;;  %v1081_v19 = vpop.f32.mrf.mxu3 }
  0xe6   : > { %v843_v20 = vpop.f32.mrf.mxu0  ;;  %v923_v21 = vpop.f32.mrf.mxu1  ;;  %v1002_v30 = vadd.f32 %v3051_v46, %v1001_v18  ;;  %v1082_v31 = vadd.f32 %v3051_v46, %v1081_v19 }
  0xe7   : > { %v844_v22 = vadd.f32 %v3051_v46, %v843_v20  ;;  %v924_v23 = vadd.f32 %v3051_v46, %v923_v21 }
  0xe8   : > { %v1216_v42 = vmax.f32 %v1002_v30, 0.0  ;;  %v1248_v43 = vmax.f32 %v1082_v31, 0.0 }
  0xe9   : > { %v1153_v26 = vmax.f32 %v844_v22, 0.0  ;;  %v1185_v27 = vmax.f32 %v924_v23, 0.0 }
  0xeb   : > { %v2316_v28 = vpack.c.bf16 %v1153_v26, %v1152_v24  ;;  %v2396_v29 = vpack.c.bf16 %v1185_v27, %v1184_v25 }
  0xed   : > { %2620 = vst [vmem:[%s3060_s12 + $0x18] sm:$0xff] %v2316_v28   ;;  %v1003_v32 = vpop.f32.mrf.mxu2  ;;  %v1083_v33 = vpop.f32.mrf.mxu3 }
  0xee   : > { %2636 = vst [vmem:[%s3060_s12 + $0x98] sm:$0xff] %v2396_v29   ;;  %v1004_v36 = vadd.f32 %v3051_v46, %v1003_v32  ;;  %v1084_v37 = vadd.f32 %v3051_v46, %v1083_v33  ;;  %v846_v38 = vpop.f32.mrf.mxu0  ;;  %v926_v39 = vpop.f32.mrf.mxu1 }
  0xef   : > { %v847_v49 = vadd.f32 %v3051_v46, %v846_v38  ;;  %v927_v50 = vadd.f32 %v3051_v46, %v926_v39 }
  0xf0   : > { %v1217_v44 = vmax.f32 %v1004_v36, 0.0  ;;  %v1249_v45 = vmax.f32 %v1084_v37, 0.0  ;;  %v2253_v36 = vld [vmem:[%s3010_s25 + $0xf0] sm:$0xff] }
  0xf1   : > { %885 = vmatmul.bf16.gmra.mxu0 %v2235_v34  ;;  %965 = vmatmul.bf16.gmra.mxu1 %v2251_v35  ;;  %v1154_v57 = vmax.f32 %v847_v49, 0.0  ;;  %v1186_v58 = vmax.f32 %v927_v50, 0.0  ;;  %v2237_v35 = vld [vmem:[%s3010_s25 + $0x70] sm:$0xff] }
  0xf2   : > { %v2476_v47 = vpack.c.bf16 %v1217_v44, %v1216_v42  ;;  %v2556_v48 = vpack.c.bf16 %v1249_v45, %v1248_v43  ;;  %1045 = vmatmul.bf16.gmra.mxu2 %v2267_v40  ;;  %1125 = vmatmul.bf16.gmra.mxu3 %v2283_v41  ;;  %v2269_v41 = vld [vmem:[%s3010_s25 + $0x170] sm:$0xff] }
  0xf3   : > { %v2285_v42 = vld [vmem:[%s3010_s25 + $0x1f0] sm:$0xff] }
  0xf4   : > { %2652 = vst [vmem:[%s3060_s12 + $0x118] sm:$0xff] %v2476_v47  }
  0xf5   : > { %2668 = vst [vmem:[%s3060_s12 + $0x198] sm:$0xff] %v2556_v48   ;;  %v1006_v51 = vpop.f32.mrf.mxu2  ;;  %v1086_v52 = vpop.f32.mrf.mxu3 }
  0xf6   : > { %v848_v53 = vpop.f32.mrf.mxu0  ;;  %v928_v54 = vpop.f32.mrf.mxu1  ;;  %v1007_v63 = vadd.f32 %v3051_v46, %v1006_v51  ;;  %v1087_v0 = vadd.f32 %v3051_v46, %v1086_v52 }
  0xf7   : > { %v849_v55 = vadd.f32 %v3051_v46, %v848_v53  ;;  %v929_v56 = vadd.f32 %v3051_v46, %v928_v54 }
  0xf8   : > { %v1218_v11 = vmax.f32 %v1007_v63, 0.0  ;;  %v1250_v12 = vmax.f32 %v1087_v0, 0.0 }
  0xf9   : > { %v1155_v59 = vmax.f32 %v849_v55, 0.0  ;;  %v1187_v60 = vmax.f32 %v929_v56, 0.0 }
  0xfb   : > { %v2321_v61 = vpack.c.bf16 %v1155_v59, %v1154_v57  ;;  %v2401_v62 = vpack.c.bf16 %v1187_v60, %v1186_v58 }
  0xfd   : > { %2621 = vst [vmem:[%s3060_s12 + $0x20] sm:$0xff] %v2321_v61   ;;  %v1008_v1 = vpop.f32.mrf.mxu2  ;;  %v1088_v2 = vpop.f32.mrf.mxu3 }
  0xfe   : > { %2637 = vst [vmem:[%s3060_s12 + $0xa0] sm:$0xff] %v2401_v62   ;;  %v1009_v5 = vadd.f32 %v3051_v46, %v1008_v1  ;;  %v1089_v6 = vadd.f32 %v3051_v46, %v1088_v2  ;;  %v851_v7 = vpop.f32.mrf.mxu0  ;;  %v931_v8 = vpop.f32.mrf.mxu1 }
  0xff   : > { %v852_v17 = vadd.f32 %v3051_v46, %v851_v7  ;;  %v932_v18 = vadd.f32 %v3051_v46, %v931_v8 }
 0x100   : > { %v1219_v13 = vmax.f32 %v1009_v5, 0.0  ;;  %v1251_v14 = vmax.f32 %v1089_v6, 0.0  ;;  %v2254_v5 = vld [vmem:[%s3010_s25 + $0xf8] sm:$0xff] }
 0x101   : > { %890 = vmatmul.bf16.gmra.mxu0 %v2236_v3  ;;  %970 = vmatmul.bf16.gmra.mxu1 %v2252_v4  ;;  %v1156_v25 = vmax.f32 %v852_v17, 0.0  ;;  %v1188_v26 = vmax.f32 %v932_v18, 0.0  ;;  %v2238_v4 = vld [vmem:[%s3010_s25 + $0x78] sm:$0xff] }
 0x102   : > { %v2481_v15 = vpack.c.bf16 %v1219_v13, %v1218_v11  ;;  %v2561_v16 = vpack.c.bf16 %v1251_v14, %v1250_v12  ;;  %1050 = vmatmul.bf16.gmra.mxu2 %v2268_v9  ;;  %1130 = vmatmul.bf16.gmra.mxu3 %v2284_v10  ;;  %v2270_v10 = vld [vmem:[%s3010_s25 + $0x178] sm:$0xff] }
 0x103   : > { %v2286_v11 = vld [vmem:[%s3010_s25 + $0x1f8] sm:$0xff] }
 0x104   : > { %2653 = vst [vmem:[%s3060_s12 + $0x120] sm:$0xff] %v2481_v15  }
 0x105   : > { %2669 = vst [vmem:[%s3060_s12 + $0x1a0] sm:$0xff] %v2561_v16   ;;  %v1011_v19 = vpop.f32.mrf.mxu2  ;;  %v1091_v20 = vpop.f32.mrf.mxu3 }
 0x106   : > { %v853_v21 = vpop.f32.mrf.mxu0  ;;  %v933_v22 = vpop.f32.mrf.mxu1  ;;  %v1012_v31 = vadd.f32 %v3051_v46, %v1011_v19  ;;  %v1092_v32 = vadd.f32 %v3051_v46, %v1091_v20 }
 0x107   : > { %v854_v23 = vadd.f32 %v3051_v46, %v853_v21  ;;  %v934_v24 = vadd.f32 %v3051_v46, %v933_v22 }
 0x108   : > { %v1220_v43 = vmax.f32 %v1012_v31, 0.0  ;;  %v1252_v44 = vmax.f32 %v1092_v32, 0.0 }
 0x109   : > { %v1157_v27 = vmax.f32 %v854_v23, 0.0  ;;  %v1189_v28 = vmax.f32 %v934_v24, 0.0 }
 0x10b   : > { %v2326_v29 = vpack.c.bf16 %v1157_v27, %v1156_v25  ;;  %v2406_v30 = vpack.c.bf16 %v1189_v28, %v1188_v26 }
 0x10d   : > { %2622 = vst [vmem:[%s3060_s12 + $0x28] sm:$0xff] %v2326_v29   ;;  %v1013_v33 = vpop.f32.mrf.mxu2  ;;  %v1093_v34 = vpop.f32.mrf.mxu3 }
 0x10e   : > { %2638 = vst [vmem:[%s3060_s12 + $0xa8] sm:$0xff] %v2406_v30   ;;  %v1014_v37 = vadd.f32 %v3051_v46, %v1013_v33  ;;  %v1094_v38 = vadd.f32 %v3051_v46, %v1093_v34  ;;  %v856_v39 = vpop.f32.mrf.mxu0  ;;  %v936_v40 = vpop.f32.mrf.mxu1 }
 0x10f   : > { %v857_v50 = vadd.f32 %v3051_v46, %v856_v39  ;;  %v937_v51 = vadd.f32 %v3051_v46, %v936_v40 }
 0x110   : > { %v1221_v45 = vmax.f32 %v1014_v37, 0.0  ;;  %v1253_v47 = vmax.f32 %v1094_v38, 0.0 }
 0x111   : > { %895 = vmatmul.bf16.gmra.mxu0 %v2237_v35  ;;  %975 = vmatmul.bf16.gmra.mxu1 %v2253_v36  ;;  %v1158_v58 = vmax.f32 %v857_v50, 0.0  ;;  %v1190_v59 = vmax.f32 %v937_v51, 0.0 }
 0x112   : > { %v2486_v48 = vpack.c.bf16 %v1221_v45, %v1220_v43  ;;  %v2566_v49 = vpack.c.bf16 %v1253_v47, %v1252_v44  ;;  %1055 = vmatmul.bf16.gmra.mxu2 %v2269_v41  ;;  %1135 = vmatmul.bf16.gmra.mxu3 %v2285_v42 }
 0x114   : > { %2654 = vst [vmem:[%s3060_s12 + $0x128] sm:$0xff] %v2486_v48  }
 0x115   : > { %2670 = vst [vmem:[%s3060_s12 + $0x1a8] sm:$0xff] %v2566_v49   ;;  %v1016_v52 = vpop.f32.mrf.mxu2  ;;  %v1096_v53 = vpop.f32.mrf.mxu3 }
 0x116   : > { %v858_v54 = vpop.f32.mrf.mxu0  ;;  %v938_v55 = vpop.f32.mrf.mxu1  ;;  %v1017_v0 = vadd.f32 %v3051_v46, %v1016_v52  ;;  %v1097_v1 = vadd.f32 %v3051_v46, %v1096_v53 }
 0x117   : > { %v859_v56 = vadd.f32 %v3051_v46, %v858_v54  ;;  %v939_v57 = vadd.f32 %v3051_v46, %v938_v55 }
 0x118   : > { %v1222_v12 = vmax.f32 %v1017_v0, 0.0  ;;  %v1254_v13 = vmax.f32 %v1097_v1, 0.0 }
 0x119   : > { %v1159_v60 = vmax.f32 %v859_v56, 0.0  ;;  %v1191_v61 = vmax.f32 %v939_v57, 0.0 }
 0x11b   : > { %v2331_v62 = vpack.c.bf16 %v1159_v60, %v1158_v58  ;;  %v2411_v63 = vpack.c.bf16 %v1191_v61, %v1190_v59 }
 0x11d   : > { %2623 = vst [vmem:[%s3060_s12 + $0x30] sm:$0xff] %v2331_v62   ;;  %v1018_v2 = vpop.f32.mrf.mxu2  ;;  %v1098_v3 = vpop.f32.mrf.mxu3 }
 0x11e   : > { %2639 = vst [vmem:[%s3060_s12 + $0xb0] sm:$0xff] %v2411_v63   ;;  %v1019_v6 = vadd.f32 %v3051_v46, %v1018_v2  ;;  %v1099_v7 = vadd.f32 %v3051_v46, %v1098_v3  ;;  %v861_v8 = vpop.f32.mrf.mxu0  ;;  %v941_v9 = vpop.f32.mrf.mxu1 }
 0x11f   : > { %v862_v18 = vadd.f32 %v3051_v46, %v861_v8  ;;  %v942_v19 = vadd.f32 %v3051_v46, %v941_v9 }
 0x120   : > { %v1223_v14 = vmax.f32 %v1019_v6, 0.0  ;;  %v1255_v15 = vmax.f32 %v1099_v7, 0.0 }
 0x121   : > { %900 = vmatmul.bf16.gmra.mxu0 %v2238_v4  ;;  %980 = vmatmul.bf16.gmra.mxu1 %v2254_v5  ;;  %v1160_v26 = vmax.f32 %v862_v18, 0.0  ;;  %v1192_v27 = vmax.f32 %v942_v19, 0.0 }
 0x122   : > { %v2491_v16 = vpack.c.bf16 %v1223_v14, %v1222_v12  ;;  %v2571_v17 = vpack.c.bf16 %v1255_v15, %v1254_v13  ;;  %1060 = vmatmul.bf16.gmra.mxu2 %v2270_v10  ;;  %1140 = vmatmul.bf16.gmra.mxu3 %v2286_v11 }
 0x124   : > { %2655 = vst [vmem:[%s3060_s12 + $0x130] sm:$0xff] %v2491_v16  }
 0x125   : > { %2671 = vst [vmem:[%s3060_s12 + $0x1b0] sm:$0xff] %v2571_v17   ;;  %v1021_v20 = vpop.f32.mrf.mxu2  ;;  %v1101_v21 = vpop.f32.mrf.mxu3 }
 0x126   : > { %v863_v22 = vpop.f32.mrf.mxu0  ;;  %v943_v23 = vpop.f32.mrf.mxu1  ;;  %v1022_v32 = vadd.f32 %v3051_v46, %v1021_v20  ;;  %v1102_v33 = vadd.f32 %v3051_v46, %v1101_v21 }
 0x127   : > { %v864_v24 = vadd.f32 %v3051_v46, %v863_v22  ;;  %v944_v25 = vadd.f32 %v3051_v46, %v943_v23 }
 0x128   : > { %v1224_v40 = vmax.f32 %v1022_v32, 0.0  ;;  %v1256_v41 = vmax.f32 %v1102_v33, 0.0 }
 0x129   : > { %v1161_v28 = vmax.f32 %v864_v24, 0.0  ;;  %v1193_v29 = vmax.f32 %v944_v25, 0.0 }
 0x12b   : > { %v2336_v30 = vpack.c.bf16 %v1161_v28, %v1160_v26  ;;  %v2416_v31 = vpack.c.bf16 %v1193_v29, %v1192_v27 }
 0x12d   : > { %2624 = vst [vmem:[%s3060_s12 + $0x38] sm:$0xff] %v2336_v30   ;;  %v1023_v34 = vpop.f32.mrf.mxu2  ;;  %v1103_v35 = vpop.f32.mrf.mxu3 }
 0x12e   : > { %2640 = vst [vmem:[%s3060_s12 + $0xb8] sm:$0xff] %v2416_v31   ;;  %v1024_v36 = vadd.f32 %v3051_v46, %v1023_v34  ;;  %v1104_v37 = vadd.f32 %v3051_v46, %v1103_v35  ;;  %v866_v38 = vpop.f32.mrf.mxu0  ;;  %v946_v39 = vpop.f32.mrf.mxu1 }
 0x12f   : > { %v867_v47 = vadd.f32 %v3051_v46, %v866_v38  ;;  %v947_v48 = vadd.f32 %v3051_v46, %v946_v39 }
 0x130   : > { %v1225_v42 = vmax.f32 %v1024_v36, 0.0  ;;  %v1257_v43 = vmax.f32 %v1104_v37, 0.0 }
 0x131   : > { %v1162_v55 = vmax.f32 %v867_v47, 0.0  ;;  %v1194_v56 = vmax.f32 %v947_v48, 0.0 }
 0x132   : > { %v2496_v44 = vpack.c.bf16 %v1225_v42, %v1224_v40  ;;  %v2576_v45 = vpack.c.bf16 %v1257_v43, %v1256_v41 }
 0x134   : > { %2656 = vst [vmem:[%s3060_s12 + $0x138] sm:$0xff] %v2496_v44  }
 0x135   : > { %2672 = vst [vmem:[%s3060_s12 + $0x1b8] sm:$0xff] %v2576_v45   ;;  %v1026_v49 = vpop.f32.mrf.mxu2  ;;  %v1106_v50 = vpop.f32.mrf.mxu3 }
 0x136   : > { %v868_v51 = vpop.f32.mrf.mxu0  ;;  %v948_v52 = vpop.f32.mrf.mxu1  ;;  %v1027_v61 = vadd.f32 %v3051_v46, %v1026_v49  ;;  %v1107_v62 = vadd.f32 %v3051_v46, %v1106_v50 }
 0x137   : > { %v869_v53 = vadd.f32 %v3051_v46, %v868_v51  ;;  %v949_v54 = vadd.f32 %v3051_v46, %v948_v52 }
 0x138   : > { %v1226_v5 = vmax.f32 %v1027_v61, 0.0  ;;  %v1258_v6 = vmax.f32 %v1107_v62, 0.0 }
 0x139   : > { %v1163_v57 = vmax.f32 %v869_v53, 0.0  ;;  %v1195_v58 = vmax.f32 %v949_v54, 0.0 }
 0x13b   : > { %v2341_v59 = vpack.c.bf16 %v1163_v57, %v1162_v55  ;;  %v2421_v60 = vpack.c.bf16 %v1195_v58, %v1194_v56 }
 0x13d   : > { %2625 = vst [vmem:[%s3060_s12 + $0x40] sm:$0xff] %v2341_v59   ;;  %v1028_v63 = vpop.f32.mrf.mxu2  ;;  %v1108_v0 = vpop.f32.mrf.mxu3 }
 0x13e   : > { %2641 = vst [vmem:[%s3060_s12 + $0xc0] sm:$0xff] %v2421_v60   ;;  %v1029_v1 = vadd.f32 %v3051_v46, %v1028_v63  ;;  %v1109_v2 = vadd.f32 %v3051_v46, %v1108_v0  ;;  %v871_v3 = vpop.f32.mrf.mxu0  ;;  %v951_v4 = vpop.f32.mrf.mxu1 }
 0x13f   : > { %v872_v11 = vadd.f32 %v3051_v46, %v871_v3  ;;  %v952_v12 = vadd.f32 %v3051_v46, %v951_v4 }
 0x140   : > { %v1227_v7 = vmax.f32 %v1029_v1, 0.0  ;;  %v1259_v8 = vmax.f32 %v1109_v2, 0.0 }
 0x141   : > { %v1164_v19 = vmax.f32 %v872_v11, 0.0  ;;  %v1196_v20 = vmax.f32 %v952_v12, 0.0 }
 0x142   : > { %v2501_v9 = vpack.c.bf16 %v1227_v7, %v1226_v5  ;;  %v2581_v10 = vpack.c.bf16 %v1259_v8, %v1258_v6 }
 0x144   : > { %2657 = vst [vmem:[%s3060_s12 + $0x140] sm:$0xff] %v2501_v9  }
 0x145   : > { %2673 = vst [vmem:[%s3060_s12 + $0x1c0] sm:$0xff] %v2581_v10   ;;  %v1031_v13 = vpop.f32.mrf.mxu2  ;;  %v1111_v14 = vpop.f32.mrf.mxu3 }
 0x146   : > { %v873_v15 = vpop.f32.mrf.mxu0  ;;  %v953_v16 = vpop.f32.mrf.mxu1  ;;  %v1032_v25 = vadd.f32 %v3051_v46, %v1031_v13  ;;  %v1112_v26 = vadd.f32 %v3051_v46, %v1111_v14 }
 0x147   : > { %v874_v17 = vadd.f32 %v3051_v46, %v873_v15  ;;  %v954_v18 = vadd.f32 %v3051_v46, %v953_v16 }
 0x148   : > { %v1228_v33 = vmax.f32 %v1032_v25, 0.0  ;;  %v1260_v34 = vmax.f32 %v1112_v26, 0.0 }
 0x149   : > { %v1165_v21 = vmax.f32 %v874_v17, 0.0  ;;  %v1197_v22 = vmax.f32 %v954_v18, 0.0 }
 0x14b   : > { %v2346_v23 = vpack.c.bf16 %v1165_v21, %v1164_v19  ;;  %v2426_v24 = vpack.c.bf16 %v1197_v22, %v1196_v20 }
 0x14d   : > { %2626 = vst [vmem:[%s3060_s12 + $0x48] sm:$0xff] %v2346_v23   ;;  %v1033_v27 = vpop.f32.mrf.mxu2  ;;  %v1113_v28 = vpop.f32.mrf.mxu3 }
 0x14e   : > { %2642 = vst [vmem:[%s3060_s12 + $0xc8] sm:$0xff] %v2426_v24   ;;  %v1034_v29 = vadd.f32 %v3051_v46, %v1033_v27  ;;  %v1114_v30 = vadd.f32 %v3051_v46, %v1113_v28  ;;  %v876_v31 = vpop.f32.mrf.mxu0  ;;  %v956_v32 = vpop.f32.mrf.mxu1 }
 0x14f   : > { %v877_v39 = vadd.f32 %v3051_v46, %v876_v31  ;;  %v957_v40 = vadd.f32 %v3051_v46, %v956_v32 }
 0x150   : > { %v1229_v35 = vmax.f32 %v1034_v29, 0.0  ;;  %v1261_v36 = vmax.f32 %v1114_v30, 0.0 }
 0x151   : > { %v1166_v48 = vmax.f32 %v877_v39, 0.0  ;;  %v1198_v49 = vmax.f32 %v957_v40, 0.0 }
 0x152   : > { %v2506_v37 = vpack.c.bf16 %v1229_v35, %v1228_v33  ;;  %v2586_v38 = vpack.c.bf16 %v1261_v36, %v1260_v34 }
 0x154   : > { %2658 = vst [vmem:[%s3060_s12 + $0x148] sm:$0xff] %v2506_v37  }
 0x155   : > { %2674 = vst [vmem:[%s3060_s12 + $0x1c8] sm:$0xff] %v2586_v38   ;;  %v1036_v41 = vpop.f32.mrf.mxu2  ;;  %v1116_v42 = vpop.f32.mrf.mxu3 }
 0x156   : > { %v878_v43 = vpop.f32.mrf.mxu0  ;;  %v958_v44 = vpop.f32.mrf.mxu1  ;;  %v1037_v54 = vadd.f32 %v3051_v46, %v1036_v41  ;;  %v1117_v55 = vadd.f32 %v3051_v46, %v1116_v42 }
 0x157   : > { %v879_v45 = vadd.f32 %v3051_v46, %v878_v43  ;;  %v959_v47 = vadd.f32 %v3051_v46, %v958_v44 }
 0x158   : > { %v1230_v62 = vmax.f32 %v1037_v54, 0.0  ;;  %v1262_v63 = vmax.f32 %v1117_v55, 0.0 }
 0x159   : > { %v1167_v50 = vmax.f32 %v879_v45, 0.0  ;;  %v1199_v51 = vmax.f32 %v959_v47, 0.0 }
 0x15b   : > { %v2351_v52 = vpack.c.bf16 %v1167_v50, %v1166_v48  ;;  %v2431_v53 = vpack.c.bf16 %v1199_v51, %v1198_v49 }
 0x15d   : > { %2627 = vst [vmem:[%s3060_s12 + $0x50] sm:$0xff] %v2351_v52   ;;  %v1038_v56 = vpop.f32.mrf.mxu2  ;;  %v1118_v57 = vpop.f32.mrf.mxu3 }
 0x15e   : > { %2643 = vst [vmem:[%s3060_s12 + $0xd0] sm:$0xff] %v2431_v53   ;;  %v1039_v58 = vadd.f32 %v3051_v46, %v1038_v56  ;;  %v1119_v59 = vadd.f32 %v3051_v46, %v1118_v57  ;;  %v881_v60 = vpop.f32.mrf.mxu0  ;;  %v961_v61 = vpop.f32.mrf.mxu1 }
 0x15f   : > { %v882_v4 = vadd.f32 %v3051_v46, %v881_v60  ;;  %v962_v5 = vadd.f32 %v3051_v46, %v961_v61 }
 0x160   : > { %v1231_v0 = vmax.f32 %v1039_v58, 0.0  ;;  %v1263_v1 = vmax.f32 %v1119_v59, 0.0 }
 0x161   : > { %v1168_v12 = vmax.f32 %v882_v4, 0.0  ;;  %v1200_v13 = vmax.f32 %v962_v5, 0.0 }
 0x162   : > { %v2511_v2 = vpack.c.bf16 %v1231_v0, %v1230_v62  ;;  %v2591_v3 = vpack.c.bf16 %v1263_v1, %v1262_v63 }
 0x164   : > { %2659 = vst [vmem:[%s3060_s12 + $0x150] sm:$0xff] %v2511_v2  }
 0x165   : > { %2675 = vst [vmem:[%s3060_s12 + $0x1d0] sm:$0xff] %v2591_v3   ;;  %v1041_v6 = vpop.f32.mrf.mxu2  ;;  %v1121_v7 = vpop.f32.mrf.mxu3 }
 0x166   : > { %v883_v8 = vpop.f32.mrf.mxu0  ;;  %v963_v9 = vpop.f32.mrf.mxu1  ;;  %v1042_v18 = vadd.f32 %v3051_v46, %v1041_v6  ;;  %v1122_v19 = vadd.f32 %v3051_v46, %v1121_v7 }
 0x167   : > { %v884_v10 = vadd.f32 %v3051_v46, %v883_v8  ;;  %v964_v11 = vadd.f32 %v3051_v46, %v963_v9 }
 0x168   : > { %v1232_v26 = vmax.f32 %v1042_v18, 0.0  ;;  %v1264_v27 = vmax.f32 %v1122_v19, 0.0 }
 0x169   : > { %v1169_v14 = vmax.f32 %v884_v10, 0.0  ;;  %v1201_v15 = vmax.f32 %v964_v11, 0.0 }
 0x16b   : > { %v2356_v16 = vpack.c.bf16 %v1169_v14, %v1168_v12  ;;  %v2436_v17 = vpack.c.bf16 %v1201_v15, %v1200_v13 }
 0x16d   : > { %2628 = vst [vmem:[%s3060_s12 + $0x58] sm:$0xff] %v2356_v16   ;;  %v1043_v20 = vpop.f32.mrf.mxu2  ;;  %v1123_v21 = vpop.f32.mrf.mxu3 }
 0x16e   : > { %2644 = vst [vmem:[%s3060_s12 + $0xd8] sm:$0xff] %v2436_v17   ;;  %v1044_v22 = vadd.f32 %v3051_v46, %v1043_v20  ;;  %v1124_v23 = vadd.f32 %v3051_v46, %v1123_v21  ;;  %v886_v24 = vpop.f32.mrf.mxu0  ;;  %v966_v25 = vpop.f32.mrf.mxu1 }
 0x16f   : > { %v887_v32 = vadd.f32 %v3051_v46, %v886_v24  ;;  %v967_v33 = vadd.f32 %v3051_v46, %v966_v25  ;;  %v2810_v25 = vld [vmem:[%s3412_s2] ss:$0 sm:$0xff] }
 0x170   : > { %v1233_v28 = vmax.f32 %v1044_v22, 0.0  ;;  %v1265_v29 = vmax.f32 %v1124_v23, 0.0 }
 0x171   : > { %v1170_v40 = vmax.f32 %v887_v32, 0.0  ;;  %v1202_v41 = vmax.f32 %v967_v33, 0.0 }
 0x172   : > { %v2516_v30 = vpack.c.bf16 %v1233_v28, %v1232_v26  ;;  %v2596_v31 = vpack.c.bf16 %v1265_v29, %v1264_v27 }
 0x174   : > { %2660 = vst [vmem:[%s3060_s12 + $0x158] sm:$0xff] %v2516_v30  }
 0x175   : > { %2676 = vst [vmem:[%s3060_s12 + $0x1d8] sm:$0xff] %v2596_v31   ;;  %v1046_v34 = vpop.f32.mrf.mxu2  ;;  %v1126_v35 = vpop.f32.mrf.mxu3 }
 0x176   : > { %v888_v36 = vpop.f32.mrf.mxu0  ;;  %v968_v37 = vpop.f32.mrf.mxu1  ;;  %v1047_v47 = vadd.f32 %v3051_v46, %v1046_v34  ;;  %v1127_v48 = vadd.f32 %v3051_v46, %v1126_v35 }
 0x177   : > { %v889_v38 = vadd.f32 %v3051_v46, %v888_v36  ;;  %v969_v39 = vadd.f32 %v3051_v46, %v968_v37 }
 0x178   : > { %v1234_v55 = vmax.f32 %v1047_v47, 0.0  ;;  %v1266_v56 = vmax.f32 %v1127_v48, 0.0 }
 0x179   : > { %v1171_v42 = vmax.f32 %v889_v38, 0.0  ;;  %v1203_v43 = vmax.f32 %v969_v39, 0.0 }
 0x17b   : > { %v2361_v44 = vpack.c.bf16 %v1171_v42, %v1170_v40  ;;  %v2441_v45 = vpack.c.bf16 %v1203_v43, %v1202_v41 }
 0x17d   : > { %2629 = vst [vmem:[%s3060_s12 + $0x60] sm:$0xff] %v2361_v44   ;;  %v1048_v49 = vpop.f32.mrf.mxu2  ;;  %v1128_v50 = vpop.f32.mrf.mxu3 }
 0x17e   : > { %2645 = vst [vmem:[%s3060_s12 + $0xe0] sm:$0xff] %v2441_v45   ;;  %v1049_v51 = vadd.f32 %v3051_v46, %v1048_v49  ;;  %v1129_v52 = vadd.f32 %v3051_v46, %v1128_v50  ;;  %v891_v53 = vpop.f32.mrf.mxu0  ;;  %v971_v54 = vpop.f32.mrf.mxu1 }
 0x17f   : > { %v892_v61 = vadd.f32 %v3051_v46, %v891_v53  ;;  %v972_v62 = vadd.f32 %v3051_v46, %v971_v54 }
 0x180   : > { %v1235_v57 = vmax.f32 %v1049_v51, 0.0  ;;  %v1267_v58 = vmax.f32 %v1129_v52, 0.0 }
 0x181   : > { %v1172_v5 = vmax.f32 %v892_v61, 0.0  ;;  %v1204_v6 = vmax.f32 %v972_v62, 0.0 }
 0x182   : > { %v2521_v59 = vpack.c.bf16 %v1235_v57, %v1234_v55  ;;  %v2601_v60 = vpack.c.bf16 %v1267_v58, %v1266_v56 }
 0x184   : > { %2661 = vst [vmem:[%s3060_s12 + $0x160] sm:$0xff] %v2521_v59  }
 0x185   : > { %2677 = vst [vmem:[%s3060_s12 + $0x1e0] sm:$0xff] %v2601_v60   ;;  %v1051_v63 = vpop.f32.mrf.mxu2  ;;  %v1131_v0 = vpop.f32.mrf.mxu3 }
 0x186   : > { %v893_v1 = vpop.f32.mrf.mxu0  ;;  %v973_v2 = vpop.f32.mrf.mxu1  ;;  %v1052_v11 = vadd.f32 %v3051_v46, %v1051_v63  ;;  %v1132_v12 = vadd.f32 %v3051_v46, %v1131_v0 }
 0x187   : > { %v894_v3 = vadd.f32 %v3051_v46, %v893_v1  ;;  %v974_v4 = vadd.f32 %v3051_v46, %v973_v2 }
 0x188   : > { %v1236_v19 = vmax.f32 %v1052_v11, 0.0  ;;  %v1268_v20 = vmax.f32 %v1132_v12, 0.0 }
 0x189   : > { %v1173_v7 = vmax.f32 %v894_v3, 0.0  ;;  %v1205_v8 = vmax.f32 %v974_v4, 0.0 }
 0x18b   : > { %v2366_v9 = vpack.c.bf16 %v1173_v7, %v1172_v5  ;;  %v2446_v10 = vpack.c.bf16 %v1205_v8, %v1204_v6 }
 0x18d   : > { %2630 = vst [vmem:[%s3060_s12 + $0x68] sm:$0xff] %v2366_v9   ;;  %v1053_v13 = vpop.f32.mrf.mxu2  ;;  %v1133_v14 = vpop.f32.mrf.mxu3 }
 0x18e   : > { %2646 = vst [vmem:[%s3060_s12 + $0xe8] sm:$0xff] %v2446_v10   ;;  %v1054_v15 = vadd.f32 %v3051_v46, %v1053_v13  ;;  %v1134_v16 = vadd.f32 %v3051_v46, %v1133_v14  ;;  %v896_v17 = vpop.f32.mrf.mxu0  ;;  %v976_v18 = vpop.f32.mrf.mxu1 }
 0x18f   : > { %v897_v26 = vadd.f32 %v2810_v25, %v896_v17  ;;  %v977_v27 = vadd.f32 %v2810_v25, %v976_v18 }
 0x190   : > { %v1237_v21 = vmax.f32 %v1054_v15, 0.0  ;;  %v1269_v22 = vmax.f32 %v1134_v16, 0.0 }
 0x191   : > { %v1174_v33 = vmax.f32 %v897_v26, 0.0  ;;  %v1206_v34 = vmax.f32 %v977_v27, 0.0 }
 0x192   : > { %v2526_v23 = vpack.c.bf16 %v1237_v21, %v1236_v19  ;;  %v2606_v24 = vpack.c.bf16 %v1269_v22, %v1268_v20 }
 0x194   : > { %2662 = vst [vmem:[%s3060_s12 + $0x168] sm:$0xff] %v2526_v23  }
 0x195   : > { %2678 = vst [vmem:[%s3060_s12 + $0x1e8] sm:$0xff] %v2606_v24   ;;  %v1056_v28 = vpop.f32.mrf.mxu2  ;;  %v1136_v29 = vpop.f32.mrf.mxu3 }
 0x196   : > { %v898_v46 = vpop.f32.mrf.mxu0  ;;  %v978_v30 = vpop.f32.mrf.mxu1  ;;  %v1057_v39 = vadd.f32 %v2810_v25, %v1056_v28  ;;  %v1137_v40 = vadd.f32 %v2810_v25, %v1136_v29 }
 0x197   : > { %v899_v31 = vadd.f32 %v2810_v25, %v898_v46  ;;  %v979_v32 = vadd.f32 %v2810_v25, %v978_v30 }
 0x198   : > { %v1238_v48 = vmax.f32 %v1057_v39, 0.0  ;;  %v1270_v49 = vmax.f32 %v1137_v40, 0.0 }
 0x199   : > { %v1175_v35 = vmax.f32 %v899_v31, 0.0  ;;  %v1207_v36 = vmax.f32 %v979_v32, 0.0 }
 0x19b   : > { %v2371_v37 = vpack.c.bf16 %v1175_v35, %v1174_v33  ;;  %v2451_v38 = vpack.c.bf16 %v1207_v36, %v1206_v34 }
 0x19d   : > { %2631 = vst [vmem:[%s3060_s12 + $0x70] sm:$0xff] %v2371_v37   ;;  %v1058_v41 = vpop.f32.mrf.mxu2  ;;  %v1138_v42 = vpop.f32.mrf.mxu3 }
 0x19e   : > { %2647 = vst [vmem:[%s3060_s12 + $0xf0] sm:$0xff] %v2451_v38   ;;  %v1059_v43 = vadd.f32 %v2810_v25, %v1058_v41  ;;  %v1139_v44 = vadd.f32 %v2810_v25, %v1138_v42  ;;  %v901_v45 = vpop.f32.mrf.mxu0  ;;  %v981_v47 = vpop.f32.mrf.mxu1 }
 0x19f   : > { %v902_v54 = vadd.f32 %v2810_v25, %v901_v45  ;;  %v982_v55 = vadd.f32 %v2810_v25, %v981_v47 }
 0x1a0   : > { %v1239_v50 = vmax.f32 %v1059_v43, 0.0  ;;  %v1271_v51 = vmax.f32 %v1139_v44, 0.0 }
 0x1a1   : > { %v1176_v62 = vmax.f32 %v902_v54, 0.0  ;;  %v1208_v63 = vmax.f32 %v982_v55, 0.0 }
 0x1a2   : > { %v2531_v52 = vpack.c.bf16 %v1239_v50, %v1238_v48  ;;  %v2611_v53 = vpack.c.bf16 %v1271_v51, %v1270_v49 }
 0x1a4   : > { %2663 = vst [vmem:[%s3060_s12 + $0x170] sm:$0xff] %v2531_v52  }
 0x1a5   : > { %2679 = vst [vmem:[%s3060_s12 + $0x1f0] sm:$0xff] %v2611_v53   ;;  %v1061_v56 = vpop.f32.mrf.mxu2  ;;  %v1141_v57 = vpop.f32.mrf.mxu3 }
 0x1a6   : > { %v903_v58 = vpop.f32.mrf.mxu0  ;;  %v983_v59 = vpop.f32.mrf.mxu1  ;;  %v1062_v4 = vadd.f32 %v2810_v25, %v1061_v56  ;;  %v1142_v5 = vadd.f32 %v2810_v25, %v1141_v57 }
 0x1a7   : > { %v904_v60 = vadd.f32 %v2810_v25, %v903_v58  ;;  %v984_v61 = vadd.f32 %v2810_v25, %v983_v59 }
 0x1a8   : > { %v1240_v10 = vmax.f32 %v1062_v4, 0.0  ;;  %v1272_v11 = vmax.f32 %v1142_v5, 0.0 }
 0x1a9   : > { %v1177_v0 = vmax.f32 %v904_v60, 0.0  ;;  %v1209_v1 = vmax.f32 %v984_v61, 0.0 }
 0x1ab   : > { %v2376_v2 = vpack.c.bf16 %v1177_v0, %v1176_v62  ;;  %v2456_v3 = vpack.c.bf16 %v1209_v1, %v1208_v63 }
 0x1ad   : > { %2632 = vst [vmem:[%s3060_s12 + $0x78] sm:$0xff] %v2376_v2   ;;  %v1063_v6 = vpop.f32.mrf.mxu2  ;;  %v1143_v7 = vpop.f32.mrf.mxu3 }
 0x1ae   : > { %2648 = vst [vmem:[%s3060_s12 + $0xf8] sm:$0xff] %v2456_v3   ;;  %v1064_v8 = vadd.f32 %v2810_v25, %v1063_v6  ;;  %v1144_v9 = vadd.f32 %v2810_v25, %v1143_v7 }
 0x1b0   : > { %v1241_v12 = vmax.f32 %v1064_v8, 0.0  ;;  %v1273_v13 = vmax.f32 %v1144_v9, 0.0 }
 0x1b1   : > { %1536 = sbr.rel (!%p2967_p3) target bundleno = 502 (0x1f6), region = 36 }
 0x1b2   : > { %v2536_v14 = vpack.c.bf16 %v1241_v12, %v1240_v10  ;;  %v2616_v15 = vpack.c.bf16 %v1273_v13, %v1272_v11 }
 0x1b4   : > { %2664 = vst [vmem:[%s3060_s12 + $0x178] sm:$0xff] %v2536_v14  }
 0x1b5   : > { %2680 = vst [vmem:[%s3060_s12 + $0x1f8] sm:$0xff] %v2616_v15  }
 0x1b6   : > { %s3427_s6 = smov (!%p1539_p9, %s1538_s6), 128 }
 0x1b7   : > { %s2208_s11 = sshll.u32 %s3427_s6, 2 }
 0x1b8   : > { %p2211_p10 = scmp.eq.s32.totalorder %s2208_s11, 0 }
 0x1b9   : > { %s3276_s17 = sshrl.u32 (!%p2211_p10), %s3427_s6, 5 }
 0x1ba   : > { %1548 = sbr.rel (%p2211_p10) target bundleno = 502 (0x1f6), region = 40  ;;  %p2212_p11 = scmp.le.s32.totalorder (!%p2211_p10), %s3276_s17, 0 }
 0x1bf   : > { %1838 = sbr.rel (%p2212_p11) target bundleno = 485 (0x1e5), region = 118  ;;  %s3415_s14 = smov (!%p2212_p11), %s3270_s10 }
 0x1c0   : > { %s3416_s20 = smov (!%p2212_p11), %s3060_s12  ;;  %s3285_s4 = smov (!%p2212_p11), 0  }
 0x1c1   : > { %s3287_s19 = smov (!%p2212_p11), 0  }
 0x1c4 LB: >> { %v1565_v16 = vld [vmem:[%s2889_s20] sm:$0xf]  ;;  %v1567_v17 = vld [vmem:[%s2889_s20 + $0x4] sm:$0xf]  ;;  %v1569_v18 = vld [vmem:[%s2889_s20 + $0x8] sm:$0xf]  ;;  %s2897_s19 = sphi %s3287_s19, %s1559_s19   ;;  %s2893_s4 = sphi %s3285_s4, %s3419_s4   ;;  %s2889_s20 = sphi %s3416_s20, %s3418_s20   ;;  %s2885_s14 = sphi %s3415_s14, %s3417_s14  }
 0x1c5   : >> { %1566 = vst [vmem:[%s2885_s14] sm:$0xf] %v1565_v16  ;;  %v1571_v19 = vld [vmem:[%s2889_s20 + $0xc] sm:$0xf]  ;;  %v1573_v20 = vld [vmem:[%s2889_s20 + $0x10] sm:$0xf]  ;;  %s1629_s21 = sadd.s32 1, %s2893_s4 }
 0x1c6   : >> { %1568 = vst [vmem:[%s2885_s14 + $0x4] sm:$0xf] %v1567_v17  ;;  %v1575_v21 = vld [vmem:[%s2889_s20 + $0x14] sm:$0xf]  ;;  %v1577_v22 = vld [vmem:[%s2889_s20 + $0x18] sm:$0xf]  ;;  %p1630_p12 = scmp.ge.s32.totalorder %s1629_s21, %s3276_s17 }
 0x1c7   : >> { %1570 = vst [vmem:[%s2885_s14 + $0x8] sm:$0xf] %v1569_v18  ;;  %v1579_v23 = vld [vmem:[%s2889_s20 + $0x1c] sm:$0xf]  ;;  %v1581_v24 = vld [vmem:[%s2889_s20 + $0x20] sm:$0xf] }
 0x1c8   : >> { %1572 = vst [vmem:[%s2885_s14 + $0xc] sm:$0xf] %v1571_v19  ;;  %v1583_v25 = vld [vmem:[%s2889_s20 + $0x24] sm:$0xf]  ;;  %v1585_v26 = vld [vmem:[%s2889_s20 + $0x28] sm:$0xf] }
 0x1c9   : >> { %1574 = vst [vmem:[%s2885_s14 + $0x10] sm:$0xf] %v1573_v20  ;;  %v1587_v27 = vld [vmem:[%s2889_s20 + $0x2c] sm:$0xf]  ;;  %v1589_v28 = vld [vmem:[%s2889_s20 + $0x30] sm:$0xf] }
 0x1ca   : >> { %1576 = vst [vmem:[%s2885_s14 + $0x14] sm:$0xf] %v1575_v21  ;;  %v1591_v29 = vld [vmem:[%s2889_s20 + $0x34] sm:$0xf]  ;;  %v1593_v46 = vld [vmem:[%s2889_s20 + $0x38] sm:$0xf] }
 0x1cb   : >> { %1578 = vst [vmem:[%s2885_s14 + $0x18] sm:$0xf] %v1577_v22  ;;  %v1595_v30 = vld [vmem:[%s2889_s20 + $0x3c] sm:$0xf]  ;;  %v1597_v31 = vld [vmem:[%s2889_s20 + $0x40] sm:$0xf] }
 0x1cc   : >> { %1580 = vst [vmem:[%s2885_s14 + $0x1c] sm:$0xf] %v1579_v23  ;;  %v1599_v32 = vld [vmem:[%s2889_s20 + $0x44] sm:$0xf]  ;;  %s3429_s21 = smov (%p1630_p12, %s1629_s21), 0  ;;  %s1559_s19 = sadd.s32 1, %s2897_s19  }
 0x1cd   : >> { %1582 = vst [vmem:[%s2885_s14 + $0x20] sm:$0xf] %v1581_v24  ;;  %v1601_v33 = vld [vmem:[%s2889_s20 + $0x48] sm:$0xf]  ;;  %v1603_v34 = vld [vmem:[%s2889_s20 + $0x4c] sm:$0xf]  ;;  %p1558_p13 = scmp.ge.s32.totalorder %s1559_s19, %s3276_s17  ;;  %s3419_s4 = smov %s3429_s21 }
 0x1ce   : >> { %1584 = vst [vmem:[%s2885_s14 + $0x24] sm:$0xf] %v1583_v25  ;;  %s2213_s23 = sshll.u32 %s3429_s21, 7  ;;  %v1605_v35 = vld [vmem:[%s2889_s20 + $0x50] sm:$0xf] }
 0x1cf   : >> { %1586 = vst [vmem:[%s2885_s14 + $0x28] sm:$0xf] %v1585_v26  ;;  %s3346_s24 = scalar_lea.vmem %s3060_s12, %s2213_s23 [#allocation2]   ;;  %s1635_s25 = scalar_lea.vmem %s3270_s10, %s2213_s23   ;;  %v1607_v36 = vld [vmem:[%s2889_s20 + $0x54] sm:$0xf]  ;;  %v1609_v37 = vld [vmem:[%s2889_s20 + $0x58] sm:$0xf] }
 0x1d0   : >> { %1588 = vst [vmem:[%s2885_s14 + $0x2c] sm:$0xf] %v1587_v27  ;;  %v1611_v38 = vld [vmem:[%s2889_s20 + $0x5c] sm:$0xf]  ;;  %v1613_v39 = vld [vmem:[%s2889_s20 + $0x60] sm:$0xf] }
 0x1d1   : >> { %1590 = vst [vmem:[%s2885_s14 + $0x30] sm:$0xf] %v1589_v28  ;;  %v1615_v40 = vld [vmem:[%s2889_s20 + $0x64] sm:$0xf]  ;;  %v1617_v41 = vld [vmem:[%s2889_s20 + $0x68] sm:$0xf] }
 0x1d2   : >> { %1592 = vst [vmem:[%s2885_s14 + $0x34] sm:$0xf] %v1591_v29  ;;  %v1619_v42 = vld [vmem:[%s2889_s20 + $0x6c] sm:$0xf]  ;;  %v1621_v43 = vld [vmem:[%s2889_s20 + $0x70] sm:$0xf] }
 0x1d3   : >> { %1594 = vst [vmem:[%s2885_s14 + $0x38] sm:$0xf] %v1593_v46  ;;  %v1623_v44 = vld [vmem:[%s2889_s20 + $0x74] sm:$0xf]  ;;  %v1625_v45 = vld [vmem:[%s2889_s20 + $0x78] sm:$0xf] }
 0x1d4   : >> { %1596 = vst [vmem:[%s2885_s14 + $0x3c] sm:$0xf] %v1595_v30  ;;  %v1627_v47 = vld [vmem:[%s2889_s20 + $0x7c] sm:$0xf]  ;;  %s3418_s20 = smov %s3346_s24 }
 0x1d5   : >> { %1598 = vst [vmem:[%s2885_s14 + $0x40] sm:$0xf] %v1597_v31 }
 0x1d6   : >> { %1600 = vst [vmem:[%s2885_s14 + $0x44] sm:$0xf] %v1599_v32 }
 0x1d7   : >> { %1602 = vst [vmem:[%s2885_s14 + $0x48] sm:$0xf] %v1601_v33 }
 0x1d8   : >> { %1604 = vst [vmem:[%s2885_s14 + $0x4c] sm:$0xf] %v1603_v34 }
 0x1d9   : >> { %1606 = vst [vmem:[%s2885_s14 + $0x50] sm:$0xf] %v1605_v35 }
 0x1da   : >> { %1608 = vst [vmem:[%s2885_s14 + $0x54] sm:$0xf] %v1607_v36 }
 0x1db   : >> { %1610 = vst [vmem:[%s2885_s14 + $0x58] sm:$0xf] %v1609_v37 }
 0x1dc   : >> { %1612 = vst [vmem:[%s2885_s14 + $0x5c] sm:$0xf] %v1611_v38 }
 0x1dd   : >> { %1614 = vst [vmem:[%s2885_s14 + $0x60] sm:$0xf] %v1613_v39 }
 0x1de   : >> { %1616 = vst [vmem:[%s2885_s14 + $0x64] sm:$0xf] %v1615_v40 }
 0x1df   : >> { %1618 = vst [vmem:[%s2885_s14 + $0x68] sm:$0xf] %v1617_v41 }
 0x1e0   : >> { %1620 = vst [vmem:[%s2885_s14 + $0x6c] sm:$0xf] %v1619_v42  ;;  %1561 = sbr.rel (!%p1558_p13) target bundleno = 452 (0x1c4), region = 124 }
 0x1e1   : >> { %1622 = vst [vmem:[%s2885_s14 + $0x70] sm:$0xf] %v1621_v43 }
 0x1e2   : >> { %1624 = vst [vmem:[%s2885_s14 + $0x74] sm:$0xf] %v1623_v44 }
 0x1e3   : >> { %1626 = vst [vmem:[%s2885_s14 + $0x78] sm:$0xf] %v1625_v45 }
 0x1e4   : >> { %1628 = vst [vmem:[%s2885_s14 + $0x7c] sm:$0xf] %v1627_v47  ;;  %s3417_s14 = smov %s1635_s25 }
 0x1e5 PF: > { %s3387_s26 = sand.u32 31, %s3427_s6   ;;  %s2296_s27 = sshll.u32 %s3276_s17, 7 }
 0x1e6   : > { %s1640_s28 = scalar_lea.vmem %s3060_s12, %s2296_s27 [#allocation2]   ;;  %s1642_s29 = scalar_lea.vmem %s3270_s10, %s2296_s27  }
 0x1e7   : > { %p2218_p0 = scmp.le.s32.totalorder %s3387_s26, 0 }
 0x1e8   : > { %s2899_s30 = smov (!%p2218_p0), %s1642_s29   ;;  %s2903_s5 = smov (!%p2218_p0), %s1640_s28  }
 0x1e9   : > { %1852 = sbr.rel (%p2218_p0) target bundleno = 502 (0x1f6), region = 129  ;;  %s2907_s7 = smov (!%p2218_p0), 0  }
 0x1ea   : > { %s2911_s8 = smov (!%p2218_p0), 0  }
 0x1ee LB: >> { %v1652_v48 = vld [vmem:[%s2905_s5] sm:$0xf]  ;;  %s1654_s6 = sadd.s32 1, %s2909_s7  ;;  %s1646_s8 = sadd.s32 1, %s2913_s8   ;;  %s2913_s8 = sphi %s2911_s8, %s1646_s8   ;;  %s2909_s7 = sphi %s2907_s7, %s2908_s7   ;;  %s2905_s5 = sphi %s2903_s5, %s1659_s5   ;;  %s2901_s30 = sphi %s2899_s30, %s1660_s30  }
 0x1ef   : >> { %1653 = vst [vmem:[%s2901_s30] sm:$0xf] %v1652_v48  ;;  %p1655_p1 = scmp.ge.s32.totalorder %s1654_s6, %s3387_s26  ;;  %p1645_p2 = scmp.ge.s32.totalorder %s1646_s8, %s3387_s26 }
 0x1f1   : >> { %s3431_s6 = smov (%p1655_p1, %s1654_s6), 0  ;;  %1648 = sbr.rel (!%p1645_p2) target bundleno = 494 (0x1ee), region = 135 }
 0x1f2   : >> { %s2219_s12 = sshll.u32 %s3431_s6, 2  ;;  %s2908_s7 = smov %s3431_s6  }
 0x1f3   : >> { %s1659_s5 = scalar_lea.vmem %s1640_s28, %s2219_s12 [#allocation2]   ;;  %s1660_s30 = scalar_lea.vmem %s1642_s29, %s2219_s12  }
 0x1f6 PF: > { %s13_s16 = sadd.s32 1, %s2881_s16   ;;  %s3420_s12 = smov %s2869_s13 }
 0x1f7   : > { %p10_p3 = scmp.ge.s32.totalorder %s13_s16, 10   ;;  %s3421_s13 = smov %s2976_s22 }
 0x1f8   : > { %s3422_s14 = smov %s2877_s15  ;;  %s3423_s15 = smov %s3425_s18 }
 0x1f9   :  { %12 = sbr.rel (!%p10_p3) target bundleno = 3 (0x3), region = 146 }

// kernel: encoder_forward.6
= control target key start
LH: loop header
LB: loop body
LE: loop exit
PB: predicated region body
PF: predicated region fallthrough
CT: control target
= control target key end

     0   :  { %s3772_s12 = smov 0   ;;  %s3774_s13 = smov 0   ;;  %s4433_s0 = inlined_call_operand.vmem [shape: bf16[1800,512], index: 0, kind: input, shape index: {}]   ;;  %s4434_s1 = inlined_call_operand.vmem [shape: bf16[512,128], index: 1, kind: input, shape index: {}]   ;;  %s4435_s2 = inlined_call_operand.vmem [shape: f32[1,128], index: 2, kind: input, shape index: {}]   ;;  %s4436_s3 = inlined_call_operand.vmem [shape: bf16[1800,128], index: 3, kind: output, shape index: {}]  }
   0x1   :  { %s3776_s14 = smov 0   ;;  %s3778_s15 = smov 0  }
   0x2   :  { %s3780_s16 = smov 0  }
   0x3 LB: > { %s2519_s17 = sadd.s32 4294967295, %s3718_s16   ;;  %s25_s18 = sadd.s32 1, %s3714_s15  ;;  %s3718_s16 = sphi %s3780_s16, %s13_s16   ;;  %s3714_s15 = sphi %s3778_s15, %s4446_s15   ;;  %s3710_s14 = sphi %s3776_s14, %s4445_s14   ;;  %s3706_s13 = sphi %s3774_s13, %s4444_s13   ;;  %s3702_s12 = sphi %s3772_s12, %s4443_s12  }
   0x4   : > { %p27_p0 = scmp.ge.s32.totalorder %s25_s18, 4  ;;  %s112_s19 = sadd.s32 1, %s3706_s13 }
   0x5   : > { %p122_p1 = scmp.ne.s32.totalorder %s3706_s13, %s3702_s12  ;;  %p123_p2 = scmp.eq.s32.totalorder %s2519_s17, 3 }
   0x6   : > { %s4448_s18 = smov (%p27_p0, %s25_s18), 0  ;;  %p2525_p4 = scmp.ge.s32.totalorder %s3718_s16, 1 }
   0x7   : > { %p3804_p3 = por %p123_p2, %p122_p1  ;;  %s107_s21 = ssub.s32 %s3714_s15, %s4448_s18 }
   0x8   : > { %p180_p5 = scmp.lt.s32.totalorder %s3718_s16, 5  ;;  %p110_p6 = scmp.eq.s32.totalorder %s107_s21, 0 }
   0xa   : > { %p181_p7 = pnand %p2525_p4, %p180_p5 }
   0xb   : > { %s3813_s22 = scalar_select %p110_p6, %s3706_s13, %s112_s19  }
   0xc   : > { %184 = sbr.rel (%p181_p7) target bundleno = 760 (0x2f8), region = 32  ;;  %s3852_s28 = sshll.u32 (!%p181_p7), %s3710_s14, 6 }
   0xd   : > { %p222_p8 = scmp.lt.s32.totalorder (!%p181_p7), %s3852_s28, 224  ;;  %s213_s19 = sand.u32 (!%p181_p7), 1, %s3702_s12  }
   0xe   : > { %s2526_s21 = sshll.u32 (!%p181_p7), %s213_s19, 8 }
   0xf   : > { %s4010_s12 = scalar_lea.vmem (!%p181_p7), [#allocation2], %s2526_s21  }
  0x11   : > { %v3323_v0 = vld [vmem:[%s4434_s1 + $0x38] sm:$0xff]  ;;  %v3322_v4 = vld [vmem:[%s4434_s1 + $0x30] sm:$0xff]  ;;  %v3321_v8 = vld [vmem:[%s4434_s1 + $0x28] sm:$0xff]  ;;  %s223_s26 = scalar_select %p222_p8, %s3852_s28, 224 }
  0x12   : > { %v3331_v1 = vld [vmem:[%s4434_s1 + $0x78] sm:$0xff]  ;;  %1273 = vmatpush.bf16.msra.mxu0 %v3323_v0  ;;  %v3330_v5 = vld [vmem:[%s4434_s1 + $0x70] sm:$0xff]  ;;  %v3329_v9 = vld [vmem:[%s4434_s1 + $0x68] sm:$0xff] }
  0x13   : > { %v3339_v2 = vld [vmem:[%s4434_s1 + $0xb8] sm:$0xff]  ;;  %1442 = vmatpush.bf16.msra.mxu1 %v3331_v1  ;;  %v3338_v6 = vld [vmem:[%s4434_s1 + $0xb0] sm:$0xff]  ;;  %v3337_v10 = vld [vmem:[%s4434_s1 + $0xa8] sm:$0xff]  ;;  %s3187_s9 = sshll.u32 %s223_s26, 4  ;;  %s3348_s26 = sshll.u32 (%p3804_p3), %s3710_s14, 8 }
  0x14   : > { %v3347_v3 = vld [vmem:[%s4434_s1 + $0xf8] sm:$0xff]  ;;  %1611 = vmatpush.bf16.msra.mxu2 %v3339_v2  ;;  %v3346_v7 = vld [vmem:[%s4434_s1 + $0xf0] sm:$0xff]  ;;  %v3345_v11 = vld [vmem:[%s4434_s1 + $0xe8] sm:$0xff]  ;;  %s3901_s24 = scalar_lea.vmem %s4433_s0, %s3187_s9  ;;  %s4293_s30 = scalar_lea.vmem (%p3804_p3), %s4436_s3, %s3348_s26  }
  0x15   : > { %1780 = vmatpush.bf16.msra.mxu3 %v3347_v3  ;;  %v3320_v12 = vld [vmem:[%s4434_s1 + $0x20] sm:$0xff]  ;;  %v3319_v16 = vld [vmem:[%s4434_s1 + $0x18] sm:$0xff]  ;;  %v3318_v20 = vld [vmem:[%s4434_s1 + $0x10] sm:$0xff] }
  0x16   : > { %1274 = vmatpush.bf16.msra.mxu0 %v3322_v4  ;;  %v3328_v13 = vld [vmem:[%s4434_s1 + $0x60] sm:$0xff]  ;;  %v3327_v17 = vld [vmem:[%s4434_s1 + $0x58] sm:$0xff]  ;;  %v3326_v21 = vld [vmem:[%s4434_s1 + $0x50] sm:$0xff] }
  0x17   : > { %1443 = vmatpush.bf16.msra.mxu1 %v3330_v5  ;;  %v3336_v14 = vld [vmem:[%s4434_s1 + $0xa0] sm:$0xff]  ;;  %v3335_v18 = vld [vmem:[%s4434_s1 + $0x98] sm:$0xff]  ;;  %v3334_v22 = vld [vmem:[%s4434_s1 + $0x90] sm:$0xff] }
  0x18   : > { %1612 = vmatpush.bf16.msra.mxu2 %v3338_v6  ;;  %v3344_v15 = vld [vmem:[%s4434_s1 + $0xe0] sm:$0xff]  ;;  %v3343_v19 = vld [vmem:[%s4434_s1 + $0xd8] sm:$0xff]  ;;  %v3342_v23 = vld [vmem:[%s4434_s1 + $0xd0] sm:$0xff] }
  0x19   : > { %1781 = vmatpush.bf16.msra.mxu3 %v3346_v7  ;;  %v3317_v24 = vld [vmem:[%s4434_s1 + $0x8] sm:$0xff]  ;;  %v3316_v28 = vld [vmem:[%s4434_s1] sm:$0xff]  ;;  %v3190_v33 = vld [vmem:[%s3901_s24 + $0xc] sm:$0xf0] }
  0x1a   : > { %1275 = vmatpush.bf16.msra.mxu0 %v3321_v8  ;;  %v3325_v25 = vld [vmem:[%s4434_s1 + $0x48] sm:$0xff]  ;;  %v3324_v29 = vld [vmem:[%s4434_s1 + $0x40] sm:$0xff]  ;;  %v2534_v35 = vld [vmem:[%s3901_s24 + $0x10] sm:$0xf0] }
  0x1b   : > { %1444 = vmatpush.bf16.msra.mxu1 %v3329_v9  ;;  %v3333_v26 = vld [vmem:[%s4434_s1 + $0x88] sm:$0xff]  ;;  %v3332_v30 = vld [vmem:[%s4434_s1 + $0x80] sm:$0xff]  ;;  %v3191_v37 = vld [vmem:[%s3901_s24 + $0x14] sm:$0xf0] }
  0x1c   : > { %1613 = vmatpush.bf16.msra.mxu2 %v3337_v10  ;;  %v3341_v27 = vld [vmem:[%s4434_s1 + $0xc8] sm:$0xff]  ;;  %v3340_v31 = vld [vmem:[%s4434_s1 + $0xc0] sm:$0xff]  ;;  %v2542_v39 = vld [vmem:[%s3901_s24 + $0x18] sm:$0xf0] }
  0x1d   : > { %1782 = vmatpush.bf16.msra.mxu3 %v3345_v11  ;;  %v2532_v32 = vld [vmem:[%s3901_s24] sm:$0xf]  ;;  %v3188_v34 = vld [vmem:[%s3901_s24 + $0x4] sm:$0xf]  ;;  %v2540_v36 = vld [vmem:[%s3901_s24 + $0x8] sm:$0xf] }
  0x1e   : > { %1276 = vmatpush.bf16.msra.mxu0 %v3320_v12  ;;  %v3189_v38 = vld [vmem:[%s3901_s24 + $0xc] sm:$0xf]  ;;  %v2533_v40 = vor.u32 %v3190_v33, %v2532_v32  ;;  %v2537_v41 = vor.u32 %v3188_v34, %v2534_v35  ;;  %v2541_v42 = vor.u32 %v3191_v37, %v2540_v36  ;;  %v2548_v44 = vld [vmem:[%s3901_s24 + $0x20] sm:$0xf]  ;;  %v3194_v45 = vld [vmem:[%s3901_s24 + $0x2c] sm:$0xf0] }
  0x1f   : > { %1445 = vmatpush.bf16.msra.mxu1 %v3328_v13  ;;  %v2545_v43 = vor.u32 %v3189_v38, %v2542_v39  ;;  %v3192_v46 = vld [vmem:[%s3901_s24 + $0x24] sm:$0xf]  ;;  %v2550_v47 = vld [vmem:[%s3901_s24 + $0x30] sm:$0xf0]  ;;  %v2556_v48 = vld [vmem:[%s3901_s24 + $0x28] sm:$0xf]  ;;  %v2549_v52 = vor.u32 %v3194_v45, %v2548_v44 }
  0x20   : > { %1614 = vmatpush.bf16.msra.mxu2 %v3336_v14  ;;  %v3195_v49 = vld [vmem:[%s3901_s24 + $0x34] sm:$0xf0]  ;;  %v3193_v50 = vld [vmem:[%s3901_s24 + $0x2c] sm:$0xf]  ;;  %v2558_v51 = vld [vmem:[%s3901_s24 + $0x38] sm:$0xf0]  ;;  %v2553_v53 = vor.u32 %v3192_v46, %v2550_v47 }
  0x21   : > { %1783 = vmatpush.bf16.msra.mxu3 %v3344_v15  ;;  %v2557_v54 = vor.u32 %v3195_v49, %v2556_v48  ;;  %v2561_v55 = vor.u32 %v3193_v50, %v2558_v51  ;;  %v2564_v56 = vld [vmem:[%s3901_s24 + $0x40] sm:$0xf]  ;;  %v3198_v57 = vld [vmem:[%s3901_s24 + $0x4c] sm:$0xf0]  ;;  %v3196_v58 = vld [vmem:[%s3901_s24 + $0x44] sm:$0xf] }
  0x22   : > { %1277 = vmatpush.bf16.msra.mxu0 %v3319_v16  ;;  %v2566_v59 = vld [vmem:[%s3901_s24 + $0x50] sm:$0xf0]  ;;  %v2572_v60 = vld [vmem:[%s3901_s24 + $0x48] sm:$0xf]  ;;  %v3199_v61 = vld [vmem:[%s3901_s24 + $0x54] sm:$0xf0]  ;;  %v2565_v0 = vor.u32 %v3198_v57, %v2564_v56 }
  0x23   : > { %1446 = vmatpush.bf16.msra.mxu1 %v3327_v17  ;;  %v3197_v62 = vld [vmem:[%s3901_s24 + $0x4c] sm:$0xf]  ;;  %v2574_v63 = vld [vmem:[%s3901_s24 + $0x58] sm:$0xf0]  ;;  %v2569_v1 = vor.u32 %v3196_v58, %v2566_v59  ;;  %v2573_v2 = vor.u32 %v3199_v61, %v2572_v60  ;;  %v2580_v4 = vld [vmem:[%s3901_s24 + $0x60] sm:$0xf] }
  0x24   : > { %1615 = vmatpush.bf16.msra.mxu2 %v3335_v18  ;;  %v2577_v3 = vor.u32 %v3197_v62, %v2574_v63  ;;  %v3202_v5 = vld [vmem:[%s3901_s24 + $0x6c] sm:$0xf0]  ;;  %v3200_v6 = vld [vmem:[%s3901_s24 + $0x64] sm:$0xf]  ;;  %v2582_v7 = vld [vmem:[%s3901_s24 + $0x70] sm:$0xf0] }
  0x25   : > { %1784 = vmatpush.bf16.msra.mxu3 %v3343_v19  ;;  %v2588_v8 = vld [vmem:[%s3901_s24 + $0x68] sm:$0xf]  ;;  %v3203_v9 = vld [vmem:[%s3901_s24 + $0x74] sm:$0xf0]  ;;  %v3201_v10 = vld [vmem:[%s3901_s24 + $0x6c] sm:$0xf]  ;;  %v2581_v12 = vor.u32 %v3202_v5, %v2580_v4  ;;  %v2585_v13 = vor.u32 %v3200_v6, %v2582_v7 }
  0x26   : > { %1278 = vmatpush.bf16.msra.mxu0 %v3318_v20  ;;  %v2590_v11 = vld [vmem:[%s3901_s24 + $0x78] sm:$0xf0]  ;;  %v2589_v14 = vor.u32 %v3203_v9, %v2588_v8  ;;  %v2596_v16 = vld [vmem:[%s3901_s24 + $0x80] sm:$0xf]  ;;  %v3206_v17 = vld [vmem:[%s3901_s24 + $0x8c] sm:$0xf0] }
  0x27   : > { %1447 = vmatpush.bf16.msra.mxu1 %v3326_v21  ;;  %v2593_v15 = vor.u32 %v3201_v10, %v2590_v11  ;;  %v3204_v18 = vld [vmem:[%s3901_s24 + $0x84] sm:$0xf]  ;;  %v2598_v19 = vld [vmem:[%s3901_s24 + $0x90] sm:$0xf0]  ;;  %v2604_v20 = vld [vmem:[%s3901_s24 + $0x88] sm:$0xf] }
  0x28   : > { %1616 = vmatpush.bf16.msra.mxu2 %v3334_v22  ;;  %v3207_v21 = vld [vmem:[%s3901_s24 + $0x94] sm:$0xf0]  ;;  %v3205_v22 = vld [vmem:[%s3901_s24 + $0x8c] sm:$0xf]  ;;  %v2620_v32 = vld [vmem:[%s3901_s24 + $0xa8] sm:$0xf] }
  0x29   : > { %1785 = vmatpush.bf16.msra.mxu3 %v3342_v23  ;;  %v2606_v23 = vld [vmem:[%s3901_s24 + $0x98] sm:$0xf0]  ;;  %v3211_v33 = vld [vmem:[%s3901_s24 + $0xb4] sm:$0xf0]  ;;  %v3209_v34 = vld [vmem:[%s3901_s24 + $0xac] sm:$0xf] }
  0x2a   : > { %1279 = vmatpush.bf16.msra.mxu0 %v3317_v24  ;;  %v2597_v24 = vor.u32 %v3206_v17, %v2596_v16  ;;  %v2622_v35 = vld [vmem:[%s3901_s24 + $0xb8] sm:$0xf0]  ;;  %v2621_v38 = vor.u32 %v3211_v33, %v2620_v32  ;;  %v2636_v44 = vld [vmem:[%s3901_s24 + $0xc8] sm:$0xf]  ;;  %v3215_v45 = vld [vmem:[%s3901_s24 + $0xd4] sm:$0xf0] }
  0x2b   : > { %1448 = vmatpush.bf16.msra.mxu1 %v3325_v25  ;;  %v2601_v25 = vor.u32 %v3204_v18, %v2598_v19  ;;  %v2625_v39 = vor.u32 %v3209_v34, %v2622_v35  ;;  %v3213_v46 = vld [vmem:[%s3901_s24 + $0xcc] sm:$0xf]  ;;  %v2638_v47 = vld [vmem:[%s3901_s24 + $0xd8] sm:$0xf0]  ;;  %v2637_v50 = vor.u32 %v3215_v45, %v2636_v44  ;;  %v2652_v56 = vld [vmem:[%s3901_s24 + $0xe8] sm:$0xf] }
  0x2c   : > { %1617 = vmatpush.bf16.msra.mxu2 %v3333_v26  ;;  %v2605_v26 = vor.u32 %v3207_v21, %v2604_v20  ;;  %v2641_v51 = vor.u32 %v3213_v46, %v2638_v47  ;;  %v3219_v57 = vld [vmem:[%s3901_s24 + $0xf4] sm:$0xf0]  ;;  %v3217_v58 = vld [vmem:[%s3901_s24 + $0xec] sm:$0xf]  ;;  %v2654_v59 = vld [vmem:[%s3901_s24 + $0xf8] sm:$0xf0] }
  0x2d   : > { %1786 = vmatpush.bf16.msra.mxu3 %v3341_v27  ;;  %v2609_v27 = vor.u32 %v3205_v22, %v2606_v23  ;;  %v2653_v62 = vor.u32 %v3219_v57, %v2652_v56  ;;  %v2657_v63 = vor.u32 %v3217_v58, %v2654_v59  ;;  %v2668_v4 = vld [vmem:[%s3901_s24 + $0x108] sm:$0xf]  ;;  %v3223_v5 = vld [vmem:[%s3901_s24 + $0x114] sm:$0xf0]  ;;  %v3221_v6 = vld [vmem:[%s3901_s24 + $0x10c] sm:$0xf] }
  0x2e   : > { %1280 = vmatpush.bf16.msra.mxu0 %v3316_v28  ;;  %v2612_v28 = vld [vmem:[%s3901_s24 + $0xa0] sm:$0xf]  ;;  %v2670_v7 = vld [vmem:[%s3901_s24 + $0x118] sm:$0xf0]  ;;  %v3226_v23 = vld [vmem:[%s3901_s24 + $0x12c] sm:$0xf0] }
  0x2f   : > { %1449 = vmatpush.bf16.msra.mxu1 %v3324_v29  ;;  %v3210_v29 = vld [vmem:[%s3901_s24 + $0xac] sm:$0xf0]  ;;  %v3996_v10 = vld [vmem:[%s4435_s2] ss:$0 sm:$0xff]  ;;  %v3228_v56 = vld [vmem:[%s3901_s24 + $0x144] sm:$0xf] }
  0x30   : > { %1618 = vmatpush.bf16.msra.mxu2 %v3332_v30  ;;  %v3208_v30 = vld [vmem:[%s3901_s24 + $0xa4] sm:$0xf]  ;;  %v2613_v36 = vor.u32 %v3210_v29, %v2612_v28  ;;  %v2676_v22 = vld [vmem:[%s3901_s24 + $0x120] sm:$0xf]  ;;  %v3227_v28 = vld [vmem:[%s3901_s24 + $0x134] sm:$0xf0] }
  0x31   : > { %1787 = vmatpush.bf16.msra.mxu3 %v3340_v31  ;;  %1281 = vmatmul.bf16.vlgmr.msra.gmra.mxu0 %v2533_v40  ;;  %v2614_v31 = vld [vmem:[%s3901_s24 + $0xb0] sm:$0xf0]  ;;  %v2628_v40 = vld [vmem:[%s3901_s24 + $0xc0] sm:$0xf]  ;;  %v3225_v29 = vld [vmem:[%s3901_s24 + $0x12c] sm:$0xf]  ;;  %v2677_v34 = vor.u32 %v3226_v23, %v2676_v22 }
  0x32   : > { %1450 = vmatmul.bf16.vlgmr.msra.gmra.mxu1 %v2537_v41  ;;  %v2617_v37 = vor.u32 %v3208_v30, %v2614_v31  ;;  %v3214_v41 = vld [vmem:[%s3901_s24 + $0xcc] sm:$0xf0]  ;;  %v2686_v30 = vld [vmem:[%s3901_s24 + $0x138] sm:$0xf0]  ;;  %v2694_v57 = vld [vmem:[%s3901_s24 + $0x150] sm:$0xf0] }
  0x33   : > { %1619 = vmatmul.bf16.vlgmr.msra.gmra.mxu2 %v2541_v42  ;;  %v3212_v42 = vld [vmem:[%s3901_s24 + $0xc4] sm:$0xf]  ;;  %v2629_v48 = vor.u32 %v3214_v41, %v2628_v40  ;;  %v2689_v41 = vor.u32 %v3225_v29, %v2686_v30  ;;  %v2700_v58 = vld [vmem:[%s3901_s24 + $0x148] sm:$0xf]  ;;  %v3231_v59 = vld [vmem:[%s3901_s24 + $0x154] sm:$0xf0] }
  0x34   : > { %1788 = vmatmul.bf16.vlgmr.msra.gmra.mxu3 %v2545_v43  ;;  %v2630_v43 = vld [vmem:[%s3901_s24 + $0xd0] sm:$0xf0]  ;;  %v3234_v22 = vld [vmem:[%s3901_s24 + $0x16c] sm:$0xf0]  ;;  %v2718_v29 = vld [vmem:[%s3901_s24 + $0x178] sm:$0xf0] }
  0x35   : > { %v2633_v49 = vor.u32 %v3212_v42, %v2630_v43 }
  0x41   : > { %1286 = vmatmul.bf16.gmra.mxu0 %v2549_v52  ;;  %v2644_v52 = vld [vmem:[%s3901_s24 + $0xe0] sm:$0xf] }
  0x42   : > { %1455 = vmatmul.bf16.gmra.mxu1 %v2553_v53  ;;  %v3218_v53 = vld [vmem:[%s3901_s24 + $0xec] sm:$0xf0] }
  0x43   : > { %1624 = vmatmul.bf16.gmra.mxu2 %v2557_v54  ;;  %v3216_v54 = vld [vmem:[%s3901_s24 + $0xe4] sm:$0xf]  ;;  %v2645_v60 = vor.u32 %v3218_v53, %v2644_v52  ;;  %v2692_v53 = vld [vmem:[%s3901_s24 + $0x140] sm:$0xf] }
  0x44   : > { %1793 = vmatmul.bf16.gmra.mxu3 %v2561_v55  ;;  %v2646_v55 = vld [vmem:[%s3901_s24 + $0xf0] sm:$0xf0] }
  0x45   : > { %v2649_v61 = vor.u32 %v3216_v54, %v2646_v55  ;;  %v3230_v54 = vld [vmem:[%s3901_s24 + $0x14c] sm:$0xf0] }
  0x51   : > { %1291 = vmatmul.bf16.gmra.mxu0 %v2565_v0  ;;  %v2660_v0 = vld [vmem:[%s3901_s24 + $0x100] sm:$0xf] }
  0x52   : > { %1460 = vmatmul.bf16.gmra.mxu1 %v2569_v1  ;;  %v3222_v1 = vld [vmem:[%s3901_s24 + $0x10c] sm:$0xf0] }
  0x53   : > { %1629 = vmatmul.bf16.gmra.mxu2 %v2573_v2  ;;  %v3220_v2 = vld [vmem:[%s3901_s24 + $0x104] sm:$0xf]  ;;  %v2661_v8 = vor.u32 %v3222_v1, %v2660_v0  ;;  %v2693_v1 = vor.u32 %v3230_v54, %v2692_v53  ;;  %v3238_v53 = vld [vmem:[%s3901_s24 + $0x18c] sm:$0xf0] }
  0x54   : > { %1798 = vmatmul.bf16.gmra.mxu3 %v2577_v3  ;;  %v2662_v3 = vld [vmem:[%s3901_s24 + $0x110] sm:$0xf0] }
  0x55   : > { %v2665_v9 = vor.u32 %v3220_v2, %v2662_v3  ;;  %v2697_v2 = vor.u32 %v3228_v56, %v2694_v57  ;;  %v2726_v56 = vld [vmem:[%s3901_s24 + $0x190] sm:$0xf0]  ;;  %v2732_v57 = vld [vmem:[%s3901_s24 + $0x188] sm:$0xf] }
  0x61   : > { %1296 = vmatmul.bf16.gmra.mxu0 %v2581_v12 }
  0x62   : > { %1465 = vmatmul.bf16.gmra.mxu1 %v2585_v13  ;;  %v2669_v13 = vor.u32 %v3223_v5, %v2668_v4 }
  0x63   : > { %1634 = vmatmul.bf16.gmra.mxu2 %v2589_v14  ;;  %v2673_v14 = vor.u32 %v3221_v6, %v2670_v7  ;;  %v2701_v7 = vor.u32 %v3231_v59, %v2700_v58  ;;  %v3239_v58 = vld [vmem:[%s3901_s24 + $0x194] sm:$0xf0]  ;;  %v3237_v59 = vld [vmem:[%s3901_s24 + $0x18c] sm:$0xf] }
  0x64   : > { %1803 = vmatmul.bf16.gmra.mxu3 %v2593_v15 }
  0x71   : > { %1301 = vmatmul.bf16.gmra.mxu0 %v2597_v24 }
  0x72   : > { %1470 = vmatmul.bf16.gmra.mxu1 %v2601_v25  ;;  %v3224_v25 = vld [vmem:[%s3901_s24 + $0x124] sm:$0xf] }
  0x73   : > { %1639 = vmatmul.bf16.gmra.mxu2 %v2605_v26  ;;  %v2678_v26 = vld [vmem:[%s3901_s24 + $0x130] sm:$0xf0] }
  0x74   : > { %1808 = vmatmul.bf16.gmra.mxu3 %v2609_v27  ;;  %v2684_v27 = vld [vmem:[%s3901_s24 + $0x128] sm:$0xf]  ;;  %v2681_v35 = vor.u32 %v3224_v25, %v2678_v26  ;;  %v2710_v25 = vld [vmem:[%s3901_s24 + $0x170] sm:$0xf0] }
  0x75   : > { %v2685_v40 = vor.u32 %v3227_v28, %v2684_v27  ;;  %v2716_v26 = vld [vmem:[%s3901_s24 + $0x168] sm:$0xf]  ;;  %v3235_v27 = vld [vmem:[%s3901_s24 + $0x174] sm:$0xf0]  ;;  %v3233_v28 = vld [vmem:[%s3901_s24 + $0x16c] sm:$0xf] }
  0x81   : > { %1306 = vmatmul.bf16.gmra.mxu0 %v2613_v36 }
  0x82   : > { %1475 = vmatmul.bf16.gmra.mxu1 %v2617_v37 }
  0x83   : > { %1644 = vmatmul.bf16.gmra.mxu2 %v2621_v38 }
  0x84   : > { %1813 = vmatmul.bf16.gmra.mxu3 %v2625_v39 }
  0x91   : > { %1311 = vmatmul.bf16.gmra.mxu0 %v2629_v48 }
  0x92   : > { %1480 = vmatmul.bf16.gmra.mxu1 %v2633_v49 }
  0x93   : > { %1649 = vmatmul.bf16.gmra.mxu2 %v2637_v50 }
  0x94   : > { %1818 = vmatmul.bf16.gmra.mxu3 %v2641_v51 }
  0xa1   : > { %1316 = vmatmul.bf16.gmra.mxu0 %v2645_v60  ;;  %v3229_v60 = vld [vmem:[%s3901_s24 + $0x14c] sm:$0xf] }
  0xa2   : > { %1485 = vmatmul.bf16.gmra.mxu1 %v2649_v61  ;;  %v2702_v61 = vld [vmem:[%s3901_s24 + $0x158] sm:$0xf0] }
  0xa3   : > { %1654 = vmatmul.bf16.gmra.mxu2 %v2653_v62 }
  0xa4   : > { %1823 = vmatmul.bf16.gmra.mxu3 %v2657_v63 }
  0xae   : > { %v1282_v11 = vpop.f32.mrf.mxu0 }
  0xaf   : > { %v1451_v12 = vpop.f32.mrf.mxu1  ;;  %v1283_v15 = vadd.f32 %v3996_v10, %v1282_v11 }
  0xb1   : > { %1321 = vmatmul.bf16.gmra.mxu0 %v2661_v8  ;;  %v1452_v18 = vadd.f32 %v1451_v12, %v1283_v15  ;;  %v2705_v8 = vor.u32 %v3229_v60, %v2702_v61  ;;  %v2734_v60 = vld [vmem:[%s3901_s24 + $0x198] sm:$0xf0] }
  0xb2   : > { %1490 = vmatmul.bf16.gmra.mxu1 %v2665_v9 }
  0xb3   : > { %1659 = vmatmul.bf16.gmra.mxu2 %v2669_v13 }
  0xb4   : > { %1828 = vmatmul.bf16.gmra.mxu3 %v2673_v14 }
  0xb6   : > { %v1620_v16 = vpop.f32.mrf.mxu2  ;;  %v1284_v19 = vpop.f32.mrf.mxu0 }
  0xb7   : > { %v1789_v17 = vpop.f32.mrf.mxu3  ;;  %v1453_v20 = vpop.f32.mrf.mxu1  ;;  %v1285_v21 = vadd.f32 %v3996_v10, %v1284_v19  ;;  %v1621_v24 = vadd.f32 %v1620_v16, %v1452_v18 }
  0xb9   : > { %v1454_v31 = vadd.f32 %v1453_v20, %v1285_v21  ;;  %v1790_v36 = vadd.f32 %v1789_v17, %v1621_v24  ;;  %v2708_v21 = vld [vmem:[%s3901_s24 + $0x160] sm:$0xf]  ;;  %v3232_v24 = vld [vmem:[%s3901_s24 + $0x164] sm:$0xf] }
  0xbb   : > { %v1949_v43 = vmax.f32 %v1790_v36, 0.0 }
  0xbe   : > { %v1622_v32 = vpop.f32.mrf.mxu2  ;;  %v1287_v38 = vpop.f32.mrf.mxu0 }
  0xbf   : > { %v1791_v33 = vpop.f32.mrf.mxu3  ;;  %v1623_v37 = vadd.f32 %v1622_v32, %v1454_v31  ;;  %v1456_v39 = vpop.f32.mrf.mxu1  ;;  %v1288_v45 = vadd.f32 %v3996_v10, %v1287_v38 }
  0xc1   : > { %v1792_v42 = vadd.f32 %v1791_v33, %v1623_v37  ;;  %1326 = vmatmul.bf16.gmra.mxu0 %v2677_v34  ;;  %v1457_v49 = vadd.f32 %v1456_v39, %v1288_v45  ;;  %v2709_v33 = vor.u32 %v3234_v22, %v2708_v21  ;;  %v2713_v34 = vor.u32 %v3232_v24, %v2710_v25  ;;  %v3242_v21 = vld [vmem:[%s3901_s24 + $0x1ac] sm:$0xf0]  ;;  %v2742_v24 = vld [vmem:[%s3901_s24 + $0x1b0] sm:$0xf0]  ;;  %v2748_v25 = vld [vmem:[%s3901_s24 + $0x1a8] sm:$0xf] }
  0xc2   : > { %1495 = vmatmul.bf16.gmra.mxu1 %v2681_v35  ;;  %v2717_v39 = vor.u32 %v3235_v27, %v2716_v26  ;;  %v3243_v26 = vld [vmem:[%s3901_s24 + $0x1b4] sm:$0xf0]  ;;  %v3241_v27 = vld [vmem:[%s3901_s24 + $0x1ac] sm:$0xf] }
  0xc3   : > { %v1950_v44 = vmax.f32 %v1792_v42, 0.0  ;;  %1664 = vmatmul.bf16.gmra.mxu2 %v2685_v40  ;;  %v2721_v40 = vor.u32 %v3233_v28, %v2718_v29  ;;  %v2750_v28 = vld [vmem:[%s3901_s24 + $0x1b8] sm:$0xf0] }
  0xc4   : > { %1833 = vmatmul.bf16.gmra.mxu3 %v2689_v41 }
  0xc5   : > { %v3354_v46 = vpack.c.bf16 %v1950_v44, %v1949_v43 }
  0xc6   : > { %v1625_v47 = vpop.f32.mrf.mxu2  ;;  %v1289_v50 = vpop.f32.mrf.mxu0 }
  0xc7   : > { %v1794_v48 = vpop.f32.mrf.mxu3  ;;  %3355 = vst [vmem:[%s4010_s12] sm:$0xff] %v3354_v46   ;;  %v1458_v51 = vpop.f32.mrf.mxu1  ;;  %v1290_v52 = vadd.f32 %v3996_v10, %v1289_v50  ;;  %v1626_v55 = vadd.f32 %v1625_v47, %v1457_v49 }
  0xc9   : > { %v1459_v62 = vadd.f32 %v1458_v51, %v1290_v52  ;;  %v1795_v3 = vadd.f32 %v1794_v48, %v1626_v55  ;;  %v2724_v52 = vld [vmem:[%s3901_s24 + $0x180] sm:$0xf]  ;;  %v3236_v55 = vld [vmem:[%s3901_s24 + $0x184] sm:$0xf] }
  0xcb   : > { %v1951_v11 = vmax.f32 %v1795_v3, 0.0 }
  0xce   : > { %v1627_v63 = vpop.f32.mrf.mxu2  ;;  %v1292_v5 = vpop.f32.mrf.mxu0 }
  0xcf   : > { %v1796_v0 = vpop.f32.mrf.mxu3  ;;  %v1628_v4 = vadd.f32 %v1627_v63, %v1459_v62  ;;  %v1461_v6 = vpop.f32.mrf.mxu1  ;;  %v1293_v13 = vadd.f32 %v3996_v10, %v1292_v5 }
  0xd1   : > { %v1797_v9 = vadd.f32 %v1796_v0, %v1628_v4  ;;  %1331 = vmatmul.bf16.gmra.mxu0 %v2693_v1  ;;  %v1462_v17 = vadd.f32 %v1461_v6, %v1293_v13  ;;  %v2725_v0 = vor.u32 %v3238_v53, %v2724_v52  ;;  %v2729_v1 = vor.u32 %v3236_v55, %v2726_v56  ;;  %v3246_v52 = vld [vmem:[%s3901_s24 + $0x1cc] sm:$0xf0]  ;;  %v2758_v55 = vld [vmem:[%s3901_s24 + $0x1d0] sm:$0xf0]  ;;  %v2764_v56 = vld [vmem:[%s3901_s24 + $0x1c8] sm:$0xf] }
  0xd2   : > { %1500 = vmatmul.bf16.gmra.mxu1 %v2697_v2  ;;  %v2733_v6 = vor.u32 %v3239_v58, %v2732_v57  ;;  %v3247_v57 = vld [vmem:[%s3901_s24 + $0x1d4] sm:$0xf0]  ;;  %v3245_v58 = vld [vmem:[%s3901_s24 + $0x1cc] sm:$0xf] }
  0xd3   : > { %v1952_v12 = vmax.f32 %v1797_v9, 0.0  ;;  %1669 = vmatmul.bf16.gmra.mxu2 %v2701_v7  ;;  %v2737_v7 = vor.u32 %v3237_v59, %v2734_v60  ;;  %v2766_v59 = vld [vmem:[%s3901_s24 + $0x1d8] sm:$0xf0] }
  0xd4   : > { %1838 = vmatmul.bf16.gmra.mxu3 %v2705_v8 }
  0xd5   : > { %v3359_v14 = vpack.c.bf16 %v1952_v12, %v1951_v11 }
  0xd6   : > { %v1630_v15 = vpop.f32.mrf.mxu2  ;;  %v1294_v18 = vpop.f32.mrf.mxu0 }
  0xd7   : > { %v1799_v16 = vpop.f32.mrf.mxu3  ;;  %3511 = vst [vmem:[%s4010_s12 + $0x8] sm:$0xff] %v3359_v14   ;;  %v1463_v19 = vpop.f32.mrf.mxu1  ;;  %v1295_v20 = vadd.f32 %v3996_v10, %v1294_v18  ;;  %v1631_v23 = vadd.f32 %v1630_v15, %v1462_v17 }
  0xd9   : > { %v1464_v30 = vadd.f32 %v1463_v19, %v1295_v20  ;;  %v1800_v35 = vadd.f32 %v1799_v16, %v1631_v23  ;;  %v2740_v20 = vld [vmem:[%s3901_s24 + $0x1a0] sm:$0xf]  ;;  %v3240_v23 = vld [vmem:[%s3901_s24 + $0x1a4] sm:$0xf] }
  0xdb   : > { %v1953_v42 = vmax.f32 %v1800_v35, 0.0 }
  0xde   : > { %v1632_v31 = vpop.f32.mrf.mxu2  ;;  %v1297_v37 = vpop.f32.mrf.mxu0 }
  0xdf   : > { %v1801_v32 = vpop.f32.mrf.mxu3  ;;  %v1633_v36 = vadd.f32 %v1632_v31, %v1464_v30  ;;  %v1466_v38 = vpop.f32.mrf.mxu1  ;;  %v1298_v44 = vadd.f32 %v3996_v10, %v1297_v37 }
  0xe1   : > { %v1802_v41 = vadd.f32 %v1801_v32, %v1633_v36  ;;  %1336 = vmatmul.bf16.gmra.mxu0 %v2709_v33  ;;  %v1467_v48 = vadd.f32 %v1466_v38, %v1298_v44  ;;  %v2741_v32 = vor.u32 %v3242_v21, %v2740_v20  ;;  %v2745_v33 = vor.u32 %v3240_v23, %v2742_v24  ;;  %v3250_v20 = vld [vmem:[%s3901_s24 + $0x1ec] sm:$0xf0]  ;;  %v2774_v23 = vld [vmem:[%s3901_s24 + $0x1f0] sm:$0xf0]  ;;  %v2780_v24 = vld [vmem:[%s3901_s24 + $0x1e8] sm:$0xf] }
  0xe2   : > { %1505 = vmatmul.bf16.gmra.mxu1 %v2713_v34  ;;  %v2749_v38 = vor.u32 %v3243_v26, %v2748_v25  ;;  %v3251_v25 = vld [vmem:[%s3901_s24 + $0x1f4] sm:$0xf0]  ;;  %v3249_v26 = vld [vmem:[%s3901_s24 + $0x1ec] sm:$0xf] }
  0xe3   : > { %v1954_v43 = vmax.f32 %v1802_v41, 0.0  ;;  %1674 = vmatmul.bf16.gmra.mxu2 %v2717_v39  ;;  %v2753_v39 = vor.u32 %v3241_v27, %v2750_v28  ;;  %v2782_v27 = vld [vmem:[%s3901_s24 + $0x1f8] sm:$0xf0] }
  0xe4   : > { %1843 = vmatmul.bf16.gmra.mxu3 %v2721_v40 }
  0xe5   : > { %v3364_v45 = vpack.c.bf16 %v1954_v43, %v1953_v42 }
  0xe6   : > { %v1635_v46 = vpop.f32.mrf.mxu2  ;;  %v1299_v49 = vpop.f32.mrf.mxu0 }
  0xe7   : > { %v1804_v47 = vpop.f32.mrf.mxu3  ;;  %3512 = vst [vmem:[%s4010_s12 + $0x10] sm:$0xff] %v3364_v45   ;;  %v1468_v50 = vpop.f32.mrf.mxu1  ;;  %v1300_v51 = vadd.f32 %v3996_v10, %v1299_v49  ;;  %v1636_v54 = vadd.f32 %v1635_v46, %v1467_v48 }
  0xe9   : > { %v1469_v61 = vadd.f32 %v1468_v50, %v1300_v51  ;;  %v1805_v2 = vadd.f32 %v1804_v47, %v1636_v54  ;;  %v2756_v51 = vld [vmem:[%s3901_s24 + $0x1c0] sm:$0xf]  ;;  %v3244_v54 = vld [vmem:[%s3901_s24 + $0x1c4] sm:$0xf] }
  0xeb   : > { %v1955_v9 = vmax.f32 %v1805_v2, 0.0 }
  0xee   : > { %v1637_v62 = vpop.f32.mrf.mxu2  ;;  %v1302_v4 = vpop.f32.mrf.mxu0 }
  0xef   : > { %v1806_v63 = vpop.f32.mrf.mxu3  ;;  %v1638_v3 = vadd.f32 %v1637_v62, %v1469_v61  ;;  %v1471_v5 = vpop.f32.mrf.mxu1  ;;  %v1303_v12 = vadd.f32 %v3996_v10, %v1302_v4 }
  0xf1   : > { %v1807_v8 = vadd.f32 %v1806_v63, %v1638_v3  ;;  %1341 = vmatmul.bf16.gmra.mxu0 %v2725_v0  ;;  %v1472_v16 = vadd.f32 %v1471_v5, %v1303_v12  ;;  %v2757_v63 = vor.u32 %v3246_v52, %v2756_v51  ;;  %v2761_v0 = vor.u32 %v3244_v54, %v2758_v55  ;;  %v3254_v51 = vld [vmem:[%s3901_s24 + $0x20c] sm:$0xf0]  ;;  %v2790_v54 = vld [vmem:[%s3901_s24 + $0x210] sm:$0xf0]  ;;  %v2796_v55 = vld [vmem:[%s3901_s24 + $0x208] sm:$0xf] }
  0xf2   : > { %1510 = vmatmul.bf16.gmra.mxu1 %v2729_v1  ;;  %v2765_v5 = vor.u32 %v3247_v57, %v2764_v56  ;;  %v3255_v56 = vld [vmem:[%s3901_s24 + $0x214] sm:$0xf0]  ;;  %v3253_v57 = vld [vmem:[%s3901_s24 + $0x20c] sm:$0xf] }
  0xf3   : > { %v1956_v11 = vmax.f32 %v1807_v8, 0.0  ;;  %1679 = vmatmul.bf16.gmra.mxu2 %v2733_v6  ;;  %v2769_v6 = vor.u32 %v3245_v58, %v2766_v59  ;;  %v2798_v58 = vld [vmem:[%s3901_s24 + $0x218] sm:$0xf0] }
  0xf4   : > { %1848 = vmatmul.bf16.gmra.mxu3 %v2737_v7 }
  0xf5   : > { %v3369_v13 = vpack.c.bf16 %v1956_v11, %v1955_v9 }
  0xf6   : > { %v1640_v14 = vpop.f32.mrf.mxu2  ;;  %v1304_v17 = vpop.f32.mrf.mxu0 }
  0xf7   : > { %v1809_v15 = vpop.f32.mrf.mxu3  ;;  %3513 = vst [vmem:[%s4010_s12 + $0x18] sm:$0xff] %v3369_v13   ;;  %v1473_v18 = vpop.f32.mrf.mxu1  ;;  %v1305_v19 = vadd.f32 %v3996_v10, %v1304_v17  ;;  %v1641_v22 = vadd.f32 %v1640_v14, %v1472_v16 }
  0xf9   : > { %v1474_v29 = vadd.f32 %v1473_v18, %v1305_v19  ;;  %v1810_v34 = vadd.f32 %v1809_v15, %v1641_v22  ;;  %v2772_v19 = vld [vmem:[%s3901_s24 + $0x1e0] sm:$0xf]  ;;  %v3248_v22 = vld [vmem:[%s3901_s24 + $0x1e4] sm:$0xf] }
  0xfb   : > { %v1957_v41 = vmax.f32 %v1810_v34, 0.0 }
  0xfe   : > { %v1642_v30 = vpop.f32.mrf.mxu2  ;;  %v1307_v36 = vpop.f32.mrf.mxu0 }
  0xff   : > { %v1811_v31 = vpop.f32.mrf.mxu3  ;;  %v1643_v35 = vadd.f32 %v1642_v30, %v1474_v29  ;;  %v1476_v37 = vpop.f32.mrf.mxu1  ;;  %v1308_v43 = vadd.f32 %v3996_v10, %v1307_v36 }
 0x101   : > { %v1812_v40 = vadd.f32 %v1811_v31, %v1643_v35  ;;  %1346 = vmatmul.bf16.gmra.mxu0 %v2741_v32  ;;  %v1477_v47 = vadd.f32 %v1476_v37, %v1308_v43  ;;  %v2773_v31 = vor.u32 %v3250_v20, %v2772_v19  ;;  %v2777_v32 = vor.u32 %v3248_v22, %v2774_v23  ;;  %v3258_v19 = vld [vmem:[%s3901_s24 + $0x22c] sm:$0xf0]  ;;  %v2806_v22 = vld [vmem:[%s3901_s24 + $0x230] sm:$0xf0]  ;;  %v2812_v23 = vld [vmem:[%s3901_s24 + $0x228] sm:$0xf] }
 0x102   : > { %1515 = vmatmul.bf16.gmra.mxu1 %v2745_v33  ;;  %v2781_v37 = vor.u32 %v3251_v25, %v2780_v24  ;;  %v3259_v24 = vld [vmem:[%s3901_s24 + $0x234] sm:$0xf0]  ;;  %v3257_v25 = vld [vmem:[%s3901_s24 + $0x22c] sm:$0xf] }
 0x103   : > { %v1958_v42 = vmax.f32 %v1812_v40, 0.0  ;;  %1684 = vmatmul.bf16.gmra.mxu2 %v2749_v38  ;;  %v2785_v38 = vor.u32 %v3249_v26, %v2782_v27  ;;  %v2814_v26 = vld [vmem:[%s3901_s24 + $0x238] sm:$0xf0] }
 0x104   : > { %1853 = vmatmul.bf16.gmra.mxu3 %v2753_v39 }
 0x105   : > { %v3374_v44 = vpack.c.bf16 %v1958_v42, %v1957_v41 }
 0x106   : > { %v1645_v45 = vpop.f32.mrf.mxu2  ;;  %v1309_v48 = vpop.f32.mrf.mxu0 }
 0x107   : > { %v1814_v46 = vpop.f32.mrf.mxu3  ;;  %3514 = vst [vmem:[%s4010_s12 + $0x20] sm:$0xff] %v3374_v44   ;;  %v1478_v49 = vpop.f32.mrf.mxu1  ;;  %v1310_v50 = vadd.f32 %v3996_v10, %v1309_v48  ;;  %v1646_v53 = vadd.f32 %v1645_v45, %v1477_v47 }
 0x109   : > { %v1479_v60 = vadd.f32 %v1478_v49, %v1310_v50  ;;  %v1815_v1 = vadd.f32 %v1814_v46, %v1646_v53  ;;  %v2788_v50 = vld [vmem:[%s3901_s24 + $0x200] sm:$0xf]  ;;  %v3252_v53 = vld [vmem:[%s3901_s24 + $0x204] sm:$0xf] }
 0x10b   : > { %v1959_v8 = vmax.f32 %v1815_v1, 0.0 }
 0x10e   : > { %v1647_v61 = vpop.f32.mrf.mxu2  ;;  %v1312_v3 = vpop.f32.mrf.mxu0 }
 0x10f   : > { %v1816_v62 = vpop.f32.mrf.mxu3  ;;  %v1648_v2 = vadd.f32 %v1647_v61, %v1479_v60  ;;  %v1481_v4 = vpop.f32.mrf.mxu1  ;;  %v1313_v11 = vadd.f32 %v3996_v10, %v1312_v3 }
 0x111   : > { %v1817_v7 = vadd.f32 %v1816_v62, %v1648_v2  ;;  %1351 = vmatmul.bf16.gmra.mxu0 %v2757_v63  ;;  %v1482_v15 = vadd.f32 %v1481_v4, %v1313_v11  ;;  %v2789_v62 = vor.u32 %v3254_v51, %v2788_v50  ;;  %v2793_v63 = vor.u32 %v3252_v53, %v2790_v54  ;;  %v3262_v50 = vld [vmem:[%s3901_s24 + $0x24c] sm:$0xf0]  ;;  %v2822_v53 = vld [vmem:[%s3901_s24 + $0x250] sm:$0xf0]  ;;  %v2828_v54 = vld [vmem:[%s3901_s24 + $0x248] sm:$0xf] }
 0x112   : > { %1520 = vmatmul.bf16.gmra.mxu1 %v2761_v0  ;;  %v2797_v4 = vor.u32 %v3255_v56, %v2796_v55  ;;  %v3263_v55 = vld [vmem:[%s3901_s24 + $0x254] sm:$0xf0]  ;;  %v3261_v56 = vld [vmem:[%s3901_s24 + $0x24c] sm:$0xf] }
 0x113   : > { %v1960_v9 = vmax.f32 %v1817_v7, 0.0  ;;  %1689 = vmatmul.bf16.gmra.mxu2 %v2765_v5  ;;  %v2801_v5 = vor.u32 %v3253_v57, %v2798_v58  ;;  %v2830_v57 = vld [vmem:[%s3901_s24 + $0x258] sm:$0xf0] }
 0x114   : > { %1858 = vmatmul.bf16.gmra.mxu3 %v2769_v6 }
 0x115   : > { %v3379_v12 = vpack.c.bf16 %v1960_v9, %v1959_v8 }
 0x116   : > { %v1650_v13 = vpop.f32.mrf.mxu2  ;;  %v1314_v16 = vpop.f32.mrf.mxu0 }
 0x117   : > { %v1819_v14 = vpop.f32.mrf.mxu3  ;;  %3515 = vst [vmem:[%s4010_s12 + $0x28] sm:$0xff] %v3379_v12   ;;  %v1483_v17 = vpop.f32.mrf.mxu1  ;;  %v1315_v18 = vadd.f32 %v3996_v10, %v1314_v16  ;;  %v1651_v21 = vadd.f32 %v1650_v13, %v1482_v15 }
 0x119   : > { %v1484_v28 = vadd.f32 %v1483_v17, %v1315_v18  ;;  %v1820_v33 = vadd.f32 %v1819_v14, %v1651_v21  ;;  %v2804_v18 = vld [vmem:[%s3901_s24 + $0x220] sm:$0xf]  ;;  %v3256_v21 = vld [vmem:[%s3901_s24 + $0x224] sm:$0xf] }
 0x11b   : > { %v1961_v40 = vmax.f32 %v1820_v33, 0.0 }
 0x11e   : > { %v1652_v29 = vpop.f32.mrf.mxu2  ;;  %v1317_v35 = vpop.f32.mrf.mxu0 }
 0x11f   : > { %v1821_v30 = vpop.f32.mrf.mxu3  ;;  %v1653_v34 = vadd.f32 %v1652_v29, %v1484_v28  ;;  %v1486_v36 = vpop.f32.mrf.mxu1  ;;  %v1318_v42 = vadd.f32 %v3996_v10, %v1317_v35 }
 0x121   : > { %v1822_v39 = vadd.f32 %v1821_v30, %v1653_v34  ;;  %1356 = vmatmul.bf16.gmra.mxu0 %v2773_v31  ;;  %v1487_v46 = vadd.f32 %v1486_v36, %v1318_v42  ;;  %v2805_v30 = vor.u32 %v3258_v19, %v2804_v18  ;;  %v2809_v31 = vor.u32 %v3256_v21, %v2806_v22  ;;  %v3266_v18 = vld [vmem:[%s3901_s24 + $0x26c] sm:$0xf0]  ;;  %v2838_v21 = vld [vmem:[%s3901_s24 + $0x270] sm:$0xf0]  ;;  %v2844_v22 = vld [vmem:[%s3901_s24 + $0x268] sm:$0xf] }
 0x122   : > { %1525 = vmatmul.bf16.gmra.mxu1 %v2777_v32  ;;  %v2813_v36 = vor.u32 %v3259_v24, %v2812_v23  ;;  %v3267_v23 = vld [vmem:[%s3901_s24 + $0x274] sm:$0xf0]  ;;  %v3265_v24 = vld [vmem:[%s3901_s24 + $0x26c] sm:$0xf] }
 0x123   : > { %v1962_v41 = vmax.f32 %v1822_v39, 0.0  ;;  %1694 = vmatmul.bf16.gmra.mxu2 %v2781_v37  ;;  %v2817_v37 = vor.u32 %v3257_v25, %v2814_v26  ;;  %v2846_v25 = vld [vmem:[%s3901_s24 + $0x278] sm:$0xf0] }
 0x124   : > { %1863 = vmatmul.bf16.gmra.mxu3 %v2785_v38 }
 0x125   : > { %v3384_v43 = vpack.c.bf16 %v1962_v41, %v1961_v40 }
 0x126   : > { %v1655_v44 = vpop.f32.mrf.mxu2  ;;  %v1319_v47 = vpop.f32.mrf.mxu0 }
 0x127   : > { %v1824_v45 = vpop.f32.mrf.mxu3  ;;  %3516 = vst [vmem:[%s4010_s12 + $0x30] sm:$0xff] %v3384_v43   ;;  %v1488_v48 = vpop.f32.mrf.mxu1  ;;  %v1320_v49 = vadd.f32 %v3996_v10, %v1319_v47  ;;  %v1656_v52 = vadd.f32 %v1655_v44, %v1487_v46 }
 0x129   : > { %v1489_v59 = vadd.f32 %v1488_v48, %v1320_v49  ;;  %v1825_v0 = vadd.f32 %v1824_v45, %v1656_v52  ;;  %v2820_v49 = vld [vmem:[%s3901_s24 + $0x240] sm:$0xf]  ;;  %v3260_v52 = vld [vmem:[%s3901_s24 + $0x244] sm:$0xf] }
 0x12b   : > { %v1963_v7 = vmax.f32 %v1825_v0, 0.0 }
 0x12e   : > { %v1657_v60 = vpop.f32.mrf.mxu2  ;;  %v1322_v2 = vpop.f32.mrf.mxu0 }
 0x12f   : > { %v1826_v61 = vpop.f32.mrf.mxu3  ;;  %v1658_v1 = vadd.f32 %v1657_v60, %v1489_v59  ;;  %v1491_v3 = vpop.f32.mrf.mxu1  ;;  %v1323_v9 = vadd.f32 %v3996_v10, %v1322_v2 }
 0x131   : > { %v1827_v6 = vadd.f32 %v1826_v61, %v1658_v1  ;;  %1361 = vmatmul.bf16.gmra.mxu0 %v2789_v62  ;;  %v1492_v14 = vadd.f32 %v1491_v3, %v1323_v9  ;;  %v2821_v61 = vor.u32 %v3262_v50, %v2820_v49  ;;  %v2825_v62 = vor.u32 %v3260_v52, %v2822_v53  ;;  %v3270_v49 = vld [vmem:[%s3901_s24 + $0x28c] sm:$0xf0]  ;;  %v2854_v52 = vld [vmem:[%s3901_s24 + $0x290] sm:$0xf0]  ;;  %v2860_v53 = vld [vmem:[%s3901_s24 + $0x288] sm:$0xf] }
 0x132   : > { %1530 = vmatmul.bf16.gmra.mxu1 %v2793_v63  ;;  %v2829_v3 = vor.u32 %v3263_v55, %v2828_v54  ;;  %v3271_v54 = vld [vmem:[%s3901_s24 + $0x294] sm:$0xf0]  ;;  %v3269_v55 = vld [vmem:[%s3901_s24 + $0x28c] sm:$0xf] }
 0x133   : > { %v1964_v8 = vmax.f32 %v1827_v6, 0.0  ;;  %1699 = vmatmul.bf16.gmra.mxu2 %v2797_v4  ;;  %v2833_v4 = vor.u32 %v3261_v56, %v2830_v57  ;;  %v2862_v56 = vld [vmem:[%s3901_s24 + $0x298] sm:$0xf0] }
 0x134   : > { %1868 = vmatmul.bf16.gmra.mxu3 %v2801_v5 }
 0x135   : > { %v3389_v11 = vpack.c.bf16 %v1964_v8, %v1963_v7 }
 0x136   : > { %v1660_v12 = vpop.f32.mrf.mxu2  ;;  %v1324_v15 = vpop.f32.mrf.mxu0 }
 0x137   : > { %v1829_v13 = vpop.f32.mrf.mxu3  ;;  %3517 = vst [vmem:[%s4010_s12 + $0x38] sm:$0xff] %v3389_v11   ;;  %v1493_v16 = vpop.f32.mrf.mxu1  ;;  %v1325_v17 = vadd.f32 %v3996_v10, %v1324_v15  ;;  %v1661_v20 = vadd.f32 %v1660_v12, %v1492_v14 }
 0x139   : > { %v1494_v27 = vadd.f32 %v1493_v16, %v1325_v17  ;;  %v1830_v32 = vadd.f32 %v1829_v13, %v1661_v20  ;;  %v2836_v17 = vld [vmem:[%s3901_s24 + $0x260] sm:$0xf]  ;;  %v3264_v20 = vld [vmem:[%s3901_s24 + $0x264] sm:$0xf] }
 0x13b   : > { %v1965_v39 = vmax.f32 %v1830_v32, 0.0 }
 0x13e   : > { %v1662_v28 = vpop.f32.mrf.mxu2  ;;  %v1327_v34 = vpop.f32.mrf.mxu0 }
 0x13f   : > { %v1831_v29 = vpop.f32.mrf.mxu3  ;;  %v1663_v33 = vadd.f32 %v1662_v28, %v1494_v27  ;;  %v1496_v35 = vpop.f32.mrf.mxu1  ;;  %v1328_v41 = vadd.f32 %v3996_v10, %v1327_v34 }
 0x141   : > { %v1832_v38 = vadd.f32 %v1831_v29, %v1663_v33  ;;  %1366 = vmatmul.bf16.gmra.mxu0 %v2805_v30  ;;  %v1497_v45 = vadd.f32 %v1496_v35, %v1328_v41  ;;  %v2837_v29 = vor.u32 %v3266_v18, %v2836_v17  ;;  %v2841_v30 = vor.u32 %v3264_v20, %v2838_v21  ;;  %v3274_v17 = vld [vmem:[%s3901_s24 + $0x2ac] sm:$0xf0]  ;;  %v2870_v20 = vld [vmem:[%s3901_s24 + $0x2b0] sm:$0xf0]  ;;  %v2876_v21 = vld [vmem:[%s3901_s24 + $0x2a8] sm:$0xf] }
 0x142   : > { %1535 = vmatmul.bf16.gmra.mxu1 %v2809_v31  ;;  %v2845_v35 = vor.u32 %v3267_v23, %v2844_v22  ;;  %v3275_v22 = vld [vmem:[%s3901_s24 + $0x2b4] sm:$0xf0]  ;;  %v3273_v23 = vld [vmem:[%s3901_s24 + $0x2ac] sm:$0xf] }
 0x143   : > { %v1966_v40 = vmax.f32 %v1832_v38, 0.0  ;;  %1704 = vmatmul.bf16.gmra.mxu2 %v2813_v36  ;;  %v2849_v36 = vor.u32 %v3265_v24, %v2846_v25  ;;  %v2878_v24 = vld [vmem:[%s3901_s24 + $0x2b8] sm:$0xf0] }
 0x144   : > { %1873 = vmatmul.bf16.gmra.mxu3 %v2817_v37 }
 0x145   : > { %v3394_v42 = vpack.c.bf16 %v1966_v40, %v1965_v39 }
 0x146   : > { %v1665_v43 = vpop.f32.mrf.mxu2  ;;  %v1329_v46 = vpop.f32.mrf.mxu0 }
 0x147   : > { %v1834_v44 = vpop.f32.mrf.mxu3  ;;  %3518 = vst [vmem:[%s4010_s12 + $0x40] sm:$0xff] %v3394_v42   ;;  %v1498_v47 = vpop.f32.mrf.mxu1  ;;  %v1330_v48 = vadd.f32 %v3996_v10, %v1329_v46  ;;  %v1666_v51 = vadd.f32 %v1665_v43, %v1497_v45 }
 0x149   : > { %v1499_v58 = vadd.f32 %v1498_v47, %v1330_v48  ;;  %v1835_v63 = vadd.f32 %v1834_v44, %v1666_v51  ;;  %v2852_v48 = vld [vmem:[%s3901_s24 + $0x280] sm:$0xf]  ;;  %v3268_v51 = vld [vmem:[%s3901_s24 + $0x284] sm:$0xf] }
 0x14b   : > { %v1967_v6 = vmax.f32 %v1835_v63, 0.0 }
 0x14e   : > { %v1667_v59 = vpop.f32.mrf.mxu2  ;;  %v1332_v1 = vpop.f32.mrf.mxu0 }
 0x14f   : > { %v1836_v60 = vpop.f32.mrf.mxu3  ;;  %v1668_v0 = vadd.f32 %v1667_v59, %v1499_v58  ;;  %v1501_v2 = vpop.f32.mrf.mxu1  ;;  %v1333_v8 = vadd.f32 %v3996_v10, %v1332_v1 }
 0x151   : > { %v1837_v5 = vadd.f32 %v1836_v60, %v1668_v0  ;;  %1371 = vmatmul.bf16.gmra.mxu0 %v2821_v61  ;;  %v1502_v13 = vadd.f32 %v1501_v2, %v1333_v8  ;;  %v2853_v60 = vor.u32 %v3270_v49, %v2852_v48  ;;  %v2857_v61 = vor.u32 %v3268_v51, %v2854_v52  ;;  %v3278_v48 = vld [vmem:[%s3901_s24 + $0x2cc] sm:$0xf0]  ;;  %v2886_v51 = vld [vmem:[%s3901_s24 + $0x2d0] sm:$0xf0]  ;;  %v2892_v52 = vld [vmem:[%s3901_s24 + $0x2c8] sm:$0xf] }
 0x152   : > { %1540 = vmatmul.bf16.gmra.mxu1 %v2825_v62  ;;  %v2861_v2 = vor.u32 %v3271_v54, %v2860_v53  ;;  %v3279_v53 = vld [vmem:[%s3901_s24 + $0x2d4] sm:$0xf0]  ;;  %v3277_v54 = vld [vmem:[%s3901_s24 + $0x2cc] sm:$0xf] }
 0x153   : > { %v1968_v7 = vmax.f32 %v1837_v5, 0.0  ;;  %1709 = vmatmul.bf16.gmra.mxu2 %v2829_v3  ;;  %v2865_v3 = vor.u32 %v3269_v55, %v2862_v56  ;;  %v2894_v55 = vld [vmem:[%s3901_s24 + $0x2d8] sm:$0xf0] }
 0x154   : > { %1878 = vmatmul.bf16.gmra.mxu3 %v2833_v4 }
 0x155   : > { %v3399_v9 = vpack.c.bf16 %v1968_v7, %v1967_v6 }
 0x156   : > { %v1670_v11 = vpop.f32.mrf.mxu2  ;;  %v1334_v14 = vpop.f32.mrf.mxu0 }
 0x157   : > { %v1839_v12 = vpop.f32.mrf.mxu3  ;;  %3519 = vst [vmem:[%s4010_s12 + $0x48] sm:$0xff] %v3399_v9   ;;  %v1503_v15 = vpop.f32.mrf.mxu1  ;;  %v1335_v16 = vadd.f32 %v3996_v10, %v1334_v14  ;;  %v1671_v19 = vadd.f32 %v1670_v11, %v1502_v13 }
 0x159   : > { %v1504_v26 = vadd.f32 %v1503_v15, %v1335_v16  ;;  %v1840_v31 = vadd.f32 %v1839_v12, %v1671_v19  ;;  %v2868_v16 = vld [vmem:[%s3901_s24 + $0x2a0] sm:$0xf]  ;;  %v3272_v19 = vld [vmem:[%s3901_s24 + $0x2a4] sm:$0xf] }
 0x15b   : > { %v1969_v38 = vmax.f32 %v1840_v31, 0.0 }
 0x15e   : > { %v1672_v27 = vpop.f32.mrf.mxu2  ;;  %v1337_v33 = vpop.f32.mrf.mxu0 }
 0x15f   : > { %v1841_v28 = vpop.f32.mrf.mxu3  ;;  %v1673_v32 = vadd.f32 %v1672_v27, %v1504_v26  ;;  %v1506_v34 = vpop.f32.mrf.mxu1  ;;  %v1338_v40 = vadd.f32 %v3996_v10, %v1337_v33 }
 0x161   : > { %v1842_v37 = vadd.f32 %v1841_v28, %v1673_v32  ;;  %1376 = vmatmul.bf16.gmra.mxu0 %v2837_v29  ;;  %v1507_v44 = vadd.f32 %v1506_v34, %v1338_v40  ;;  %v2869_v28 = vor.u32 %v3274_v17, %v2868_v16  ;;  %v2873_v29 = vor.u32 %v3272_v19, %v2870_v20  ;;  %v3282_v16 = vld [vmem:[%s3901_s24 + $0x2ec] sm:$0xf0]  ;;  %v2902_v19 = vld [vmem:[%s3901_s24 + $0x2f0] sm:$0xf0]  ;;  %v2908_v20 = vld [vmem:[%s3901_s24 + $0x2e8] sm:$0xf] }
 0x162   : > { %1545 = vmatmul.bf16.gmra.mxu1 %v2841_v30  ;;  %v2877_v34 = vor.u32 %v3275_v22, %v2876_v21  ;;  %v3283_v21 = vld [vmem:[%s3901_s24 + $0x2f4] sm:$0xf0]  ;;  %v3281_v22 = vld [vmem:[%s3901_s24 + $0x2ec] sm:$0xf] }
 0x163   : > { %v1970_v39 = vmax.f32 %v1842_v37, 0.0  ;;  %1714 = vmatmul.bf16.gmra.mxu2 %v2845_v35  ;;  %v2881_v35 = vor.u32 %v3273_v23, %v2878_v24  ;;  %v2910_v23 = vld [vmem:[%s3901_s24 + $0x2f8] sm:$0xf0] }
 0x164   : > { %1883 = vmatmul.bf16.gmra.mxu3 %v2849_v36 }
 0x165   : > { %v3404_v41 = vpack.c.bf16 %v1970_v39, %v1969_v38 }
 0x166   : > { %v1675_v42 = vpop.f32.mrf.mxu2  ;;  %v1339_v45 = vpop.f32.mrf.mxu0 }
 0x167   : > { %v1844_v43 = vpop.f32.mrf.mxu3  ;;  %3520 = vst [vmem:[%s4010_s12 + $0x50] sm:$0xff] %v3404_v41   ;;  %v1508_v46 = vpop.f32.mrf.mxu1  ;;  %v1340_v47 = vadd.f32 %v3996_v10, %v1339_v45  ;;  %v1676_v50 = vadd.f32 %v1675_v42, %v1507_v44 }
 0x169   : > { %v1509_v57 = vadd.f32 %v1508_v46, %v1340_v47  ;;  %v1845_v62 = vadd.f32 %v1844_v43, %v1676_v50  ;;  %v2884_v47 = vld [vmem:[%s3901_s24 + $0x2c0] sm:$0xf]  ;;  %v3276_v50 = vld [vmem:[%s3901_s24 + $0x2c4] sm:$0xf] }
 0x16b   : > { %v1971_v5 = vmax.f32 %v1845_v62, 0.0 }
 0x16e   : > { %v1677_v58 = vpop.f32.mrf.mxu2  ;;  %v1342_v0 = vpop.f32.mrf.mxu0 }
 0x16f   : > { %v1846_v59 = vpop.f32.mrf.mxu3  ;;  %v1678_v63 = vadd.f32 %v1677_v58, %v1509_v57  ;;  %v1511_v1 = vpop.f32.mrf.mxu1  ;;  %v1343_v7 = vadd.f32 %v3996_v10, %v1342_v0 }
 0x171   : > { %v1847_v4 = vadd.f32 %v1846_v59, %v1678_v63  ;;  %1381 = vmatmul.bf16.gmra.mxu0 %v2853_v60  ;;  %v1512_v12 = vadd.f32 %v1511_v1, %v1343_v7  ;;  %v2885_v59 = vor.u32 %v3278_v48, %v2884_v47  ;;  %v2889_v60 = vor.u32 %v3276_v50, %v2886_v51  ;;  %v3286_v47 = vld [vmem:[%s3901_s24 + $0x30c] sm:$0xf0]  ;;  %v2918_v50 = vld [vmem:[%s3901_s24 + $0x310] sm:$0xf0]  ;;  %v2924_v51 = vld [vmem:[%s3901_s24 + $0x308] sm:$0xf] }
 0x172   : > { %1550 = vmatmul.bf16.gmra.mxu1 %v2857_v61  ;;  %v2897_v1 = vor.u32 %v3277_v54, %v2894_v55  ;;  %v2926_v54 = vld [vmem:[%s3901_s24 + $0x318] sm:$0xf0] }
 0x173   : > { %v1972_v6 = vmax.f32 %v1847_v4, 0.0  ;;  %1719 = vmatmul.bf16.gmra.mxu2 %v2861_v2 }
 0x174   : > { %1888 = vmatmul.bf16.gmra.mxu3 %v2865_v3 }
 0x175   : > { %v3409_v8 = vpack.c.bf16 %v1972_v6, %v1971_v5  ;;  %v4157_v5 = vld [vmem:[%s4435_s2] ss:$0 sm:$0xff] }
 0x176   : > { %v1680_v9 = vpop.f32.mrf.mxu2  ;;  %v1344_v13 = vpop.f32.mrf.mxu0 }
 0x177   : > { %v1849_v11 = vpop.f32.mrf.mxu3  ;;  %3521 = vst [vmem:[%s4010_s12 + $0x58] sm:$0xff] %v3409_v8   ;;  %v1513_v14 = vpop.f32.mrf.mxu1  ;;  %v1345_v15 = vadd.f32 %v3996_v10, %v1344_v13  ;;  %v1681_v18 = vadd.f32 %v1680_v9, %v1512_v12 }
 0x179   : > { %v1514_v25 = vadd.f32 %v1513_v14, %v1345_v15  ;;  %v1850_v30 = vadd.f32 %v1849_v11, %v1681_v18  ;;  %v2900_v15 = vld [vmem:[%s3901_s24 + $0x2e0] sm:$0xf]  ;;  %v3280_v18 = vld [vmem:[%s3901_s24 + $0x2e4] sm:$0xf] }
 0x17b   : > { %v1973_v37 = vmax.f32 %v1850_v30, 0.0 }
 0x17e   : > { %v1682_v26 = vpop.f32.mrf.mxu2  ;;  %v1347_v32 = vpop.f32.mrf.mxu0 }
 0x17f   : > { %v1851_v27 = vpop.f32.mrf.mxu3  ;;  %v1683_v31 = vadd.f32 %v1682_v26, %v1514_v25  ;;  %v1516_v33 = vpop.f32.mrf.mxu1  ;;  %v1348_v39 = vadd.f32 %v3996_v10, %v1347_v32 }
 0x181   : > { %v1852_v36 = vadd.f32 %v1851_v27, %v1683_v31  ;;  %1386 = vmatmul.bf16.gmra.mxu0 %v2869_v28  ;;  %v1517_v43 = vadd.f32 %v1516_v33, %v1348_v39  ;;  %v2901_v27 = vor.u32 %v3282_v16, %v2900_v15  ;;  %v2905_v28 = vor.u32 %v3280_v18, %v2902_v19  ;;  %v3290_v15 = vld [vmem:[%s3901_s24 + $0x32c] sm:$0xf0]  ;;  %v2934_v18 = vld [vmem:[%s3901_s24 + $0x330] sm:$0xf0]  ;;  %v2940_v19 = vld [vmem:[%s3901_s24 + $0x328] sm:$0xf] }
 0x182   : > { %1555 = vmatmul.bf16.gmra.mxu1 %v2873_v29  ;;  %v2909_v33 = vor.u32 %v3283_v21, %v2908_v20  ;;  %v3291_v20 = vld [vmem:[%s3901_s24 + $0x334] sm:$0xf0]  ;;  %v3289_v21 = vld [vmem:[%s3901_s24 + $0x32c] sm:$0xf] }
 0x183   : > { %v1974_v38 = vmax.f32 %v1852_v36, 0.0  ;;  %1724 = vmatmul.bf16.gmra.mxu2 %v2877_v34  ;;  %v2913_v34 = vor.u32 %v3281_v22, %v2910_v23  ;;  %v2942_v22 = vld [vmem:[%s3901_s24 + $0x338] sm:$0xf0] }
 0x184   : > { %1893 = vmatmul.bf16.gmra.mxu3 %v2881_v35 }
 0x185   : > { %v3414_v40 = vpack.c.bf16 %v1974_v38, %v1973_v37 }
 0x186   : > { %v1685_v41 = vpop.f32.mrf.mxu2  ;;  %v1349_v44 = vpop.f32.mrf.mxu0 }
 0x187   : > { %v1854_v42 = vpop.f32.mrf.mxu3  ;;  %3522 = vst [vmem:[%s4010_s12 + $0x60] sm:$0xff] %v3414_v40   ;;  %v1518_v45 = vpop.f32.mrf.mxu1  ;;  %v1350_v46 = vadd.f32 %v3996_v10, %v1349_v44  ;;  %v1686_v49 = vadd.f32 %v1685_v41, %v1517_v43  ;;  %v2893_v10 = vor.u32 %v3279_v53, %v2892_v52  ;;  %v3287_v52 = vld [vmem:[%s3901_s24 + $0x314] sm:$0xf0]  ;;  %v3285_v53 = vld [vmem:[%s3901_s24 + $0x30c] sm:$0xf] }
 0x189   : > { %v1519_v56 = vadd.f32 %v1518_v45, %v1350_v46  ;;  %v1855_v61 = vadd.f32 %v1854_v42, %v1686_v49  ;;  %v2916_v46 = vld [vmem:[%s3901_s24 + $0x300] sm:$0xf]  ;;  %v3284_v49 = vld [vmem:[%s3901_s24 + $0x304] sm:$0xf] }
 0x18b   : > { %v1975_v3 = vmax.f32 %v1855_v61, 0.0 }
 0x18e   : > { %v1687_v57 = vpop.f32.mrf.mxu2  ;;  %v1352_v63 = vpop.f32.mrf.mxu0 }
 0x18f   : > { %v1856_v58 = vpop.f32.mrf.mxu3  ;;  %v1688_v62 = vadd.f32 %v1687_v57, %v1519_v56  ;;  %v1521_v0 = vpop.f32.mrf.mxu1  ;;  %v1353_v6 = vadd.f32 %v4157_v5, %v1352_v63 }
 0x191   : > { %v1857_v2 = vadd.f32 %v1856_v58, %v1688_v62  ;;  %1391 = vmatmul.bf16.gmra.mxu0 %v2885_v59  ;;  %v1522_v11 = vadd.f32 %v1521_v0, %v1353_v6  ;;  %v2917_v58 = vor.u32 %v3286_v47, %v2916_v46  ;;  %v2921_v59 = vor.u32 %v3284_v49, %v2918_v50  ;;  %v3294_v46 = vld [vmem:[%s3901_s24 + $0x34c] sm:$0xf0]  ;;  %v2950_v49 = vld [vmem:[%s3901_s24 + $0x350] sm:$0xf0]  ;;  %v2956_v50 = vld [vmem:[%s3901_s24 + $0x348] sm:$0xf] }
 0x192   : > { %1560 = vmatmul.bf16.gmra.mxu1 %v2889_v60  ;;  %v2925_v0 = vor.u32 %v3287_v52, %v2924_v51  ;;  %v3295_v51 = vld [vmem:[%s3901_s24 + $0x354] sm:$0xf0]  ;;  %v3293_v52 = vld [vmem:[%s3901_s24 + $0x34c] sm:$0xf] }
 0x193   : > { %v1976_v4 = vmax.f32 %v1857_v2, 0.0  ;;  %1729 = vmatmul.bf16.gmra.mxu2 %v2893_v10  ;;  %v2929_v10 = vor.u32 %v3285_v53, %v2926_v54  ;;  %v2958_v53 = vld [vmem:[%s3901_s24 + $0x358] sm:$0xf0] }
 0x194   : > { %1898 = vmatmul.bf16.gmra.mxu3 %v2897_v1 }
 0x195   : > { %v3419_v7 = vpack.c.bf16 %v1976_v4, %v1975_v3 }
 0x196   : > { %v1690_v8 = vpop.f32.mrf.mxu2  ;;  %v1354_v12 = vpop.f32.mrf.mxu0 }
 0x197   : > { %v1859_v9 = vpop.f32.mrf.mxu3  ;;  %3523 = vst [vmem:[%s4010_s12 + $0x68] sm:$0xff] %v3419_v7   ;;  %v1523_v13 = vpop.f32.mrf.mxu1  ;;  %v1355_v14 = vadd.f32 %v4157_v5, %v1354_v12  ;;  %v1691_v17 = vadd.f32 %v1690_v8, %v1522_v11 }
 0x199   : > { %v1524_v24 = vadd.f32 %v1523_v13, %v1355_v14  ;;  %v1860_v29 = vadd.f32 %v1859_v9, %v1691_v17  ;;  %v2932_v14 = vld [vmem:[%s3901_s24 + $0x320] sm:$0xf]  ;;  %v3288_v17 = vld [vmem:[%s3901_s24 + $0x324] sm:$0xf] }
 0x19b   : > { %v1977_v36 = vmax.f32 %v1860_v29, 0.0 }
 0x19e   : > { %v1692_v25 = vpop.f32.mrf.mxu2  ;;  %v1357_v31 = vpop.f32.mrf.mxu0 }
 0x19f   : > { %v1861_v26 = vpop.f32.mrf.mxu3  ;;  %v1693_v30 = vadd.f32 %v1692_v25, %v1524_v24  ;;  %v1526_v32 = vpop.f32.mrf.mxu1  ;;  %v1358_v38 = vadd.f32 %v4157_v5, %v1357_v31 }
 0x1a1   : > { %v1862_v35 = vadd.f32 %v1861_v26, %v1693_v30  ;;  %1396 = vmatmul.bf16.gmra.mxu0 %v2901_v27  ;;  %v1527_v42 = vadd.f32 %v1526_v32, %v1358_v38  ;;  %v2933_v26 = vor.u32 %v3290_v15, %v2932_v14  ;;  %v2937_v27 = vor.u32 %v3288_v17, %v2934_v18  ;;  %v3298_v14 = vld [vmem:[%s3901_s24 + $0x36c] sm:$0xf0]  ;;  %v2966_v17 = vld [vmem:[%s3901_s24 + $0x370] sm:$0xf0]  ;;  %v2972_v18 = vld [vmem:[%s3901_s24 + $0x368] sm:$0xf] }
 0x1a2   : > { %1565 = vmatmul.bf16.gmra.mxu1 %v2905_v28  ;;  %v2941_v32 = vor.u32 %v3291_v20, %v2940_v19  ;;  %v3299_v19 = vld [vmem:[%s3901_s24 + $0x374] sm:$0xf0]  ;;  %v3297_v20 = vld [vmem:[%s3901_s24 + $0x36c] sm:$0xf] }
 0x1a3   : > { %v1978_v37 = vmax.f32 %v1862_v35, 0.0  ;;  %1734 = vmatmul.bf16.gmra.mxu2 %v2909_v33  ;;  %v2945_v33 = vor.u32 %v3289_v21, %v2942_v22  ;;  %v2974_v21 = vld [vmem:[%s3901_s24 + $0x378] sm:$0xf0] }
 0x1a4   : > { %1903 = vmatmul.bf16.gmra.mxu3 %v2913_v34 }
 0x1a5   : > { %v3424_v39 = vpack.c.bf16 %v1978_v37, %v1977_v36 }
 0x1a6   : > { %v1695_v40 = vpop.f32.mrf.mxu2  ;;  %v1359_v43 = vpop.f32.mrf.mxu0 }
 0x1a7   : > { %v1864_v41 = vpop.f32.mrf.mxu3  ;;  %3524 = vst [vmem:[%s4010_s12 + $0x70] sm:$0xff] %v3424_v39   ;;  %v1528_v44 = vpop.f32.mrf.mxu1  ;;  %v1360_v45 = vadd.f32 %v4157_v5, %v1359_v43  ;;  %v1696_v48 = vadd.f32 %v1695_v40, %v1527_v42 }
 0x1a9   : > { %v1529_v55 = vadd.f32 %v1528_v44, %v1360_v45  ;;  %v1865_v60 = vadd.f32 %v1864_v41, %v1696_v48  ;;  %v2948_v45 = vld [vmem:[%s3901_s24 + $0x340] sm:$0xf]  ;;  %v3292_v48 = vld [vmem:[%s3901_s24 + $0x344] sm:$0xf] }
 0x1ab   : > { %v1979_v2 = vmax.f32 %v1865_v60, 0.0 }
 0x1ae   : > { %v1697_v56 = vpop.f32.mrf.mxu2  ;;  %v1362_v62 = vpop.f32.mrf.mxu0 }
 0x1af   : > { %v1866_v57 = vpop.f32.mrf.mxu3  ;;  %v1698_v61 = vadd.f32 %v1697_v56, %v1529_v55  ;;  %v1531_v63 = vpop.f32.mrf.mxu1  ;;  %v1363_v4 = vadd.f32 %v4157_v5, %v1362_v62 }
 0x1b1   : > { %v1867_v1 = vadd.f32 %v1866_v57, %v1698_v61  ;;  %1401 = vmatmul.bf16.gmra.mxu0 %v2917_v58  ;;  %v1532_v9 = vadd.f32 %v1531_v63, %v1363_v4  ;;  %v2949_v57 = vor.u32 %v3294_v46, %v2948_v45  ;;  %v2953_v58 = vor.u32 %v3292_v48, %v2950_v49  ;;  %v3302_v45 = vld [vmem:[%s3901_s24 + $0x38c] sm:$0xf0]  ;;  %v2982_v48 = vld [vmem:[%s3901_s24 + $0x390] sm:$0xf0]  ;;  %v2988_v49 = vld [vmem:[%s3901_s24 + $0x388] sm:$0xf] }
 0x1b2   : > { %1570 = vmatmul.bf16.gmra.mxu1 %v2921_v59  ;;  %v2957_v63 = vor.u32 %v3295_v51, %v2956_v50  ;;  %v3303_v50 = vld [vmem:[%s3901_s24 + $0x394] sm:$0xf0]  ;;  %v3301_v51 = vld [vmem:[%s3901_s24 + $0x38c] sm:$0xf] }
 0x1b3   : > { %v1980_v3 = vmax.f32 %v1867_v1, 0.0  ;;  %1739 = vmatmul.bf16.gmra.mxu2 %v2925_v0  ;;  %v2961_v0 = vor.u32 %v3293_v52, %v2958_v53  ;;  %v2990_v52 = vld [vmem:[%s3901_s24 + $0x398] sm:$0xf0] }
 0x1b4   : > { %1908 = vmatmul.bf16.gmra.mxu3 %v2929_v10 }
 0x1b5   : > { %v3429_v6 = vpack.c.bf16 %v1980_v3, %v1979_v2 }
 0x1b6   : > { %v1700_v7 = vpop.f32.mrf.mxu2  ;;  %v1364_v11 = vpop.f32.mrf.mxu0 }
 0x1b7   : > { %v1869_v8 = vpop.f32.mrf.mxu3  ;;  %3525 = vst [vmem:[%s4010_s12 + $0x78] sm:$0xff] %v3429_v6   ;;  %v1533_v12 = vpop.f32.mrf.mxu1  ;;  %v1365_v13 = vadd.f32 %v4157_v5, %v1364_v11  ;;  %v1701_v16 = vadd.f32 %v1700_v7, %v1532_v9 }
 0x1b9   : > { %v1534_v23 = vadd.f32 %v1533_v12, %v1365_v13  ;;  %v1870_v28 = vadd.f32 %v1869_v8, %v1701_v16  ;;  %v2964_v13 = vld [vmem:[%s3901_s24 + $0x360] sm:$0xf]  ;;  %v3296_v16 = vld [vmem:[%s3901_s24 + $0x364] sm:$0xf] }
 0x1bb   : > { %v1981_v35 = vmax.f32 %v1870_v28, 0.0 }
 0x1be   : > { %v1702_v24 = vpop.f32.mrf.mxu2  ;;  %v1367_v30 = vpop.f32.mrf.mxu0 }
 0x1bf   : > { %v1871_v25 = vpop.f32.mrf.mxu3  ;;  %v1703_v29 = vadd.f32 %v1702_v24, %v1534_v23  ;;  %v1536_v31 = vpop.f32.mrf.mxu1  ;;  %v1368_v37 = vadd.f32 %v4157_v5, %v1367_v30 }
 0x1c1   : > { %v1872_v34 = vadd.f32 %v1871_v25, %v1703_v29  ;;  %1406 = vmatmul.bf16.gmra.mxu0 %v2933_v26  ;;  %v1537_v41 = vadd.f32 %v1536_v31, %v1368_v37  ;;  %v2965_v25 = vor.u32 %v3298_v14, %v2964_v13  ;;  %v2969_v26 = vor.u32 %v3296_v16, %v2966_v17  ;;  %v3306_v13 = vld [vmem:[%s3901_s24 + $0x3ac] sm:$0xf0]  ;;  %v2998_v16 = vld [vmem:[%s3901_s24 + $0x3b0] sm:$0xf0]  ;;  %v3004_v17 = vld [vmem:[%s3901_s24 + $0x3a8] sm:$0xf] }
 0x1c2   : > { %1575 = vmatmul.bf16.gmra.mxu1 %v2937_v27  ;;  %v2973_v31 = vor.u32 %v3299_v19, %v2972_v18  ;;  %v3307_v18 = vld [vmem:[%s3901_s24 + $0x3b4] sm:$0xf0]  ;;  %v3305_v19 = vld [vmem:[%s3901_s24 + $0x3ac] sm:$0xf] }
 0x1c3   : > { %v1982_v36 = vmax.f32 %v1872_v34, 0.0  ;;  %1744 = vmatmul.bf16.gmra.mxu2 %v2941_v32  ;;  %v2977_v32 = vor.u32 %v3297_v20, %v2974_v21  ;;  %v3006_v20 = vld [vmem:[%s3901_s24 + $0x3b8] sm:$0xf0] }
 0x1c4   : > { %1913 = vmatmul.bf16.gmra.mxu3 %v2945_v33 }
 0x1c5   : > { %v3434_v38 = vpack.c.bf16 %v1982_v36, %v1981_v35 }
 0x1c6   : > { %v1705_v39 = vpop.f32.mrf.mxu2  ;;  %v1369_v42 = vpop.f32.mrf.mxu0 }
 0x1c7   : > { %v1874_v40 = vpop.f32.mrf.mxu3  ;;  %3526 = vst [vmem:[%s4010_s12 + $0x80] sm:$0xff] %v3434_v38   ;;  %v1538_v43 = vpop.f32.mrf.mxu1  ;;  %v1370_v44 = vadd.f32 %v4157_v5, %v1369_v42  ;;  %v1706_v47 = vadd.f32 %v1705_v39, %v1537_v41 }
 0x1c9   : > { %v1539_v54 = vadd.f32 %v1538_v43, %v1370_v44  ;;  %v1875_v59 = vadd.f32 %v1874_v40, %v1706_v47  ;;  %v2980_v44 = vld [vmem:[%s3901_s24 + $0x380] sm:$0xf]  ;;  %v3300_v47 = vld [vmem:[%s3901_s24 + $0x384] sm:$0xf] }
 0x1cb   : > { %v1983_v1 = vmax.f32 %v1875_v59, 0.0 }
 0x1ce   : > { %v1707_v55 = vpop.f32.mrf.mxu2  ;;  %v1372_v61 = vpop.f32.mrf.mxu0 }
 0x1cf   : > { %v1876_v56 = vpop.f32.mrf.mxu3  ;;  %v1708_v60 = vadd.f32 %v1707_v55, %v1539_v54  ;;  %v1541_v62 = vpop.f32.mrf.mxu1  ;;  %v1373_v3 = vadd.f32 %v4157_v5, %v1372_v61 }
 0x1d1   : > { %v1877_v10 = vadd.f32 %v1876_v56, %v1708_v60  ;;  %1411 = vmatmul.bf16.gmra.mxu0 %v2949_v57  ;;  %v1542_v8 = vadd.f32 %v1541_v62, %v1373_v3  ;;  %v2981_v56 = vor.u32 %v3302_v45, %v2980_v44  ;;  %v2985_v57 = vor.u32 %v3300_v47, %v2982_v48  ;;  %v3310_v44 = vld [vmem:[%s3901_s24 + $0x3cc] sm:$0xf0]  ;;  %v3014_v47 = vld [vmem:[%s3901_s24 + $0x3d0] sm:$0xf0]  ;;  %v3020_v48 = vld [vmem:[%s3901_s24 + $0x3c8] sm:$0xf] }
 0x1d2   : > { %1580 = vmatmul.bf16.gmra.mxu1 %v2953_v58  ;;  %v2989_v62 = vor.u32 %v3303_v50, %v2988_v49  ;;  %v3311_v49 = vld [vmem:[%s3901_s24 + $0x3d4] sm:$0xf0]  ;;  %v3309_v50 = vld [vmem:[%s3901_s24 + $0x3cc] sm:$0xf] }
 0x1d3   : > { %v1984_v2 = vmax.f32 %v1877_v10, 0.0  ;;  %1749 = vmatmul.bf16.gmra.mxu2 %v2957_v63  ;;  %v2993_v63 = vor.u32 %v3301_v51, %v2990_v52  ;;  %v3022_v51 = vld [vmem:[%s3901_s24 + $0x3d8] sm:$0xf0] }
 0x1d4   : > { %1918 = vmatmul.bf16.gmra.mxu3 %v2961_v0 }
 0x1d5   : > { %v3439_v4 = vpack.c.bf16 %v1984_v2, %v1983_v1 }
 0x1d6   : > { %v1710_v6 = vpop.f32.mrf.mxu2  ;;  %v1374_v9 = vpop.f32.mrf.mxu0 }
 0x1d7   : > { %v1879_v7 = vpop.f32.mrf.mxu3  ;;  %3527 = vst [vmem:[%s4010_s12 + $0x88] sm:$0xff] %v3439_v4   ;;  %v1543_v11 = vpop.f32.mrf.mxu1  ;;  %v1375_v12 = vadd.f32 %v4157_v5, %v1374_v9  ;;  %v1711_v15 = vadd.f32 %v1710_v6, %v1542_v8 }
 0x1d9   : > { %v1544_v22 = vadd.f32 %v1543_v11, %v1375_v12  ;;  %v1880_v27 = vadd.f32 %v1879_v7, %v1711_v15  ;;  %v2996_v12 = vld [vmem:[%s3901_s24 + $0x3a0] sm:$0xf]  ;;  %v3304_v15 = vld [vmem:[%s3901_s24 + $0x3a4] sm:$0xf] }
 0x1db   : > { %v1985_v34 = vmax.f32 %v1880_v27, 0.0 }
 0x1de   : > { %v1712_v23 = vpop.f32.mrf.mxu2  ;;  %v1377_v29 = vpop.f32.mrf.mxu0 }
 0x1df   : > { %v1881_v24 = vpop.f32.mrf.mxu3  ;;  %v1713_v28 = vadd.f32 %v1712_v23, %v1544_v22  ;;  %v1546_v30 = vpop.f32.mrf.mxu1  ;;  %v1378_v36 = vadd.f32 %v4157_v5, %v1377_v29 }
 0x1e1   : > { %v1882_v33 = vadd.f32 %v1881_v24, %v1713_v28  ;;  %1416 = vmatmul.bf16.gmra.mxu0 %v2965_v25  ;;  %v1547_v40 = vadd.f32 %v1546_v30, %v1378_v36  ;;  %v2997_v24 = vor.u32 %v3306_v13, %v2996_v12  ;;  %v3001_v25 = vor.u32 %v3304_v15, %v2998_v16  ;;  %v3314_v12 = vld [vmem:[%s3901_s24 + $0x3ec] sm:$0xf0]  ;;  %v3030_v15 = vld [vmem:[%s3901_s24 + $0x3f0] sm:$0xf0]  ;;  %v3036_v16 = vld [vmem:[%s3901_s24 + $0x3e8] sm:$0xf] }
 0x1e2   : > { %1585 = vmatmul.bf16.gmra.mxu1 %v2969_v26  ;;  %v3005_v30 = vor.u32 %v3307_v18, %v3004_v17  ;;  %v3315_v17 = vld [vmem:[%s3901_s24 + $0x3f4] sm:$0xf0]  ;;  %v3313_v18 = vld [vmem:[%s3901_s24 + $0x3ec] sm:$0xf] }
 0x1e3   : > { %v1986_v35 = vmax.f32 %v1882_v33, 0.0  ;;  %1754 = vmatmul.bf16.gmra.mxu2 %v2973_v31  ;;  %v3009_v31 = vor.u32 %v3305_v19, %v3006_v20  ;;  %v3038_v19 = vld [vmem:[%s3901_s24 + $0x3f8] sm:$0xf0] }
 0x1e4   : > { %1923 = vmatmul.bf16.gmra.mxu3 %v2977_v32 }
 0x1e5   : > { %v3444_v37 = vpack.c.bf16 %v1986_v35, %v1985_v34 }
 0x1e6   : > { %v1715_v38 = vpop.f32.mrf.mxu2  ;;  %v1379_v41 = vpop.f32.mrf.mxu0 }
 0x1e7   : > { %v1884_v39 = vpop.f32.mrf.mxu3  ;;  %3528 = vst [vmem:[%s4010_s12 + $0x90] sm:$0xff] %v3444_v37   ;;  %v1548_v42 = vpop.f32.mrf.mxu1  ;;  %v1380_v43 = vadd.f32 %v4157_v5, %v1379_v41  ;;  %v1716_v46 = vadd.f32 %v1715_v38, %v1547_v40 }
 0x1e9   : > { %v1549_v53 = vadd.f32 %v1548_v42, %v1380_v43  ;;  %v1885_v58 = vadd.f32 %v1884_v39, %v1716_v46  ;;  %v3012_v43 = vld [vmem:[%s3901_s24 + $0x3c0] sm:$0xf]  ;;  %v3308_v46 = vld [vmem:[%s3901_s24 + $0x3c4] sm:$0xf] }
 0x1eb   : > { %v1987_v10 = vmax.f32 %v1885_v58, 0.0 }
 0x1ee   : > { %v1717_v54 = vpop.f32.mrf.mxu2  ;;  %v1382_v60 = vpop.f32.mrf.mxu0 }
 0x1ef   : > { %v1886_v55 = vpop.f32.mrf.mxu3  ;;  %v1718_v59 = vadd.f32 %v1717_v54, %v1549_v53  ;;  %v1551_v61 = vpop.f32.mrf.mxu1  ;;  %v1383_v2 = vadd.f32 %v4157_v5, %v1382_v60 }
 0x1f1   : > { %v1887_v0 = vadd.f32 %v1886_v55, %v1718_v59  ;;  %1421 = vmatmul.bf16.gmra.mxu0 %v2981_v56  ;;  %v1552_v7 = vadd.f32 %v1551_v61, %v1383_v2  ;;  %v3013_v55 = vor.u32 %v3310_v44, %v3012_v43  ;;  %v3017_v56 = vor.u32 %v3308_v46, %v3014_v47 }
 0x1f2   : > { %1590 = vmatmul.bf16.gmra.mxu1 %v2985_v57  ;;  %v3021_v61 = vor.u32 %v3311_v49, %v3020_v48 }
 0x1f3   : > { %v1988_v1 = vmax.f32 %v1887_v0, 0.0  ;;  %1759 = vmatmul.bf16.gmra.mxu2 %v2989_v62  ;;  %v3025_v62 = vor.u32 %v3309_v50, %v3022_v51 }
 0x1f4   : > { %1928 = vmatmul.bf16.gmra.mxu3 %v2993_v63 }
 0x1f5   : > { %v3449_v3 = vpack.c.bf16 %v1988_v1, %v1987_v10 }
 0x1f6   : > { %v1720_v4 = vpop.f32.mrf.mxu2  ;;  %v1384_v8 = vpop.f32.mrf.mxu0 }
 0x1f7   : > { %v1889_v6 = vpop.f32.mrf.mxu3  ;;  %3529 = vst [vmem:[%s4010_s12 + $0x98] sm:$0xff] %v3449_v3   ;;  %v1553_v9 = vpop.f32.mrf.mxu1  ;;  %v1385_v11 = vadd.f32 %v4157_v5, %v1384_v8  ;;  %v1721_v14 = vadd.f32 %v1720_v4, %v1552_v7 }
 0x1f9   : > { %v1554_v21 = vadd.f32 %v1553_v9, %v1385_v11  ;;  %v1890_v26 = vadd.f32 %v1889_v6, %v1721_v14  ;;  %v3028_v11 = vld [vmem:[%s3901_s24 + $0x3e0] sm:$0xf]  ;;  %v3312_v14 = vld [vmem:[%s3901_s24 + $0x3e4] sm:$0xf]  ;;  %s2149_s24 = ssub.s32 (%p3804_p3), 225, %s3852_s28 }
 0x1fa   : > { %p2150_p9 = scmp.lt.s32.totalorder (%p3804_p3), %s2149_s24, 64 }
 0x1fb   : > { %v1989_v33 = vmax.f32 %v1890_v26, 0.0 }
 0x1fe   : > { %v1722_v22 = vpop.f32.mrf.mxu2  ;;  %v1387_v28 = vpop.f32.mrf.mxu0 }
 0x1ff   : > { %v1891_v23 = vpop.f32.mrf.mxu3  ;;  %v1723_v27 = vadd.f32 %v1722_v22, %v1554_v21  ;;  %v1556_v29 = vpop.f32.mrf.mxu1  ;;  %v1388_v35 = vadd.f32 %v4157_v5, %v1387_v28 }
 0x201   : > { %v1892_v32 = vadd.f32 %v1891_v23, %v1723_v27  ;;  %1426 = vmatmul.bf16.gmra.mxu0 %v2997_v24  ;;  %v1557_v39 = vadd.f32 %v1556_v29, %v1388_v35  ;;  %v3029_v23 = vor.u32 %v3314_v12, %v3028_v11  ;;  %v3033_v24 = vor.u32 %v3312_v14, %v3030_v15 }
 0x202   : > { %1595 = vmatmul.bf16.gmra.mxu1 %v3001_v25  ;;  %v3037_v29 = vor.u32 %v3315_v17, %v3036_v16 }
 0x203   : > { %v1990_v34 = vmax.f32 %v1892_v32, 0.0  ;;  %1764 = vmatmul.bf16.gmra.mxu2 %v3005_v30  ;;  %v3041_v30 = vor.u32 %v3313_v18, %v3038_v19 }
 0x204   : > { %1933 = vmatmul.bf16.gmra.mxu3 %v3009_v31 }
 0x205   : > { %v3454_v36 = vpack.c.bf16 %v1990_v34, %v1989_v33 }
 0x206   : > { %v1725_v37 = vpop.f32.mrf.mxu2  ;;  %v1389_v40 = vpop.f32.mrf.mxu0 }
 0x207   : > { %v1894_v38 = vpop.f32.mrf.mxu3  ;;  %3530 = vst [vmem:[%s4010_s12 + $0xa0] sm:$0xff] %v3454_v36   ;;  %v1558_v41 = vpop.f32.mrf.mxu1  ;;  %v1390_v42 = vadd.f32 %v4157_v5, %v1389_v40  ;;  %v1726_v45 = vadd.f32 %v1725_v37, %v1557_v39 }
 0x209   : > { %v1559_v52 = vadd.f32 %v1558_v41, %v1390_v42  ;;  %v1895_v57 = vadd.f32 %v1894_v38, %v1726_v45 }
 0x20b   : > { %v1991_v0 = vmax.f32 %v1895_v57, 0.0 }
 0x20e   : > { %v1727_v53 = vpop.f32.mrf.mxu2  ;;  %v1392_v59 = vpop.f32.mrf.mxu0 }
 0x20f   : > { %v1896_v54 = vpop.f32.mrf.mxu3  ;;  %v1728_v58 = vadd.f32 %v1727_v53, %v1559_v52  ;;  %v1561_v60 = vpop.f32.mrf.mxu1  ;;  %v1393_v1 = vadd.f32 %v4157_v5, %v1392_v59 }
 0x211   : > { %v1897_v63 = vadd.f32 %v1896_v54, %v1728_v58  ;;  %1431 = vmatmul.bf16.gmra.mxu0 %v3013_v55  ;;  %v1562_v6 = vadd.f32 %v1561_v60, %v1393_v1 }
 0x212   : > { %1600 = vmatmul.bf16.gmra.mxu1 %v3017_v56 }
 0x213   : > { %v1992_v10 = vmax.f32 %v1897_v63, 0.0  ;;  %1769 = vmatmul.bf16.gmra.mxu2 %v3021_v61 }
 0x214   : > { %1938 = vmatmul.bf16.gmra.mxu3 %v3025_v62 }
 0x215   : > { %v3459_v2 = vpack.c.bf16 %v1992_v10, %v1991_v0 }
 0x216   : > { %v1730_v3 = vpop.f32.mrf.mxu2  ;;  %v1394_v7 = vpop.f32.mrf.mxu0 }
 0x217   : > { %v1899_v4 = vpop.f32.mrf.mxu3  ;;  %3531 = vst [vmem:[%s4010_s12 + $0xa8] sm:$0xff] %v3459_v2   ;;  %v1563_v8 = vpop.f32.mrf.mxu1  ;;  %v1395_v9 = vadd.f32 %v4157_v5, %v1394_v7  ;;  %v1731_v13 = vadd.f32 %v1730_v3, %v1562_v6 }
 0x219   : > { %v1564_v20 = vadd.f32 %v1563_v8, %v1395_v9  ;;  %v1900_v25 = vadd.f32 %v1899_v4, %v1731_v13 }
 0x21b   : > { %v1993_v32 = vmax.f32 %v1900_v25, 0.0 }
 0x21e   : > { %v1732_v21 = vpop.f32.mrf.mxu2  ;;  %v1397_v27 = vpop.f32.mrf.mxu0 }
 0x21f   : > { %v1901_v22 = vpop.f32.mrf.mxu3  ;;  %v1733_v26 = vadd.f32 %v1732_v21, %v1564_v20  ;;  %v1566_v28 = vpop.f32.mrf.mxu1  ;;  %v1398_v34 = vadd.f32 %v4157_v5, %v1397_v27 }
 0x221   : > { %v1902_v31 = vadd.f32 %v1901_v22, %v1733_v26  ;;  %1436 = vmatmul.bf16.gmra.mxu0 %v3029_v23  ;;  %v1567_v38 = vadd.f32 %v1566_v28, %v1398_v34 }
 0x222   : > { %1605 = vmatmul.bf16.gmra.mxu1 %v3033_v24 }
 0x223   : > { %v1994_v33 = vmax.f32 %v1902_v31, 0.0  ;;  %1774 = vmatmul.bf16.gmra.mxu2 %v3037_v29 }
 0x224   : > { %1943 = vmatmul.bf16.gmra.mxu3 %v3041_v30 }
 0x225   : > { %v3464_v35 = vpack.c.bf16 %v1994_v33, %v1993_v32 }
 0x226   : > { %v1735_v36 = vpop.f32.mrf.mxu2  ;;  %v1399_v39 = vpop.f32.mrf.mxu0 }
 0x227   : > { %v1904_v37 = vpop.f32.mrf.mxu3  ;;  %3532 = vst [vmem:[%s4010_s12 + $0xb0] sm:$0xff] %v3464_v35   ;;  %v1568_v40 = vpop.f32.mrf.mxu1  ;;  %v1400_v41 = vadd.f32 %v4157_v5, %v1399_v39  ;;  %v1736_v42 = vadd.f32 %v1735_v36, %v1567_v38 }
 0x229   : > { %v1569_v43 = vadd.f32 %v1568_v40, %v1400_v41  ;;  %v1905_v46 = vadd.f32 %v1904_v37, %v1736_v42 }
 0x22b   : > { %v1995_v51 = vmax.f32 %v1905_v46, 0.0 }
 0x22e   : > { %v1737_v44 = vpop.f32.mrf.mxu2  ;;  %v1402_v48 = vpop.f32.mrf.mxu0 }
 0x22f   : > { %v1906_v45 = vpop.f32.mrf.mxu3  ;;  %v1738_v47 = vadd.f32 %v1737_v44, %v1569_v43  ;;  %v1571_v49 = vpop.f32.mrf.mxu1  ;;  %v1403_v53 = vadd.f32 %v4157_v5, %v1402_v48 }
 0x231   : > { %v1907_v50 = vadd.f32 %v1906_v45, %v1738_v47  ;;  %v1572_v57 = vadd.f32 %v1571_v49, %v1403_v53 }
 0x233   : > { %v1996_v52 = vmax.f32 %v1907_v50, 0.0 }
 0x235   : > { %v3469_v54 = vpack.c.bf16 %v1996_v52, %v1995_v51 }
 0x236   : > { %v1740_v55 = vpop.f32.mrf.mxu2  ;;  %v1404_v58 = vpop.f32.mrf.mxu0 }
 0x237   : > { %v1909_v56 = vpop.f32.mrf.mxu3  ;;  %3533 = vst [vmem:[%s4010_s12 + $0xb8] sm:$0xff] %v3469_v54   ;;  %v1573_v59 = vpop.f32.mrf.mxu1  ;;  %v1405_v60 = vadd.f32 %v4157_v5, %v1404_v58  ;;  %v1741_v61 = vadd.f32 %v1740_v55, %v1572_v57 }
 0x239   : > { %v1574_v62 = vadd.f32 %v1573_v59, %v1405_v60  ;;  %v1910_v10 = vadd.f32 %v1909_v56, %v1741_v61 }
 0x23b   : > { %v1997_v6 = vmax.f32 %v1910_v10, 0.0 }
 0x23e   : > { %v1742_v63 = vpop.f32.mrf.mxu2  ;;  %v1407_v2 = vpop.f32.mrf.mxu0 }
 0x23f   : > { %v1911_v0 = vpop.f32.mrf.mxu3  ;;  %v1743_v1 = vadd.f32 %v1742_v63, %v1574_v62  ;;  %v1576_v3 = vpop.f32.mrf.mxu1  ;;  %v1408_v8 = vadd.f32 %v4157_v5, %v1407_v2 }
 0x241   : > { %v1912_v4 = vadd.f32 %v1911_v0, %v1743_v1  ;;  %v1577_v13 = vadd.f32 %v1576_v3, %v1408_v8 }
 0x243   : > { %v1998_v7 = vmax.f32 %v1912_v4, 0.0 }
 0x245   : > { %v3474_v9 = vpack.c.bf16 %v1998_v7, %v1997_v6 }
 0x246   : > { %v1745_v11 = vpop.f32.mrf.mxu2  ;;  %v1409_v14 = vpop.f32.mrf.mxu0 }
 0x247   : > { %v1914_v12 = vpop.f32.mrf.mxu3  ;;  %3534 = vst [vmem:[%s4010_s12 + $0xc0] sm:$0xff] %v3474_v9   ;;  %v1578_v15 = vpop.f32.mrf.mxu1  ;;  %v1410_v16 = vadd.f32 %v4157_v5, %v1409_v14  ;;  %v1746_v17 = vadd.f32 %v1745_v11, %v1577_v13 }
 0x249   : > { %v1579_v18 = vadd.f32 %v1578_v15, %v1410_v16  ;;  %v1915_v21 = vadd.f32 %v1914_v12, %v1746_v17 }
 0x24b   : > { %v1999_v26 = vmax.f32 %v1915_v21, 0.0 }
 0x24e   : > { %v1747_v19 = vpop.f32.mrf.mxu2  ;;  %v1412_v23 = vpop.f32.mrf.mxu0 }
 0x24f   : > { %v1916_v20 = vpop.f32.mrf.mxu3  ;;  %v1748_v22 = vadd.f32 %v1747_v19, %v1579_v18  ;;  %v1581_v24 = vpop.f32.mrf.mxu1  ;;  %v1413_v28 = vadd.f32 %v4157_v5, %v1412_v23 }
 0x251   : > { %v1917_v25 = vadd.f32 %v1916_v20, %v1748_v22  ;;  %v1582_v32 = vadd.f32 %v1581_v24, %v1413_v28 }
 0x253   : > { %v2000_v27 = vmax.f32 %v1917_v25, 0.0 }
 0x255   : > { %v3479_v29 = vpack.c.bf16 %v2000_v27, %v1999_v26 }
 0x256   : > { %v1750_v30 = vpop.f32.mrf.mxu2  ;;  %v1414_v33 = vpop.f32.mrf.mxu0 }
 0x257   : > { %v1919_v31 = vpop.f32.mrf.mxu3  ;;  %3535 = vst [vmem:[%s4010_s12 + $0xc8] sm:$0xff] %v3479_v29   ;;  %v1583_v34 = vpop.f32.mrf.mxu1  ;;  %v1415_v35 = vadd.f32 %v4157_v5, %v1414_v33  ;;  %v1751_v36 = vadd.f32 %v1750_v30, %v1582_v32 }
 0x259   : > { %v1584_v37 = vadd.f32 %v1583_v34, %v1415_v35  ;;  %v1920_v40 = vadd.f32 %v1919_v31, %v1751_v36 }
 0x25b   : > { %v2001_v45 = vmax.f32 %v1920_v40, 0.0 }
 0x25e   : > { %v1752_v38 = vpop.f32.mrf.mxu2  ;;  %v1417_v42 = vpop.f32.mrf.mxu0 }
 0x25f   : > { %v1921_v39 = vpop.f32.mrf.mxu3  ;;  %v1753_v41 = vadd.f32 %v1752_v38, %v1584_v37  ;;  %v1586_v43 = vpop.f32.mrf.mxu1  ;;  %v1418_v47 = vadd.f32 %v4157_v5, %v1417_v42 }
 0x261   : > { %v1922_v44 = vadd.f32 %v1921_v39, %v1753_v41  ;;  %v1587_v51 = vadd.f32 %v1586_v43, %v1418_v47 }
 0x263   : > { %v2002_v46 = vmax.f32 %v1922_v44, 0.0 }
 0x265   : > { %v3484_v48 = vpack.c.bf16 %v2002_v46, %v2001_v45 }
 0x266   : > { %v1755_v49 = vpop.f32.mrf.mxu2  ;;  %v1419_v52 = vpop.f32.mrf.mxu0 }
 0x267   : > { %v1924_v50 = vpop.f32.mrf.mxu3  ;;  %3536 = vst [vmem:[%s4010_s12 + $0xd0] sm:$0xff] %v3484_v48   ;;  %v1588_v53 = vpop.f32.mrf.mxu1  ;;  %v1420_v54 = vadd.f32 %v4157_v5, %v1419_v52  ;;  %v1756_v55 = vadd.f32 %v1755_v49, %v1587_v51 }
 0x269   : > { %v1589_v56 = vadd.f32 %v1588_v53, %v1420_v54  ;;  %v1925_v59 = vadd.f32 %v1924_v50, %v1756_v55 }
 0x26b   : > { %v2003_v0 = vmax.f32 %v1925_v59, 0.0 }
 0x26e   : > { %v1757_v57 = vpop.f32.mrf.mxu2  ;;  %v1422_v61 = vpop.f32.mrf.mxu0 }
 0x26f   : > { %v1926_v58 = vpop.f32.mrf.mxu3  ;;  %v1758_v60 = vadd.f32 %v1757_v57, %v1589_v56  ;;  %v1591_v62 = vpop.f32.mrf.mxu1  ;;  %v1423_v1 = vadd.f32 %v4157_v5, %v1422_v61 }
 0x271   : > { %v1927_v63 = vadd.f32 %v1926_v58, %v1758_v60  ;;  %v1592_v6 = vadd.f32 %v1591_v62, %v1423_v1 }
 0x273   : > { %v2004_v10 = vmax.f32 %v1927_v63, 0.0 }
 0x275   : > { %v3489_v2 = vpack.c.bf16 %v2004_v10, %v2003_v0 }
 0x276   : > { %v1760_v3 = vpop.f32.mrf.mxu2  ;;  %v1424_v7 = vpop.f32.mrf.mxu0 }
 0x277   : > { %v1929_v4 = vpop.f32.mrf.mxu3  ;;  %3537 = vst [vmem:[%s4010_s12 + $0xd8] sm:$0xff] %v3489_v2   ;;  %v1593_v8 = vpop.f32.mrf.mxu1  ;;  %v1425_v9 = vadd.f32 %v4157_v5, %v1424_v7  ;;  %v1761_v11 = vadd.f32 %v1760_v3, %v1592_v6 }
 0x279   : > { %v1594_v12 = vadd.f32 %v1593_v8, %v1425_v9  ;;  %v1930_v15 = vadd.f32 %v1929_v4, %v1761_v11 }
 0x27b   : > { %v2005_v20 = vmax.f32 %v1930_v15, 0.0 }
 0x27e   : > { %v1762_v13 = vpop.f32.mrf.mxu2  ;;  %v1427_v17 = vpop.f32.mrf.mxu0 }
 0x27f   : > { %v1931_v14 = vpop.f32.mrf.mxu3  ;;  %v1763_v16 = vadd.f32 %v1762_v13, %v1594_v12  ;;  %v1596_v18 = vpop.f32.mrf.mxu1  ;;  %v1428_v22 = vadd.f32 %v4157_v5, %v1427_v17 }
 0x281   : > { %v1932_v19 = vadd.f32 %v1931_v14, %v1763_v16  ;;  %v1597_v26 = vadd.f32 %v1596_v18, %v1428_v22 }
 0x283   : > { %v2006_v21 = vmax.f32 %v1932_v19, 0.0 }
 0x285   : > { %v3494_v23 = vpack.c.bf16 %v2006_v21, %v2005_v20 }
 0x286   : > { %v1765_v24 = vpop.f32.mrf.mxu2  ;;  %v1429_v27 = vpop.f32.mrf.mxu0 }
 0x287   : > { %v1934_v25 = vpop.f32.mrf.mxu3  ;;  %3538 = vst [vmem:[%s4010_s12 + $0xe0] sm:$0xff] %v3494_v23   ;;  %v1598_v28 = vpop.f32.mrf.mxu1  ;;  %v1430_v29 = vadd.f32 %v4157_v5, %v1429_v27  ;;  %v1766_v30 = vadd.f32 %v1765_v24, %v1597_v26 }
 0x289   : > { %v1599_v31 = vadd.f32 %v1598_v28, %v1430_v29  ;;  %v1935_v34 = vadd.f32 %v1934_v25, %v1766_v30 }
 0x28b   : > { %v2007_v39 = vmax.f32 %v1935_v34, 0.0 }
 0x28e   : > { %v1767_v32 = vpop.f32.mrf.mxu2  ;;  %v1432_v36 = vpop.f32.mrf.mxu0 }
 0x28f   : > { %v1936_v33 = vpop.f32.mrf.mxu3  ;;  %v1768_v35 = vadd.f32 %v1767_v32, %v1599_v31  ;;  %v1601_v37 = vpop.f32.mrf.mxu1  ;;  %v1433_v41 = vadd.f32 %v4157_v5, %v1432_v36 }
 0x291   : > { %v1937_v38 = vadd.f32 %v1936_v33, %v1768_v35  ;;  %v1602_v45 = vadd.f32 %v1601_v37, %v1433_v41 }
 0x293   : > { %v2008_v40 = vmax.f32 %v1937_v38, 0.0 }
 0x295   : > { %v3499_v42 = vpack.c.bf16 %v2008_v40, %v2007_v39 }
 0x296   : > { %v1770_v43 = vpop.f32.mrf.mxu2  ;;  %v1434_v46 = vpop.f32.mrf.mxu0 }
 0x297   : > { %v1939_v44 = vpop.f32.mrf.mxu3  ;;  %3539 = vst [vmem:[%s4010_s12 + $0xe8] sm:$0xff] %v3499_v42   ;;  %v1603_v47 = vpop.f32.mrf.mxu1  ;;  %v1435_v48 = vadd.f32 %v4157_v5, %v1434_v46  ;;  %v1771_v49 = vadd.f32 %v1770_v43, %v1602_v45 }
 0x299   : > { %v1604_v50 = vadd.f32 %v1603_v47, %v1435_v48  ;;  %v1940_v53 = vadd.f32 %v1939_v44, %v1771_v49 }
 0x29b   : > { %v2009_v58 = vmax.f32 %v1940_v53, 0.0 }
 0x29e   : > { %v1772_v51 = vpop.f32.mrf.mxu2  ;;  %v1437_v55 = vpop.f32.mrf.mxu0 }
 0x29f   : > { %v1941_v52 = vpop.f32.mrf.mxu3  ;;  %v1773_v54 = vadd.f32 %v1772_v51, %v1604_v50  ;;  %v1606_v57 = vpop.f32.mrf.mxu1  ;;  %v1438_v60 = vadd.f32 %v4157_v5, %v1437_v55 }
 0x2a1   : > { %v1942_v56 = vadd.f32 %v1941_v52, %v1773_v54  ;;  %v1607_v0 = vadd.f32 %v1606_v57, %v1438_v60 }
 0x2a3   : > { %v2010_v59 = vmax.f32 %v1942_v56, 0.0 }
 0x2a5   : > { %v3504_v61 = vpack.c.bf16 %v2010_v59, %v2009_v58 }
 0x2a6   : > { %v1775_v62 = vpop.f32.mrf.mxu2  ;;  %v1439_v10 = vpop.f32.mrf.mxu0 }
 0x2a7   : > { %v1944_v63 = vpop.f32.mrf.mxu3  ;;  %3540 = vst [vmem:[%s4010_s12 + $0xf0] sm:$0xff] %v3504_v61   ;;  %v1440_v1 = vadd.f32 %v4157_v5, %v1439_v10  ;;  %v1776_v2 = vadd.f32 %v1775_v62, %v1607_v0  ;;  %v1608_v3 = vpop.f32.mrf.mxu1 }
 0x2a9   : > { %v1609_v4 = vadd.f32 %v1608_v3, %v1440_v1  ;;  %v1945_v7 = vadd.f32 %v1944_v63, %v1776_v2 }
 0x2ab   : > { %v2011_v12 = vmax.f32 %v1945_v7, 0.0 }
 0x2ae   : > { %v1777_v6 = vpop.f32.mrf.mxu2 }
 0x2af   : > { %v1778_v8 = vadd.f32 %v1777_v6, %v1609_v4  ;;  %v1946_v9 = vpop.f32.mrf.mxu3 }
 0x2b1   : > { %v1947_v11 = vadd.f32 %v1946_v9, %v1778_v8 }
 0x2b3   : > { %v2012_v13 = vmax.f32 %v1947_v11, 0.0  ;;  %2147 = sbr.rel (!%p3804_p3) target bundleno = 760 (0x2f8), region = 36 }
 0x2b5   : > { %v3509_v14 = vpack.c.bf16 %v2012_v13, %v2011_v12 }
 0x2b7   : > { %3541 = vst [vmem:[%s4010_s12 + $0xf8] sm:$0xff] %v3509_v14  }
 0x2b8   : > { %s4450_s24 = smov (!%p2150_p9, %s2149_s24), 64 }
 0x2b9   : > { %s3172_s4 = sshll.u32 %s4450_s24, 2 }
 0x2ba   : > { %p3175_p10 = scmp.eq.s32.totalorder %s3172_s4, 0 }
 0x2bb   : > { %s4299_s5 = sshrl.u32 (!%p3175_p10), %s4450_s24, 5 }
 0x2bc   : > { %2159 = sbr.rel (%p3175_p10) target bundleno = 760 (0x2f8), region = 40  ;;  %p3176_p11 = scmp.le.s32.totalorder (!%p3175_p10), %s4299_s5, 0 }
 0x2c1   : > { %2449 = sbr.rel (%p3176_p11) target bundleno = 743 (0x2e7), region = 118  ;;  %s4438_s14 = smov (!%p3176_p11), %s4293_s30 }
 0x2c2   : > { %s4439_s20 = smov (!%p3176_p11), %s4010_s12  ;;  %s4308_s28 = smov (!%p3176_p11), 0  }
 0x2c3   : > { %s4310_s6 = smov (!%p3176_p11), 0  }
 0x2c6 LB: >> { %v2176_v5 = vld [vmem:[%s3726_s20] sm:$0xf]  ;;  %v2178_v15 = vld [vmem:[%s3726_s20 + $0x4] sm:$0xf]  ;;  %v2180_v16 = vld [vmem:[%s3726_s20 + $0x8] sm:$0xf]  ;;  %s3734_s6 = sphi %s4310_s6, %s2170_s6   ;;  %s3730_s28 = sphi %s4308_s28, %s4442_s28   ;;  %s3726_s20 = sphi %s4439_s20, %s4441_s20   ;;  %s3722_s14 = sphi %s4438_s14, %s4440_s14  }
 0x2c7   : >> { %2177 = vst [vmem:[%s3722_s14] sm:$0xf] %v2176_v5  ;;  %v2182_v17 = vld [vmem:[%s3726_s20 + $0xc] sm:$0xf]  ;;  %v2184_v18 = vld [vmem:[%s3726_s20 + $0x10] sm:$0xf]  ;;  %s2240_s7 = sadd.s32 1, %s3730_s28 }
 0x2c8   : >> { %2179 = vst [vmem:[%s3722_s14 + $0x4] sm:$0xf] %v2178_v15  ;;  %v2186_v19 = vld [vmem:[%s3726_s20 + $0x14] sm:$0xf]  ;;  %v2188_v20 = vld [vmem:[%s3726_s20 + $0x18] sm:$0xf]  ;;  %p2241_p12 = scmp.ge.s32.totalorder %s2240_s7, %s4299_s5 }
 0x2c9   : >> { %2181 = vst [vmem:[%s3722_s14 + $0x8] sm:$0xf] %v2180_v16  ;;  %v2190_v21 = vld [vmem:[%s3726_s20 + $0x1c] sm:$0xf]  ;;  %v2192_v22 = vld [vmem:[%s3726_s20 + $0x20] sm:$0xf] }
 0x2ca   : >> { %2183 = vst [vmem:[%s3722_s14 + $0xc] sm:$0xf] %v2182_v17  ;;  %v2194_v23 = vld [vmem:[%s3726_s20 + $0x24] sm:$0xf]  ;;  %v2196_v24 = vld [vmem:[%s3726_s20 + $0x28] sm:$0xf] }
 0x2cb   : >> { %2185 = vst [vmem:[%s3722_s14 + $0x10] sm:$0xf] %v2184_v18  ;;  %v2198_v25 = vld [vmem:[%s3726_s20 + $0x2c] sm:$0xf]  ;;  %v2200_v26 = vld [vmem:[%s3726_s20 + $0x30] sm:$0xf] }
 0x2cc   : >> { %2187 = vst [vmem:[%s3722_s14 + $0x14] sm:$0xf] %v2186_v19  ;;  %v2202_v27 = vld [vmem:[%s3726_s20 + $0x34] sm:$0xf]  ;;  %v2204_v28 = vld [vmem:[%s3726_s20 + $0x38] sm:$0xf] }
 0x2cd   : >> { %2189 = vst [vmem:[%s3722_s14 + $0x18] sm:$0xf] %v2188_v20  ;;  %v2206_v29 = vld [vmem:[%s3726_s20 + $0x3c] sm:$0xf]  ;;  %v2208_v30 = vld [vmem:[%s3726_s20 + $0x40] sm:$0xf] }
 0x2ce   : >> { %2191 = vst [vmem:[%s3722_s14 + $0x1c] sm:$0xf] %v2190_v21  ;;  %v2210_v31 = vld [vmem:[%s3726_s20 + $0x44] sm:$0xf]  ;;  %s4452_s7 = smov (%p2241_p12, %s2240_s7), 0  ;;  %s2170_s6 = sadd.s32 1, %s3734_s6  }
 0x2cf   : >> { %2193 = vst [vmem:[%s3722_s14 + $0x20] sm:$0xf] %v2192_v22  ;;  %v2212_v32 = vld [vmem:[%s3726_s20 + $0x48] sm:$0xf]  ;;  %v2214_v33 = vld [vmem:[%s3726_s20 + $0x4c] sm:$0xf]  ;;  %p2169_p13 = scmp.ge.s32.totalorder %s2170_s6, %s4299_s5  ;;  %s4442_s28 = smov %s4452_s7 }
 0x2d0   : >> { %2195 = vst [vmem:[%s3722_s14 + $0x24] sm:$0xf] %v2194_v23  ;;  %s3177_s8 = sshll.u32 %s4452_s7, 7  ;;  %v2216_v34 = vld [vmem:[%s3726_s20 + $0x50] sm:$0xf] }
 0x2d1   : >> { %2197 = vst [vmem:[%s3722_s14 + $0x28] sm:$0xf] %v2196_v24  ;;  %s4369_s9 = scalar_lea.vmem %s4010_s12, %s3177_s8 [#allocation2]   ;;  %s2246_s10 = scalar_lea.vmem %s4293_s30, %s3177_s8   ;;  %v2218_v35 = vld [vmem:[%s3726_s20 + $0x54] sm:$0xf]  ;;  %v2220_v36 = vld [vmem:[%s3726_s20 + $0x58] sm:$0xf] }
 0x2d2   : >> { %2199 = vst [vmem:[%s3722_s14 + $0x2c] sm:$0xf] %v2198_v25  ;;  %v2222_v37 = vld [vmem:[%s3726_s20 + $0x5c] sm:$0xf]  ;;  %v2224_v38 = vld [vmem:[%s3726_s20 + $0x60] sm:$0xf] }
 0x2d3   : >> { %2201 = vst [vmem:[%s3722_s14 + $0x30] sm:$0xf] %v2200_v26  ;;  %v2226_v39 = vld [vmem:[%s3726_s20 + $0x64] sm:$0xf]  ;;  %v2228_v40 = vld [vmem:[%s3726_s20 + $0x68] sm:$0xf] }
 0x2d4   : >> { %2203 = vst [vmem:[%s3722_s14 + $0x34] sm:$0xf] %v2202_v27  ;;  %v2230_v41 = vld [vmem:[%s3726_s20 + $0x6c] sm:$0xf]  ;;  %v2232_v42 = vld [vmem:[%s3726_s20 + $0x70] sm:$0xf] }
 0x2d5   : >> { %2205 = vst [vmem:[%s3722_s14 + $0x38] sm:$0xf] %v2204_v28  ;;  %v2234_v43 = vld [vmem:[%s3726_s20 + $0x74] sm:$0xf]  ;;  %v2236_v44 = vld [vmem:[%s3726_s20 + $0x78] sm:$0xf] }
 0x2d6   : >> { %2207 = vst [vmem:[%s3722_s14 + $0x3c] sm:$0xf] %v2206_v29  ;;  %v2238_v45 = vld [vmem:[%s3726_s20 + $0x7c] sm:$0xf]  ;;  %s4441_s20 = smov %s4369_s9 }
 0x2d7   : >> { %2209 = vst [vmem:[%s3722_s14 + $0x40] sm:$0xf] %v2208_v30 }
 0x2d8   : >> { %2211 = vst [vmem:[%s3722_s14 + $0x44] sm:$0xf] %v2210_v31 }
 0x2d9   : >> { %2213 = vst [vmem:[%s3722_s14 + $0x48] sm:$0xf] %v2212_v32 }
 0x2da   : >> { %2215 = vst [vmem:[%s3722_s14 + $0x4c] sm:$0xf] %v2214_v33 }
 0x2db   : >> { %2217 = vst [vmem:[%s3722_s14 + $0x50] sm:$0xf] %v2216_v34 }
 0x2dc   : >> { %2219 = vst [vmem:[%s3722_s14 + $0x54] sm:$0xf] %v2218_v35 }
 0x2dd   : >> { %2221 = vst [vmem:[%s3722_s14 + $0x58] sm:$0xf] %v2220_v36 }
 0x2de   : >> { %2223 = vst [vmem:[%s3722_s14 + $0x5c] sm:$0xf] %v2222_v37 }
 0x2df   : >> { %2225 = vst [vmem:[%s3722_s14 + $0x60] sm:$0xf] %v2224_v38 }
 0x2e0   : >> { %2227 = vst [vmem:[%s3722_s14 + $0x64] sm:$0xf] %v2226_v39 }
 0x2e1   : >> { %2229 = vst [vmem:[%s3722_s14 + $0x68] sm:$0xf] %v2228_v40 }
 0x2e2   : >> { %2231 = vst [vmem:[%s3722_s14 + $0x6c] sm:$0xf] %v2230_v41  ;;  %2172 = sbr.rel (!%p2169_p13) target bundleno = 710 (0x2c6), region = 124 }
 0x2e3   : >> { %2233 = vst [vmem:[%s3722_s14 + $0x70] sm:$0xf] %v2232_v42 }
 0x2e4   : >> { %2235 = vst [vmem:[%s3722_s14 + $0x74] sm:$0xf] %v2234_v43 }
 0x2e5   : >> { %2237 = vst [vmem:[%s3722_s14 + $0x78] sm:$0xf] %v2236_v44 }
 0x2e6   : >> { %2239 = vst [vmem:[%s3722_s14 + $0x7c] sm:$0xf] %v2238_v45  ;;  %s4440_s14 = smov %s2246_s10 }
 0x2e7 PF: > { %s4410_s11 = sand.u32 31, %s4450_s24   ;;  %s3349_s17 = sshll.u32 %s4299_s5, 7 }
 0x2e8   : > { %s2251_s19 = scalar_lea.vmem %s4010_s12, %s3349_s17 [#allocation2]   ;;  %s2253_s21 = scalar_lea.vmem %s4293_s30, %s3349_s17  }
 0x2e9   : > { %p3182_p0 = scmp.le.s32.totalorder %s4410_s11, 0 }
 0x2ea   : > { %s3736_s23 = smov (!%p3182_p0), %s2253_s21   ;;  %s3740_s25 = smov (!%p3182_p0), %s2251_s19  }
 0x2eb   : > { %2463 = sbr.rel (%p3182_p0) target bundleno = 760 (0x2f8), region = 129  ;;  %s3744_s26 = smov (!%p3182_p0), 0  }
 0x2ec   : > { %s3748_s27 = smov (!%p3182_p0), 0  }
 0x2f0 LB: >> { %v2263_v46 = vld [vmem:[%s3742_s25] sm:$0xf]  ;;  %s2265_s24 = sadd.s32 1, %s3746_s26  ;;  %s2257_s27 = sadd.s32 1, %s3750_s27   ;;  %s3750_s27 = sphi %s3748_s27, %s2257_s27   ;;  %s3746_s26 = sphi %s3744_s26, %s3745_s26   ;;  %s3742_s25 = sphi %s3740_s25, %s2270_s25   ;;  %s3738_s23 = sphi %s3736_s23, %s2271_s23  }
 0x2f1   : >> { %2264 = vst [vmem:[%s3738_s23] sm:$0xf] %v2263_v46  ;;  %p2266_p1 = scmp.ge.s32.totalorder %s2265_s24, %s4410_s11  ;;  %p2256_p2 = scmp.ge.s32.totalorder %s2257_s27, %s4410_s11 }
 0x2f3   : >> { %s4454_s24 = smov (%p2266_p1, %s2265_s24), 0  ;;  %2259 = sbr.rel (!%p2256_p2) target bundleno = 752 (0x2f0), region = 135 }
 0x2f4   : >> { %s3183_s12 = sshll.u32 %s4454_s24, 2  ;;  %s3745_s26 = smov %s4454_s24  }
 0x2f5   : >> { %s2270_s25 = scalar_lea.vmem %s2251_s19, %s3183_s12 [#allocation2]   ;;  %s2271_s23 = scalar_lea.vmem %s2253_s21, %s3183_s12  }
 0x2f8 PF: > { %s13_s16 = sadd.s32 1, %s3718_s16   ;;  %s4443_s12 = smov %s3706_s13 }
 0x2f9   : > { %p10_p3 = scmp.ge.s32.totalorder %s13_s16, 6   ;;  %s4444_s13 = smov %s3813_s22 }
 0x2fa   : > { %s4445_s14 = smov %s3714_s15  ;;  %s4446_s15 = smov %s4448_s18 }
 0x2fb   :  { %12 = sbr.rel (!%p10_p3) target bundleno = 3 (0x3), region = 146 }

// kernel: encoder_forward.7
= control target key start
LH: loop header
LB: loop body
LE: loop exit
PB: predicated region body
PF: predicated region fallthrough
CT: control target
= control target key end

     0   :  { %s4032_s12 = smov 0   ;;  %s4034_s13 = smov 0   ;;  %s4833_s0 = inlined_call_operand.vmem [shape: bf16[392,1024], index: 0, kind: input, shape index: {}]   ;;  %s4834_s1 = inlined_call_operand.vmem [shape: bf16[1024,128], index: 1, kind: input, shape index: {}]   ;;  %s4835_s2 = inlined_call_operand.vmem [shape: f32[1,128], index: 2, kind: input, shape index: {}]   ;;  %s4836_s3 = inlined_call_operand.vmem [shape: bf16[392,128], index: 3, kind: output, shape index: {}]  }
   0x1   :  { %s4036_s14 = smov 0   ;;  %s4038_s15 = smov 0  }
   0x2   :  { %s4040_s16 = smov 0  }
   0x3 LB: > { %s2715_s17 = sadd.s32 4294967295, %s3978_s16   ;;  %s25_s18 = sadd.s32 1, %s3974_s15  ;;  %s3978_s16 = sphi %s4040_s16, %s13_s16   ;;  %s3974_s15 = sphi %s4038_s15, %s4846_s15   ;;  %s3970_s14 = sphi %s4036_s14, %s4845_s14   ;;  %s3966_s13 = sphi %s4034_s13, %s4844_s13   ;;  %s3962_s12 = sphi %s4032_s12, %s4843_s12  }
   0x4   : > { %p27_p0 = scmp.ge.s32.totalorder %s25_s18, 2  ;;  %s112_s19 = sadd.s32 1, %s3966_s13 }
   0x5   : > { %p122_p1 = scmp.ne.s32.totalorder %s3966_s13, %s3962_s12  ;;  %p123_p2 = scmp.eq.s32.totalorder %s2715_s17, 1 }
   0x6   : > { %s4848_s18 = smov (%p27_p0, %s25_s18), 0  ;;  %p2721_p4 = scmp.ge.s32.totalorder %s3978_s16, 1 }
   0x7   : > { %p4064_p3 = por %p123_p2, %p122_p1  ;;  %s107_s21 = ssub.s32 %s3974_s15, %s4848_s18 }
   0x8   : > { %p180_p5 = scmp.lt.s32.totalorder %s3978_s16, 3  ;;  %p110_p6 = scmp.eq.s32.totalorder %s107_s21, 0 }
   0xa   : > { %p181_p7 = pnand %p2721_p4, %p180_p5 }
   0xb   : > { %s4073_s22 = scalar_select %p110_p6, %s3966_s13, %s112_s19  }
   0xc   : > { %184 = sbr.rel (%p181_p7) target bundleno = 760 (0x2f8), region = 32  ;;  %s4112_s28 = sshll.u32 (!%p181_p7), %s3970_s14, 5 }
   0xd   : > { %p222_p8 = scmp.lt.s32.totalorder (!%p181_p7), %s4112_s28, 48  ;;  %s213_s11 = sand.u32 (!%p181_p7), 1, %s3962_s12  }
   0xe   : > { %s2722_s17 = sshll.u32 (!%p181_p7), %s213_s11, 7 }
   0xf   : > { %s4591_s12 = scalar_lea.vmem (!%p181_p7), [#allocation2], %s2722_s17  }
  0x11   : > { %v3647_v0 = vld [vmem:[%s4834_s1 + $0x38] sm:$0xff]  ;;  %v3646_v4 = vld [vmem:[%s4834_s1 + $0x30] sm:$0xff]  ;;  %v3645_v8 = vld [vmem:[%s4834_s1 + $0x28] sm:$0xff]  ;;  %s223_s26 = scalar_select %p222_p8, %s4112_s28, 48 }
  0x12   : > { %v3655_v1 = vld [vmem:[%s4834_s1 + $0x78] sm:$0xff]  ;;  %1529 = vmatpush.bf16.msra.mxu0 %v3647_v0  ;;  %v3654_v5 = vld [vmem:[%s4834_s1 + $0x70] sm:$0xff]  ;;  %v3653_v9 = vld [vmem:[%s4834_s1 + $0x68] sm:$0xff]  ;;  %s3704_s19 = sshll.u32 (%p4064_p3), %s3970_s14, 7 }
  0x13   : > { %v3663_v2 = vld [vmem:[%s4834_s1 + $0xb8] sm:$0xff]  ;;  %1618 = vmatpush.bf16.msra.mxu1 %v3655_v1  ;;  %v3662_v6 = vld [vmem:[%s4834_s1 + $0xb0] sm:$0xff]  ;;  %v3661_v10 = vld [vmem:[%s4834_s1 + $0xa8] sm:$0xff]  ;;  %s3511_s9 = sshll.u32 %s223_s26, 5  ;;  %s4693_s25 = scalar_lea.vmem (%p4064_p3), %s4836_s3, %s3704_s19  }
  0x14   : > { %v3671_v3 = vld [vmem:[%s4834_s1 + $0xf8] sm:$0xff]  ;;  %1707 = vmatpush.bf16.msra.mxu2 %v3663_v2  ;;  %v3670_v7 = vld [vmem:[%s4834_s1 + $0xf0] sm:$0xff]  ;;  %v3669_v11 = vld [vmem:[%s4834_s1 + $0xe8] sm:$0xff]  ;;  %s4161_s24 = scalar_lea.vmem %s4833_s0, %s3511_s9 }
  0x15   : > { %1796 = vmatpush.bf16.msra.mxu3 %v3671_v3  ;;  %v3644_v12 = vld [vmem:[%s4834_s1 + $0x20] sm:$0xff]  ;;  %v3643_v16 = vld [vmem:[%s4834_s1 + $0x18] sm:$0xff]  ;;  %v3642_v20 = vld [vmem:[%s4834_s1 + $0x10] sm:$0xff] }
  0x16   : > { %1530 = vmatpush.bf16.msra.mxu0 %v3646_v4  ;;  %v3652_v13 = vld [vmem:[%s4834_s1 + $0x60] sm:$0xff]  ;;  %v3651_v17 = vld [vmem:[%s4834_s1 + $0x58] sm:$0xff]  ;;  %v3650_v21 = vld [vmem:[%s4834_s1 + $0x50] sm:$0xff] }
  0x17   : > { %1619 = vmatpush.bf16.msra.mxu1 %v3654_v5  ;;  %v3660_v14 = vld [vmem:[%s4834_s1 + $0xa0] sm:$0xff]  ;;  %v3659_v18 = vld [vmem:[%s4834_s1 + $0x98] sm:$0xff]  ;;  %v3658_v22 = vld [vmem:[%s4834_s1 + $0x90] sm:$0xff] }
  0x18   : > { %1708 = vmatpush.bf16.msra.mxu2 %v3662_v6  ;;  %v3668_v15 = vld [vmem:[%s4834_s1 + $0xe0] sm:$0xff]  ;;  %v3667_v19 = vld [vmem:[%s4834_s1 + $0xd8] sm:$0xff]  ;;  %v3666_v23 = vld [vmem:[%s4834_s1 + $0xd0] sm:$0xff] }
  0x19   : > { %1797 = vmatpush.bf16.msra.mxu3 %v3670_v7  ;;  %v3641_v24 = vld [vmem:[%s4834_s1 + $0x8] sm:$0xff]  ;;  %v3640_v28 = vld [vmem:[%s4834_s1] sm:$0xff]  ;;  %v3695_v40 = vld [vmem:[%s4834_s1 + $0x1b8] sm:$0xff] }
  0x1a   : > { %1531 = vmatpush.bf16.msra.mxu0 %v3645_v8  ;;  %v3649_v25 = vld [vmem:[%s4834_s1 + $0x48] sm:$0xff]  ;;  %v3648_v29 = vld [vmem:[%s4834_s1 + $0x40] sm:$0xff]  ;;  %v3679_v41 = vld [vmem:[%s4834_s1 + $0x138] sm:$0xff] }
  0x1b   : > { %1620 = vmatpush.bf16.msra.mxu1 %v3653_v9  ;;  %v3657_v26 = vld [vmem:[%s4834_s1 + $0x88] sm:$0xff]  ;;  %v3656_v30 = vld [vmem:[%s4834_s1 + $0x80] sm:$0xff]  ;;  %v3703_v46 = vld [vmem:[%s4834_s1 + $0x1f8] sm:$0xff] }
  0x1c   : > { %1709 = vmatpush.bf16.msra.mxu2 %v3661_v10  ;;  %v3665_v27 = vld [vmem:[%s4834_s1 + $0xc8] sm:$0xff]  ;;  %v3664_v31 = vld [vmem:[%s4834_s1 + $0xc0] sm:$0xff]  ;;  %v3687_v47 = vld [vmem:[%s4834_s1 + $0x178] sm:$0xff] }
  0x1d   : > { %1798 = vmatpush.bf16.msra.mxu3 %v3669_v11  ;;  %v2728_v32 = vld [vmem:[%s4161_s24] sm:$0xf]  ;;  %v3512_v34 = vld [vmem:[%s4161_s24 + $0x4] sm:$0xf]  ;;  %v2736_v36 = vld [vmem:[%s4161_s24 + $0x8] sm:$0xf] }
  0x1e   : > { %1532 = vmatpush.bf16.msra.mxu0 %v3644_v12  ;;  %v3516_v33 = vld [vmem:[%s4161_s24 + $0x1c] sm:$0xf0]  ;;  %v2730_v35 = vld [vmem:[%s4161_s24 + $0x20] sm:$0xf0]  ;;  %v3517_v37 = vld [vmem:[%s4161_s24 + $0x24] sm:$0xf0] }
  0x1f   : > { %1621 = vmatpush.bf16.msra.mxu1 %v3652_v13  ;;  %v3513_v38 = vld [vmem:[%s4161_s24 + $0xc] sm:$0xf]  ;;  %v2729_v42 = vor.u32 %v3516_v33, %v2728_v32  ;;  %v2733_v43 = vor.u32 %v3512_v34, %v2730_v35  ;;  %v2737_v44 = vor.u32 %v3517_v37, %v2736_v36  ;;  %v3694_v48 = vld [vmem:[%s4834_s1 + $0x1b0] sm:$0xff]  ;;  %v2760_v52 = vld [vmem:[%s4161_s24 + $0x40] sm:$0xf] }
  0x20   : > { %1710 = vmatpush.bf16.msra.mxu2 %v3660_v14  ;;  %v2738_v39 = vld [vmem:[%s4161_s24 + $0x28] sm:$0xf0]  ;;  %v3678_v49 = vld [vmem:[%s4834_s1 + $0x130] sm:$0xff]  ;;  %v3524_v53 = vld [vmem:[%s4161_s24 + $0x5c] sm:$0xf0] }
  0x21   : > { %1799 = vmatpush.bf16.msra.mxu3 %v3668_v15  ;;  %v2741_v45 = vor.u32 %v3513_v38, %v2738_v39  ;;  %v3702_v50 = vld [vmem:[%s4834_s1 + $0x1f0] sm:$0xff]  ;;  %v3520_v54 = vld [vmem:[%s4161_s24 + $0x44] sm:$0xf]  ;;  %v2768_v56 = vld [vmem:[%s4161_s24 + $0x48] sm:$0xf]  ;;  %v2761_v60 = vor.u32 %v3524_v53, %v2760_v52 }
  0x22   : > { %1533 = vmatpush.bf16.msra.mxu0 %v3643_v16  ;;  %v3686_v51 = vld [vmem:[%s4834_s1 + $0x170] sm:$0xff]  ;;  %v2762_v55 = vld [vmem:[%s4161_s24 + $0x60] sm:$0xf0]  ;;  %v3525_v57 = vld [vmem:[%s4161_s24 + $0x64] sm:$0xf0] }
  0x23   : > { %1622 = vmatpush.bf16.msra.mxu1 %v3651_v17  ;;  %v3521_v58 = vld [vmem:[%s4161_s24 + $0x4c] sm:$0xf]  ;;  %v2765_v61 = vor.u32 %v3520_v54, %v2762_v55  ;;  %v2769_v62 = vor.u32 %v3525_v57, %v2768_v56  ;;  %v2792_v0 = vld [vmem:[%s4161_s24 + $0x80] sm:$0xf]  ;;  %v3528_v2 = vld [vmem:[%s4161_s24 + $0x84] sm:$0xf] }
  0x24   : > { %1711 = vmatpush.bf16.msra.mxu2 %v3659_v18  ;;  %v2770_v59 = vld [vmem:[%s4161_s24 + $0x68] sm:$0xf0]  ;;  %v3532_v1 = vld [vmem:[%s4161_s24 + $0x9c] sm:$0xf0]  ;;  %v2794_v3 = vld [vmem:[%s4161_s24 + $0xa0] sm:$0xf0] }
  0x25   : > { %1800 = vmatpush.bf16.msra.mxu3 %v3667_v19  ;;  %v2773_v63 = vor.u32 %v3521_v58, %v2770_v59  ;;  %v2800_v4 = vld [vmem:[%s4161_s24 + $0x88] sm:$0xf]  ;;  %v3529_v6 = vld [vmem:[%s4161_s24 + $0x8c] sm:$0xf]  ;;  %v2793_v8 = vor.u32 %v3532_v1, %v2792_v0  ;;  %v2797_v9 = vor.u32 %v3528_v2, %v2794_v3  ;;  %v2824_v16 = vld [vmem:[%s4161_s24 + $0xc0] sm:$0xf] }
  0x26   : > { %1534 = vmatpush.bf16.msra.mxu0 %v3642_v20  ;;  %v3533_v5 = vld [vmem:[%s4161_s24 + $0xa4] sm:$0xf0]  ;;  %v2802_v7 = vld [vmem:[%s4161_s24 + $0xa8] sm:$0xf0]  ;;  %v3540_v17 = vld [vmem:[%s4161_s24 + $0xdc] sm:$0xf0] }
  0x27   : > { %1623 = vmatpush.bf16.msra.mxu1 %v3650_v21  ;;  %v2801_v10 = vor.u32 %v3533_v5, %v2800_v4  ;;  %v2805_v11 = vor.u32 %v3529_v6, %v2802_v7  ;;  %v3693_v12 = vld [vmem:[%s4834_s1 + $0x1a8] sm:$0xff]  ;;  %v3536_v18 = vld [vmem:[%s4161_s24 + $0xc4] sm:$0xf]  ;;  %v2920_v56 = vld [vmem:[%s4161_s24 + $0x180] sm:$0xf] }
  0x28   : > { %1712 = vmatpush.bf16.msra.mxu2 %v3658_v22  ;;  %v3677_v13 = vld [vmem:[%s4834_s1 + $0x128] sm:$0xff]  ;;  %v2826_v19 = vld [vmem:[%s4161_s24 + $0xe0] sm:$0xf0]  ;;  %v3564_v57 = vld [vmem:[%s4161_s24 + $0x19c] sm:$0xf0] }
  0x29   : > { %1801 = vmatpush.bf16.msra.mxu3 %v3666_v23  ;;  %v3701_v14 = vld [vmem:[%s4834_s1 + $0x1e8] sm:$0xff]  ;;  %v3560_v58 = vld [vmem:[%s4161_s24 + $0x184] sm:$0xf]  ;;  %v2921_v0 = vor.u32 %v3564_v57, %v2920_v56  ;;  %v3691_v4 = vld [vmem:[%s4834_s1 + $0x198] sm:$0xff] }
  0x2a   : > { %1535 = vmatpush.bf16.msra.mxu0 %v3641_v24  ;;  %v3685_v15 = vld [vmem:[%s4834_s1 + $0x168] sm:$0xff]  ;;  %v2825_v24 = vor.u32 %v3540_v17, %v2824_v16  ;;  %v2922_v59 = vld [vmem:[%s4161_s24 + $0x1a0] sm:$0xf0]  ;;  %v3675_v5 = vld [vmem:[%s4834_s1 + $0x118] sm:$0xff] }
  0x2b   : > { %1624 = vmatpush.bf16.msra.mxu1 %v3649_v25  ;;  %v2832_v20 = vld [vmem:[%s4161_s24 + $0xc8] sm:$0xf]  ;;  %v3537_v22 = vld [vmem:[%s4161_s24 + $0xcc] sm:$0xf]  ;;  %v2829_v25 = vor.u32 %v3536_v18, %v2826_v19  ;;  %v2925_v1 = vor.u32 %v3560_v58, %v2922_v59  ;;  %v3699_v6 = vld [vmem:[%s4834_s1 + $0x1d8] sm:$0xff] }
  0x2c   : > { %1713 = vmatpush.bf16.msra.mxu2 %v3657_v26  ;;  %v3541_v21 = vld [vmem:[%s4161_s24 + $0xe4] sm:$0xf0]  ;;  %v2834_v23 = vld [vmem:[%s4161_s24 + $0xe8] sm:$0xf0]  ;;  %v3683_v7 = vld [vmem:[%s4834_s1 + $0x158] sm:$0xff] }
  0x2d   : > { %1802 = vmatpush.bf16.msra.mxu3 %v3665_v27  ;;  %v2833_v26 = vor.u32 %v3541_v21, %v2832_v20  ;;  %v2837_v27 = vor.u32 %v3537_v22, %v2834_v23  ;;  %v2864_v32 = vld [vmem:[%s4161_s24 + $0x108] sm:$0xf]  ;;  %v3545_v34 = vld [vmem:[%s4161_s24 + $0x10c] sm:$0xf]  ;;  %v4308_v20 = vld [vmem:[%s4835_s2] ss:$0 sm:$0xff] }
  0x2e   : > { %1536 = vmatpush.bf16.msra.mxu0 %v3640_v28  ;;  %v2856_v28 = vld [vmem:[%s4161_s24 + $0x100] sm:$0xf]  ;;  %v3549_v33 = vld [vmem:[%s4161_s24 + $0x124] sm:$0xf0]  ;;  %v2866_v35 = vld [vmem:[%s4161_s24 + $0x128] sm:$0xf0] }
  0x2f   : > { %1625 = vmatpush.bf16.msra.mxu1 %v3648_v29  ;;  %v3548_v29 = vld [vmem:[%s4161_s24 + $0x11c] sm:$0xf0]  ;;  %v2865_v38 = vor.u32 %v3549_v33, %v2864_v32  ;;  %v2869_v39 = vor.u32 %v3545_v34, %v2866_v35  ;;  %v3576_v23 = vld [vmem:[%s4161_s24 + $0x204] sm:$0xf]  ;;  %v3026_v56 = vld [vmem:[%s4161_s24 + $0x268] sm:$0xf0] }
  0x30   : > { %1714 = vmatpush.bf16.msra.mxu2 %v3656_v30  ;;  %v3544_v30 = vld [vmem:[%s4161_s24 + $0x104] sm:$0xf]  ;;  %v2857_v36 = vor.u32 %v3548_v29, %v2856_v28  ;;  %v2984_v21 = vld [vmem:[%s4161_s24 + $0x200] sm:$0xf]  ;;  %v2994_v28 = vld [vmem:[%s4161_s24 + $0x228] sm:$0xf0] }
  0x31   : > { %1803 = vmatpush.bf16.msra.mxu3 %v3664_v31  ;;  %1537 = vmatmul.bf16.vlgmr.msra.gmra.mxu0 %v2729_v42  ;;  %v2858_v31 = vld [vmem:[%s4161_s24 + $0x120] sm:$0xf0]  ;;  %v3580_v22 = vld [vmem:[%s4161_s24 + $0x21c] sm:$0xf0] }
  0x32   : > { %1885 = vmatpush.bf16.msrb.mxu0 %v3679_v41  ;;  %1626 = vmatmul.bf16.vlgmr.msra.gmra.mxu1 %v2733_v43  ;;  %v2861_v37 = vor.u32 %v3544_v30, %v2858_v31  ;;  %v3676_v41 = vld [vmem:[%s4834_s1 + $0x120] sm:$0xff]  ;;  %v2985_v29 = vor.u32 %v3580_v22, %v2984_v21  ;;  %v3058_v21 = vld [vmem:[%s4161_s24 + $0x2a8] sm:$0xf0] }
  0x33   : > { %1715 = vmatmul.bf16.vlgmr.msra.gmra.mxu2 %v2737_v44  ;;  %1974 = vmatpush.bf16.msrb.mxu1 %v3687_v47  ;;  %v3700_v42 = vld [vmem:[%s4834_s1 + $0x1e0] sm:$0xff] }
  0x34   : > { %2063 = vmatpush.bf16.msrb.mxu2 %v3695_v40  ;;  %1804 = vmatmul.bf16.vlgmr.msra.gmra.mxu3 %v2741_v45  ;;  %v3692_v40 = vld [vmem:[%s4834_s1 + $0x1a0] sm:$0xff] }
  0x35   : > { %2152 = vmatpush.bf16.msrb.mxu3 %v3703_v46  ;;  %v3684_v43 = vld [vmem:[%s4834_s1 + $0x160] sm:$0xff] }
  0x36   : > { %1886 = vmatpush.bf16.msrb.mxu0 %v3678_v49  ;;  %v2888_v44 = vld [vmem:[%s4161_s24 + $0x140] sm:$0xf]  ;;  %v3552_v46 = vld [vmem:[%s4161_s24 + $0x144] sm:$0xf]  ;;  %v3557_v49 = vld [vmem:[%s4161_s24 + $0x164] sm:$0xf0] }
  0x37   : > { %1975 = vmatpush.bf16.msrb.mxu1 %v3686_v51  ;;  %v3556_v45 = vld [vmem:[%s4161_s24 + $0x15c] sm:$0xf0]  ;;  %v2890_v47 = vld [vmem:[%s4161_s24 + $0x160] sm:$0xf0]  ;;  %v2898_v51 = vld [vmem:[%s4161_s24 + $0x168] sm:$0xf0] }
  0x38   : > { %2064 = vmatpush.bf16.msrb.mxu2 %v3694_v48  ;;  %v2896_v48 = vld [vmem:[%s4161_s24 + $0x148] sm:$0xf]  ;;  %v2889_v52 = vor.u32 %v3556_v45, %v2888_v44  ;;  %v2893_v53 = vor.u32 %v3552_v46, %v2890_v47  ;;  %v3682_v47 = vld [vmem:[%s4834_s1 + $0x150] sm:$0xff] }
  0x39   : > { %2153 = vmatpush.bf16.msrb.mxu3 %v3702_v50  ;;  %v3553_v50 = vld [vmem:[%s4161_s24 + $0x14c] sm:$0xf]  ;;  %v2897_v54 = vor.u32 %v3557_v49, %v2896_v48  ;;  %v3016_v49 = vld [vmem:[%s4161_s24 + $0x240] sm:$0xf] }
  0x3a   : > { %1887 = vmatpush.bf16.msrb.mxu0 %v3677_v13  ;;  %v2901_v55 = vor.u32 %v3553_v50, %v2898_v51  ;;  %v3573_v13 = vld [vmem:[%s4161_s24 + $0x1e4] sm:$0xf0]  ;;  %v3588_v50 = vld [vmem:[%s4161_s24 + $0x25c] sm:$0xf0]  ;;  %v3584_v51 = vld [vmem:[%s4161_s24 + $0x244] sm:$0xf] }
  0x3b   : > { %1976 = vmatpush.bf16.msrb.mxu1 %v3685_v15  ;;  %v2962_v15 = vld [vmem:[%s4161_s24 + $0x1e8] sm:$0xf0]  ;;  %v3017_v59 = vor.u32 %v3588_v50, %v3016_v49  ;;  %v3600_v49 = vld [vmem:[%s4161_s24 + $0x2c4] sm:$0xf] }
  0x3c   : > { %2065 = vmatpush.bf16.msrb.mxu2 %v3693_v12  ;;  %v2960_v12 = vld [vmem:[%s4161_s24 + $0x1c8] sm:$0xf]  ;;  %v3082_v50 = vld [vmem:[%s4161_s24 + $0x2e0] sm:$0xf0] }
  0x3d   : > { %2154 = vmatpush.bf16.msrb.mxu3 %v3701_v14  ;;  %v3569_v14 = vld [vmem:[%s4161_s24 + $0x1cc] sm:$0xf]  ;;  %v2961_v18 = vor.u32 %v3573_v13, %v2960_v12  ;;  %v3048_v13 = vld [vmem:[%s4161_s24 + $0x280] sm:$0xf] }
  0x3e   : > { %1888 = vmatpush.bf16.msrb.mxu0 %v3676_v41  ;;  %v2965_v19 = vor.u32 %v3569_v14, %v2962_v15  ;;  %v3596_v14 = vld [vmem:[%s4161_s24 + $0x29c] sm:$0xf0]  ;;  %v3592_v15 = vld [vmem:[%s4161_s24 + $0x284] sm:$0xf] }
  0x3f   : > { %1977 = vmatpush.bf16.msrb.mxu1 %v3684_v43 }
  0x40   : > { %2066 = vmatpush.bf16.msrb.mxu2 %v3692_v40 }
  0x41   : > { %1542 = vmatmul.bf16.gmra.mxu0 %v2761_v60  ;;  %2155 = vmatpush.bf16.msrb.mxu3 %v3700_v42  ;;  %v2928_v60 = vld [vmem:[%s4161_s24 + $0x188] sm:$0xf] }
  0x42   : > { %1631 = vmatmul.bf16.gmra.mxu1 %v2765_v61  ;;  %v3565_v61 = vld [vmem:[%s4161_s24 + $0x1a4] sm:$0xf0]  ;;  %1889 = vmatpush.bf16.msrb.mxu0 %v3675_v5 }
  0x43   : > { %1720 = vmatmul.bf16.gmra.mxu2 %v2769_v62  ;;  %v3561_v62 = vld [vmem:[%s4161_s24 + $0x18c] sm:$0xf]  ;;  %v2929_v2 = vor.u32 %v3565_v61, %v2928_v60  ;;  %1978 = vmatpush.bf16.msrb.mxu1 %v3683_v7 }
  0x44   : > { %1809 = vmatmul.bf16.gmra.mxu3 %v2773_v63  ;;  %v2930_v63 = vld [vmem:[%s4161_s24 + $0x1a8] sm:$0xf0]  ;;  %2067 = vmatpush.bf16.msrb.mxu2 %v3691_v4 }
  0x45   : > { %v2933_v3 = vor.u32 %v3561_v62, %v2930_v63  ;;  %2156 = vmatpush.bf16.msrb.mxu3 %v3699_v6 }
  0x47   : > { %1979 = vmatpush.bf16.msrb.mxu1 %v3682_v47  ;;  %v3080_v47 = vld [vmem:[%s4161_s24 + $0x2c0] sm:$0xf] }
  0x51   : > { %1547 = vmatmul.bf16.gmra.mxu0 %v2793_v8  ;;  %v2952_v8 = vld [vmem:[%s4161_s24 + $0x1c0] sm:$0xf] }
  0x52   : > { %1636 = vmatmul.bf16.gmra.mxu1 %v2797_v9  ;;  %v3572_v9 = vld [vmem:[%s4161_s24 + $0x1dc] sm:$0xf0] }
  0x53   : > { %1725 = vmatmul.bf16.gmra.mxu2 %v2801_v10  ;;  %v3568_v10 = vld [vmem:[%s4161_s24 + $0x1c4] sm:$0xf]  ;;  %v2953_v16 = vor.u32 %v3572_v9, %v2952_v8 }
  0x54   : > { %1814 = vmatmul.bf16.gmra.mxu3 %v2805_v11  ;;  %v2954_v11 = vld [vmem:[%s4161_s24 + $0x1e0] sm:$0xf0] }
  0x55   : > { %v2957_v17 = vor.u32 %v3568_v10, %v2954_v11 }
  0x61   : > { %1552 = vmatmul.bf16.gmra.mxu0 %v2825_v24  ;;  %v2986_v24 = vld [vmem:[%s4161_s24 + $0x220] sm:$0xf0] }
  0x62   : > { %1641 = vmatmul.bf16.gmra.mxu1 %v2829_v25  ;;  %v2992_v25 = vld [vmem:[%s4161_s24 + $0x208] sm:$0xf]  ;;  %v2989_v30 = vor.u32 %v3576_v23, %v2986_v24  ;;  %v3049_v24 = vor.u32 %v3596_v14, %v3048_v13  ;;  %v3112_v13 = vld [vmem:[%s4161_s24 + $0x300] sm:$0xf] }
  0x63   : > { %1730 = vmatmul.bf16.gmra.mxu2 %v2833_v26  ;;  %v3581_v26 = vld [vmem:[%s4161_s24 + $0x224] sm:$0xf0]  ;;  %v3612_v14 = vld [vmem:[%s4161_s24 + $0x31c] sm:$0xf0] }
  0x64   : > { %1819 = vmatmul.bf16.gmra.mxu3 %v2837_v27  ;;  %v3577_v27 = vld [vmem:[%s4161_s24 + $0x20c] sm:$0xf]  ;;  %v2993_v33 = vor.u32 %v3581_v26, %v2992_v25 }
  0x65   : > { %v2997_v34 = vor.u32 %v3577_v27, %v2994_v28 }
  0x71   : > { %1557 = vmatmul.bf16.gmra.mxu0 %v2857_v36 }
  0x72   : > { %1646 = vmatmul.bf16.gmra.mxu1 %v2861_v37  ;;  %v3690_v37 = vld [vmem:[%s4834_s1 + $0x190] sm:$0xff] }
  0x73   : > { %1735 = vmatmul.bf16.gmra.mxu2 %v2865_v38  ;;  %v3674_v38 = vld [vmem:[%s4834_s1 + $0x110] sm:$0xff] }
  0x74   : > { %1824 = vmatmul.bf16.gmra.mxu3 %v2869_v39  ;;  %v3698_v39 = vld [vmem:[%s4834_s1 + $0x1d0] sm:$0xff]  ;;  %2068 = vmatpush.bf16.msrb.mxu2 %v3690_v37 }
  0x75   : > { %1890 = vmatpush.bf16.msrb.mxu0 %v3674_v38  ;;  %2157 = vmatpush.bf16.msrb.mxu3 %v3698_v39 }
  0x81   : > { %1562 = vmatmul.bf16.gmra.mxu0 %v2889_v52  ;;  %v3018_v52 = vld [vmem:[%s4161_s24 + $0x260] sm:$0xf0] }
  0x82   : > { %1651 = vmatmul.bf16.gmra.mxu1 %v2893_v53  ;;  %v3024_v53 = vld [vmem:[%s4161_s24 + $0x248] sm:$0xf]  ;;  %v3021_v60 = vor.u32 %v3584_v51, %v3018_v52 }
  0x83   : > { %1740 = vmatmul.bf16.gmra.mxu2 %v2897_v54  ;;  %v3589_v54 = vld [vmem:[%s4161_s24 + $0x264] sm:$0xf0] }
  0x84   : > { %1829 = vmatmul.bf16.gmra.mxu3 %v2901_v55  ;;  %v3585_v55 = vld [vmem:[%s4161_s24 + $0x24c] sm:$0xf]  ;;  %v3088_v51 = vld [vmem:[%s4161_s24 + $0x2c8] sm:$0xf] }
  0x85   : > { %v3605_v52 = vld [vmem:[%s4161_s24 + $0x2e4] sm:$0xf0] }
  0x91   : > { %1567 = vmatmul.bf16.gmra.mxu0 %v2921_v0  ;;  %v3025_v0 = vor.u32 %v3589_v54, %v3024_v53  ;;  %v3601_v53 = vld [vmem:[%s4161_s24 + $0x2cc] sm:$0xf] }
  0x92   : > { %1656 = vmatmul.bf16.gmra.mxu1 %v2925_v1  ;;  %v3029_v1 = vor.u32 %v3585_v55, %v3026_v56  ;;  %v3090_v54 = vld [vmem:[%s4161_s24 + $0x2e8] sm:$0xf0] }
  0x93   : > { %1745 = vmatmul.bf16.gmra.mxu2 %v2929_v2 }
  0x94   : > { %1834 = vmatmul.bf16.gmra.mxu3 %v2933_v3 }
  0xa1   : > { %1572 = vmatmul.bf16.gmra.mxu0 %v2953_v16  ;;  %v3050_v16 = vld [vmem:[%s4161_s24 + $0x2a0] sm:$0xf0] }
  0xa2   : > { %1661 = vmatmul.bf16.gmra.mxu1 %v2957_v17  ;;  %v3056_v17 = vld [vmem:[%s4161_s24 + $0x288] sm:$0xf]  ;;  %v3053_v25 = vor.u32 %v3592_v15, %v3050_v16  ;;  %v3608_v15 = vld [vmem:[%s4161_s24 + $0x304] sm:$0xf] }
  0xa3   : > { %1750 = vmatmul.bf16.gmra.mxu2 %v2961_v18  ;;  %v3597_v18 = vld [vmem:[%s4161_s24 + $0x2a4] sm:$0xf0]  ;;  %v3114_v16 = vld [vmem:[%s4161_s24 + $0x320] sm:$0xf0] }
  0xa4   : > { %1839 = vmatmul.bf16.gmra.mxu3 %v2965_v19  ;;  %v3593_v19 = vld [vmem:[%s4161_s24 + $0x28c] sm:$0xf] }
  0xae   : > { %v1538_v31 = vpop.f32.mrf.mxu0 }
  0xaf   : > { %v1627_v32 = vpop.f32.mrf.mxu1  ;;  %v1539_v35 = vadd.f32 %v4308_v20, %v1538_v31 }
  0xb1   : > { %v1628_v36 = vadd.f32 %v1627_v32, %v1539_v35  ;;  %1577 = vmatmul.bf16.gmra.mxu0 %v2985_v29  ;;  %v3057_v29 = vor.u32 %v3597_v18, %v3056_v17  ;;  %v3673_v35 = vld [vmem:[%s4834_s1 + $0x108] sm:$0xff] }
  0xb2   : > { %1666 = vmatmul.bf16.gmra.mxu1 %v2989_v30  ;;  %v3061_v30 = vor.u32 %v3593_v19, %v3058_v21  ;;  %1891 = vmatpush.bf16.msrb.mxu0 %v3673_v35  ;;  %v3120_v17 = vld [vmem:[%s4161_s24 + $0x308] sm:$0xf]  ;;  %v3609_v19 = vld [vmem:[%s4161_s24 + $0x30c] sm:$0xf]  ;;  %v3688_v35 = vld [vmem:[%s4834_s1 + $0x180] sm:$0xff] }
  0xb3   : > { %1755 = vmatmul.bf16.gmra.mxu2 %v2993_v33  ;;  %v3613_v18 = vld [vmem:[%s4161_s24 + $0x324] sm:$0xf0]  ;;  %v3122_v21 = vld [vmem:[%s4161_s24 + $0x328] sm:$0xf0] }
  0xb4   : > { %1844 = vmatmul.bf16.gmra.mxu3 %v2997_v34  ;;  %v3689_v34 = vld [vmem:[%s4834_s1 + $0x188] sm:$0xff] }
  0xb5   : > { %2069 = vmatpush.bf16.msrb.mxu2 %v3689_v34 }
  0xb6   : > { %v1716_v40 = vpop.f32.mrf.mxu2  ;;  %v1540_v43 = vpop.f32.mrf.mxu0 }
  0xb7   : > { %v1805_v41 = vpop.f32.mrf.mxu3  ;;  %v1717_v42 = vadd.f32 %v1716_v40, %v1628_v36  ;;  %v1629_v44 = vpop.f32.mrf.mxu1  ;;  %v1541_v45 = vadd.f32 %v4308_v20, %v1540_v43  ;;  %v3697_v36 = vld [vmem:[%s4834_s1 + $0x1c8] sm:$0xff] }
  0xb8   : > { %2158 = vmatpush.bf16.msrb.mxu3 %v3697_v36  ;;  %v3672_v36 = vld [vmem:[%s4834_s1 + $0x100] sm:$0xff] }
  0xb9   : > { %v4329_v46 = vadd.f32 %v1805_v41, %v1717_v42  ;;  %v1630_v48 = vadd.f32 %v1629_v44, %v1541_v45  ;;  %v3681_v44 = vld [vmem:[%s4834_s1 + $0x148] sm:$0xff]  ;;  %2070 = vmatpush.bf16.msrb.mxu2 %v3688_v35  ;;  %1892 = vmatpush.bf16.msrb.mxu0 %v3672_v36 }
  0xba   : > { %1980 = vmatpush.bf16.msrb.mxu1 %v3681_v44 }
  0xbe   : > { %v1718_v57 = vpop.f32.mrf.mxu2  ;;  %v1543_v62 = vpop.f32.mrf.mxu0 }
  0xbf   : > { %v1807_v58 = vpop.f32.mrf.mxu3  ;;  %v1719_v61 = vadd.f32 %v1718_v57, %v1630_v48  ;;  %v1632_v63 = vpop.f32.mrf.mxu1  ;;  %v1544_v2 = vadd.f32 %v4308_v20, %v1543_v62  ;;  %v3604_v48 = vld [vmem:[%s4161_s24 + $0x2dc] sm:$0xf0]  ;;  %v3089_v62 = vor.u32 %v3605_v52, %v3088_v51  ;;  %v3616_v51 = vld [vmem:[%s4161_s24 + $0x344] sm:$0xf] }
  0xc0   : > { %v3081_v57 = vor.u32 %v3604_v48, %v3080_v47  ;;  %v3680_v47 = vld [vmem:[%s4834_s1 + $0x140] sm:$0xff] }
  0xc1   : > { %v4343_v3 = vadd.f32 %v1807_v58, %v1719_v61  ;;  %v1633_v4 = vadd.f32 %v1632_v63, %v1544_v2  ;;  %1582 = vmatmul.bf16.gmra.mxu0 %v3017_v59  ;;  %v3085_v58 = vor.u32 %v3600_v49, %v3082_v50  ;;  %v3093_v63 = vor.u32 %v3601_v53, %v3090_v54  ;;  %v3144_v49 = vld [vmem:[%s4161_s24 + $0x340] sm:$0xf]  ;;  %v3146_v52 = vld [vmem:[%s4161_s24 + $0x360] sm:$0xf0]  ;;  %v3152_v53 = vld [vmem:[%s4161_s24 + $0x348] sm:$0xf] }
  0xc2   : > { %1671 = vmatmul.bf16.gmra.mxu1 %v3021_v60  ;;  %v3620_v50 = vld [vmem:[%s4161_s24 + $0x35c] sm:$0xf0]  ;;  %v3621_v54 = vld [vmem:[%s4161_s24 + $0x364] sm:$0xf0] }
  0xc3   : > { %1760 = vmatmul.bf16.gmra.mxu2 %v3025_v0  ;;  %1981 = vmatpush.bf16.msrb.mxu1 %v3680_v47 }
  0xc4   : > { %1849 = vmatmul.bf16.gmra.mxu3 %v3029_v1 }
  0xc6   : > { %v1721_v5 = vpop.f32.mrf.mxu2  ;;  %v1545_v8 = vpop.f32.mrf.mxu0 }
  0xc7   : > { %v1810_v6 = vpop.f32.mrf.mxu3  ;;  %v1722_v7 = vadd.f32 %v1721_v5, %v1633_v4  ;;  %v1634_v9 = vpop.f32.mrf.mxu1  ;;  %v1546_v10 = vadd.f32 %v4308_v20, %v1545_v8 }
  0xc9   : > { %v4346_v11 = vadd.f32 %v1810_v6, %v1722_v7  ;;  %v1635_v12 = vadd.f32 %v1634_v9, %v1546_v10 }
  0xce   : > { %v1723_v22 = vpop.f32.mrf.mxu2  ;;  %v1548_v27 = vpop.f32.mrf.mxu0 }
  0xcf   : > { %v1812_v23 = vpop.f32.mrf.mxu3  ;;  %v1724_v26 = vadd.f32 %v1723_v22, %v1635_v12  ;;  %v1637_v28 = vpop.f32.mrf.mxu1  ;;  %v1549_v31 = vadd.f32 %v4308_v20, %v1548_v27 }
  0xd1   : > { %v4357_v32 = vadd.f32 %v1812_v23, %v1724_v26  ;;  %v1638_v33 = vadd.f32 %v1637_v28, %v1549_v31  ;;  %1587 = vmatmul.bf16.gmra.mxu0 %v3049_v24  ;;  %v3113_v24 = vor.u32 %v3612_v14, %v3112_v13 }
  0xd2   : > { %1676 = vmatmul.bf16.gmra.mxu1 %v3053_v25  ;;  %v3117_v25 = vor.u32 %v3608_v15, %v3114_v16 }
  0xd3   : > { %1765 = vmatmul.bf16.gmra.mxu2 %v3057_v29  ;;  %v3121_v29 = vor.u32 %v3613_v18, %v3120_v17  ;;  %v3176_v17 = vld [vmem:[%s4161_s24 + $0x380] sm:$0xf] }
  0xd4   : > { %1854 = vmatmul.bf16.gmra.mxu3 %v3061_v30  ;;  %v3125_v30 = vor.u32 %v3609_v19, %v3122_v21  ;;  %v3628_v18 = vld [vmem:[%s4161_s24 + $0x39c] sm:$0xf0]  ;;  %v3624_v19 = vld [vmem:[%s4161_s24 + $0x384] sm:$0xf] }
  0xd5   : > { %v3178_v21 = vld [vmem:[%s4161_s24 + $0x3a0] sm:$0xf0] }
  0xd6   : > { %v1726_v37 = vpop.f32.mrf.mxu2  ;;  %v1550_v40 = vpop.f32.mrf.mxu0 }
  0xd7   : > { %v1815_v38 = vpop.f32.mrf.mxu3  ;;  %v1727_v39 = vadd.f32 %v1726_v37, %v1638_v33  ;;  %v1639_v41 = vpop.f32.mrf.mxu1  ;;  %v1551_v42 = vadd.f32 %v4308_v20, %v1550_v40  ;;  %v3696_v37 = vld [vmem:[%s4834_s1 + $0x1c0] sm:$0xff] }
  0xd8   : > { %2159 = vmatpush.bf16.msrb.mxu3 %v3696_v37 }
  0xd9   : > { %v4369_v43 = vadd.f32 %v1815_v38, %v1727_v39  ;;  %v1640_v45 = vadd.f32 %v1639_v41, %v1551_v42 }
  0xde   : > { %v1728_v55 = vpop.f32.mrf.mxu2  ;;  %v1553_v60 = vpop.f32.mrf.mxu0 }
  0xdf   : > { %v1817_v56 = vpop.f32.mrf.mxu3  ;;  %v1729_v59 = vadd.f32 %v1728_v55, %v1640_v45  ;;  %v1642_v61 = vpop.f32.mrf.mxu1  ;;  %v1554_v0 = vadd.f32 %v4308_v20, %v1553_v60  ;;  %v3617_v55 = vld [vmem:[%s4161_s24 + $0x34c] sm:$0xf]  ;;  %v3149_v60 = vor.u32 %v3616_v51, %v3146_v52  ;;  %v3208_v51 = vld [vmem:[%s4161_s24 + $0x3c0] sm:$0xf] }
  0xe0   : > { %v3636_v52 = vld [vmem:[%s4161_s24 + $0x3dc] sm:$0xf0] }
  0xe1   : > { %v4383_v1 = vadd.f32 %v1817_v56, %v1729_v59  ;;  %v1643_v2 = vadd.f32 %v1642_v61, %v1554_v0  ;;  %1592 = vmatmul.bf16.gmra.mxu0 %v3081_v57  ;;  %v3154_v56 = vld [vmem:[%s4161_s24 + $0x368] sm:$0xf0]  ;;  %v3145_v59 = vor.u32 %v3620_v50, %v3144_v49  ;;  %v3153_v0 = vor.u32 %v3621_v54, %v3152_v53  ;;  %v3632_v53 = vld [vmem:[%s4161_s24 + $0x3c4] sm:$0xf] }
  0xe2   : > { %1681 = vmatmul.bf16.gmra.mxu1 %v3085_v58  ;;  %v3210_v54 = vld [vmem:[%s4161_s24 + $0x3e0] sm:$0xf0] }
  0xe3   : > { %1770 = vmatmul.bf16.gmra.mxu2 %v3089_v62 }
  0xe4   : > { %1859 = vmatmul.bf16.gmra.mxu3 %v3093_v63 }
  0xe6   : > { %v1731_v4 = vpop.f32.mrf.mxu2  ;;  %v1555_v7 = vpop.f32.mrf.mxu0 }
  0xe7   : > { %v1820_v5 = vpop.f32.mrf.mxu3  ;;  %v1732_v6 = vadd.f32 %v1731_v4, %v1643_v2  ;;  %v1644_v8 = vpop.f32.mrf.mxu1  ;;  %v1556_v9 = vadd.f32 %v4308_v20, %v1555_v7  ;;  %v3157_v2 = vor.u32 %v3617_v55, %v3154_v56  ;;  %v3216_v55 = vld [vmem:[%s4161_s24 + $0x3c8] sm:$0xf] }
  0xe8   : > { %v3637_v56 = vld [vmem:[%s4161_s24 + $0x3e4] sm:$0xf0] }
  0xe9   : > { %v4386_v10 = vadd.f32 %v1820_v5, %v1732_v6  ;;  %v1645_v12 = vadd.f32 %v1644_v8, %v1556_v9 }
  0xee   : > { %v1733_v22 = vpop.f32.mrf.mxu2  ;;  %v1558_v27 = vpop.f32.mrf.mxu0 }
  0xef   : > { %v1822_v23 = vpop.f32.mrf.mxu3  ;;  %v1734_v26 = vadd.f32 %v1733_v22, %v1645_v12  ;;  %v1647_v28 = vpop.f32.mrf.mxu1  ;;  %v1559_v31 = vadd.f32 %v4308_v20, %v1558_v27  ;;  %v3184_v22 = vld [vmem:[%s4161_s24 + $0x388] sm:$0xf] }
  0xf1   : > { %v4397_v33 = vadd.f32 %v1822_v23, %v1734_v26  ;;  %v1648_v34 = vadd.f32 %v1647_v28, %v1559_v31  ;;  %1597 = vmatmul.bf16.gmra.mxu0 %v3113_v24  ;;  %v3629_v23 = vld [vmem:[%s4161_s24 + $0x3a4] sm:$0xf0]  ;;  %v3625_v24 = vld [vmem:[%s4161_s24 + $0x38c] sm:$0xf]  ;;  %v3177_v28 = vor.u32 %v3628_v18, %v3176_v17 }
  0xf2   : > { %1686 = vmatmul.bf16.gmra.mxu1 %v3117_v25  ;;  %v3186_v25 = vld [vmem:[%s4161_s24 + $0x3a8] sm:$0xf0]  ;;  %v3185_v35 = vor.u32 %v3629_v23, %v3184_v22  ;;  %v2744_v22 = vld [vmem:[%s4161_s24 + $0x10] sm:$0xf] }
  0xf3   : > { %1775 = vmatmul.bf16.gmra.mxu2 %v3121_v29  ;;  %v3181_v29 = vor.u32 %v3624_v19, %v3178_v21  ;;  %v3189_v36 = vor.u32 %v3625_v24, %v3186_v25  ;;  %v3518_v23 = vld [vmem:[%s4161_s24 + $0x2c] sm:$0xf0]  ;;  %v3514_v24 = vld [vmem:[%s4161_s24 + $0x14] sm:$0xf] }
  0xf4   : > { %1864 = vmatmul.bf16.gmra.mxu3 %v3125_v30  ;;  %v2746_v25 = vld [vmem:[%s4161_s24 + $0x30] sm:$0xf0] }
  0xf6   : > { %v1736_v38 = vpop.f32.mrf.mxu2  ;;  %v1560_v41 = vpop.f32.mrf.mxu0 }
  0xf7   : > { %v1825_v39 = vpop.f32.mrf.mxu3  ;;  %v1737_v40 = vadd.f32 %v1736_v38, %v1648_v34  ;;  %v1649_v42 = vpop.f32.mrf.mxu1  ;;  %v1561_v44 = vadd.f32 %v4308_v20, %v1560_v41 }
  0xf9   : > { %v4409_v45 = vadd.f32 %v1825_v39, %v1737_v40  ;;  %v1650_v48 = vadd.f32 %v1649_v42, %v1561_v44 }
  0xfe   : > { %v1738_v57 = vpop.f32.mrf.mxu2  ;;  %v1563_v62 = vpop.f32.mrf.mxu0 }
  0xff   : > { %v1827_v58 = vpop.f32.mrf.mxu3  ;;  %v1739_v61 = vadd.f32 %v1738_v57, %v1650_v48  ;;  %v1652_v63 = vpop.f32.mrf.mxu1  ;;  %v1564_v4 = vadd.f32 %v4308_v20, %v1563_v62  ;;  %v3633_v57 = vld [vmem:[%s4161_s24 + $0x3cc] sm:$0xf]  ;;  %v3213_v62 = vor.u32 %v3632_v53, %v3210_v54 }
 0x101   : > { %v4423_v5 = vadd.f32 %v1827_v58, %v1739_v61  ;;  %v1653_v6 = vadd.f32 %v1652_v63, %v1564_v4  ;;  %1602 = vmatmul.bf16.gmra.mxu0 %v3145_v59  ;;  %v3218_v58 = vld [vmem:[%s4161_s24 + $0x3e8] sm:$0xf0]  ;;  %v3209_v61 = vor.u32 %v3636_v52, %v3208_v51  ;;  %v3217_v4 = vor.u32 %v3637_v56, %v3216_v55 }
 0x102   : > { %1691 = vmatmul.bf16.gmra.mxu1 %v3149_v60 }
 0x103   : > { %1780 = vmatmul.bf16.gmra.mxu2 %v3153_v0 }
 0x104   : > { %1869 = vmatmul.bf16.gmra.mxu3 %v3157_v2 }
 0x106   : > { %v1741_v7 = vpop.f32.mrf.mxu2  ;;  %v1565_v12 = vpop.f32.mrf.mxu0 }
 0x107   : > { %v1830_v8 = vpop.f32.mrf.mxu3  ;;  %v1742_v9 = vadd.f32 %v1741_v7, %v1653_v6  ;;  %v1654_v13 = vpop.f32.mrf.mxu1  ;;  %v1566_v14 = vadd.f32 %v4308_v20, %v1565_v12  ;;  %v3221_v6 = vor.u32 %v3633_v57, %v3218_v58  ;;  %v2776_v57 = vld [vmem:[%s4161_s24 + $0x50] sm:$0xf] }
 0x108   : > { %v3526_v58 = vld [vmem:[%s4161_s24 + $0x6c] sm:$0xf0] }
 0x109   : > { %v4426_v15 = vadd.f32 %v1830_v8, %v1742_v9  ;;  %v1655_v16 = vadd.f32 %v1654_v13, %v1566_v14 }
 0x10e   : > { %v1743_v26 = vpop.f32.mrf.mxu2  ;;  %v1568_v31 = vpop.f32.mrf.mxu0 }
 0x10f   : > { %v1832_v27 = vpop.f32.mrf.mxu3  ;;  %v1744_v30 = vadd.f32 %v1743_v26, %v1655_v16  ;;  %v1657_v34 = vpop.f32.mrf.mxu1  ;;  %v1569_v37 = vadd.f32 %v4308_v20, %v1568_v31  ;;  %v2752_v26 = vld [vmem:[%s4161_s24 + $0x18] sm:$0xf] }
 0x111   : > { %v4437_v38 = vadd.f32 %v1832_v27, %v1744_v30  ;;  %v1658_v39 = vadd.f32 %v1657_v34, %v1569_v37  ;;  %1607 = vmatmul.bf16.gmra.mxu0 %v3177_v28  ;;  %v3519_v27 = vld [vmem:[%s4161_s24 + $0x34] sm:$0xf0]  ;;  %v3515_v28 = vld [vmem:[%s4161_s24 + $0x1c] sm:$0xf]  ;;  %v2745_v34 = vor.u32 %v3518_v23, %v2744_v22 }
 0x112   : > { %1696 = vmatmul.bf16.gmra.mxu1 %v3181_v29  ;;  %v2754_v29 = vld [vmem:[%s4161_s24 + $0x38] sm:$0xf0] }
 0x113   : > { %1785 = vmatmul.bf16.gmra.mxu2 %v3185_v35  ;;  %v2749_v35 = vor.u32 %v3514_v24, %v2746_v25 }
 0x114   : > { %1874 = vmatmul.bf16.gmra.mxu3 %v3189_v36 }
 0x116   : > { %v1746_v40 = vpop.f32.mrf.mxu2  ;;  %v1570_v44 = vpop.f32.mrf.mxu0 }
 0x117   : > { %v1835_v41 = vpop.f32.mrf.mxu3  ;;  %v1747_v42 = vadd.f32 %v1746_v40, %v1658_v39  ;;  %v1659_v47 = vpop.f32.mrf.mxu1  ;;  %v1571_v48 = vadd.f32 %v4308_v20, %v1570_v44  ;;  %v2753_v40 = vor.u32 %v3519_v27, %v2752_v26 }
 0x119   : > { %v4440_v49 = vadd.f32 %v1835_v41, %v1747_v42  ;;  %v1660_v50 = vadd.f32 %v1659_v47, %v1571_v48  ;;  %v2757_v41 = vor.u32 %v3515_v28, %v2754_v29 }
 0x11e   : > { %v1748_v59 = vpop.f32.mrf.mxu2  ;;  %v1573_v0 = vpop.f32.mrf.mxu0 }
 0x11f   : > { %v1837_v60 = vpop.f32.mrf.mxu3  ;;  %v1749_v63 = vadd.f32 %v1748_v59, %v1660_v50  ;;  %v1662_v2 = vpop.f32.mrf.mxu1  ;;  %v1574_v7 = vadd.f32 %v4308_v20, %v1573_v0  ;;  %v3522_v59 = vld [vmem:[%s4161_s24 + $0x54] sm:$0xf]  ;;  %v2786_v0 = vld [vmem:[%s4161_s24 + $0x78] sm:$0xf0] }
 0x121   : > { %v4451_v8 = vadd.f32 %v1837_v60, %v1749_v63  ;;  %v1663_v9 = vadd.f32 %v1662_v2, %v1574_v7  ;;  %1612 = vmatmul.bf16.gmra.mxu0 %v3209_v61  ;;  %v2778_v60 = vld [vmem:[%s4161_s24 + $0x70] sm:$0xf0]  ;;  %v2784_v61 = vld [vmem:[%s4161_s24 + $0x58] sm:$0xf]  ;;  %v3523_v63 = vld [vmem:[%s4161_s24 + $0x5c] sm:$0xf] }
 0x122   : > { %1701 = vmatmul.bf16.gmra.mxu1 %v3213_v62  ;;  %v3527_v62 = vld [vmem:[%s4161_s24 + $0x74] sm:$0xf0]  ;;  %v2781_v7 = vor.u32 %v3522_v59, %v2778_v60 }
 0x123   : > { %1790 = vmatmul.bf16.gmra.mxu2 %v3217_v4 }
 0x124   : > { %1879 = vmatmul.bf16.gmra.mxu3 %v3221_v6  ;;  %v2777_v6 = vor.u32 %v3526_v58, %v2776_v57 }
 0x126   : > { %v1751_v12 = vpop.f32.mrf.mxu2  ;;  %v1575_v16 = vpop.f32.mrf.mxu0 }
 0x127   : > { %v1840_v13 = vpop.f32.mrf.mxu3  ;;  %v1752_v14 = vadd.f32 %v1751_v12, %v1663_v9  ;;  %v1664_v17 = vpop.f32.mrf.mxu1  ;;  %v1576_v18 = vadd.f32 %v4308_v20, %v1575_v16  ;;  %v2789_v16 = vor.u32 %v3523_v63, %v2786_v0 }
 0x129   : > { %v4454_v19 = vadd.f32 %v1840_v13, %v1752_v14  ;;  %v1665_v21 = vadd.f32 %v1664_v17, %v1576_v18  ;;  %v2785_v14 = vor.u32 %v3527_v62, %v2784_v61 }
 0x12e   : > { %v1753_v30 = vpop.f32.mrf.mxu2  ;;  %v1578_v37 = vpop.f32.mrf.mxu0 }
 0x12f   : > { %v1842_v31 = vpop.f32.mrf.mxu3  ;;  %v1754_v36 = vadd.f32 %v1753_v30, %v1665_v21  ;;  %v1667_v39 = vpop.f32.mrf.mxu1  ;;  %v1579_v42 = vadd.f32 %v4308_v20, %v1578_v37  ;;  %v2808_v30 = vld [vmem:[%s4161_s24 + $0x90] sm:$0xf]  ;;  %v3535_v37 = vld [vmem:[%s4161_s24 + $0xb4] sm:$0xf0] }
 0x131   : > { %v4465_v44 = vadd.f32 %v1842_v31, %v1754_v36  ;;  %v1668_v47 = vadd.f32 %v1667_v39, %v1579_v42  ;;  %1893 = vmatmul.bf16.vlgmr.msrb.gmra.mxu0 %v2745_v34  ;;  %v3534_v31 = vld [vmem:[%s4161_s24 + $0xac] sm:$0xf0]  ;;  %v3530_v34 = vld [vmem:[%s4161_s24 + $0x94] sm:$0xf]  ;;  %v2816_v36 = vld [vmem:[%s4161_s24 + $0x98] sm:$0xf] }
 0x132   : > { %1982 = vmatmul.bf16.vlgmr.msrb.gmra.mxu1 %v2749_v35  ;;  %v2810_v35 = vld [vmem:[%s4161_s24 + $0xb0] sm:$0xf0]  ;;  %v3531_v39 = vld [vmem:[%s4161_s24 + $0x9c] sm:$0xf] }
 0x133   : > { %2071 = vmatmul.bf16.vlgmr.msrb.gmra.mxu2 %v2753_v40  ;;  %v2818_v40 = vld [vmem:[%s4161_s24 + $0xb8] sm:$0xf0] }
 0x134   : > { %2160 = vmatmul.bf16.vlgmr.msrb.gmra.mxu3 %v2757_v41 }
 0x136   : > { %v1756_v48 = vpop.f32.mrf.mxu2  ;;  %v1580_v52 = vpop.f32.mrf.mxu0 }
 0x137   : > { %v1845_v50 = vpop.f32.mrf.mxu3  ;;  %v1757_v51 = vadd.f32 %v1756_v48, %v1668_v47  ;;  %v1669_v53 = vpop.f32.mrf.mxu1  ;;  %v1581_v54 = vadd.f32 %v4308_v20, %v1580_v52  ;;  %v2809_v47 = vor.u32 %v3534_v31, %v2808_v30  ;;  %v2813_v48 = vor.u32 %v3530_v34, %v2810_v35 }
 0x139   : > { %v4468_v55 = vadd.f32 %v1845_v50, %v1757_v51  ;;  %v1670_v56 = vadd.f32 %v1669_v53, %v1581_v54  ;;  %v2817_v53 = vor.u32 %v3535_v37, %v2816_v36  ;;  %v2821_v54 = vor.u32 %v3531_v39, %v2818_v40 }
 0x13e   : > { %v1758_v2 = vpop.f32.mrf.mxu2  ;;  %v1583_v12 = vpop.f32.mrf.mxu0 }
 0x13f   : > { %v1847_v4 = vpop.f32.mrf.mxu3  ;;  %v1759_v9 = vadd.f32 %v1758_v2, %v1670_v56  ;;  %v1672_v13 = vpop.f32.mrf.mxu1  ;;  %v1584_v17 = vadd.f32 %v4308_v20, %v1583_v12  ;;  %v2842_v12 = vld [vmem:[%s4161_s24 + $0xf0] sm:$0xf0] }
 0x141   : > { %v4479_v18 = vadd.f32 %v1847_v4, %v1759_v9  ;;  %v1673_v21 = vadd.f32 %v1672_v13, %v1584_v17  ;;  %1898 = vmatmul.bf16.gmra.mxu0 %v2777_v6  ;;  %v2840_v6 = vld [vmem:[%s4161_s24 + $0xd0] sm:$0xf]  ;;  %v3538_v9 = vld [vmem:[%s4161_s24 + $0xd4] sm:$0xf]  ;;  %v2848_v13 = vld [vmem:[%s4161_s24 + $0xd8] sm:$0xf] }
 0x142   : > { %1987 = vmatmul.bf16.gmra.mxu1 %v2781_v7  ;;  %v3542_v7 = vld [vmem:[%s4161_s24 + $0xec] sm:$0xf0]  ;;  %v2850_v17 = vld [vmem:[%s4161_s24 + $0xf8] sm:$0xf0] }
 0x143   : > { %2076 = vmatmul.bf16.gmra.mxu2 %v2785_v14  ;;  %v3543_v14 = vld [vmem:[%s4161_s24 + $0xf4] sm:$0xf0] }
 0x144   : > { %2165 = vmatmul.bf16.gmra.mxu3 %v2789_v16  ;;  %v3539_v16 = vld [vmem:[%s4161_s24 + $0xdc] sm:$0xf] }
 0x145   : > { %v2853_v30 = vor.u32 %v3539_v16, %v2850_v17 }
 0x146   : > { %v1761_v22 = vpop.f32.mrf.mxu2  ;;  %v1585_v25 = vpop.f32.mrf.mxu0 }
 0x147   : > { %v1850_v23 = vpop.f32.mrf.mxu3  ;;  %v1762_v24 = vadd.f32 %v1761_v22, %v1673_v21  ;;  %v1674_v26 = vpop.f32.mrf.mxu1  ;;  %v1586_v27 = vadd.f32 %v4308_v20, %v1585_v25 }
 0x149   : > { %v4482_v28 = vadd.f32 %v1850_v23, %v1762_v24  ;;  %v1675_v29 = vadd.f32 %v1674_v26, %v1586_v27  ;;  %v2841_v23 = vor.u32 %v3542_v7, %v2840_v6  ;;  %v2845_v24 = vor.u32 %v3538_v9, %v2842_v12 }
 0x14e   : > { %v1763_v41 = vpop.f32.mrf.mxu2  ;;  %v1588_v51 = vpop.f32.mrf.mxu0 }
 0x14f   : > { %v1852_v42 = vpop.f32.mrf.mxu3  ;;  %v1764_v50 = vadd.f32 %v1763_v41, %v1675_v29  ;;  %v1677_v52 = vpop.f32.mrf.mxu1  ;;  %v1589_v56 = vadd.f32 %v4308_v20, %v1588_v51  ;;  %v2849_v29 = vor.u32 %v3543_v14, %v2848_v13  ;;  %v3550_v51 = vld [vmem:[%s4161_s24 + $0x12c] sm:$0xf0] }
 0x151   : > { %v4493_v57 = vadd.f32 %v1852_v42, %v1764_v50  ;;  %v1678_v58 = vadd.f32 %v1677_v52, %v1589_v56  ;;  %1903 = vmatmul.bf16.gmra.mxu0 %v2809_v47  ;;  %v2872_v50 = vld [vmem:[%s4161_s24 + $0x110] sm:$0xf]  ;;  %v3546_v52 = vld [vmem:[%s4161_s24 + $0x114] sm:$0xf]  ;;  %v3551_v56 = vld [vmem:[%s4161_s24 + $0x134] sm:$0xf0] }
 0x152   : > { %1992 = vmatmul.bf16.gmra.mxu1 %v2813_v48 }
 0x153   : > { %2081 = vmatmul.bf16.gmra.mxu2 %v2817_v53  ;;  %v2874_v53 = vld [vmem:[%s4161_s24 + $0x130] sm:$0xf0] }
 0x154   : > { %2170 = vmatmul.bf16.gmra.mxu3 %v2821_v54  ;;  %v2880_v54 = vld [vmem:[%s4161_s24 + $0x118] sm:$0xf] }
 0x155   : > { %v2881_v7 = vor.u32 %v3551_v56, %v2880_v54 }
 0x156   : > { %v1766_v59 = vpop.f32.mrf.mxu2  ;;  %v1590_v62 = vpop.f32.mrf.mxu0 }
 0x157   : > { %v1855_v60 = vpop.f32.mrf.mxu3  ;;  %v1767_v61 = vadd.f32 %v1766_v59, %v1678_v58  ;;  %v1679_v63 = vpop.f32.mrf.mxu1  ;;  %v1591_v0 = vadd.f32 %v4308_v20, %v1590_v62  ;;  %v3547_v58 = vld [vmem:[%s4161_s24 + $0x11c] sm:$0xf]  ;;  %v2873_v62 = vor.u32 %v3550_v51, %v2872_v50 }
 0x158   : > { %v2882_v59 = vld [vmem:[%s4161_s24 + $0x138] sm:$0xf0] }
 0x159   : > { %v4496_v2 = vadd.f32 %v1855_v60, %v1767_v61  ;;  %v1680_v4 = vadd.f32 %v1679_v63, %v1591_v0  ;;  %v2877_v63 = vor.u32 %v3546_v52, %v2874_v53  ;;  %v2885_v9 = vor.u32 %v3547_v58, %v2882_v59 }
 0x15e   : > { %v1768_v21 = vpop.f32.mrf.mxu2  ;;  %v1593_v26 = vpop.f32.mrf.mxu0 }
 0x15f   : > { %v1857_v22 = vpop.f32.mrf.mxu3  ;;  %v1769_v25 = vadd.f32 %v1768_v21, %v1680_v4  ;;  %v1682_v27 = vpop.f32.mrf.mxu1  ;;  %v1594_v31 = vadd.f32 %v4308_v20, %v1593_v26 }
 0x161   : > { %v4507_v34 = vadd.f32 %v1857_v22, %v1769_v25  ;;  %v1683_v35 = vadd.f32 %v1682_v27, %v1594_v31  ;;  %1908 = vmatmul.bf16.gmra.mxu0 %v2841_v23  ;;  %v2904_v27 = vld [vmem:[%s4161_s24 + $0x150] sm:$0xf]  ;;  %v2906_v31 = vld [vmem:[%s4161_s24 + $0x170] sm:$0xf0] }
 0x162   : > { %1997 = vmatmul.bf16.gmra.mxu1 %v2845_v24 }
 0x163   : > { %2086 = vmatmul.bf16.gmra.mxu2 %v2849_v29  ;;  %v3558_v29 = vld [vmem:[%s4161_s24 + $0x16c] sm:$0xf0] }
 0x164   : > { %2175 = vmatmul.bf16.gmra.mxu3 %v2853_v30  ;;  %v3554_v30 = vld [vmem:[%s4161_s24 + $0x154] sm:$0xf] }
 0x166   : > { %v1771_v36 = vpop.f32.mrf.mxu2  ;;  %v1595_v40 = vpop.f32.mrf.mxu0 }
 0x167   : > { %v1860_v37 = vpop.f32.mrf.mxu3  ;;  %v1772_v39 = vadd.f32 %v1771_v36, %v1683_v35  ;;  %v1684_v41 = vpop.f32.mrf.mxu1  ;;  %v1596_v42 = vadd.f32 %v4308_v20, %v1595_v40  ;;  %v2912_v35 = vld [vmem:[%s4161_s24 + $0x158] sm:$0xf] }
 0x168   : > { %v3559_v36 = vld [vmem:[%s4161_s24 + $0x174] sm:$0xf0] }
 0x169   : > { %v4510_v47 = vadd.f32 %v1860_v37, %v1772_v39  ;;  %v1685_v48 = vadd.f32 %v1684_v41, %v1596_v42  ;;  %v3555_v37 = vld [vmem:[%s4161_s24 + $0x15c] sm:$0xf]  ;;  %v2905_v42 = vor.u32 %v3558_v29, %v2904_v27  ;;  %v2913_v53 = vor.u32 %v3559_v36, %v2912_v35 }
 0x16a   : > { %v2914_v39 = vld [vmem:[%s4161_s24 + $0x178] sm:$0xf0] }
 0x16b   : > { %v2917_v54 = vor.u32 %v3555_v37, %v2914_v39 }
 0x16e   : > { %v1773_v60 = vpop.f32.mrf.mxu2  ;;  %v1598_v4 = vpop.f32.mrf.mxu0 }
 0x16f   : > { %v1862_v61 = vpop.f32.mrf.mxu3  ;;  %v1774_v0 = vadd.f32 %v1773_v60, %v1685_v48  ;;  %v1687_v6 = vpop.f32.mrf.mxu1  ;;  %v1599_v12 = vadd.f32 %v4308_v20, %v1598_v4  ;;  %v2909_v48 = vor.u32 %v3554_v30, %v2906_v31 }
 0x171   : > { %v4521_v13 = vadd.f32 %v1862_v61, %v1774_v0  ;;  %v1688_v14 = vadd.f32 %v1687_v6, %v1599_v12  ;;  %1913 = vmatmul.bf16.gmra.mxu0 %v2873_v62  ;;  %v3566_v12 = vld [vmem:[%s4161_s24 + $0x1ac] sm:$0xf0] }
 0x172   : > { %2002 = vmatmul.bf16.gmra.mxu1 %v2877_v63 }
 0x173   : > { %2091 = vmatmul.bf16.gmra.mxu2 %v2881_v7 }
 0x174   : > { %2180 = vmatmul.bf16.gmra.mxu3 %v2885_v9  ;;  %v2936_v9 = vld [vmem:[%s4161_s24 + $0x190] sm:$0xf] }
 0x175   : > { %v2937_v27 = vor.u32 %v3566_v12, %v2936_v9 }
 0x176   : > { %v1776_v16 = vpop.f32.mrf.mxu2  ;;  %v1600_v22 = vpop.f32.mrf.mxu0 }
 0x177   : > { %v1865_v17 = vpop.f32.mrf.mxu3  ;;  %v1777_v21 = vadd.f32 %v1776_v16, %v1688_v14  ;;  %v1689_v23 = vpop.f32.mrf.mxu1  ;;  %v1601_v24 = vadd.f32 %v4308_v20, %v1600_v22  ;;  %v3562_v14 = vld [vmem:[%s4161_s24 + $0x194] sm:$0xf]  ;;  %v3563_v22 = vld [vmem:[%s4161_s24 + $0x19c] sm:$0xf] }
 0x178   : > { %v2938_v16 = vld [vmem:[%s4161_s24 + $0x1b0] sm:$0xf0] }
 0x179   : > { %v4524_v25 = vadd.f32 %v1865_v17, %v1777_v21  ;;  %v1690_v26 = vadd.f32 %v1689_v23, %v1601_v24  ;;  %v2944_v17 = vld [vmem:[%s4161_s24 + $0x198] sm:$0xf]  ;;  %v2946_v23 = vld [vmem:[%s4161_s24 + $0x1b8] sm:$0xf0]  ;;  %v2941_v29 = vor.u32 %v3562_v14, %v2938_v16 }
 0x17a   : > { %v3567_v21 = vld [vmem:[%s4161_s24 + $0x1b4] sm:$0xf0]  ;;  %v2949_v37 = vor.u32 %v3563_v22, %v2946_v23 }
 0x17b   : > { %v2945_v36 = vor.u32 %v3567_v21, %v2944_v17 }
 0x17e   : > { %v1778_v40 = vpop.f32.mrf.mxu2  ;;  %v1603_v51 = vpop.f32.mrf.mxu0 }
 0x17f   : > { %v1867_v41 = vpop.f32.mrf.mxu3  ;;  %v1779_v50 = vadd.f32 %v1778_v40, %v1690_v26  ;;  %v1692_v52 = vpop.f32.mrf.mxu1  ;;  %v1604_v56 = vadd.f32 %v4308_v20, %v1603_v51 }
 0x181   : > { %v4535_v58 = vadd.f32 %v1867_v41, %v1779_v50  ;;  %v1693_v59 = vadd.f32 %v1692_v52, %v1604_v56  ;;  %1918 = vmatmul.bf16.gmra.mxu0 %v2905_v42 }
 0x182   : > { %2007 = vmatmul.bf16.gmra.mxu1 %v2909_v48 }
 0x183   : > { %2096 = vmatmul.bf16.gmra.mxu2 %v2913_v53 }
 0x184   : > { %2185 = vmatmul.bf16.gmra.mxu3 %v2917_v54 }
 0x186   : > { %v1781_v60 = vpop.f32.mrf.mxu2  ;;  %v1605_v63 = vpop.f32.mrf.mxu0 }
 0x187   : > { %v1870_v61 = vpop.f32.mrf.mxu3  ;;  %v1782_v62 = vadd.f32 %v1781_v60, %v1693_v59  ;;  %v1694_v0 = vpop.f32.mrf.mxu1  ;;  %v1606_v4 = vadd.f32 %v4308_v20, %v1605_v63  ;;  %v2968_v59 = vld [vmem:[%s4161_s24 + $0x1d0] sm:$0xf]  ;;  %v2976_v63 = vld [vmem:[%s4161_s24 + $0x1d8] sm:$0xf] }
 0x188   : > { %v3574_v60 = vld [vmem:[%s4161_s24 + $0x1ec] sm:$0xf0] }
 0x189   : > { %v4538_v6 = vadd.f32 %v1870_v61, %v1782_v62  ;;  %v1695_v7 = vadd.f32 %v1694_v0, %v1606_v4  ;;  %v3570_v61 = vld [vmem:[%s4161_s24 + $0x1d4] sm:$0xf]  ;;  %v3575_v0 = vld [vmem:[%s4161_s24 + $0x1f4] sm:$0xf0]  ;;  %v3571_v4 = vld [vmem:[%s4161_s24 + $0x1dc] sm:$0xf]  ;;  %v2969_v14 = vor.u32 %v3574_v60, %v2968_v59 }
 0x18a   : > { %v2970_v62 = vld [vmem:[%s4161_s24 + $0x1f0] sm:$0xf0]  ;;  %v2977_v23 = vor.u32 %v3575_v0, %v2976_v63  ;;  %v3579_v59 = vld [vmem:[%s4161_s24 + $0x21c] sm:$0xf] }
 0x18b   : > { %v2973_v16 = vor.u32 %v3570_v61, %v2970_v62  ;;  %v3010_v60 = vld [vmem:[%s4161_s24 + $0x238] sm:$0xf0] }
 0x18e   : > { %v1783_v24 = vpop.f32.mrf.mxu2  ;;  %v1608_v31 = vpop.f32.mrf.mxu0 }
 0x18f   : > { %v1872_v26 = vpop.f32.mrf.mxu3  ;;  %v1784_v30 = vadd.f32 %v1783_v24, %v1695_v7  ;;  %v1697_v35 = vpop.f32.mrf.mxu1  ;;  %v1609_v39 = vadd.f32 %v4308_v20, %v1608_v31  ;;  %v2978_v7 = vld [vmem:[%s4161_s24 + $0x1f8] sm:$0xf0]  ;;  %v3907_v24 = vld [vmem:[%s4835_s2] ss:$0 sm:$0xff] }
 0x191   : > { %v4549_v40 = vadd.f32 %v1872_v26, %v1784_v30  ;;  %v1698_v41 = vadd.f32 %v1697_v35, %v1609_v39  ;;  %1923 = vmatmul.bf16.gmra.mxu0 %v2937_v27 }
 0x192   : > { %2012 = vmatmul.bf16.gmra.mxu1 %v2941_v29 }
 0x193   : > { %2101 = vmatmul.bf16.gmra.mxu2 %v2945_v36 }
 0x194   : > { %2190 = vmatmul.bf16.gmra.mxu3 %v2949_v37 }
 0x196   : > { %v1786_v42 = vpop.f32.mrf.mxu2  ;;  %v1610_v51 = vpop.f32.mrf.mxu0 }
 0x197   : > { %v1875_v48 = vpop.f32.mrf.mxu3  ;;  %v1787_v50 = vadd.f32 %v1786_v42, %v1698_v41  ;;  %v1699_v52 = vpop.f32.mrf.mxu1  ;;  %v1611_v53 = vadd.f32 %v4308_v20, %v1610_v51  ;;  %v2981_v20 = vor.u32 %v3571_v4, %v2978_v7  ;;  %v3578_v51 = vld [vmem:[%s4161_s24 + $0x214] sm:$0xf] }
 0x199   : > { %v4552_v54 = vadd.f32 %v1875_v48, %v1787_v50  ;;  %v1700_v56 = vadd.f32 %v1699_v52, %v1611_v53  ;;  %v3000_v48 = vld [vmem:[%s4161_s24 + $0x210] sm:$0xf]  ;;  %v3002_v52 = vld [vmem:[%s4161_s24 + $0x230] sm:$0xf0]  ;;  %v3008_v53 = vld [vmem:[%s4161_s24 + $0x218] sm:$0xf] }
 0x19a   : > { %v3582_v50 = vld [vmem:[%s4161_s24 + $0x22c] sm:$0xf0]  ;;  %v3005_v0 = vor.u32 %v3578_v51, %v3002_v52 }
 0x19b   : > { %v3001_v63 = vor.u32 %v3582_v50, %v3000_v48  ;;  %v3042_v48 = vld [vmem:[%s4161_s24 + $0x278] sm:$0xf0] }
 0x19e   : > { %v1788_v9 = vpop.f32.mrf.mxu2  ;;  %v1613_v21 = vpop.f32.mrf.mxu0 }
 0x19f   : > { %v1877_v12 = vpop.f32.mrf.mxu3  ;;  %v1789_v17 = vadd.f32 %v1788_v9, %v1700_v56  ;;  %v1702_v22 = vpop.f32.mrf.mxu1  ;;  %v1614_v26 = vadd.f32 %v3907_v24, %v1613_v21  ;;  %v3583_v56 = vld [vmem:[%s4161_s24 + $0x234] sm:$0xf0] }
 0x1a1   : > { %v4565_v27 = vadd.f32 %v1877_v12, %v1789_v17  ;;  %v1703_v29 = vadd.f32 %v1702_v22, %v1614_v26  ;;  %1928 = vmatmul.bf16.gmra.mxu0 %v2969_v14  ;;  %v3009_v12 = vor.u32 %v3583_v56, %v3008_v53  ;;  %v3013_v14 = vor.u32 %v3579_v59, %v3010_v60 }
 0x1a2   : > { %2017 = vmatmul.bf16.gmra.mxu1 %v2973_v16 }
 0x1a3   : > { %2106 = vmatmul.bf16.gmra.mxu2 %v2977_v23 }
 0x1a4   : > { %2195 = vmatmul.bf16.gmra.mxu3 %v2981_v20 }
 0x1a6   : > { %v1791_v30 = vpop.f32.mrf.mxu2  ;;  %v1615_v36 = vpop.f32.mrf.mxu0 }
 0x1a7   : > { %v1880_v31 = vpop.f32.mrf.mxu3  ;;  %v1792_v35 = vadd.f32 %v1791_v30, %v1703_v29  ;;  %v1704_v37 = vpop.f32.mrf.mxu1  ;;  %v1616_v39 = vadd.f32 %v3907_v24, %v1615_v36  ;;  %v3032_v29 = vld [vmem:[%s4161_s24 + $0x250] sm:$0xf]  ;;  %v3034_v36 = vld [vmem:[%s4161_s24 + $0x270] sm:$0xf0] }
 0x1a8   : > { %v3590_v30 = vld [vmem:[%s4161_s24 + $0x26c] sm:$0xf0] }
 0x1a9   : > { %v4567_v41 = vadd.f32 %v1880_v31, %v1792_v35  ;;  %v1705_v42 = vadd.f32 %v1704_v37, %v1616_v39  ;;  %v3586_v35 = vld [vmem:[%s4161_s24 + $0x254] sm:$0xf]  ;;  %v3040_v37 = vld [vmem:[%s4161_s24 + $0x258] sm:$0xf]  ;;  %v3033_v52 = vor.u32 %v3590_v30, %v3032_v29 }
 0x1aa   : > { %v3591_v39 = vld [vmem:[%s4161_s24 + $0x274] sm:$0xf0]  ;;  %v3037_v53 = vor.u32 %v3586_v35, %v3034_v36  ;;  %v3594_v29 = vld [vmem:[%s4161_s24 + $0x294] sm:$0xf]  ;;  %v3595_v35 = vld [vmem:[%s4161_s24 + $0x29c] sm:$0xf] }
 0x1ab   : > { %v3066_v30 = vld [vmem:[%s4161_s24 + $0x2b0] sm:$0xf0]  ;;  %v3074_v36 = vld [vmem:[%s4161_s24 + $0x2b8] sm:$0xf0] }
 0x1ae   : > { %v1793_v61 = vpop.f32.mrf.mxu2  ;;  %v1894_v7 = vpop.f32.mrf.mxu0 }
 0x1af   : > { %v1882_v62 = vpop.f32.mrf.mxu3  ;;  %v1794_v4 = vadd.f32 %v1793_v61, %v1705_v42  ;;  %v1983_v9 = vpop.f32.mrf.mxu1  ;;  %v1895_v17 = vadd.f32 %v1894_v7, %v4329_v46  ;;  %v3587_v42 = vld [vmem:[%s4161_s24 + $0x25c] sm:$0xf] }
 0x1b1   : > { %v4577_v16 = vadd.f32 %v1882_v62, %v1794_v4  ;;  %1933 = vmatmul.bf16.gmra.mxu0 %v3001_v63  ;;  %v1984_v24 = vadd.f32 %v1983_v9, %v1895_v17  ;;  %v3045_v62 = vor.u32 %v3587_v42, %v3042_v48 }
 0x1b2   : > { %2022 = vmatmul.bf16.gmra.mxu1 %v3005_v0 }
 0x1b3   : > { %2111 = vmatmul.bf16.gmra.mxu2 %v3009_v12 }
 0x1b4   : > { %2200 = vmatmul.bf16.gmra.mxu3 %v3013_v14 }
 0x1b6   : > { %v2072_v21 = vpop.f32.mrf.mxu2  ;;  %v1896_v23 = vpop.f32.mrf.mxu0 }
 0x1b7   : > { %v2161_v22 = vpop.f32.mrf.mxu3  ;;  %v1985_v20 = vpop.f32.mrf.mxu1  ;;  %v1897_v26 = vadd.f32 %v1896_v23, %v4343_v3  ;;  %v2073_v31 = vadd.f32 %v2072_v21, %v1984_v24  ;;  %v3041_v3 = vor.u32 %v3591_v39, %v3040_v37  ;;  %v3598_v24 = vld [vmem:[%s4161_s24 + $0x2ac] sm:$0xf0] }
 0x1b9   : > { %v1986_v50 = vadd.f32 %v1985_v20, %v1897_v26  ;;  %v2162_v56 = vadd.f32 %v2161_v22, %v2073_v31  ;;  %v3064_v20 = vld [vmem:[%s4161_s24 + $0x290] sm:$0xf]  ;;  %v3072_v31 = vld [vmem:[%s4161_s24 + $0x298] sm:$0xf] }
 0x1ba   : > { %v3065_v48 = vor.u32 %v3598_v24, %v3064_v20  ;;  %v3104_v20 = vld [vmem:[%s4161_s24 + $0x2d8] sm:$0xf] }
 0x1bb   : > { %v2241_v0 = vmax.f32 %v2162_v56, 0.0  ;;  %v3077_v56 = vor.u32 %v3595_v35, %v3074_v36  ;;  %v3607_v24 = vld [vmem:[%s4161_s24 + $0x2f4] sm:$0xf0] }
 0x1be   : > { %v2074_v51 = vpop.f32.mrf.mxu2  ;;  %v1899_v60 = vpop.f32.mrf.mxu0 }
 0x1bf   : > { %v2163_v46 = vpop.f32.mrf.mxu3  ;;  %v2075_v59 = vadd.f32 %v2074_v51, %v1986_v50  ;;  %v1988_v61 = vpop.f32.mrf.mxu1  ;;  %v1900_v9 = vadd.f32 %v1899_v60, %v4346_v11  ;;  %v3599_v11 = vld [vmem:[%s4161_s24 + $0x2b4] sm:$0xf0]  ;;  %v3069_v50 = vor.u32 %v3594_v29, %v3066_v30  ;;  %v3106_v29 = vld [vmem:[%s4161_s24 + $0x2f8] sm:$0xf0] }
 0x1c1   : > { %v2164_v63 = vadd.f32 %v2163_v46, %v2075_v59  ;;  %1938 = vmatmul.bf16.gmra.mxu0 %v3033_v52  ;;  %v1989_v22 = vadd.f32 %v1988_v61, %v1900_v9 }
 0x1c2   : > { %2027 = vmatmul.bf16.gmra.mxu1 %v3037_v53 }
 0x1c3   : > { %v2242_v4 = vmax.f32 %v2164_v63, 0.0  ;;  %2116 = vmatmul.bf16.gmra.mxu2 %v3041_v3 }
 0x1c4   : > { %2205 = vmatmul.bf16.gmra.mxu3 %v3045_v62 }
 0x1c5   : > { %v3710_v7 = vpack.c.bf16 %v2242_v4, %v2241_v0 }
 0x1c6   : > { %v2077_v12 = vpop.f32.mrf.mxu2  ;;  %v1901_v17 = vpop.f32.mrf.mxu0 }
 0x1c7   : > { %v2166_v14 = vpop.f32.mrf.mxu3  ;;  %3711 = vst [vmem:[%s4591_s12] sm:$0xff] %v3710_v7   ;;  %v1990_v21 = vpop.f32.mrf.mxu1  ;;  %v1902_v23 = vadd.f32 %v1901_v17, %v4357_v32  ;;  %v2078_v26 = vadd.f32 %v2077_v12, %v1989_v22  ;;  %v3073_v32 = vor.u32 %v3599_v11, %v3072_v31  ;;  %v3606_v17 = vld [vmem:[%s4161_s24 + $0x2ec] sm:$0xf0]  ;;  %v3602_v22 = vld [vmem:[%s4161_s24 + $0x2d4] sm:$0xf] }
 0x1c9   : > { %v1991_v37 = vadd.f32 %v1990_v21, %v1902_v23  ;;  %v2167_v51 = vadd.f32 %v2166_v14, %v2078_v26  ;;  %v3096_v14 = vld [vmem:[%s4161_s24 + $0x2d0] sm:$0xf]  ;;  %v3098_v23 = vld [vmem:[%s4161_s24 + $0x2f0] sm:$0xf0]  ;;  %v3603_v26 = vld [vmem:[%s4161_s24 + $0x2dc] sm:$0xf] }
 0x1ca   : > { %v3097_v11 = vor.u32 %v3606_v17, %v3096_v14  ;;  %v3101_v35 = vor.u32 %v3602_v22, %v3098_v23  ;;  %v3611_v14 = vld [vmem:[%s4161_s24 + $0x31c] sm:$0xf] }
 0x1cb   : > { %v2243_v60 = vmax.f32 %v2167_v51, 0.0  ;;  %v3138_v17 = vld [vmem:[%s4161_s24 + $0x338] sm:$0xf0] }
 0x1ce   : > { %v2079_v39 = vpop.f32.mrf.mxu2  ;;  %v1904_v52 = vpop.f32.mrf.mxu0 }
 0x1cf   : > { %v2168_v42 = vpop.f32.mrf.mxu3  ;;  %v2080_v46 = vadd.f32 %v2079_v39, %v1991_v37  ;;  %v1993_v53 = vpop.f32.mrf.mxu1  ;;  %v1905_v62 = vadd.f32 %v1904_v52, %v4369_v43 }
 0x1d1   : > { %v2169_v59 = vadd.f32 %v2168_v42, %v2080_v46  ;;  %1943 = vmatmul.bf16.gmra.mxu0 %v3065_v48  ;;  %v1994_v9 = vadd.f32 %v1993_v53, %v1905_v62  ;;  %v3109_v48 = vor.u32 %v3603_v26, %v3106_v29  ;;  %v3128_v62 = vld [vmem:[%s4161_s24 + $0x310] sm:$0xf] }
 0x1d2   : > { %2032 = vmatmul.bf16.gmra.mxu1 %v3069_v50 }
 0x1d3   : > { %v2244_v61 = vmax.f32 %v2169_v59, 0.0  ;;  %2121 = vmatmul.bf16.gmra.mxu2 %v3073_v32 }
 0x1d4   : > { %2210 = vmatmul.bf16.gmra.mxu3 %v3077_v56 }
 0x1d5   : > { %v3715_v3 = vpack.c.bf16 %v2244_v61, %v2243_v60 }
 0x1d6   : > { %v2082_v63 = vpop.f32.mrf.mxu2  ;;  %v1906_v4 = vpop.f32.mrf.mxu0 }
 0x1d7   : > { %v2171_v0 = vpop.f32.mrf.mxu3  ;;  %3787 = vst [vmem:[%s4591_s12 + $0x8] sm:$0xff] %v3715_v3   ;;  %v1995_v7 = vpop.f32.mrf.mxu1  ;;  %v1907_v12 = vadd.f32 %v1906_v4, %v4383_v1  ;;  %v2083_v21 = vadd.f32 %v2082_v63, %v1994_v9  ;;  %v3105_v1 = vor.u32 %v3607_v24, %v3104_v20  ;;  %v3614_v63 = vld [vmem:[%s4161_s24 + $0x32c] sm:$0xf0]  ;;  %v3610_v4 = vld [vmem:[%s4161_s24 + $0x314] sm:$0xf] }
 0x1d8   : > { %v3136_v9 = vld [vmem:[%s4161_s24 + $0x318] sm:$0xf]  ;;  %v3129_v23 = vor.u32 %v3614_v63, %v3128_v62 }
 0x1d9   : > { %v1996_v30 = vadd.f32 %v1995_v7, %v1907_v12  ;;  %v2172_v36 = vadd.f32 %v2171_v0, %v2083_v21  ;;  %v3130_v7 = vld [vmem:[%s4161_s24 + $0x330] sm:$0xf0]  ;;  %v3615_v12 = vld [vmem:[%s4161_s24 + $0x334] sm:$0xf0] }
 0x1da   : > { %v3133_v20 = vor.u32 %v3610_v4, %v3130_v7 }
 0x1db   : > { %v2245_v51 = vmax.f32 %v2172_v36, 0.0 }
 0x1de   : > { %v2084_v43 = vpop.f32.mrf.mxu2  ;;  %v1909_v39 = vpop.f32.mrf.mxu0 }
 0x1df   : > { %v2173_v31 = vpop.f32.mrf.mxu3  ;;  %v2085_v37 = vadd.f32 %v2084_v43, %v1996_v30  ;;  %v1998_v42 = vpop.f32.mrf.mxu1  ;;  %v1910_v53 = vadd.f32 %v1909_v39, %v4386_v10  ;;  %v3141_v43 = vor.u32 %v3611_v14, %v3138_v17 }
 0x1e1   : > { %v2174_v50 = vadd.f32 %v2173_v31, %v2085_v37  ;;  %1948 = vmatmul.bf16.gmra.mxu0 %v3097_v11  ;;  %v1999_v61 = vadd.f32 %v1998_v42, %v1910_v53 }
 0x1e2   : > { %2037 = vmatmul.bf16.gmra.mxu1 %v3101_v35 }
 0x1e3   : > { %v2246_v46 = vmax.f32 %v2174_v50, 0.0  ;;  %2126 = vmatmul.bf16.gmra.mxu2 %v3105_v1 }
 0x1e4   : > { %2215 = vmatmul.bf16.gmra.mxu3 %v3109_v48 }
 0x1e5   : > { %v3720_v52 = vpack.c.bf16 %v2246_v46, %v2245_v51  ;;  %v3160_v46 = vld [vmem:[%s4161_s24 + $0x350] sm:$0xf] }
 0x1e6   : > { %v2087_v32 = vpop.f32.mrf.mxu2  ;;  %v1911_v59 = vpop.f32.mrf.mxu0 }
 0x1e7   : > { %v2176_v56 = vpop.f32.mrf.mxu3  ;;  %3788 = vst [vmem:[%s4591_s12 + $0x10] sm:$0xff] %v3720_v52   ;;  %v2000_v60 = vpop.f32.mrf.mxu1  ;;  %v1912_v3 = vadd.f32 %v1911_v59, %v4397_v33  ;;  %v2088_v0 = vadd.f32 %v2087_v32, %v1999_v61  ;;  %v3137_v33 = vor.u32 %v3615_v12, %v3136_v9  ;;  %v3622_v52 = vld [vmem:[%s4161_s24 + $0x36c] sm:$0xf0]  ;;  %v3618_v32 = vld [vmem:[%s4161_s24 + $0x354] sm:$0xf] }
 0x1e8   : > { %v3168_v59 = vld [vmem:[%s4161_s24 + $0x358] sm:$0xf]  ;;  %v3619_v61 = vld [vmem:[%s4161_s24 + $0x35c] sm:$0xf] }
 0x1e9   : > { %v2001_v21 = vadd.f32 %v2000_v60, %v1912_v3  ;;  %v2177_v24 = vadd.f32 %v2176_v56, %v2088_v0  ;;  %v3162_v56 = vld [vmem:[%s4161_s24 + $0x370] sm:$0xf0]  ;;  %v3623_v60 = vld [vmem:[%s4161_s24 + $0x374] sm:$0xf0]  ;;  %v3170_v3 = vld [vmem:[%s4161_s24 + $0x378] sm:$0xf0]  ;;  %v3161_v0 = vor.u32 %v3622_v52, %v3160_v46 }
 0x1ea   : > { %v3165_v4 = vor.u32 %v3618_v32, %v3162_v56  ;;  %v3173_v17 = vor.u32 %v3619_v61, %v3170_v3 }
 0x1eb   : > { %v2247_v11 = vmax.f32 %v2177_v24, 0.0 }
 0x1ee   : > { %v2089_v10 = vpop.f32.mrf.mxu2  ;;  %v1914_v29 = vpop.f32.mrf.mxu0 }
 0x1ef   : > { %v2178_v22 = vpop.f32.mrf.mxu3  ;;  %v2090_v26 = vadd.f32 %v2089_v10, %v2001_v21  ;;  %v2003_v30 = vpop.f32.mrf.mxu1  ;;  %v1915_v37 = vadd.f32 %v1914_v29, %v4409_v45 }
 0x1f1   : > { %v2179_v31 = vadd.f32 %v2178_v22, %v2090_v26  ;;  %1953 = vmatmul.bf16.gmra.mxu0 %v3129_v23  ;;  %v2004_v50 = vadd.f32 %v2003_v30, %v1915_v37  ;;  %v3194_v37 = vld [vmem:[%s4161_s24 + $0x3b0] sm:$0xf0] }
 0x1f2   : > { %2042 = vmatmul.bf16.gmra.mxu1 %v3133_v20 }
 0x1f3   : > { %v2248_v35 = vmax.f32 %v2179_v31, 0.0  ;;  %2131 = vmatmul.bf16.gmra.mxu2 %v3137_v33  ;;  %v3192_v31 = vld [vmem:[%s4161_s24 + $0x390] sm:$0xf] }
 0x1f4   : > { %2220 = vmatmul.bf16.gmra.mxu3 %v3141_v43 }
 0x1f5   : > { %v3725_v36 = vpack.c.bf16 %v2248_v35, %v2247_v11  ;;  %v3630_v11 = vld [vmem:[%s4161_s24 + $0x3ac] sm:$0xf0] }
 0x1f6   : > { %v2092_v39 = vpop.f32.mrf.mxu2  ;;  %v1916_v1 = vpop.f32.mrf.mxu0  ;;  %v3193_v46 = vor.u32 %v3630_v11, %v3192_v31 }
 0x1f7   : > { %v2181_v42 = vpop.f32.mrf.mxu3  ;;  %3789 = vst [vmem:[%s4591_s12 + $0x18] sm:$0xff] %v3725_v36   ;;  %v2005_v48 = vpop.f32.mrf.mxu1  ;;  %v1917_v51 = vadd.f32 %v1916_v1, %v4423_v5  ;;  %v2093_v53 = vadd.f32 %v2092_v39, %v2004_v50  ;;  %v3169_v5 = vor.u32 %v3623_v60, %v3168_v59  ;;  %v3626_v36 = vld [vmem:[%s4161_s24 + $0x394] sm:$0xf]  ;;  %v3200_v39 = vld [vmem:[%s4161_s24 + $0x398] sm:$0xf] }
 0x1f8   : > { %v3627_v1 = vld [vmem:[%s4161_s24 + $0x39c] sm:$0xf]  ;;  %v3197_v52 = vor.u32 %v3626_v36, %v3194_v37 }
 0x1f9   : > { %v2006_v62 = vadd.f32 %v2005_v48, %v1917_v51  ;;  %v2182_v7 = vadd.f32 %v2181_v42, %v2093_v53  ;;  %v3631_v42 = vld [vmem:[%s4161_s24 + $0x3b4] sm:$0xf0]  ;;  %v3202_v48 = vld [vmem:[%s4161_s24 + $0x3b8] sm:$0xf0] }
 0x1fa   : > { %v3205_v60 = vor.u32 %v3627_v1, %v3202_v48 }
 0x1fb   : > { %v2249_v10 = vmax.f32 %v2182_v7, 0.0 }
 0x1fe   : > { %v2094_v45 = vpop.f32.mrf.mxu2  ;;  %v1919_v12 = vpop.f32.mrf.mxu0 }
 0x1ff   : > { %v2183_v63 = vpop.f32.mrf.mxu3  ;;  %v2095_v9 = vadd.f32 %v2094_v45, %v2006_v62  ;;  %v2008_v14 = vpop.f32.mrf.mxu1  ;;  %v1920_v20 = vadd.f32 %v1919_v12, %v4426_v15 }
 0x201   : > { %v2184_v21 = vadd.f32 %v2183_v63, %v2095_v9  ;;  %1958 = vmatmul.bf16.gmra.mxu0 %v3161_v0  ;;  %v2009_v33 = vadd.f32 %v2008_v14, %v1920_v20  ;;  %v3639_v20 = vld [vmem:[%s4161_s24 + $0x3f4] sm:$0xf0] }
 0x202   : > { %2047 = vmatmul.bf16.gmra.mxu1 %v3165_v4 }
 0x203   : > { %v2250_v22 = vmax.f32 %v2184_v21, 0.0  ;;  %2136 = vmatmul.bf16.gmra.mxu2 %v3169_v5  ;;  %v3224_v5 = vld [vmem:[%s4161_s24 + $0x3d0] sm:$0xf] }
 0x204   : > { %2225 = vmatmul.bf16.gmra.mxu3 %v3173_v17  ;;  %v3638_v17 = vld [vmem:[%s4161_s24 + $0x3ec] sm:$0xf0] }
 0x205   : > { %v3730_v23 = vpack.c.bf16 %v2250_v22, %v2249_v10  ;;  %v3634_v10 = vld [vmem:[%s4161_s24 + $0x3d4] sm:$0xf] }
 0x206   : > { %v2097_v24 = vpop.f32.mrf.mxu2  ;;  %v1921_v29 = vpop.f32.mrf.mxu0  ;;  %v3226_v22 = vld [vmem:[%s4161_s24 + $0x3f0] sm:$0xf0] }
 0x207   : > { %v2186_v26 = vpop.f32.mrf.mxu3  ;;  %3790 = vst [vmem:[%s4591_s12 + $0x20] sm:$0xff] %v3730_v23   ;;  %v2010_v30 = vpop.f32.mrf.mxu1  ;;  %v1922_v43 = vadd.f32 %v1921_v29, %v4437_v38  ;;  %v2098_v35 = vadd.f32 %v2097_v24, %v2009_v33  ;;  %v3201_v38 = vor.u32 %v3631_v42, %v3200_v39  ;;  %v3232_v23 = vld [vmem:[%s4161_s24 + $0x3d8] sm:$0xf]  ;;  %v3635_v24 = vld [vmem:[%s4161_s24 + $0x3dc] sm:$0xf]  ;;  %v3225_v33 = vor.u32 %v3638_v17, %v3224_v5 }
 0x209   : > { %v2011_v50 = vadd.f32 %v2010_v30, %v1922_v43  ;;  %v2187_v53 = vadd.f32 %v2186_v26, %v2098_v35  ;;  %v3234_v26 = vld [vmem:[%s4161_s24 + $0x3f8] sm:$0xf0]  ;;  %v3229_v43 = vor.u32 %v3634_v10, %v3226_v22  ;;  %s2345_s24 = ssub.s32 (%p4064_p3), 49, %s4112_s28 }
 0x20a   : > { %v3237_v37 = vor.u32 %v3635_v24, %v3234_v26  ;;  %p2346_p9 = scmp.lt.s32.totalorder (%p4064_p3), %s2345_s24, 32 }
 0x20b   : > { %v2251_v3 = vmax.f32 %v2187_v53, 0.0 }
 0x20e   : > { %v2099_v15 = vpop.f32.mrf.mxu2  ;;  %v1924_v56 = vpop.f32.mrf.mxu0 }
 0x20f   : > { %v2188_v51 = vpop.f32.mrf.mxu3  ;;  %v2100_v32 = vadd.f32 %v2099_v15, %v2011_v50  ;;  %v2013_v59 = vpop.f32.mrf.mxu1  ;;  %v1925_v63 = vadd.f32 %v1924_v56, %v4440_v49 }
 0x211   : > { %v2189_v61 = vadd.f32 %v2188_v51, %v2100_v32  ;;  %1963 = vmatmul.bf16.gmra.mxu0 %v3193_v46  ;;  %v2014_v12 = vadd.f32 %v2013_v59, %v1925_v63 }
 0x212   : > { %2052 = vmatmul.bf16.gmra.mxu1 %v3197_v52 }
 0x213   : > { %v2252_v62 = vmax.f32 %v2189_v61, 0.0  ;;  %2141 = vmatmul.bf16.gmra.mxu2 %v3201_v38 }
 0x214   : > { %2230 = vmatmul.bf16.gmra.mxu3 %v3205_v60 }
 0x215   : > { %v3735_v45 = vpack.c.bf16 %v2252_v62, %v2251_v3 }
 0x216   : > { %v2102_v0 = vpop.f32.mrf.mxu2  ;;  %v1926_v7 = vpop.f32.mrf.mxu0 }
 0x217   : > { %v2191_v4 = vpop.f32.mrf.mxu3  ;;  %3791 = vst [vmem:[%s4591_s12 + $0x28] sm:$0xff] %v3735_v45   ;;  %v2015_v9 = vpop.f32.mrf.mxu1  ;;  %v1927_v14 = vadd.f32 %v1926_v7, %v4451_v8  ;;  %v2103_v21 = vadd.f32 %v2102_v0, %v2014_v12  ;;  %v3233_v8 = vor.u32 %v3639_v20, %v3232_v23 }
 0x219   : > { %v2016_v29 = vadd.f32 %v2015_v9, %v1927_v14  ;;  %v2192_v31 = vadd.f32 %v2191_v4, %v2103_v21 }
 0x21b   : > { %v2253_v42 = vmax.f32 %v2192_v31, 0.0 }
 0x21e   : > { %v2104_v49 = vpop.f32.mrf.mxu2  ;;  %v1929_v35 = vpop.f32.mrf.mxu0 }
 0x21f   : > { %v2193_v30 = vpop.f32.mrf.mxu3  ;;  %v2105_v11 = vadd.f32 %v2104_v49, %v2016_v29  ;;  %v2018_v36 = vpop.f32.mrf.mxu1  ;;  %v1930_v50 = vadd.f32 %v1929_v35, %v4454_v19 }
 0x221   : > { %v2194_v39 = vadd.f32 %v2193_v30, %v2105_v11  ;;  %1968 = vmatmul.bf16.gmra.mxu0 %v3225_v33  ;;  %v2019_v53 = vadd.f32 %v2018_v36, %v1930_v50 }
 0x222   : > { %2057 = vmatmul.bf16.gmra.mxu1 %v3229_v43 }
 0x223   : > { %v2254_v1 = vmax.f32 %v2194_v39, 0.0  ;;  %2146 = vmatmul.bf16.gmra.mxu2 %v3233_v8 }
 0x224   : > { %2235 = vmatmul.bf16.gmra.mxu3 %v3237_v37 }
 0x225   : > { %v3740_v48 = vpack.c.bf16 %v2254_v1, %v2253_v42 }
 0x226   : > { %v2107_v15 = vpop.f32.mrf.mxu2  ;;  %v1931_v46 = vpop.f32.mrf.mxu0 }
 0x227   : > { %v2196_v51 = vpop.f32.mrf.mxu3  ;;  %3792 = vst [vmem:[%s4591_s12 + $0x30] sm:$0xff] %v3740_v48   ;;  %v2020_v52 = vpop.f32.mrf.mxu1  ;;  %v1932_v32 = vadd.f32 %v1931_v46, %v4465_v44  ;;  %v2108_v56 = vadd.f32 %v2107_v15, %v2019_v53 }
 0x229   : > { %v2021_v59 = vadd.f32 %v2020_v52, %v1932_v32  ;;  %v2197_v61 = vadd.f32 %v2196_v51, %v2108_v56 }
 0x22b   : > { %v2255_v0 = vmax.f32 %v2197_v61, 0.0 }
 0x22e   : > { %v2109_v38 = vpop.f32.mrf.mxu2  ;;  %v1934_v62 = vpop.f32.mrf.mxu0 }
 0x22f   : > { %v2198_v60 = vpop.f32.mrf.mxu3  ;;  %v2110_v3 = vadd.f32 %v2109_v38, %v2021_v59  ;;  %v2023_v45 = vpop.f32.mrf.mxu1  ;;  %v1935_v7 = vadd.f32 %v1934_v62, %v4468_v55 }
 0x231   : > { %v2199_v63 = vadd.f32 %v2198_v60, %v2110_v3  ;;  %v2024_v5 = vadd.f32 %v2023_v45, %v1935_v7 }
 0x233   : > { %v2256_v19 = vmax.f32 %v2199_v63, 0.0 }
 0x235   : > { %v3745_v4 = vpack.c.bf16 %v2256_v19, %v2255_v0 }
 0x236   : > { %v2112_v9 = vpop.f32.mrf.mxu2  ;;  %v1936_v14 = vpop.f32.mrf.mxu0 }
 0x237   : > { %v2201_v12 = vpop.f32.mrf.mxu3  ;;  %3793 = vst [vmem:[%s4591_s12 + $0x38] sm:$0xff] %v3745_v4   ;;  %v2025_v44 = vpop.f32.mrf.mxu1  ;;  %v1937_v17 = vadd.f32 %v1936_v14, %v4479_v18  ;;  %v2113_v21 = vadd.f32 %v2112_v9, %v2024_v5 }
 0x239   : > { %v2026_v10 = vadd.f32 %v2025_v44, %v1937_v17  ;;  %v2202_v20 = vadd.f32 %v2201_v12, %v2113_v21 }
 0x23b   : > { %v2257_v30 = vmax.f32 %v2202_v20, 0.0 }
 0x23e   : > { %v2114_v22 = vpop.f32.mrf.mxu2  ;;  %v1939_v26 = vpop.f32.mrf.mxu0 }
 0x23f   : > { %v2203_v23 = vpop.f32.mrf.mxu3  ;;  %v2115_v24 = vadd.f32 %v2114_v22, %v2026_v10  ;;  %v2028_v29 = vpop.f32.mrf.mxu1  ;;  %v1940_v43 = vadd.f32 %v1939_v26, %v4482_v28 }
 0x241   : > { %v2204_v49 = vadd.f32 %v2203_v23, %v2115_v24  ;;  %v2029_v36 = vadd.f32 %v2028_v29, %v1940_v43 }
 0x243   : > { %v2258_v55 = vmax.f32 %v2204_v49, 0.0 }
 0x245   : > { %v3750_v33 = vpack.c.bf16 %v2258_v55, %v2257_v30 }
 0x246   : > { %v2117_v31 = vpop.f32.mrf.mxu2  ;;  %v1941_v35 = vpop.f32.mrf.mxu0 }
 0x247   : > { %v2206_v11 = vpop.f32.mrf.mxu3  ;;  %3794 = vst [vmem:[%s4591_s12 + $0x40] sm:$0xff] %v3750_v33   ;;  %v2030_v18 = vpop.f32.mrf.mxu1  ;;  %v1942_v8 = vadd.f32 %v1941_v35, %v4493_v57  ;;  %v2118_v37 = vadd.f32 %v2117_v31, %v2029_v36 }
 0x249   : > { %v2031_v39 = vadd.f32 %v2030_v18, %v1942_v8  ;;  %v2207_v48 = vadd.f32 %v2206_v11, %v2118_v37 }
 0x24b   : > { %v2259_v52 = vmax.f32 %v2207_v48, 0.0 }
 0x24e   : > { %v2119_v42 = vpop.f32.mrf.mxu2  ;;  %v1944_v15 = vpop.f32.mrf.mxu0 }
 0x24f   : > { %v2208_v1 = vpop.f32.mrf.mxu3  ;;  %v2120_v50 = vadd.f32 %v2119_v42, %v2031_v39  ;;  %v2033_v51 = vpop.f32.mrf.mxu1  ;;  %v1945_v32 = vadd.f32 %v1944_v15, %v4496_v2 }
 0x251   : > { %v2209_v46 = vadd.f32 %v2208_v1, %v2120_v50  ;;  %v2034_v60 = vadd.f32 %v2033_v51, %v1945_v32 }
 0x253   : > { %v2260_v28 = vmax.f32 %v2209_v46, 0.0 }
 0x255   : > { %v3755_v53 = vpack.c.bf16 %v2260_v28, %v2259_v52 }
 0x256   : > { %v2122_v56 = vpop.f32.mrf.mxu2  ;;  %v1946_v38 = vpop.f32.mrf.mxu0 }
 0x257   : > { %v2211_v59 = vpop.f32.mrf.mxu3  ;;  %3795 = vst [vmem:[%s4591_s12 + $0x48] sm:$0xff] %v3755_v53   ;;  %v2035_v57 = vpop.f32.mrf.mxu1  ;;  %v1947_v61 = vadd.f32 %v1946_v38, %v4507_v34  ;;  %v2123_v3 = vadd.f32 %v2122_v56, %v2034_v60 }
 0x259   : > { %v2036_v62 = vadd.f32 %v2035_v57, %v1947_v61  ;;  %v2212_v0 = vadd.f32 %v2211_v59, %v2123_v3 }
 0x25b   : > { %v2261_v12 = vmax.f32 %v2212_v0, 0.0 }
 0x25e   : > { %v2124_v45 = vpop.f32.mrf.mxu2  ;;  %v1949_v4 = vpop.f32.mrf.mxu0 }
 0x25f   : > { %v2213_v63 = vpop.f32.mrf.mxu3  ;;  %v2125_v19 = vadd.f32 %v2124_v45, %v2036_v62  ;;  %v2038_v7 = vpop.f32.mrf.mxu1  ;;  %v1950_v44 = vadd.f32 %v1949_v4, %v4510_v47 }
 0x261   : > { %v2214_v9 = vadd.f32 %v2213_v63, %v2125_v19  ;;  %v2039_v10 = vadd.f32 %v2038_v7, %v1950_v44 }
 0x263   : > { %v2262_v2 = vmax.f32 %v2214_v9, 0.0 }
 0x265   : > { %v3760_v14 = vpack.c.bf16 %v2262_v2, %v2261_v12 }
 0x266   : > { %v2127_v5 = vpop.f32.mrf.mxu2  ;;  %v1951_v21 = vpop.f32.mrf.mxu0 }
 0x267   : > { %v2216_v17 = vpop.f32.mrf.mxu3  ;;  %3796 = vst [vmem:[%s4591_s12 + $0x50] sm:$0xff] %v3760_v14   ;;  %v2040_v34 = vpop.f32.mrf.mxu1  ;;  %v1952_v22 = vadd.f32 %v1951_v21, %v4521_v13  ;;  %v2128_v23 = vadd.f32 %v2127_v5, %v2039_v10 }
 0x269   : > { %v2041_v20 = vadd.f32 %v2040_v34, %v1952_v22  ;;  %v2217_v29 = vadd.f32 %v2216_v17, %v2128_v23 }
 0x26b   : > { %v2263_v43 = vmax.f32 %v2217_v29, 0.0 }
 0x26e   : > { %v2129_v24 = vpop.f32.mrf.mxu2  ;;  %v1954_v30 = vpop.f32.mrf.mxu0 }
 0x26f   : > { %v2218_v26 = vpop.f32.mrf.mxu3  ;;  %v2130_v49 = vadd.f32 %v2129_v24, %v2041_v20  ;;  %v2043_v55 = vpop.f32.mrf.mxu1  ;;  %v1955_v11 = vadd.f32 %v1954_v30, %v4524_v25 }
 0x271   : > { %v2219_v33 = vadd.f32 %v2218_v26, %v2130_v49  ;;  %v2044_v8 = vadd.f32 %v2043_v55, %v1955_v11 }
 0x273   : > { %v2264_v47 = vmax.f32 %v2219_v33, 0.0 }
 0x275   : > { %v3765_v31 = vpack.c.bf16 %v2264_v47, %v2263_v43 }
 0x276   : > { %v2132_v35 = vpop.f32.mrf.mxu2  ;;  %v1956_v36 = vpop.f32.mrf.mxu0 }
 0x277   : > { %v2221_v18 = vpop.f32.mrf.mxu3  ;;  %3797 = vst [vmem:[%s4591_s12 + $0x58] sm:$0xff] %v3765_v31   ;;  %v2045_v13 = vpop.f32.mrf.mxu1  ;;  %v1957_v37 = vadd.f32 %v1956_v36, %v4535_v58  ;;  %v2133_v39 = vadd.f32 %v2132_v35, %v2044_v8 }
 0x279   : > { %v2046_v42 = vadd.f32 %v2045_v13, %v1957_v37  ;;  %v2222_v50 = vadd.f32 %v2221_v18, %v2133_v39 }
 0x27b   : > { %v2265_v28 = vmax.f32 %v2222_v50, 0.0 }
 0x27e   : > { %v2134_v1 = vpop.f32.mrf.mxu2  ;;  %v1959_v51 = vpop.f32.mrf.mxu0 }
 0x27f   : > { %v2223_v48 = vpop.f32.mrf.mxu3  ;;  %v2135_v15 = vadd.f32 %v2134_v1, %v2046_v42  ;;  %v2048_v46 = vpop.f32.mrf.mxu1  ;;  %v1960_v32 = vadd.f32 %v1959_v51, %v4538_v6 }
 0x281   : > { %v2224_v52 = vadd.f32 %v2223_v48, %v2135_v15  ;;  %v2049_v57 = vadd.f32 %v2048_v46, %v1960_v32 }
 0x283   : > { %v2266_v25 = vmax.f32 %v2224_v52, 0.0 }
 0x285   : > { %v3770_v53 = vpack.c.bf16 %v2266_v25, %v2265_v28 }
 0x286   : > { %v2137_v56 = vpop.f32.mrf.mxu2  ;;  %v1961_v38 = vpop.f32.mrf.mxu0 }
 0x287   : > { %v2226_v59 = vpop.f32.mrf.mxu3  ;;  %3798 = vst [vmem:[%s4591_s12 + $0x60] sm:$0xff] %v3770_v53   ;;  %v2050_v58 = vpop.f32.mrf.mxu1  ;;  %v1962_v60 = vadd.f32 %v1961_v38, %v4549_v40  ;;  %v2138_v61 = vadd.f32 %v2137_v56, %v2049_v57 }
 0x289   : > { %v2051_v3 = vadd.f32 %v2050_v58, %v1962_v60  ;;  %v2227_v63 = vadd.f32 %v2226_v59, %v2138_v61 }
 0x28b   : > { %v2267_v9 = vmax.f32 %v2227_v63, 0.0 }
 0x28e   : > { %v2139_v62 = vpop.f32.mrf.mxu2  ;;  %v1964_v19 = vpop.f32.mrf.mxu0 }
 0x28f   : > { %v2228_v45 = vpop.f32.mrf.mxu3  ;;  %v2140_v0 = vadd.f32 %v2139_v62, %v2051_v3  ;;  %v2053_v4 = vpop.f32.mrf.mxu1  ;;  %v1965_v2 = vadd.f32 %v1964_v19, %v4552_v54 }
 0x291   : > { %v2229_v7 = vadd.f32 %v2228_v45, %v2140_v0  ;;  %v2054_v17 = vadd.f32 %v2053_v4, %v1965_v2 }
 0x293   : > { %v2268_v6 = vmax.f32 %v2229_v7, 0.0 }
 0x295   : > { %v3775_v12 = vpack.c.bf16 %v2268_v6, %v2267_v9 }
 0x296   : > { %v2142_v14 = vpop.f32.mrf.mxu2  ;;  %v1966_v5 = vpop.f32.mrf.mxu0 }
 0x297   : > { %v2231_v44 = vpop.f32.mrf.mxu3  ;;  %3799 = vst [vmem:[%s4591_s12 + $0x68] sm:$0xff] %v3775_v12   ;;  %v2055_v40 = vpop.f32.mrf.mxu1  ;;  %v1967_v21 = vadd.f32 %v1966_v5, %v4565_v27  ;;  %v2143_v34 = vadd.f32 %v2142_v14, %v2054_v17 }
 0x299   : > { %v2056_v10 = vadd.f32 %v2055_v40, %v1967_v21  ;;  %v2232_v20 = vadd.f32 %v2231_v44, %v2143_v34 }
 0x29b   : > { %v2269_v30 = vmax.f32 %v2232_v20, 0.0 }
 0x29e   : > { %v2144_v22 = vpop.f32.mrf.mxu2  ;;  %v1969_v26 = vpop.f32.mrf.mxu0 }
 0x29f   : > { %v2233_v23 = vpop.f32.mrf.mxu3  ;;  %v2145_v24 = vadd.f32 %v2144_v22, %v2056_v10  ;;  %v2058_v49 = vpop.f32.mrf.mxu1  ;;  %v1970_v33 = vadd.f32 %v1969_v26, %v4567_v41 }
 0x2a1   : > { %v2234_v29 = vadd.f32 %v2233_v23, %v2145_v24  ;;  %v2059_v31 = vadd.f32 %v2058_v49, %v1970_v33 }
 0x2a3   : > { %v2270_v54 = vmax.f32 %v2234_v29, 0.0 }
 0x2a5   : > { %v3780_v55 = vpack.c.bf16 %v2270_v54, %v2269_v30 }
 0x2a6   : > { %v2147_v43 = vpop.f32.mrf.mxu2  ;;  %v1971_v27 = vpop.f32.mrf.mxu0 }
 0x2a7   : > { %v2236_v47 = vpop.f32.mrf.mxu3  ;;  %3800 = vst [vmem:[%s4591_s12 + $0x70] sm:$0xff] %v3780_v55   ;;  %v1972_v11 = vadd.f32 %v1971_v27, %v4577_v16  ;;  %v2148_v35 = vadd.f32 %v2147_v43, %v2059_v31  ;;  %v2060_v18 = vpop.f32.mrf.mxu1 }
 0x2a9   : > { %v2061_v36 = vadd.f32 %v2060_v18, %v1972_v11  ;;  %v2237_v8 = vadd.f32 %v2236_v47, %v2148_v35 }
 0x2ab   : > { %v2271_v1 = vmax.f32 %v2237_v8, 0.0 }
 0x2ae   : > { %v2149_v13 = vpop.f32.mrf.mxu2 }
 0x2af   : > { %v2150_v37 = vadd.f32 %v2149_v13, %v2061_v36  ;;  %v2238_v39 = vpop.f32.mrf.mxu3 }
 0x2b1   : > { %v2239_v42 = vadd.f32 %v2238_v39, %v2150_v37 }
 0x2b3   : > { %v2272_v48 = vmax.f32 %v2239_v42, 0.0  ;;  %2343 = sbr.rel (!%p4064_p3) target bundleno = 760 (0x2f8), region = 36 }
 0x2b5   : > { %v3785_v50 = vpack.c.bf16 %v2272_v48, %v2271_v1 }
 0x2b7   : > { %3801 = vst [vmem:[%s4591_s12 + $0x78] sm:$0xff] %v3785_v50  }
 0x2b8   : > { %s4850_s24 = smov (!%p2346_p9, %s2345_s24), 32 }
 0x2b9   : > { %s3496_s26 = sshll.u32 %s4850_s24, 2 }
 0x2ba   : > { %p3499_p10 = scmp.eq.s32.totalorder %s3496_s26, 0 }
 0x2bb   : > { %s4699_s27 = sshrl.u32 (!%p3499_p10), %s4850_s24, 5 }
 0x2bc   : > { %2355 = sbr.rel (%p3499_p10) target bundleno = 760 (0x2f8), region = 40  ;;  %p3500_p11 = scmp.le.s32.totalorder (!%p3499_p10), %s4699_s27, 0 }
 0x2c1   : > { %2645 = sbr.rel (%p3500_p11) target bundleno = 743 (0x2e7), region = 118  ;;  %s4838_s14 = smov (!%p3500_p11), %s4693_s25 }
 0x2c2   : > { %s4839_s20 = smov (!%p3500_p11), %s4591_s12  ;;  %s4708_s28 = smov (!%p3500_p11), 0  }
 0x2c3   : > { %s4710_s29 = smov (!%p3500_p11), 0  }
 0x2c6 LB: >> { %v2372_v41 = vld [vmem:[%s3986_s20] sm:$0xf]  ;;  %v2374_v16 = vld [vmem:[%s3986_s20 + $0x4] sm:$0xf]  ;;  %v2376_v15 = vld [vmem:[%s3986_s20 + $0x8] sm:$0xf]  ;;  %s3994_s29 = sphi %s4710_s29, %s2366_s29   ;;  %s3990_s28 = sphi %s4708_s28, %s4842_s28   ;;  %s3986_s20 = sphi %s4839_s20, %s4841_s20   ;;  %s3982_s14 = sphi %s4838_s14, %s4840_s14  }
 0x2c7   : >> { %2373 = vst [vmem:[%s3982_s14] sm:$0xf] %v2372_v41  ;;  %v2378_v51 = vld [vmem:[%s3986_s20 + $0xc] sm:$0xf]  ;;  %v2380_v46 = vld [vmem:[%s3986_s20 + $0x10] sm:$0xf]  ;;  %s2436_s30 = sadd.s32 1, %s3990_s28 }
 0x2c8   : >> { %2375 = vst [vmem:[%s3982_s14 + $0x4] sm:$0xf] %v2374_v16  ;;  %v2382_v52 = vld [vmem:[%s3986_s20 + $0x14] sm:$0xf]  ;;  %v2384_v28 = vld [vmem:[%s3986_s20 + $0x18] sm:$0xf]  ;;  %p2437_p12 = scmp.ge.s32.totalorder %s2436_s30, %s4699_s27 }
 0x2c9   : >> { %2377 = vst [vmem:[%s3982_s14 + $0x8] sm:$0xf] %v2376_v15  ;;  %v2386_v25 = vld [vmem:[%s3986_s20 + $0x1c] sm:$0xf]  ;;  %v2388_v53 = vld [vmem:[%s3986_s20 + $0x20] sm:$0xf] }
 0x2ca   : >> { %2379 = vst [vmem:[%s3982_s14 + $0xc] sm:$0xf] %v2378_v51  ;;  %v2390_v32 = vld [vmem:[%s3986_s20 + $0x24] sm:$0xf]  ;;  %v2392_v56 = vld [vmem:[%s3986_s20 + $0x28] sm:$0xf] }
 0x2cb   : >> { %2381 = vst [vmem:[%s3982_s14 + $0x10] sm:$0xf] %v2380_v46  ;;  %v2394_v59 = vld [vmem:[%s3986_s20 + $0x2c] sm:$0xf]  ;;  %v2396_v38 = vld [vmem:[%s3986_s20 + $0x30] sm:$0xf] }
 0x2cc   : >> { %2383 = vst [vmem:[%s3982_s14 + $0x14] sm:$0xf] %v2382_v52  ;;  %v2398_v58 = vld [vmem:[%s3986_s20 + $0x34] sm:$0xf]  ;;  %v2400_v57 = vld [vmem:[%s3986_s20 + $0x38] sm:$0xf] }
 0x2cd   : >> { %2385 = vst [vmem:[%s3982_s14 + $0x18] sm:$0xf] %v2384_v28  ;;  %v2402_v60 = vld [vmem:[%s3986_s20 + $0x3c] sm:$0xf]  ;;  %v2404_v61 = vld [vmem:[%s3986_s20 + $0x40] sm:$0xf] }
 0x2ce   : >> { %2387 = vst [vmem:[%s3982_s14 + $0x1c] sm:$0xf] %v2386_v25  ;;  %v2406_v3 = vld [vmem:[%s3986_s20 + $0x44] sm:$0xf]  ;;  %s4852_s30 = smov (%p2437_p12, %s2436_s30), 0  ;;  %s2366_s29 = sadd.s32 1, %s3994_s29  }
 0x2cf   : >> { %2389 = vst [vmem:[%s3982_s14 + $0x20] sm:$0xf] %v2388_v53  ;;  %v2408_v62 = vld [vmem:[%s3986_s20 + $0x48] sm:$0xf]  ;;  %v2410_v45 = vld [vmem:[%s3986_s20 + $0x4c] sm:$0xf]  ;;  %p2365_p13 = scmp.ge.s32.totalorder %s2366_s29, %s4699_s27  ;;  %s4842_s28 = smov %s4852_s30 }
 0x2d0   : >> { %2391 = vst [vmem:[%s3982_s14 + $0x24] sm:$0xf] %v2390_v32  ;;  %s3501_s4 = sshll.u32 %s4852_s30, 7  ;;  %v2412_v63 = vld [vmem:[%s3986_s20 + $0x50] sm:$0xf] }
 0x2d1   : >> { %2393 = vst [vmem:[%s3982_s14 + $0x28] sm:$0xf] %v2392_v56  ;;  %s4769_s5 = scalar_lea.vmem %s4591_s12, %s3501_s4 [#allocation2]   ;;  %s2442_s6 = scalar_lea.vmem %s4693_s25, %s3501_s4   ;;  %v2414_v0 = vld [vmem:[%s3986_s20 + $0x54] sm:$0xf]  ;;  %v2416_v19 = vld [vmem:[%s3986_s20 + $0x58] sm:$0xf] }
 0x2d2   : >> { %2395 = vst [vmem:[%s3982_s14 + $0x2c] sm:$0xf] %v2394_v59  ;;  %v2418_v4 = vld [vmem:[%s3986_s20 + $0x5c] sm:$0xf]  ;;  %v2420_v7 = vld [vmem:[%s3986_s20 + $0x60] sm:$0xf] }
 0x2d3   : >> { %2397 = vst [vmem:[%s3982_s14 + $0x30] sm:$0xf] %v2396_v38  ;;  %v2422_v9 = vld [vmem:[%s3986_s20 + $0x64] sm:$0xf]  ;;  %v2424_v6 = vld [vmem:[%s3986_s20 + $0x68] sm:$0xf] }
 0x2d4   : >> { %2399 = vst [vmem:[%s3982_s14 + $0x34] sm:$0xf] %v2398_v58  ;;  %v2426_v12 = vld [vmem:[%s3986_s20 + $0x6c] sm:$0xf]  ;;  %v2428_v2 = vld [vmem:[%s3986_s20 + $0x70] sm:$0xf] }
 0x2d5   : >> { %2401 = vst [vmem:[%s3982_s14 + $0x38] sm:$0xf] %v2400_v57  ;;  %v2430_v14 = vld [vmem:[%s3986_s20 + $0x74] sm:$0xf]  ;;  %v2432_v44 = vld [vmem:[%s3986_s20 + $0x78] sm:$0xf] }
 0x2d6   : >> { %2403 = vst [vmem:[%s3982_s14 + $0x3c] sm:$0xf] %v2402_v60  ;;  %v2434_v5 = vld [vmem:[%s3986_s20 + $0x7c] sm:$0xf]  ;;  %s4841_s20 = smov %s4769_s5 }
 0x2d7   : >> { %2405 = vst [vmem:[%s3982_s14 + $0x40] sm:$0xf] %v2404_v61 }
 0x2d8   : >> { %2407 = vst [vmem:[%s3982_s14 + $0x44] sm:$0xf] %v2406_v3 }
 0x2d9   : >> { %2409 = vst [vmem:[%s3982_s14 + $0x48] sm:$0xf] %v2408_v62 }
 0x2da   : >> { %2411 = vst [vmem:[%s3982_s14 + $0x4c] sm:$0xf] %v2410_v45 }
 0x2db   : >> { %2413 = vst [vmem:[%s3982_s14 + $0x50] sm:$0xf] %v2412_v63 }
 0x2dc   : >> { %2415 = vst [vmem:[%s3982_s14 + $0x54] sm:$0xf] %v2414_v0 }
 0x2dd   : >> { %2417 = vst [vmem:[%s3982_s14 + $0x58] sm:$0xf] %v2416_v19 }
 0x2de   : >> { %2419 = vst [vmem:[%s3982_s14 + $0x5c] sm:$0xf] %v2418_v4 }
 0x2df   : >> { %2421 = vst [vmem:[%s3982_s14 + $0x60] sm:$0xf] %v2420_v7 }
 0x2e0   : >> { %2423 = vst [vmem:[%s3982_s14 + $0x64] sm:$0xf] %v2422_v9 }
 0x2e1   : >> { %2425 = vst [vmem:[%s3982_s14 + $0x68] sm:$0xf] %v2424_v6 }
 0x2e2   : >> { %2427 = vst [vmem:[%s3982_s14 + $0x6c] sm:$0xf] %v2426_v12  ;;  %2368 = sbr.rel (!%p2365_p13) target bundleno = 710 (0x2c6), region = 124 }
 0x2e3   : >> { %2429 = vst [vmem:[%s3982_s14 + $0x70] sm:$0xf] %v2428_v2 }
 0x2e4   : >> { %2431 = vst [vmem:[%s3982_s14 + $0x74] sm:$0xf] %v2430_v14 }
 0x2e5   : >> { %2433 = vst [vmem:[%s3982_s14 + $0x78] sm:$0xf] %v2432_v44 }
 0x2e6   : >> { %2435 = vst [vmem:[%s3982_s14 + $0x7c] sm:$0xf] %v2434_v5  ;;  %s4840_s14 = smov %s2442_s6 }
 0x2e7 PF: > { %s4810_s7 = sand.u32 31, %s4850_s24   ;;  %s3705_s8 = sshll.u32 %s4699_s27, 7 }
 0x2e8   : > { %s2447_s9 = scalar_lea.vmem %s4591_s12, %s3705_s8 [#allocation2]   ;;  %s2449_s10 = scalar_lea.vmem %s4693_s25, %s3705_s8  }
 0x2e9   : > { %p3506_p0 = scmp.le.s32.totalorder %s4810_s7, 0 }
 0x2ea   : > { %s3996_s11 = smov (!%p3506_p0), %s2449_s10   ;;  %s4000_s17 = smov (!%p3506_p0), %s2447_s9  }
 0x2eb   : > { %2659 = sbr.rel (%p3506_p0) target bundleno = 760 (0x2f8), region = 129  ;;  %s4004_s19 = smov (!%p3506_p0), 0  }
 0x2ec   : > { %s4008_s21 = smov (!%p3506_p0), 0  }
 0x2f0 LB: >> { %v2459_v40 = vld [vmem:[%s4002_s17] sm:$0xf]  ;;  %s2461_s24 = sadd.s32 1, %s4006_s19  ;;  %s2453_s21 = sadd.s32 1, %s4010_s21   ;;  %s4010_s21 = sphi %s4008_s21, %s2453_s21   ;;  %s4006_s19 = sphi %s4004_s19, %s4005_s19   ;;  %s4002_s17 = sphi %s4000_s17, %s2466_s17   ;;  %s3998_s11 = sphi %s3996_s11, %s2467_s11  }
 0x2f1   : >> { %2460 = vst [vmem:[%s3998_s11] sm:$0xf] %v2459_v40  ;;  %p2462_p1 = scmp.ge.s32.totalorder %s2461_s24, %s4810_s7  ;;  %p2452_p2 = scmp.ge.s32.totalorder %s2453_s21, %s4810_s7 }
 0x2f3   : >> { %s4854_s24 = smov (%p2462_p1, %s2461_s24), 0  ;;  %2455 = sbr.rel (!%p2452_p2) target bundleno = 752 (0x2f0), region = 135 }
 0x2f4   : >> { %s3507_s12 = sshll.u32 %s4854_s24, 2  ;;  %s4005_s19 = smov %s4854_s24  }
 0x2f5   : >> { %s2466_s17 = scalar_lea.vmem %s2447_s9, %s3507_s12 [#allocation2]   ;;  %s2467_s11 = scalar_lea.vmem %s2449_s10, %s3507_s12  }
 0x2f8 PF: > { %s13_s16 = sadd.s32 1, %s3978_s16   ;;  %s4843_s12 = smov %s3966_s13 }
 0x2f9   : > { %p10_p3 = scmp.ge.s32.totalorder %s13_s16, 4   ;;  %s4844_s13 = smov %s4073_s22 }
 0x2fa   : > { %s4845_s14 = smov %s3974_s15  ;;  %s4846_s15 = smov %s4848_s18 }
 0x2fb   :  { %12 = sbr.rel (!%p10_p3) target bundleno = 3 (0x3), region = 146 }

// kernel: encoder_forward.8
= control target key start
LH: loop header
LB: loop body
LE: loop exit
PB: predicated region body
PF: predicated region fallthrough
CT: control target
= control target key end

     0   :  { %s5294_s12 = smov 0   ;;  %s5296_s13 = smov 0   ;;  %s7562_s0 = inlined_call_operand.vmem [shape: bf16[72,2048], index: 0, kind: input, shape index: {}]   ;;  %s7563_s1 = inlined_call_operand.vmem [shape: bf16[2048,256], index: 1, kind: input, shape index: {}]   ;;  %s7564_s2 = inlined_call_operand.vmem [shape: f32[1,256], index: 2, kind: input, shape index: {}]   ;;  %s7565_s3 = inlined_call_operand.vmem [shape: bf16[72,256], index: 3, kind: output, shape index: {}]  }
   0x1   :  { %s5298_s14 = smov 0   ;;  %s5300_s15 = smov 0  }
   0x2   :  { %s5302_s16 = smov 0  }
   0x3 LB: > { %s3429_s17 = sadd.s32 4294967295, %s5240_s16   ;;  %s25_s18 = sadd.s32 1, %s5236_s15  ;;  %s5240_s16 = sphi %s5302_s16, %s13_s16   ;;  %s5236_s15 = sphi %s5300_s15, %s7658_s15   ;;  %s5232_s14 = sphi %s5298_s14, %s7657_s14   ;;  %s5228_s13 = sphi %s5296_s13, %s7656_s13   ;;  %s5224_s12 = sphi %s5294_s12, %s7655_s12  }
   0x4   : > { %p27_p0 = scmp.ge.s32.totalorder %s25_s18, 2  ;;  %s112_s19 = sadd.s32 1, %s5228_s13 }
   0x5   : > { %p122_p1 = scmp.ne.s32.totalorder %s5228_s13, %s5224_s12  ;;  %p123_p2 = scmp.eq.s32.totalorder %s3429_s17, 1 }
   0x6   : > { %s7660_s18 = smov (%p27_p0, %s25_s18), 0  ;;  %p3435_p4 = scmp.ge.s32.totalorder %s5240_s16, 1 }
   0x7   : > { %p5326_p3 = por %p123_p2, %p122_p1  ;;  %s107_s21 = ssub.s32 %s5236_s15, %s7660_s18 }
   0x8   : > { %p184_p5 = scmp.lt.s32.totalorder %s5240_s16, 3  ;;  %p110_p6 = scmp.eq.s32.totalorder %s107_s21, 0 }
   0xa   : > { %p185_p7 = pnand %p3435_p4, %p184_p5 }
   0xb   : > { %s5335_s22 = scalar_select %p110_p6, %s5228_s13, %s112_s19  }
   0xc   : > { %188 = sbr.rel (%p185_p7) target bundleno = 740 (0x2e4), region = 32 }
  0x11   : > { %v3754_v0 = vld [vmem:[%s7563_s1 + $0x70] sm:$0xf]  ;;  %v4819_v1 = vld [vmem:[%s7563_s1 + $0x74] sm:$0xf0]  ;;  %v3746_v11 = vld [vmem:[%s7563_s1 + $0x60] sm:$0xf] }
  0x12   : > { %v3818_v2 = vld [vmem:[%s7563_s1 + $0xf0] sm:$0xf]  ;;  %v3755_v3 = vor.u32 %v4819_v1, %v3754_v0  ;;  %v4835_v4 = vld [vmem:[%s7563_s1 + $0xf4] sm:$0xf0]  ;;  %v4817_v13 = vld [vmem:[%s7563_s1 + $0x64] sm:$0xf0] }
  0x13   : > { %v3882_v5 = vld [vmem:[%s7563_s1 + $0x170] sm:$0xf]  ;;  %v4851_v6 = vld [vmem:[%s7563_s1 + $0x174] sm:$0xf0]  ;;  %v3819_v7 = vor.u32 %v4835_v4, %v3818_v2  ;;  %v3810_v14 = vld [vmem:[%s7563_s1 + $0xe0] sm:$0xf]  ;;  %v3747_v16 = vor.u32 %v4817_v13, %v3746_v11 }
  0x14   : > { %v3883_v8 = vor.u32 %v4851_v6, %v3882_v5  ;;  %v3946_v9 = vld [vmem:[%s7563_s1 + $0x1f0] sm:$0xf]  ;;  %v4867_v10 = vld [vmem:[%s7563_s1 + $0x1f4] sm:$0xf0]  ;;  %2183 = vmatpush.bf16.msra.mxu0 %v3755_v3  ;;  %v4833_v15 = vld [vmem:[%s7563_s1 + $0xe4] sm:$0xf0] }
  0x15   : > { %v3947_v12 = vor.u32 %v4867_v10, %v3946_v9  ;;  %2212 = vmatpush.bf16.msra.mxu1 %v3819_v7  ;;  %v3811_v17 = vor.u32 %v4833_v15, %v3810_v14  ;;  %v3874_v18 = vld [vmem:[%s7563_s1 + $0x160] sm:$0xf]  ;;  %v4849_v19 = vld [vmem:[%s7563_s1 + $0x164] sm:$0xf0]  ;;  %v3738_v23 = vld [vmem:[%s7563_s1 + $0x50] sm:$0xf] }
  0x16   : > { %2241 = vmatpush.bf16.msra.mxu2 %v3883_v8  ;;  %v3938_v20 = vld [vmem:[%s7563_s1 + $0x1e0] sm:$0xf]  ;;  %v3875_v21 = vor.u32 %v4849_v19, %v3874_v18  ;;  %v4865_v22 = vld [vmem:[%s7563_s1 + $0x1e4] sm:$0xf0]  ;;  %v4815_v24 = vld [vmem:[%s7563_s1 + $0x54] sm:$0xf0] }
  0x17   : > { %2270 = vmatpush.bf16.msra.mxu3 %v3947_v12  ;;  %v3939_v25 = vor.u32 %v4865_v22, %v3938_v20  ;;  %v3802_v26 = vld [vmem:[%s7563_s1 + $0xd0] sm:$0xf]  ;;  %v4831_v27 = vld [vmem:[%s7563_s1 + $0xd4] sm:$0xf0]  ;;  %v3739_v29 = vor.u32 %v4815_v24, %v3738_v23  ;;  %v3730_v35 = vld [vmem:[%s7563_s1 + $0x40] sm:$0xf] }
  0x18   : > { %v3866_v28 = vld [vmem:[%s7563_s1 + $0x150] sm:$0xf]  ;;  %2184 = vmatpush.bf16.msra.mxu0 %v3747_v16  ;;  %v4847_v30 = vld [vmem:[%s7563_s1 + $0x154] sm:$0xf0]  ;;  %v3803_v33 = vor.u32 %v4831_v27, %v3802_v26  ;;  %v4813_v36 = vld [vmem:[%s7563_s1 + $0x44] sm:$0xf0] }
  0x19   : > { %v3930_v31 = vld [vmem:[%s7563_s1 + $0x1d0] sm:$0xf]  ;;  %v4863_v32 = vld [vmem:[%s7563_s1 + $0x1d4] sm:$0xf0]  ;;  %2213 = vmatpush.bf16.msra.mxu1 %v3811_v17  ;;  %v3867_v34 = vor.u32 %v4847_v30, %v3866_v28  ;;  %v3794_v37 = vld [vmem:[%s7563_s1 + $0xc0] sm:$0xf]  ;;  %v3731_v44 = vor.u32 %v4813_v36, %v3730_v35 }
  0x1a   : > { %2242 = vmatpush.bf16.msra.mxu2 %v3875_v21  ;;  %v3931_v38 = vor.u32 %v4863_v32, %v3930_v31  ;;  %v4829_v39 = vld [vmem:[%s7563_s1 + $0xc4] sm:$0xf0]  ;;  %v3858_v40 = vld [vmem:[%s7563_s1 + $0x140] sm:$0xf]  ;;  %v3722_v47 = vld [vmem:[%s7563_s1 + $0x30] sm:$0xf] }
  0x1b   : > { %2271 = vmatpush.bf16.msra.mxu3 %v3939_v25  ;;  %v4845_v41 = vld [vmem:[%s7563_s1 + $0x144] sm:$0xf0]  ;;  %v3922_v42 = vld [vmem:[%s7563_s1 + $0x1c0] sm:$0xf]  ;;  %v3795_v45 = vor.u32 %v4829_v39, %v3794_v37  ;;  %v4811_v48 = vld [vmem:[%s7563_s1 + $0x34] sm:$0xf0] }
  0x1c   : > { %v4861_v43 = vld [vmem:[%s7563_s1 + $0x1c4] sm:$0xf0]  ;;  %2185 = vmatpush.bf16.msra.mxu0 %v3739_v29  ;;  %v3859_v46 = vor.u32 %v4845_v41, %v3858_v40  ;;  %v3786_v49 = vld [vmem:[%s7563_s1 + $0xb0] sm:$0xf]  ;;  %v4827_v51 = vld [vmem:[%s7563_s1 + $0xb4] sm:$0xf0]  ;;  %v3723_v56 = vor.u32 %v4811_v48, %v3722_v47 }
  0x1d   : > { %2214 = vmatpush.bf16.msra.mxu1 %v3803_v33  ;;  %v3923_v50 = vor.u32 %v4861_v43, %v3922_v42  ;;  %v3850_v52 = vld [vmem:[%s7563_s1 + $0x130] sm:$0xf]  ;;  %v4843_v53 = vld [vmem:[%s7563_s1 + $0x134] sm:$0xf0]  ;;  %v3787_v57 = vor.u32 %v4827_v51, %v3786_v49  ;;  %v3714_v59 = vld [vmem:[%s7563_s1 + $0x20] sm:$0xf] }
  0x1e   : > { %2243 = vmatpush.bf16.msra.mxu2 %v3867_v34  ;;  %v3914_v54 = vld [vmem:[%s7563_s1 + $0x1b0] sm:$0xf]  ;;  %v4859_v55 = vld [vmem:[%s7563_s1 + $0x1b4] sm:$0xf0]  ;;  %v3851_v58 = vor.u32 %v4843_v53, %v3850_v52  ;;  %v4809_v60 = vld [vmem:[%s7563_s1 + $0x24] sm:$0xf0] }
  0x1f   : > { %2272 = vmatpush.bf16.msra.mxu3 %v3931_v38  ;;  %v3778_v61 = vld [vmem:[%s7563_s1 + $0xa0] sm:$0xf]  ;;  %v3915_v62 = vor.u32 %v4859_v55, %v3914_v54  ;;  %v4825_v63 = vld [vmem:[%s7563_s1 + $0xa4] sm:$0xf0]  ;;  %v3715_v4 = vor.u32 %v4809_v60, %v3714_v59  ;;  %v3706_v5 = vld [vmem:[%s7563_s1 + $0x10] sm:$0xf] }
  0x20   : > { %2186 = vmatpush.bf16.msra.mxu0 %v3731_v44  ;;  %v3842_v0 = vld [vmem:[%s7563_s1 + $0x120] sm:$0xf]  ;;  %v4841_v1 = vld [vmem:[%s7563_s1 + $0x124] sm:$0xf0]  ;;  %v3779_v6 = vor.u32 %v4825_v63, %v3778_v61  ;;  %v4807_v8 = vld [vmem:[%s7563_s1 + $0x14] sm:$0xf0] }
  0x21   : > { %2215 = vmatpush.bf16.msra.mxu1 %v3795_v45  ;;  %v3906_v2 = vld [vmem:[%s7563_s1 + $0x1a0] sm:$0xf]  ;;  %v4857_v3 = vld [vmem:[%s7563_s1 + $0x1a4] sm:$0xf0]  ;;  %v3843_v7 = vor.u32 %v4841_v1, %v3842_v0  ;;  %v3770_v9 = vld [vmem:[%s7563_s1 + $0x90] sm:$0xf]  ;;  %v3707_v16 = vor.u32 %v4807_v8, %v3706_v5 }
  0x22   : > { %2244 = vmatpush.bf16.msra.mxu2 %v3859_v46  ;;  %v4823_v10 = vld [vmem:[%s7563_s1 + $0x94] sm:$0xf0]  ;;  %v3907_v11 = vor.u32 %v4857_v3, %v3906_v2  ;;  %v3834_v12 = vld [vmem:[%s7563_s1 + $0x110] sm:$0xf]  ;;  %s5500_s9 = sshll.u32 %s5232_s14, 3  ;;  %s219_s17 = sand.u32 1, %s5224_s12  }
  0x23   : > { %2273 = vmatpush.bf16.msra.mxu3 %v3923_v50  ;;  %v4839_v13 = vld [vmem:[%s7563_s1 + $0x114] sm:$0xf0]  ;;  %v3898_v14 = vld [vmem:[%s7563_s1 + $0x190] sm:$0xf]  ;;  %p228_p8 = scmp.lt.s32.totalorder %s5500_s9, 8  ;;  %v3771_v20 = vor.u32 %v4823_v10, %v3770_v9  ;;  %s5062_s21 = sshll.u32 (%p5326_p3), %s5232_s14, 6 }
  0x24   : > { %2187 = vmatpush.bf16.msra.mxu0 %v3723_v56  ;;  %v4855_v15 = vld [vmem:[%s7563_s1 + $0x194] sm:$0xf0]  ;;  %v3698_v17 = vld [vmem:[%s7563_s1] sm:$0xf]  ;;  %v4805_v18 = vld [vmem:[%s7563_s1 + $0x4] sm:$0xf0]  ;;  %v3835_v21 = vor.u32 %v4839_v13, %v3834_v12  ;;  %s7503_s25 = scalar_lea.vmem (%p5326_p3), %s7565_s3, %s5062_s21  }
  0x25   : > { %2216 = vmatpush.bf16.msra.mxu1 %v3787_v57  ;;  %v3762_v19 = vld [vmem:[%s7563_s1 + $0x80] sm:$0xf]  ;;  %v4821_v22 = vld [vmem:[%s7563_s1 + $0x84] sm:$0xf0]  ;;  %s229_s5 = scalar_select %p228_p8, %s5500_s9, 8  ;;  %v3899_v24 = vor.u32 %v4855_v15, %v3898_v14  ;;  %v3699_v30 = vor.u32 %v4805_v18, %v3698_v17 }
  0x26   : > { %2245 = vmatpush.bf16.msra.mxu2 %v3851_v58  ;;  %v3826_v23 = vld [vmem:[%s7563_s1 + $0x100] sm:$0xf]  ;;  %v4837_v25 = vld [vmem:[%s7563_s1 + $0x104] sm:$0xf0]  ;;  %v4138_v28 = vld [vmem:[%s7563_s1 + $0x370] sm:$0xf]  ;;  %v3763_v35 = vor.u32 %v4821_v22, %v3762_v19 }
  0x27   : > { %2274 = vmatpush.bf16.msra.mxu3 %v3915_v62  ;;  %v3890_v26 = vld [vmem:[%s7563_s1 + $0x180] sm:$0xf]  ;;  %v4853_v27 = vld [vmem:[%s7563_s1 + $0x184] sm:$0xf0]  ;;  %s4739_s19 = sshll.u32 %s229_s5, 6  ;;  %v3827_v36 = vor.u32 %v4837_v25, %v3826_v23 }
  0x28   : > { %2188 = vmatpush.bf16.msra.mxu0 %v3715_v4  ;;  %v4915_v29 = vld [vmem:[%s7563_s1 + $0x374] sm:$0xf0]  ;;  %s5543_s28 = scalar_lea.vmem %s7562_s0, %s4739_s19  ;;  %v4010_v31 = vld [vmem:[%s7563_s1 + $0x270] sm:$0xf]  ;;  %v4130_v42 = vld [vmem:[%s7563_s1 + $0x360] sm:$0xf]  ;;  %v3891_v43 = vor.u32 %v4853_v27, %v3890_v26 }
  0x29   : > { %2217 = vmatpush.bf16.msra.mxu1 %v3779_v6  ;;  %v4883_v32 = vld [vmem:[%s7563_s1 + $0x274] sm:$0xf0]  ;;  %v4202_v33 = vld [vmem:[%s7563_s1 + $0x3f0] sm:$0xf]  ;;  %v3442_v37 = vld [vmem:[%s5543_s28] sm:$0xf]  ;;  %v4139_v47 = vor.u32 %v4915_v29, %v4138_v28 }
  0x2a   : > { %2246 = vmatpush.bf16.msra.mxu2 %v3843_v7  ;;  %v4931_v34 = vld [vmem:[%s7563_s1 + $0x3f4] sm:$0xf0]  ;;  %v4748_v38 = vld [vmem:[%s5543_s28 + $0x3c] sm:$0xf0]  ;;  %v4740_v39 = vld [vmem:[%s5543_s28 + $0x4] sm:$0xf]  ;;  %v4011_v58 = vor.u32 %v4883_v32, %v4010_v31 }
  0x2b   : > { %2275 = vmatpush.bf16.msra.mxu3 %v3907_v11  ;;  %v4074_v40 = vld [vmem:[%s7563_s1 + $0x2f0] sm:$0xf]  ;;  %v4899_v41 = vld [vmem:[%s7563_s1 + $0x2f4] sm:$0xf0]  ;;  %v3444_v44 = vld [vmem:[%s5543_s28 + $0x40] sm:$0xf0]  ;;  %v5572_v48 = vor.u32 %v4748_v38, %v3442_v37  ;;  %v4203_v51 = vor.u32 %v4931_v34, %v4202_v33 }
  0x2c   : > { %2189 = vmatpush.bf16.msra.mxu0 %v3707_v16  ;;  %v3450_v45 = vld [vmem:[%s5543_s28 + $0x8] sm:$0xf]  ;;  %v4741_v49 = vld [vmem:[%s5543_s28 + $0xc] sm:$0xf]  ;;  %v5579_v53 = vor.u32 %v4740_v39, %v3444_v44  ;;  %v4194_v55 = vld [vmem:[%s7563_s1 + $0x3e0] sm:$0xf]  ;;  %v4075_v59 = vor.u32 %v4899_v41, %v4074_v40 }
  0x2d   : > { %2218 = vmatpush.bf16.msra.mxu1 %v3771_v20  ;;  %v4749_v46 = vld [vmem:[%s5543_s28 + $0x44] sm:$0xf0]  ;;  %v3452_v50 = vld [vmem:[%s5543_s28 + $0x48] sm:$0xf0]  ;;  %v4002_v61 = vld [vmem:[%s7563_s1 + $0x260] sm:$0xf] }
  0x2e   : > { %2247 = vmatpush.bf16.msra.mxu2 %v3835_v21  ;;  %v4913_v52 = vld [vmem:[%s7563_s1 + $0x364] sm:$0xf0]  ;;  %v5581_v54 = vor.u32 %v4749_v46, %v3450_v45  ;;  %v5589_v57 = vor.u32 %v4741_v49, %v3452_v50  ;;  %v4066_v63 = vld [vmem:[%s7563_s1 + $0x2e0] sm:$0xf]  ;;  %v4122_v2 = vld [vmem:[%s7563_s1 + $0x350] sm:$0xf] }
  0x2f   : > { %2276 = vmatpush.bf16.msra.mxu3 %v3899_v24  ;;  %v4929_v56 = vld [vmem:[%s7563_s1 + $0x3e4] sm:$0xf0]  ;;  %v4131_v60 = vor.u32 %v4913_v52, %v4130_v42  ;;  %v4911_v3 = vld [vmem:[%s7563_s1 + $0x354] sm:$0xf0]  ;;  %v4186_v4 = vld [vmem:[%s7563_s1 + $0x3d0] sm:$0xf] }
  0x30   : > { %2190 = vmatpush.bf16.msra.mxu0 %v3699_v30  ;;  %v4881_v62 = vld [vmem:[%s7563_s1 + $0x264] sm:$0xf0]  ;;  %v4195_v0 = vor.u32 %v4929_v56, %v4194_v55  ;;  %v4927_v5 = vld [vmem:[%s7563_s1 + $0x3d4] sm:$0xf0]  ;;  %v4123_v8 = vor.u32 %v4911_v3, %v4122_v2  ;;  %v3994_v9 = vld [vmem:[%s7563_s1 + $0x250] sm:$0xf] }
  0x31   : > { %2219 = vmatpush.bf16.msra.mxu1 %v3763_v35  ;;  %v4897_v1 = vld [vmem:[%s7563_s1 + $0x2e4] sm:$0xf0]  ;;  %v4003_v6 = vor.u32 %v4881_v62, %v4002_v61  ;;  %v4879_v10 = vld [vmem:[%s7563_s1 + $0x254] sm:$0xf0]  ;;  %v4058_v11 = vld [vmem:[%s7563_s1 + $0x2d0] sm:$0xf]  ;;  %v4187_v12 = vor.u32 %v4927_v5, %v4186_v4 }
  0x32   : > { %2248 = vmatpush.bf16.msra.mxu2 %v3827_v36  ;;  %v4067_v7 = vor.u32 %v4897_v1, %v4066_v63  ;;  %v4895_v13 = vld [vmem:[%s7563_s1 + $0x2d4] sm:$0xf0]  ;;  %v4114_v14 = vld [vmem:[%s7563_s1 + $0x340] sm:$0xf]  ;;  %v4909_v15 = vld [vmem:[%s7563_s1 + $0x344] sm:$0xf0]  ;;  %v3995_v18 = vor.u32 %v4879_v10, %v3994_v9 }
  0x33   : > { %2277 = vmatpush.bf16.msra.mxu3 %v3891_v43  ;;  %2191 = vmatmul.bf16.vlgmr.msra.gmra.mxu0 %v5572_v48  ;;  %v4178_v16 = vld [vmem:[%s7563_s1 + $0x3c0] sm:$0xf]  ;;  %v4925_v17 = vld [vmem:[%s7563_s1 + $0x3c4] sm:$0xf0]  ;;  %v4059_v21 = vor.u32 %v4895_v13, %v4058_v11  ;;  %v4115_v22 = vor.u32 %v4909_v15, %v4114_v14  ;;  %v4756_v26 = vld [vmem:[%s5543_s28 + $0x84] sm:$0xf] }
  0x34   : > { %2220 = vmatmul.bf16.vlgmr.msra.gmra.mxu1 %v5579_v53  ;;  %2299 = vmatpush.bf16.msrb.mxu0 %v4011_v58  ;;  %v3506_v19 = vld [vmem:[%s5543_s28 + $0x80] sm:$0xf]  ;;  %v4877_v24 = vld [vmem:[%s7563_s1 + $0x244] sm:$0xf0]  ;;  %v3508_v27 = vld [vmem:[%s5543_s28 + $0xc0] sm:$0xf0]  ;;  %v4179_v28 = vor.u32 %v4925_v17, %v4178_v16 }
  0x35   : > { %2249 = vmatmul.bf16.vlgmr.msra.gmra.mxu2 %v5581_v54  ;;  %2328 = vmatpush.bf16.msrb.mxu1 %v4075_v59  ;;  %v4764_v20 = vld [vmem:[%s5543_s28 + $0xbc] sm:$0xf0]  ;;  %v4893_v29 = vld [vmem:[%s7563_s1 + $0x2c4] sm:$0xf0]  ;;  %v4106_v30 = vld [vmem:[%s7563_s1 + $0x330] sm:$0xf]  ;;  %v5695_v50 = vor.u32 %v4756_v26, %v3508_v27 }
  0x36   : > { %2357 = vmatpush.bf16.msrb.mxu2 %v4139_v47  ;;  %2278 = vmatmul.bf16.vlgmr.msra.gmra.mxu3 %v5589_v57  ;;  %v3986_v23 = vld [vmem:[%s7563_s1 + $0x240] sm:$0xf]  ;;  %v4907_v31 = vld [vmem:[%s7563_s1 + $0x334] sm:$0xf0]  ;;  %v3514_v32 = vld [vmem:[%s5543_s28 + $0x88] sm:$0xf]  ;;  %v5684_v44 = vor.u32 %v4764_v20, %v3506_v19 }
  0x37   : > { %2386 = vmatpush.bf16.msrb.mxu3 %v4203_v51  ;;  %v4050_v25 = vld [vmem:[%s7563_s1 + $0x2c0] sm:$0xf]  ;;  %v4170_v33 = vld [vmem:[%s7563_s1 + $0x3b0] sm:$0xf]  ;;  %v4923_v34 = vld [vmem:[%s7563_s1 + $0x3b4] sm:$0xf0]  ;;  %v3987_v38 = vor.u32 %v4877_v24, %v3986_v23  ;;  %v4107_v40 = vor.u32 %v4907_v31, %v4106_v30 }
  0x38   : > { %2300 = vmatpush.bf16.msrb.mxu0 %v4003_v6  ;;  %v4765_v35 = vld [vmem:[%s5543_s28 + $0xc4] sm:$0xf0]  ;;  %v4757_v36 = vld [vmem:[%s5543_s28 + $0x8c] sm:$0xf]  ;;  %v4051_v39 = vor.u32 %v4893_v29, %v4050_v25  ;;  %v3978_v41 = vld [vmem:[%s7563_s1 + $0x230] sm:$0xf]  ;;  %v4171_v45 = vor.u32 %v4923_v34, %v4170_v33 }
  0x39   : > { %2329 = vmatpush.bf16.msrb.mxu1 %v4067_v7  ;;  %v3516_v37 = vld [vmem:[%s5543_s28 + $0xc8] sm:$0xf0]  ;;  %v4875_v42 = vld [vmem:[%s7563_s1 + $0x234] sm:$0xf0]  ;;  %v4042_v43 = vld [vmem:[%s7563_s1 + $0x2b0] sm:$0xf]  ;;  %v5697_v51 = vor.u32 %v4765_v35, %v3514_v32 }
  0x3a   : > { %2358 = vmatpush.bf16.msrb.mxu2 %v4131_v60  ;;  %v4891_v46 = vld [vmem:[%s7563_s1 + $0x2b4] sm:$0xf0]  ;;  %v4098_v47 = vld [vmem:[%s7563_s1 + $0x320] sm:$0xf]  ;;  %v4905_v49 = vld [vmem:[%s7563_s1 + $0x324] sm:$0xf0]  ;;  %v5705_v56 = vor.u32 %v4757_v36, %v3516_v37  ;;  %v3979_v58 = vor.u32 %v4875_v42, %v3978_v41 }
  0x3b   : > { %2387 = vmatpush.bf16.msrb.mxu3 %v4195_v0  ;;  %v4162_v52 = vld [vmem:[%s7563_s1 + $0x3a0] sm:$0xf]  ;;  %v4921_v55 = vld [vmem:[%s7563_s1 + $0x3a4] sm:$0xf0]  ;;  %v4043_v59 = vor.u32 %v4891_v46, %v4042_v43  ;;  %v4099_v60 = vor.u32 %v4905_v49, %v4098_v47  ;;  %v4090_v3 = vld [vmem:[%s7563_s1 + $0x310] sm:$0xf] }
  0x3c   : > { %2301 = vmatpush.bf16.msrb.mxu0 %v3995_v18  ;;  %v3970_v61 = vld [vmem:[%s7563_s1 + $0x220] sm:$0xf]  ;;  %v4873_v62 = vld [vmem:[%s7563_s1 + $0x224] sm:$0xf0]  ;;  %v4163_v63 = vor.u32 %v4921_v55, %v4162_v52  ;;  %v4903_v4 = vld [vmem:[%s7563_s1 + $0x314] sm:$0xf0] }
  0x3d   : > { %2330 = vmatpush.bf16.msrb.mxu1 %v4059_v21  ;;  %v4034_v0 = vld [vmem:[%s7563_s1 + $0x2a0] sm:$0xf]  ;;  %v4889_v1 = vld [vmem:[%s7563_s1 + $0x2a4] sm:$0xf0]  ;;  %v3971_v2 = vor.u32 %v4873_v62, %v3970_v61  ;;  %v3962_v5 = vld [vmem:[%s7563_s1 + $0x210] sm:$0xf]  ;;  %v4091_v7 = vor.u32 %v4903_v4, %v4090_v3 }
  0x3e   : > { %2359 = vmatpush.bf16.msrb.mxu2 %v4123_v8  ;;  %v4035_v6 = vor.u32 %v4889_v1, %v4034_v0  ;;  %v4871_v8 = vld [vmem:[%s7563_s1 + $0x214] sm:$0xf0]  ;;  %v4154_v9 = vld [vmem:[%s7563_s1 + $0x390] sm:$0xf]  ;;  %v4082_v14 = vld [vmem:[%s7563_s1 + $0x300] sm:$0xf] }
  0x3f   : > { %2388 = vmatpush.bf16.msrb.mxu3 %v4187_v12  ;;  %v4919_v10 = vld [vmem:[%s7563_s1 + $0x394] sm:$0xf0]  ;;  %v4026_v12 = vld [vmem:[%s7563_s1 + $0x290] sm:$0xf]  ;;  %v4901_v15 = vld [vmem:[%s7563_s1 + $0x304] sm:$0xf0]  ;;  %v3963_v16 = vor.u32 %v4871_v8, %v3962_v5 }
  0x40   : > { %2302 = vmatpush.bf16.msrb.mxu0 %v3987_v38  ;;  %v4155_v11 = vor.u32 %v4919_v10, %v4154_v9  ;;  %v4887_v13 = vld [vmem:[%s7563_s1 + $0x294] sm:$0xf0]  ;;  %v4146_v17 = vld [vmem:[%s7563_s1 + $0x380] sm:$0xf]  ;;  %v4917_v18 = vld [vmem:[%s7563_s1 + $0x384] sm:$0xf0]  ;;  %v4083_v20 = vor.u32 %v4901_v15, %v4082_v14 }
  0x41   : > { %2331 = vmatpush.bf16.msrb.mxu1 %v4051_v39  ;;  %v4027_v19 = vor.u32 %v4887_v13, %v4026_v12  ;;  %v3954_v21 = vld [vmem:[%s7563_s1 + $0x200] sm:$0xf]  ;;  %v4147_v23 = vor.u32 %v4917_v18, %v4146_v17  ;;  %v4885_v25 = vld [vmem:[%s7563_s1 + $0x284] sm:$0xf0]  ;;  %v3572_v29 = vld [vmem:[%s5543_s28 + $0x140] sm:$0xf0] }
  0x42   : > { %2360 = vmatpush.bf16.msrb.mxu2 %v4115_v22  ;;  %v4869_v22 = vld [vmem:[%s7563_s1 + $0x204] sm:$0xf0]  ;;  %v4018_v24 = vld [vmem:[%s7563_s1 + $0x280] sm:$0xf]  ;;  %v4773_v33 = vld [vmem:[%s5543_s28 + $0x10c] sm:$0xf] }
  0x43   : > { %2389 = vmatpush.bf16.msrb.mxu3 %v4179_v28  ;;  %2196 = vmatmul.bf16.gmra.mxu0 %v5684_v44  ;;  %v3570_v26 = vld [vmem:[%s5543_s28 + $0x100] sm:$0xf]  ;;  %v4772_v28 = vld [vmem:[%s5543_s28 + $0x104] sm:$0xf]  ;;  %v3578_v30 = vld [vmem:[%s5543_s28 + $0x108] sm:$0xf]  ;;  %v3955_v32 = vor.u32 %v4869_v22, %v3954_v21  ;;  %v4019_v35 = vor.u32 %v4885_v25, %v4018_v24 }
  0x44   : > { %2225 = vmatmul.bf16.gmra.mxu1 %v5695_v50  ;;  %2303 = vmatpush.bf16.msrb.mxu0 %v3979_v58  ;;  %v4780_v27 = vld [vmem:[%s5543_s28 + $0x13c] sm:$0xf0]  ;;  %v4781_v31 = vld [vmem:[%s5543_s28 + $0x144] sm:$0xf0]  ;;  %v3580_v34 = vld [vmem:[%s5543_s28 + $0x148] sm:$0xf0]  ;;  %v5781_v37 = vor.u32 %v4772_v28, %v3572_v29 }
  0x45   : > { %2254 = vmatmul.bf16.gmra.mxu2 %v5697_v51  ;;  %2332 = vmatpush.bf16.msrb.mxu1 %v4043_v59  ;;  %v5779_v36 = vor.u32 %v4780_v27, %v3570_v26  ;;  %v5783_v38 = vor.u32 %v4781_v31, %v3578_v30  ;;  %v5785_v39 = vor.u32 %v4773_v33, %v3580_v34  ;;  %v4979_v41 = vld [vmem:[%s7563_s1 + $0x574] sm:$0xf0]  ;;  %v4266_v42 = vld [vmem:[%s7563_s1 + $0x470] sm:$0xf]  ;;  %v4386_v59 = vld [vmem:[%s7563_s1 + $0x560] sm:$0xf] }
  0x46   : > { %2361 = vmatpush.bf16.msrb.mxu2 %v4107_v40  ;;  %2283 = vmatmul.bf16.gmra.mxu3 %v5705_v56  ;;  %v4394_v40 = vld [vmem:[%s7563_s1 + $0x570] sm:$0xf]  ;;  %v4995_v47 = vld [vmem:[%s7563_s1 + $0x5f4] sm:$0xf0]  ;;  %v4977_v61 = vld [vmem:[%s7563_s1 + $0x564] sm:$0xf0] }
  0x47   : > { %2390 = vmatpush.bf16.msrb.mxu3 %v4171_v45  ;;  %v4395_v43 = vor.u32 %v4979_v41, %v4394_v40  ;;  %v4947_v45 = vld [vmem:[%s7563_s1 + $0x474] sm:$0xf0]  ;;  %v4458_v46 = vld [vmem:[%s7563_s1 + $0x5f0] sm:$0xf]  ;;  %v4258_v62 = vld [vmem:[%s7563_s1 + $0x460] sm:$0xf]  ;;  %v4387_v0 = vor.u32 %v4977_v61, %v4386_v59 }
  0x48   : > { %2304 = vmatpush.bf16.msrb.mxu0 %v3971_v2  ;;  %v4267_v49 = vor.u32 %v4947_v45, %v4266_v42  ;;  %v4459_v52 = vor.u32 %v4995_v47, %v4458_v46  ;;  %v4330_v55 = vld [vmem:[%s7563_s1 + $0x4f0] sm:$0xf]  ;;  %v4963_v58 = vld [vmem:[%s7563_s1 + $0x4f4] sm:$0xf0]  ;;  %v4450_v2 = vld [vmem:[%s7563_s1 + $0x5e0] sm:$0xf] }
  0x49   : > { %2333 = vmatpush.bf16.msrb.mxu1 %v4035_v6  ;;  %v4993_v3 = vld [vmem:[%s7563_s1 + $0x5e4] sm:$0xf0]  ;;  %v4322_v4 = vld [vmem:[%s7563_s1 + $0x4e0] sm:$0xf]  ;;  %v4788_v10 = vld [vmem:[%s5543_s28 + $0x184] sm:$0xf] }
  0x4a   : > { %2362 = vmatpush.bf16.msrb.mxu2 %v4099_v60  ;;  %v4331_v60 = vor.u32 %v4963_v58, %v4330_v55  ;;  %v4451_v5 = vor.u32 %v4993_v3, %v4450_v2  ;;  %v4961_v6 = vld [vmem:[%s7563_s1 + $0x4e4] sm:$0xf0]  ;;  %v3634_v8 = vld [vmem:[%s5543_s28 + $0x180] sm:$0xf]  ;;  %v4789_v14 = vld [vmem:[%s5543_s28 + $0x18c] sm:$0xf] }
  0x4b   : > { %2391 = vmatpush.bf16.msrb.mxu3 %v4163_v63  ;;  %v4945_v63 = vld [vmem:[%s7563_s1 + $0x464] sm:$0xf0]  ;;  %v4796_v9 = vld [vmem:[%s5543_s28 + $0x1bc] sm:$0xf0]  ;;  %v3644_v15 = vld [vmem:[%s5543_s28 + $0x1c8] sm:$0xf0] }
  0x4c   : > { %2305 = vmatpush.bf16.msrb.mxu0 %v3963_v16  ;;  %v4259_v1 = vor.u32 %v4945_v63, %v4258_v62  ;;  %v3642_v12 = vld [vmem:[%s5543_s28 + $0x188] sm:$0xf]  ;;  %v5847_v16 = vor.u32 %v4796_v9, %v3634_v8  ;;  %v4975_v21 = vld [vmem:[%s7563_s1 + $0x554] sm:$0xf0]  ;;  %v4250_v22 = vld [vmem:[%s7563_s1 + $0x450] sm:$0xf] }
  0x4d   : > { %2334 = vmatpush.bf16.msrb.mxu1 %v4027_v19  ;;  %v4797_v13 = vld [vmem:[%s5543_s28 + $0x1c4] sm:$0xf0]  ;;  %v5853_v19 = vor.u32 %v4789_v14, %v3644_v15  ;;  %v4943_v24 = vld [vmem:[%s7563_s1 + $0x454] sm:$0xf0]  ;;  %v4442_v25 = vld [vmem:[%s7563_s1 + $0x5d0] sm:$0xf] }
  0x4e   : > { %2363 = vmatpush.bf16.msrb.mxu2 %v4091_v7  ;;  %v4323_v7 = vor.u32 %v4961_v6, %v4322_v4  ;;  %v5851_v18 = vor.u32 %v4797_v13, %v3642_v12  ;;  %v4991_v26 = vld [vmem:[%s7563_s1 + $0x5d4] sm:$0xf0]  ;;  %v4251_v27 = vor.u32 %v4943_v24, %v4250_v22  ;;  %v4314_v29 = vld [vmem:[%s7563_s1 + $0x4d0] sm:$0xf]  ;;  %v4370_v31 = vld [vmem:[%s7563_s1 + $0x540] sm:$0xf] }
  0x4f   : > { %2392 = vmatpush.bf16.msrb.mxu3 %v4155_v11  ;;  %v3636_v11 = vld [vmem:[%s5543_s28 + $0x1c0] sm:$0xf0]  ;;  %v4443_v28 = vor.u32 %v4991_v26, %v4442_v25  ;;  %v4959_v30 = vld [vmem:[%s7563_s1 + $0x4d4] sm:$0xf0]  ;;  %v4973_v33 = vld [vmem:[%s7563_s1 + $0x544] sm:$0xf0] }
  0x50   : > { %2306 = vmatpush.bf16.msrb.mxu0 %v3955_v32  ;;  %v5849_v17 = vor.u32 %v4788_v10, %v3636_v11  ;;  %v4315_v32 = vor.u32 %v4959_v30, %v4314_v29  ;;  %v4242_v34 = vld [vmem:[%s7563_s1 + $0x440] sm:$0xf]  ;;  %v4371_v40 = vor.u32 %v4973_v33, %v4370_v31  ;;  %v4957_v47 = vld [vmem:[%s7563_s1 + $0x4c4] sm:$0xf0]  ;;  %v4750_v55 = vld [vmem:[%s5543_s28 + $0x4c] sm:$0xf0] }
  0x51   : > { %2335 = vmatpush.bf16.msrb.mxu1 %v4019_v35  ;;  %v4941_v35 = vld [vmem:[%s7563_s1 + $0x444] sm:$0xf0]  ;;  %v4434_v42 = vld [vmem:[%s7563_s1 + $0x5c0] sm:$0xf]  ;;  %v4742_v58 = vld [vmem:[%s5543_s28 + $0x14] sm:$0xf] }
  0x52   : > { %2364 = vmatpush.bf16.msrb.mxu2 %v4083_v20  ;;  %v4378_v20 = vld [vmem:[%s7563_s1 + $0x550] sm:$0xf]  ;;  %v4243_v41 = vor.u32 %v4941_v35, %v4242_v34  ;;  %v4306_v45 = vld [vmem:[%s7563_s1 + $0x4c0] sm:$0xf]  ;;  %v3460_v59 = vld [vmem:[%s5543_s28 + $0x50] sm:$0xf0] }
  0x53   : > { %2393 = vmatpush.bf16.msrb.mxu3 %v4147_v23  ;;  %2201 = vmatmul.bf16.gmra.mxu0 %v5779_v36  ;;  %v4379_v23 = vor.u32 %v4975_v21, %v4378_v20  ;;  %v4751_v61 = vld [vmem:[%s5543_s28 + $0x54] sm:$0xf0]  ;;  %v4743_v62 = vld [vmem:[%s5543_s28 + $0x1c] sm:$0xf]  ;;  %v4362_v4 = vld [vmem:[%s7563_s1 + $0x530] sm:$0xf] }
  0x54   : > { %2230 = vmatmul.bf16.gmra.mxu1 %v5781_v37  ;;  %2415 = vmatpush.bf16.msra.mxu0 %v4267_v49  ;;  %v4307_v49 = vor.u32 %v4957_v47, %v4306_v45  ;;  %v3468_v63 = vld [vmem:[%s5543_s28 + $0x58] sm:$0xf0]  ;;  %v4234_v6 = vld [vmem:[%s7563_s1 + $0x430] sm:$0xf]  ;;  %v4939_v8 = vld [vmem:[%s7563_s1 + $0x434] sm:$0xf0] }
  0x55   : > { %2259 = vmatmul.bf16.gmra.mxu2 %v5783_v38  ;;  %2444 = vmatpush.bf16.msra.mxu1 %v4331_v60  ;;  %v3466_v60 = vld [vmem:[%s5543_s28 + $0x18] sm:$0xf]  ;;  %v5921_v3 = vor.u32 %v4743_v62, %v3468_v63  ;;  %v4426_v9 = vld [vmem:[%s7563_s1 + $0x5b0] sm:$0xf]  ;;  %v4235_v11 = vor.u32 %v4939_v8, %v4234_v6  ;;  %v4354_v15 = vld [vmem:[%s7563_s1 + $0x520] sm:$0xf] }
  0x56   : > { %2288 = vmatmul.bf16.gmra.mxu3 %v5785_v39  ;;  %2473 = vmatpush.bf16.msra.mxu2 %v4395_v43  ;;  %v4989_v43 = vld [vmem:[%s7563_s1 + $0x5c4] sm:$0xf0]  ;;  %v5919_v2 = vor.u32 %v4751_v61, %v3466_v60  ;;  %v4987_v10 = vld [vmem:[%s7563_s1 + $0x5b4] sm:$0xf0]  ;;  %v4298_v13 = vld [vmem:[%s7563_s1 + $0x4b0] sm:$0xf] }
  0x57   : > { %2502 = vmatpush.bf16.msra.mxu3 %v4459_v52  ;;  %v4435_v46 = vor.u32 %v4989_v43, %v4434_v42  ;;  %v3458_v52 = vld [vmem:[%s5543_s28 + $0x10] sm:$0xf]  ;;  %v4427_v12 = vor.u32 %v4987_v10, %v4426_v9  ;;  %v4955_v14 = vld [vmem:[%s7563_s1 + $0x4b4] sm:$0xf0]  ;;  %v4969_v21 = vld [vmem:[%s7563_s1 + $0x524] sm:$0xf0] }
  0x58   : > { %2416 = vmatpush.bf16.msra.mxu0 %v4259_v1  ;;  %v5917_v1 = vor.u32 %v4742_v58, %v3460_v59  ;;  %v4299_v20 = vor.u32 %v4955_v14, %v4298_v13  ;;  %v4226_v22 = vld [vmem:[%s7563_s1 + $0x420] sm:$0xf]  ;;  %v4355_v24 = vor.u32 %v4969_v21, %v4354_v15  ;;  %v4953_v30 = vld [vmem:[%s7563_s1 + $0x4a4] sm:$0xf0]  ;;  %v4766_v33 = vld [vmem:[%s5543_s28 + $0xcc] sm:$0xf0] }
  0x59   : > { %2445 = vmatpush.bf16.msra.mxu1 %v4323_v7  ;;  %v4418_v26 = vld [vmem:[%s7563_s1 + $0x5a0] sm:$0xf]  ;;  %v4758_v34 = vld [vmem:[%s5543_s28 + $0x94] sm:$0xf]  ;;  %v4759_v42 = vld [vmem:[%s5543_s28 + $0x9c] sm:$0xf] }
  0x5a   : > { %2474 = vmatpush.bf16.msra.mxu2 %v4387_v0  ;;  %v5915_v0 = vor.u32 %v4750_v55, %v3458_v52  ;;  %v3524_v35 = vld [vmem:[%s5543_s28 + $0xd0] sm:$0xf0]  ;;  %v3532_v43 = vld [vmem:[%s5543_s28 + $0xd8] sm:$0xf0]  ;;  %v4346_v52 = vld [vmem:[%s7563_s1 + $0x510] sm:$0xf] }
  0x5b   : > { %2503 = vmatpush.bf16.msra.mxu3 %v4451_v5  ;;  %v4971_v5 = vld [vmem:[%s7563_s1 + $0x534] sm:$0xf0]  ;;  %v4218_v58 = vld [vmem:[%s7563_s1 + $0x410] sm:$0xf]  ;;  %v4965_v9 = vld [vmem:[%s7563_s1 + $0x504] sm:$0xf0] }
  0x5c   : > { %2417 = vmatpush.bf16.msra.mxu0 %v4251_v27  ;;  %v4363_v7 = vor.u32 %v4971_v5, %v4362_v4  ;;  %v4985_v27 = vld [vmem:[%s7563_s1 + $0x5a4] sm:$0xf0]  ;;  %v4967_v55 = vld [vmem:[%s7563_s1 + $0x514] sm:$0xf0]  ;;  %v4410_v61 = vld [vmem:[%s7563_s1 + $0x590] sm:$0xf] }
  0x5d   : > { %2446 = vmatpush.bf16.msra.mxu1 %v4315_v32  ;;  %v4419_v29 = vor.u32 %v4985_v27, %v4418_v26  ;;  %v3522_v32 = vld [vmem:[%s5543_s28 + $0x90] sm:$0xf]  ;;  %v4347_v59 = vor.u32 %v4967_v55, %v4346_v52  ;;  %v4935_v60 = vld [vmem:[%s7563_s1 + $0x414] sm:$0xf0]  ;;  %v4210_v10 = vld [vmem:[%s7563_s1 + $0x400] sm:$0xf] }
  0x5e   : > { %2475 = vmatpush.bf16.msra.mxu2 %v4379_v23  ;;  %v4937_v23 = vld [vmem:[%s7563_s1 + $0x424] sm:$0xf0]  ;;  %v5983_v45 = vor.u32 %v4766_v33, %v3522_v32  ;;  %v4983_v62 = vld [vmem:[%s7563_s1 + $0x594] sm:$0xf0]  ;;  %v4219_v63 = vor.u32 %v4935_v60, %v4218_v58  ;;  %v4282_v5 = vld [vmem:[%s7563_s1 + $0x490] sm:$0xf] }
  0x5f   : > { %2504 = vmatpush.bf16.msra.mxu3 %v4443_v28  ;;  %v4227_v25 = vor.u32 %v4937_v23, %v4226_v22  ;;  %v4290_v28 = vld [vmem:[%s7563_s1 + $0x4a0] sm:$0xf]  ;;  %v4411_v4 = vor.u32 %v4983_v62, %v4410_v61  ;;  %v4951_v6 = vld [vmem:[%s7563_s1 + $0x494] sm:$0xf0]  ;;  %v4981_v15 = vld [vmem:[%s7563_s1 + $0x584] sm:$0xf0] }
  0x60   : > { %2418 = vmatpush.bf16.msra.mxu0 %v4243_v41  ;;  %v4291_v31 = vor.u32 %v4953_v30, %v4290_v28  ;;  %v4767_v41 = vld [vmem:[%s5543_s28 + $0xd4] sm:$0xf0]  ;;  %v4283_v8 = vor.u32 %v4951_v6, %v4282_v5  ;;  %v4402_v14 = vld [vmem:[%s7563_s1 + $0x580] sm:$0xf]  ;;  %v4949_v22 = vld [vmem:[%s7563_s1 + $0x484] sm:$0xf0] }
  0x61   : > { %2447 = vmatpush.bf16.msra.mxu1 %v4307_v49  ;;  %v5989_v49 = vor.u32 %v4759_v42, %v3532_v43  ;;  %v4403_v21 = vor.u32 %v4981_v15, %v4402_v14  ;;  %v4774_v26 = vld [vmem:[%s5543_s28 + $0x114] sm:$0xf]  ;;  %v3594_v28 = vld [vmem:[%s5543_s28 + $0x118] sm:$0xf]  ;;  %v4775_v30 = vld [vmem:[%s5543_s28 + $0x11c] sm:$0xf] }
  0x62   : > { %2476 = vmatpush.bf16.msra.mxu2 %v4371_v40  ;;  %v3530_v40 = vld [vmem:[%s5543_s28 + $0x98] sm:$0xf]  ;;  %v3588_v27 = vld [vmem:[%s5543_s28 + $0x150] sm:$0xf0]  ;;  %v4522_v42 = vld [vmem:[%s7563_s1 + $0x670] sm:$0xf] }
  0x63   : > { %2206 = vmatmul.bf16.gmra.mxu0 %v5847_v16  ;;  %2505 = vmatpush.bf16.msra.mxu3 %v4435_v46  ;;  %v5985_v46 = vor.u32 %v4758_v34, %v3524_v35  ;;  %v5987_v47 = vor.u32 %v4767_v41, %v3530_v40  ;;  %v6053_v33 = vor.u32 %v4774_v26, %v3588_v27  ;;  %v4650_v40 = vld [vmem:[%s7563_s1 + $0x770] sm:$0xf]  ;;  %v5043_v41 = vld [vmem:[%s7563_s1 + $0x774] sm:$0xf0]  ;;  %v4790_v5 = vld [vmem:[%s5543_s28 + $0x194] sm:$0xf] }
  0x64   : > { %2235 = vmatmul.bf16.gmra.mxu1 %v5849_v17  ;;  %2419 = vmatpush.bf16.msra.mxu0 %v4235_v11  ;;  %v4933_v11 = vld [vmem:[%s7563_s1 + $0x404] sm:$0xf0]  ;;  %v4651_v43 = vor.u32 %v5043_v41, %v4650_v40  ;;  %v5011_v52 = vld [vmem:[%s7563_s1 + $0x674] sm:$0xf0]  ;;  %v4714_v55 = vld [vmem:[%s7563_s1 + $0x7f0] sm:$0xf] }
  0x65   : > { %2264 = vmatmul.bf16.gmra.mxu2 %v5851_v18  ;;  %2448 = vmatpush.bf16.msra.mxu1 %v4299_v20  ;;  %v4211_v13 = vor.u32 %v4933_v11, %v4210_v10  ;;  %v4274_v20 = vld [vmem:[%s7563_s1 + $0x480] sm:$0xf]  ;;  %v5059_v58 = vld [vmem:[%s7563_s1 + $0x7f4] sm:$0xf0]  ;;  %v3650_v61 = vld [vmem:[%s5543_s28 + $0x190] sm:$0xf] }
  0x66   : > { %2293 = vmatmul.bf16.gmra.mxu3 %v5853_v19  ;;  %2477 = vmatpush.bf16.msra.mxu2 %v4363_v7  ;;  %v4338_v7 = vld [vmem:[%s7563_s1 + $0x500] sm:$0xf]  ;;  %v4275_v23 = vor.u32 %v4949_v22, %v4274_v20  ;;  %v4715_v60 = vor.u32 %v5059_v58, %v4714_v55  ;;  %v4798_v62 = vld [vmem:[%s5543_s28 + $0x1cc] sm:$0xf0]  ;;  %v5009_v11 = vld [vmem:[%s7563_s1 + $0x664] sm:$0xf0] }
  0x67   : > { %2506 = vmatpush.bf16.msra.mxu3 %v4427_v12  ;;  %v4339_v12 = vor.u32 %v4965_v9, %v4338_v7  ;;  %v4642_v7 = vld [vmem:[%s7563_s1 + $0x760] sm:$0xf]  ;;  %v3652_v14 = vld [vmem:[%s5543_s28 + $0x1d0] sm:$0xf0]  ;;  %v3658_v15 = vld [vmem:[%s5543_s28 + $0x198] sm:$0xf] }
  0x68   : > { %2420 = vmatpush.bf16.msra.mxu0 %v4227_v25  ;;  %v4782_v25 = vld [vmem:[%s5543_s28 + $0x14c] sm:$0xf0]  ;;  %v4514_v9 = vld [vmem:[%s7563_s1 + $0x660] sm:$0xf]  ;;  %v4799_v20 = vld [vmem:[%s5543_s28 + $0x1d4] sm:$0xf0]  ;;  %v6115_v26 = vor.u32 %v4790_v5, %v3652_v14 }
  0x69   : > { %2449 = vmatpush.bf16.msra.mxu1 %v4291_v31  ;;  %v3596_v31 = vld [vmem:[%s5543_s28 + $0x158] sm:$0xf0]  ;;  %v6117_v27 = vor.u32 %v4799_v20, %v3658_v15  ;;  %v577_v40 = vld [vmem:[%s7564_s2] sm:$0x3]  ;;  %v4634_v41 = vld [vmem:[%s7563_s1 + $0x750] sm:$0xf] }
  0x6a   : > { %2478 = vmatpush.bf16.msra.mxu2 %v4355_v24  ;;  %v3586_v24 = vld [vmem:[%s5543_s28 + $0x110] sm:$0xf]  ;;  %v6057_v35 = vor.u32 %v4775_v30, %v3596_v31  ;;  %v5025_v30 = vld [vmem:[%s7563_s1 + $0x6e4] sm:$0xf0]  ;;  %v5007_v55 = vld [vmem:[%s7563_s1 + $0x654] sm:$0xf0] }
  0x6b   : > { %2507 = vmatpush.bf16.msra.mxu3 %v4419_v29  ;;  %v4783_v29 = vld [vmem:[%s5543_s28 + $0x154] sm:$0xf0]  ;;  %v6051_v32 = vor.u32 %v4782_v25, %v3586_v24  ;;  %v3660_v24 = vld [vmem:[%s5543_s28 + $0x1d8] sm:$0xf0]  ;;  %v6113_v25 = vor.u32 %v4798_v62, %v3650_v61  ;;  %v4698_v58 = vld [vmem:[%s7563_s1 + $0x7d0] sm:$0xf] }
  0x6c   : > { %2421 = vmatpush.bf16.msra.mxu0 %v4219_v63  ;;  %v6055_v34 = vor.u32 %v4783_v29, %v3594_v28  ;;  %v4586_v63 = vld [vmem:[%s7563_s1 + $0x6f0] sm:$0xf]  ;;  %v4578_v29 = vld [vmem:[%s7563_s1 + $0x6e0] sm:$0xf]  ;;  %v6152_v62 = vperm.slane %v577_v40, 0  ;;  %s3436_s19 = sshll.u32 %s219_s17, 6 }
  0x6d   : > { %2450 = vmatpush.bf16.msra.mxu1 %v4283_v8  ;;  %v5041_v8 = vld [vmem:[%s7563_s1 + $0x764] sm:$0xf0]  ;;  %v4579_v31 = vor.u32 %v5025_v30, %v4578_v29  ;;  %v4570_v5 = vld [vmem:[%s7563_s1 + $0x6d0] sm:$0xf]  ;;  %v4690_v14 = vld [vmem:[%s7563_s1 + $0x7c0] sm:$0xf] }
  0x6e   : > { %2479 = vmatpush.bf16.msra.mxu2 %v4347_v59  ;;  %v4523_v59 = vor.u32 %v5011_v52, %v4522_v42  ;;  %v4643_v10 = vor.u32 %v5041_v8, %v4642_v7  ;;  %v5039_v42 = vld [vmem:[%s7563_s1 + $0x754] sm:$0xf0]  ;;  %v4506_v52 = vld [vmem:[%s7563_s1 + $0x650] sm:$0xf]  ;;  %v4744_v7 = vld [vmem:[%s5543_s28 + $0x24] sm:$0xf] }
  0x6f   : > { %2508 = vmatpush.bf16.msra.mxu3 %v4411_v4  ;;  %v5027_v4 = vld [vmem:[%s7563_s1 + $0x6f4] sm:$0xf0]  ;;  %v5053_v15 = vld [vmem:[%s7563_s1 + $0x7c4] sm:$0xf0]  ;;  %v3476_v20 = vld [vmem:[%s5543_s28 + $0x60] sm:$0xf0] }
  0x70   : > { %2422 = vmatpush.bf16.msra.mxu0 %v4211_v13  ;;  %v4587_v6 = vor.u32 %v5027_v4, %v4586_v63  ;;  %v5057_v13 = vld [vmem:[%s7563_s1 + $0x7e4] sm:$0xf0]  ;;  %v3474_v63 = vld [vmem:[%s5543_s28 + $0x20] sm:$0xf]  ;;  %v4745_v29 = vld [vmem:[%s5543_s28 + $0x2c] sm:$0xf] }
  0x71   : > { %2451 = vmatpush.bf16.msra.mxu1 %v4275_v23  ;;  %v4791_v23 = vld [vmem:[%s5543_s28 + $0x19c] sm:$0xf]  ;;  %v4752_v4 = vld [vmem:[%s5543_s28 + $0x5c] sm:$0xf0]  ;;  %v3484_v30 = vld [vmem:[%s5543_s28 + $0x68] sm:$0xf0] }
  0x72   : > { %2480 = vmatpush.bf16.msra.mxu2 %v4339_v12  ;;  %v4706_v12 = vld [vmem:[%s7563_s1 + $0x7e0] sm:$0xf]  ;;  %v6119_v28 = vor.u32 %v4791_v23, %v3660_v24  ;;  %v4691_v24 = vor.u32 %v5053_v15, %v4690_v14  ;;  %s7459_s12 = scalar_lea.vmem [#allocation2], %s3436_s19  }
  0x73   : > { %2307 = vmatmul.bf16.vlgmr.msrb.gmra.mxu0 %v5915_v0  ;;  %2509 = vmatpush.bf16.msra.mxu3 %v4403_v21  ;;  %v4515_v21 = vor.u32 %v5009_v11, %v4514_v9  ;;  %v4707_v22 = vor.u32 %v5057_v13, %v4706_v12  ;;  %v4626_v9 = vld [vmem:[%s7563_s1 + $0x740] sm:$0xf]  ;;  %v5005_v13 = vld [vmem:[%s7563_s1 + $0x644] sm:$0xf0] }
  0x74   : > { %2336 = vmatmul.bf16.vlgmr.msrb.gmra.mxu1 %v5917_v1  ;;  %2531 = vmatpush.bf16.msrb.mxu0 %v4523_v59  ;;  %v4507_v59 = vor.u32 %v5007_v55, %v4506_v52  ;;  %v4498_v11 = vld [vmem:[%s7563_s1 + $0x640] sm:$0xf]  ;;  %v6193_v55 = vor.u32 %v4745_v29, %v3484_v30  ;;  %v4554_v29 = vld [vmem:[%s7563_s1 + $0x6b0] sm:$0xf]  ;;  %v5019_v30 = vld [vmem:[%s7563_s1 + $0x6b4] sm:$0xf0] }
  0x75   : > { %2365 = vmatmul.bf16.vlgmr.msrb.gmra.mxu2 %v5919_v2  ;;  %2560 = vmatpush.bf16.msrb.mxu1 %v4587_v6  ;;  %v5023_v6 = vld [vmem:[%s7563_s1 + $0x6d4] sm:$0xf0]  ;;  %v4499_v23 = vor.u32 %v5005_v13, %v4498_v11 }
  0x76   : > { %2394 = vmatmul.bf16.vlgmr.msrb.gmra.mxu3 %v5921_v3  ;;  %2589 = vmatpush.bf16.msrb.mxu2 %v4651_v43  ;;  %v4635_v43 = vor.u32 %v5039_v42, %v4634_v41  ;;  %v4571_v8 = vor.u32 %v5023_v6, %v4570_v5  ;;  %v6188_v41 = vor.u32 %v4744_v7, %v3476_v20  ;;  %v4490_v6 = vld [vmem:[%s7563_s1 + $0x630] sm:$0xf]  ;;  %v5003_v7 = vld [vmem:[%s7563_s1 + $0x634] sm:$0xf0] }
  0x77   : > { %2618 = vmatpush.bf16.msrb.mxu3 %v4715_v60  ;;  %v5055_v60 = vld [vmem:[%s7563_s1 + $0x7d4] sm:$0xf0]  ;;  %7598 = vst [vmem:[#allocation6_spill] sm:$0xff] %v6193_v55 }
  0x78   : > { %2532 = vmatpush.bf16.msrb.mxu0 %v4515_v21  ;;  %v4699_v61 = vor.u32 %v5055_v60, %v4698_v58  ;;  %v3482_v21 = vld [vmem:[%s5543_s28 + $0x28] sm:$0xf]  ;;  %7596 = vst [vmem:[#allocation4_spill] sm:$0xff] %v6188_v41  ;;  %v4562_v58 = vld [vmem:[%s7563_s1 + $0x6c0] sm:$0xf] }
  0x79   : > { %2561 = vmatpush.bf16.msrb.mxu1 %v4579_v31  ;;  %v6186_v31 = vor.u32 %v4752_v4, %v3474_v63  ;;  %v4618_v63 = vld [vmem:[%s7563_s1 + $0x730] sm:$0xf]  ;;  %v5035_v4 = vld [vmem:[%s7563_s1 + $0x734] sm:$0xf0] }
  0x7a   : > { %2590 = vmatpush.bf16.msrb.mxu2 %v4643_v10  ;;  %v5037_v10 = vld [vmem:[%s7563_s1 + $0x744] sm:$0xf0]  ;;  %v4619_v5 = vor.u32 %v5035_v4, %v4618_v63  ;;  %v5051_v11 = vld [vmem:[%s7563_s1 + $0x7b4] sm:$0xf0]  ;;  %v4674_v4 = vld [vmem:[%s7563_s1 + $0x7a0] sm:$0xf] }
  0x7b   : > { %2619 = vmatpush.bf16.msrb.mxu3 %v4707_v22  ;;  %v4627_v12 = vor.u32 %v5037_v10, %v4626_v9  ;;  %v4753_v22 = vld [vmem:[%s5543_s28 + $0x64] sm:$0xf0]  ;;  %7595 = vst [vmem:[#allocation3_spill] sm:$0xff] %v6186_v31  ;;  %v4491_v10 = vor.u32 %v5003_v7, %v4490_v6  ;;  %v3540_v6 = vld [vmem:[%s5543_s28 + $0xe0] sm:$0xf0] }
  0x7c   : > { %2533 = vmatpush.bf16.msrb.mxu0 %v4507_v59  ;;  %v6190_v42 = vor.u32 %v4753_v22, %v3482_v21  ;;  %v5021_v59 = vld [vmem:[%s7563_s1 + $0x6c4] sm:$0xf0] }
  0x7d   : > { %2562 = vmatpush.bf16.msrb.mxu1 %v4571_v8  ;;  %v4682_v8 = vld [vmem:[%s7563_s1 + $0x7b0] sm:$0xf]  ;;  %v5001_v63 = vld [vmem:[%s7563_s1 + $0x624] sm:$0xf0] }
  0x7e   : > { %2591 = vmatpush.bf16.msrb.mxu2 %v4635_v43  ;;  %7597 = vst [vmem:[#allocation5_spill] sm:$0xff] %v6190_v42  ;;  %v4683_v15 = vor.u32 %v5051_v11, %v4682_v8  ;;  %v3546_v7 = vld [vmem:[%s5543_s28 + $0xa8] sm:$0xf]  ;;  %v4761_v11 = vld [vmem:[%s5543_s28 + $0xac] sm:$0xf] }
  0x7f   : > { %2620 = vmatpush.bf16.msrb.mxu3 %v4699_v61  ;;  %v4563_v61 = vor.u32 %v5021_v59, %v4562_v58  ;;  %v4610_v58 = vld [vmem:[%s7563_s1 + $0x720] sm:$0xf]  ;;  %v5033_v59 = vld [vmem:[%s7563_s1 + $0x724] sm:$0xf0] }
  0x80   : > { %2534 = vmatpush.bf16.msrb.mxu0 %v4499_v23  ;;  %v3538_v23 = vld [vmem:[%s5543_s28 + $0xa0] sm:$0xf]  ;;  %v4769_v8 = vld [vmem:[%s5543_s28 + $0xe4] sm:$0xf0] }
  0x81   : > { %2563 = vmatpush.bf16.msrb.mxu1 %v4563_v61  ;;  %v4611_v61 = vor.u32 %v5033_v59, %v4610_v58 }
  0x82   : > { %2592 = vmatpush.bf16.msrb.mxu2 %v4627_v12 }
  0x83   : > { %2312 = vmatmul.bf16.gmra.mxu0 %v5983_v45  ;;  %2621 = vmatpush.bf16.msrb.mxu3 %v4691_v24  ;;  %v4768_v24 = vld [vmem:[%s5543_s28 + $0xdc] sm:$0xf0] }
  0x84   : > { %2341 = vmatmul.bf16.gmra.mxu1 %v5985_v46  ;;  %2535 = vmatpush.bf16.msrb.mxu0 %v4491_v10 }
  0x85   : > { %2370 = vmatmul.bf16.gmra.mxu2 %v5987_v47 }
  0x86   : > { %2399 = vmatmul.bf16.gmra.mxu3 %v5989_v49  ;;  %2593 = vmatpush.bf16.msrb.mxu2 %v4619_v5  ;;  %v5049_v5 = vld [vmem:[%s7563_s1 + $0x7a4] sm:$0xf0] }
  0x87   : > { %2622 = vmatpush.bf16.msrb.mxu3 %v4683_v15  ;;  %v4675_v10 = vor.u32 %v5049_v5, %v4674_v4  ;;  %v4474_v5 = vld [vmem:[%s7563_s1 + $0x610] sm:$0xf] }
  0x8a   : > { %2594 = vmatpush.bf16.msrb.mxu2 %v4611_v61  ;;  %v4602_v61 = vld [vmem:[%s7563_s1 + $0x710] sm:$0xf] }
  0x8b   : > { %2623 = vmatpush.bf16.msrb.mxu3 %v4675_v10  ;;  %v5047_v10 = vld [vmem:[%s7563_s1 + $0x794] sm:$0xf0] }
  0x93   : > { %2317 = vmatmul.bf16.gmra.mxu0 %v6051_v32 }
  0x94   : > { %2346 = vmatmul.bf16.gmra.mxu1 %v6053_v33 }
  0x95   : > { %2375 = vmatmul.bf16.gmra.mxu2 %v6055_v34 }
  0x96   : > { %2404 = vmatmul.bf16.gmra.mxu3 %v6057_v35 }
  0xa3   : > { %2322 = vmatmul.bf16.gmra.mxu0 %v6113_v25 }
  0xa4   : > { %2351 = vmatmul.bf16.gmra.mxu1 %v6115_v26 }
  0xa5   : > { %2380 = vmatmul.bf16.gmra.mxu2 %v6117_v27 }
  0xa6   : > { %2409 = vmatmul.bf16.gmra.mxu3 %v6119_v28 }
  0xb0   : > { %v2192_v40 = vpop.f32.mrf.mxu0 }
  0xb1   : > { %v2193_v43 = vadd.f32 %v2192_v40, %v6152_v62  ;;  %v2221_v52 = vpop.f32.mrf.mxu1 }
  0xb3   : > { %v2222_v60 = vadd.f32 %v2221_v52, %v2193_v43  ;;  %2423 = vmatmul.bf16.vlgmr.msra.gmra.mxu0 %v6186_v31  ;;  %v4760_v43 = vld [vmem:[%s5543_s28 + $0xa4] sm:$0xf]  ;;  %v4555_v52 = vor.u32 %v5019_v30, %v4554_v29  ;;  %v6262_v30 = vor.u32 %v4769_v8, %v3546_v7  ;;  %v4666_v7 = vld [vmem:[%s7563_s1 + $0x790] sm:$0xf] }
  0xb4   : > { %2452 = vmatmul.bf16.vlgmr.msra.gmra.mxu1 %v6188_v41  ;;  %v6260_v29 = vor.u32 %v4760_v43, %v3540_v6  ;;  %v4999_v6 = vld [vmem:[%s7563_s1 + $0x614] sm:$0xf0] }
  0xb5   : > { %2481 = vmatmul.bf16.vlgmr.msra.gmra.mxu2 %v6190_v42  ;;  %2564 = vmatpush.bf16.msrb.mxu1 %v4555_v52  ;;  %7601 = vst [vmem:[#allocation9_spill] sm:$0xff] %v6262_v30 }
  0xb6   : > { %2510 = vmatmul.bf16.vlgmr.msra.gmra.mxu3 %v6193_v55  ;;  %7600 = vst [vmem:[#allocation8_spill] sm:$0xff] %v6260_v29 }
  0xb8   : > { %v2250_v9 = vpop.f32.mrf.mxu2  ;;  %v2194_v14 = vpop.f32.mrf.mxu0 }
  0xb9   : > { %v2251_v12 = vadd.f32 %v2250_v9, %v2222_v60  ;;  %v2279_v13 = vpop.f32.mrf.mxu3  ;;  %v2195_v20 = vadd.f32 %v2194_v14, %v6152_v62  ;;  %v2223_v21 = vpop.f32.mrf.mxu1  ;;  %v4482_v60 = vld [vmem:[%s7563_s1 + $0x620] sm:$0xf]  ;;  %v6258_v14 = vor.u32 %v4768_v24, %v3538_v23  ;;  %v5017_v24 = vld [vmem:[%s7563_s1 + $0x6a4] sm:$0xf0] }
  0xba   : > { %v4483_v9 = vor.u32 %v5001_v63, %v4482_v60  ;;  %v4546_v23 = vld [vmem:[%s7563_s1 + $0x6a0] sm:$0xf]  ;;  %v5031_v63 = vld [vmem:[%s7563_s1 + $0x714] sm:$0xf0] }
  0xbb   : > { %v6224_v22 = vadd.f32 %v2279_v13, %v2251_v12  ;;  %v2224_v40 = vadd.f32 %v2223_v21, %v2195_v20  ;;  %v3548_v12 = vld [vmem:[%s5543_s28 + $0xe8] sm:$0xf0]  ;;  %7599 = vst [vmem:[#allocation7_spill] sm:$0xff] %v6258_v14  ;;  %v4547_v43 = vor.u32 %v5017_v24, %v4546_v23  ;;  %v4603_v4 = vor.u32 %v5031_v63, %v4602_v61  ;;  %v4784_v23 = vld [vmem:[%s5543_s28 + $0x15c] sm:$0xf0] }
  0xbc   : > { %2536 = vmatpush.bf16.msrb.mxu0 %v4483_v9  ;;  %v6265_v59 = vor.u32 %v4761_v11, %v3548_v12  ;;  %v4475_v9 = vor.u32 %v4999_v6, %v4474_v5  ;;  %v4538_v24 = vld [vmem:[%s7563_s1 + $0x690] sm:$0xf]  ;;  %v4776_v61 = vld [vmem:[%s5543_s28 + $0x124] sm:$0xf]  ;;  %v5029_v5 = vld [vmem:[%s7563_s1 + $0x704] sm:$0xf0] }
  0xbd   : > { %2565 = vmatpush.bf16.msrb.mxu1 %v4547_v43  ;;  %2595 = vmatpush.bf16.msrb.mxu2 %v4603_v4  ;;  %v4594_v4 = vld [vmem:[%s7563_s1 + $0x700] sm:$0xf] }
  0xbe   : > { %7602 = vst [vmem:[#allocation10_spill] sm:$0xff] %v6265_v59  ;;  %v4466_v6 = vld [vmem:[%s7563_s1 + $0x600] sm:$0xf] }
  0xc0   : > { %v2252_v13 = vpop.f32.mrf.mxu2  ;;  %v2197_v21 = vpop.f32.mrf.mxu0  ;;  %2537 = vmatpush.bf16.msrb.mxu0 %v4475_v9  ;;  %v4658_v9 = vld [vmem:[%s7563_s1 + $0x780] sm:$0xf] }
  0xc1   : > { %v2253_v15 = vadd.f32 %v2252_v13, %v2224_v40  ;;  %v2281_v20 = vpop.f32.mrf.mxu3  ;;  %v2198_v58 = vadd.f32 %v2197_v21, %v6152_v62  ;;  %v2226_v52 = vpop.f32.mrf.mxu1 }
  0xc3   : > { %v6267_v60 = vadd.f32 %v2281_v20, %v2253_v15  ;;  %v2227_v40 = vadd.f32 %v2226_v52, %v2198_v58  ;;  %2428 = vmatmul.bf16.gmra.mxu0 %v6258_v14  ;;  %v4667_v15 = vor.u32 %v5047_v10, %v4666_v7  ;;  %v3602_v52 = vld [vmem:[%s5543_s28 + $0x120] sm:$0xf]  ;;  %v4595_v7 = vor.u32 %v5029_v5, %v4594_v4  ;;  %v5045_v10 = vld [vmem:[%s7563_s1 + $0x784] sm:$0xf0] }
  0xc4   : > { %2457 = vmatmul.bf16.gmra.mxu1 %v6260_v29  ;;  %v6332_v4 = vor.u32 %v4784_v23, %v3602_v52  ;;  %v4530_v5 = vld [vmem:[%s7563_s1 + $0x680] sm:$0xf] }
  0xc5   : > { %2486 = vmatmul.bf16.gmra.mxu2 %v6262_v30  ;;  %2624 = vmatpush.bf16.msrb.mxu3 %v4667_v15 }
  0xc6   : > { %2515 = vmatmul.bf16.gmra.mxu3 %v6265_v59  ;;  %2596 = vmatpush.bf16.msrb.mxu2 %v4595_v7  ;;  %7603 = vst [vmem:[#allocation11_spill] sm:$0xff] %v6332_v4  ;;  %v5013_v59 = vld [vmem:[%s7563_s1 + $0x684] sm:$0xf0] }
  0xc7   : > { %v4531_v7 = vor.u32 %v5013_v59, %v4530_v5  ;;  %v4850_v59 = vld [vmem:[%s7563_s1 + $0x174] sm:$0xf] }
  0xc8   : > { %v2255_v8 = vpop.f32.mrf.mxu2  ;;  %v2199_v13 = vpop.f32.mrf.mxu0 }
  0xc9   : > { %v2256_v11 = vadd.f32 %v2255_v8, %v2227_v40  ;;  %v2284_v12 = vpop.f32.mrf.mxu3  ;;  %v2200_v20 = vadd.f32 %v2199_v13, %v6152_v62  ;;  %v2228_v21 = vpop.f32.mrf.mxu1  ;;  %v5015_v40 = vld [vmem:[%s7563_s1 + $0x694] sm:$0xf0]  ;;  %v4997_v8 = vld [vmem:[%s7563_s1 + $0x604] sm:$0xf0] }
  0xca   : > { %v4539_v63 = vor.u32 %v5015_v40, %v4538_v24  ;;  %v4785_v13 = vld [vmem:[%s5543_s28 + $0x164] sm:$0xf0]  ;;  %v4467_v15 = vor.u32 %v4997_v8, %v4466_v6  ;;  %v3612_v24 = vld [vmem:[%s5543_s28 + $0x168] sm:$0xf0] }
  0xcb   : > { %v6298_v58 = vadd.f32 %v2284_v12, %v2256_v11  ;;  %v2229_v43 = vadd.f32 %v2228_v21, %v2200_v20  ;;  %v3604_v11 = vld [vmem:[%s5543_s28 + $0x160] sm:$0xf0]  ;;  %v3610_v12 = vld [vmem:[%s5543_s28 + $0x128] sm:$0xf]  ;;  %v4659_v20 = vor.u32 %v5045_v10, %v4658_v9  ;;  %v4777_v21 = vld [vmem:[%s5543_s28 + $0x12c] sm:$0xf] }
  0xcc   : > { %2566 = vmatpush.bf16.msrb.mxu1 %v4539_v63  ;;  %2538 = vmatpush.bf16.msrb.mxu0 %v4467_v15  ;;  %v6340_v8 = vor.u32 %v4776_v61, %v3604_v11  ;;  %v6342_v9 = vor.u32 %v4785_v13, %v3610_v12  ;;  %v6345_v10 = vor.u32 %v4777_v21, %v3612_v24  ;;  %v3756_v11 = vld [vmem:[%s7563_s1 + $0x78] sm:$0xf0]  ;;  %v4866_v12 = vld [vmem:[%s7563_s1 + $0x1f4] sm:$0xf] }
  0xcd   : > { %2625 = vmatpush.bf16.msrb.mxu3 %v4659_v20  ;;  %v3948_v13 = vld [vmem:[%s7563_s1 + $0x1f8] sm:$0xf0] }
  0xce   : > { %7604 = vst [vmem:[#allocation12_spill] sm:$0xff] %v6340_v8 }
  0xcf   : > { %7605 = vst [vmem:[#allocation13_spill] sm:$0xff] %v6342_v9 }
  0xd0   : > { %v2257_v40 = vpop.f32.mrf.mxu2  ;;  %v2202_v6 = vpop.f32.mrf.mxu0  ;;  %7606 = vst [vmem:[#allocation14_spill] sm:$0xff] %v6345_v10  ;;  %2567 = vmatpush.bf16.msrb.mxu1 %v4531_v7 }
  0xd1   : > { %v2258_v30 = vadd.f32 %v2257_v40, %v2229_v43  ;;  %v2286_v63 = vpop.f32.mrf.mxu3  ;;  %v2203_v52 = vadd.f32 %v2202_v6, %v6152_v62  ;;  %v2231_v23 = vpop.f32.mrf.mxu1  ;;  %v3884_v43 = vld [vmem:[%s7563_s1 + $0x178] sm:$0xf0]  ;;  %v3951_v40 = vor.u32 %v4866_v12, %v3948_v13  ;;  %v4848_v13 = vld [vmem:[%s7563_s1 + $0x164] sm:$0xf] }
  0xd2   : > { %v3887_v61 = vor.u32 %v4850_v59, %v3884_v43  ;;  %v3666_v59 = vld [vmem:[%s5543_s28 + $0x1a0] sm:$0xf] }
  0xd3   : > { %v6347_v15 = vadd.f32 %v2286_v63, %v2258_v30  ;;  %v2232_v20 = vadd.f32 %v2231_v23, %v2203_v52  ;;  %2433 = vmatmul.bf16.gmra.mxu0 %v6332_v4  ;;  %v4818_v30 = vld [vmem:[%s7563_s1 + $0x74] sm:$0xf]  ;;  %2734 = vmatpush.bf16.msra.mxu3 %v3951_v40  ;;  %v4800_v43 = vld [vmem:[%s5543_s28 + $0x1dc] sm:$0xf0] }
  0xd4   : > { %2462 = vmatmul.bf16.gmra.mxu1 %v6340_v8  ;;  %v3759_v24 = vor.u32 %v4818_v30, %v3756_v11  ;;  %2705 = vmatpush.bf16.msra.mxu2 %v3887_v61  ;;  %v4834_v30 = vld [vmem:[%s7563_s1 + $0xf4] sm:$0xf]  ;;  %v4792_v11 = vld [vmem:[%s5543_s28 + $0x1a4] sm:$0xf]  ;;  %v6406_v8 = vor.u32 %v4800_v43, %v3666_v59 }
  0xd5   : > { %2491 = vmatmul.bf16.gmra.mxu2 %v6342_v9  ;;  %v4793_v9 = vld [vmem:[%s5543_s28 + $0x1ac] sm:$0xf]  ;;  %v4832_v59 = vld [vmem:[%s7563_s1 + $0xe4] sm:$0xf] }
  0xd6   : > { %2520 = vmatmul.bf16.gmra.mxu3 %v6345_v10  ;;  %2647 = vmatpush.bf16.msra.mxu0 %v3759_v24  ;;  %v4816_v24 = vld [vmem:[%s7563_s1 + $0x64] sm:$0xf]  ;;  %7607 = vst [vmem:[#allocation15_spill] sm:$0xff] %v6406_v8 }
  0xd8   : > { %v2260_v21 = vpop.f32.mrf.mxu2  ;;  %v2204_v6 = vpop.f32.mrf.mxu0 }
  0xd9   : > { %v2261_v5 = vadd.f32 %v2260_v21, %v2232_v20  ;;  %v2289_v63 = vpop.f32.mrf.mxu3  ;;  %v2205_v7 = vadd.f32 %v2204_v6, %v6152_v62  ;;  %v2233_v52 = vpop.f32.mrf.mxu1  ;;  %v3820_v20 = vld [vmem:[%s7563_s1 + $0xf8] sm:$0xf0]  ;;  %v3876_v21 = vld [vmem:[%s7563_s1 + $0x168] sm:$0xf0] }
  0xda   : > { %v3823_v12 = vor.u32 %v4834_v30, %v3820_v20  ;;  %v3879_v40 = vor.u32 %v4848_v13, %v3876_v21  ;;  %v3940_v6 = vld [vmem:[%s7563_s1 + $0x1e8] sm:$0xf0]  ;;  %v4801_v30 = vld [vmem:[%s5543_s28 + $0x1e4] sm:$0xf0] }
  0xdb   : > { %v6372_v23 = vadd.f32 %v2289_v63, %v2261_v5  ;;  %v2234_v61 = vadd.f32 %v2233_v52, %v2205_v7  ;;  %v3748_v5 = vld [vmem:[%s7563_s1 + $0x68] sm:$0xf0]  ;;  %v4864_v63 = vld [vmem:[%s7563_s1 + $0x1e4] sm:$0xf]  ;;  %v3674_v52 = vld [vmem:[%s5543_s28 + $0x1a8] sm:$0xf] }
  0xdc   : > { %v3668_v7 = vld [vmem:[%s5543_s28 + $0x1e0] sm:$0xf0]  ;;  %2676 = vmatpush.bf16.msra.mxu1 %v3823_v12  ;;  %v3751_v20 = vor.u32 %v4816_v24, %v3748_v5  ;;  %v3943_v10 = vor.u32 %v4864_v63, %v3940_v6  ;;  %v3676_v13 = vld [vmem:[%s5543_s28 + $0x1e8] sm:$0xf0]  ;;  %2706 = vmatpush.bf16.msra.mxu2 %v3879_v40  ;;  %v6410_v42 = vor.u32 %v4801_v30, %v3674_v52  ;;  %v3932_v6 = vld [vmem:[%s7563_s1 + $0x1d8] sm:$0xf0] }
  0xdd   : > { %v6408_v55 = vor.u32 %v4792_v11, %v3668_v7  ;;  %v6413_v24 = vor.u32 %v4793_v9, %v3676_v13  ;;  %v3740_v9 = vld [vmem:[%s7563_s1 + $0x58] sm:$0xf0]  ;;  %v4862_v11 = vld [vmem:[%s7563_s1 + $0x1d4] sm:$0xf] }
  0xde   : > { %2648 = vmatpush.bf16.msra.mxu0 %v3751_v20  ;;  %2735 = vmatpush.bf16.msra.mxu3 %v3943_v10  ;;  %7609 = vst [vmem:[#allocation17_spill] sm:$0xff] %v6410_v42  ;;  %v3812_v10 = vld [vmem:[%s7563_s1 + $0xe8] sm:$0xf0]  ;;  %v3935_v20 = vor.u32 %v4862_v11, %v3932_v6 }
  0xdf   : > { %7608 = vst [vmem:[#allocation16_spill] sm:$0xff] %v6408_v55  ;;  %v3924_v6 = vld [vmem:[%s7563_s1 + $0x1c8] sm:$0xf0] }
  0xe0   : > { %v2262_v21 = vpop.f32.mrf.mxu2  ;;  %v2207_v14 = vpop.f32.mrf.mxu0  ;;  %7610 = vst [vmem:[#allocation18_spill] sm:$0xff] %v6413_v24 }
  0xe1   : > { %v2263_v4 = vadd.f32 %v2262_v21, %v2234_v61  ;;  %v2291_v29 = vpop.f32.mrf.mxu3  ;;  %v2208_v41 = vadd.f32 %v2207_v14, %v6152_v62  ;;  %v2236_v12 = vpop.f32.mrf.mxu1  ;;  %v3815_v61 = vor.u32 %v4832_v59, %v3812_v10  ;;  %v4846_v14 = vld [vmem:[%s7563_s1 + $0x154] sm:$0xf]  ;;  %v3490_v59 = vld [vmem:[%s5543_s28 + $0x30] sm:$0xf] }
  0xe2   : > { %v4754_v10 = vld [vmem:[%s5543_s28 + $0x6c] sm:$0xf0]  ;;  %2736 = vmatpush.bf16.msra.mxu3 %v3935_v20 }
  0xe3   : > { %v6415_v5 = vadd.f32 %v2291_v29, %v2263_v4  ;;  %v2237_v43 = vadd.f32 %v2236_v12, %v2208_v41  ;;  %2438 = vmatmul.bf16.gmra.mxu0 %v6406_v8  ;;  %2677 = vmatpush.bf16.msra.mxu1 %v3815_v61  ;;  %v3868_v29 = vld [vmem:[%s7563_s1 + $0x158] sm:$0xf0]  ;;  %v4814_v41 = vld [vmem:[%s7563_s1 + $0x54] sm:$0xf] }
  0xe4   : > { %2467 = vmatmul.bf16.gmra.mxu1 %v6408_v55  ;;  %v3871_v4 = vor.u32 %v4846_v14, %v3868_v29  ;;  %v3743_v63 = vor.u32 %v4814_v41, %v3740_v9  ;;  %v3804_v61 = vld [vmem:[%s7563_s1 + $0xd8] sm:$0xf0]  ;;  %v3860_v41 = vld [vmem:[%s7563_s1 + $0x148] sm:$0xf0]  ;;  %v4812_v9 = vld [vmem:[%s7563_s1 + $0x44] sm:$0xf] }
  0xe5   : > { %2496 = vmatmul.bf16.gmra.mxu2 %v6410_v42 }
  0xe6   : > { %2525 = vmatmul.bf16.gmra.mxu3 %v6413_v24  ;;  %2707 = vmatpush.bf16.msra.mxu2 %v3871_v4  ;;  %v4844_v4 = vld [vmem:[%s7563_s1 + $0x144] sm:$0xf] }
  0xe7   : > { %2649 = vmatpush.bf16.msra.mxu0 %v3743_v63  ;;  %v3863_v11 = vor.u32 %v4844_v4, %v3860_v41  ;;  %v4860_v63 = vld [vmem:[%s7563_s1 + $0x1c4] sm:$0xf]  ;;  %v6480_v4 = vor.u32 %v4754_v10, %v3490_v59  ;;  %v3796_v10 = vld [vmem:[%s7563_s1 + $0xc8] sm:$0xf0] }
  0xe8   : > { %v2265_v40 = vpop.f32.mrf.mxu2  ;;  %v2209_v30 = vpop.f32.mrf.mxu0  ;;  %v4828_v59 = vld [vmem:[%s7563_s1 + $0xc4] sm:$0xf] }
  0xe9   : > { %v2266_v7 = vadd.f32 %v2265_v40, %v2237_v43  ;;  %v2294_v52 = vpop.f32.mrf.mxu3  ;;  %v2210_v13 = vadd.f32 %v2209_v30, %v6152_v62  ;;  %v2238_v21 = vpop.f32.mrf.mxu1  ;;  %v4830_v43 = vld [vmem:[%s7563_s1 + $0xd4] sm:$0xf]  ;;  %v3732_v40 = vld [vmem:[%s7563_s1 + $0x48] sm:$0xf0]  ;;  %v4755_v30 = vld [vmem:[%s5543_s28 + $0x74] sm:$0xf0] }
  0xea   : > { %v4746_v62 = vld [vmem:[%s5543_s28 + $0x34] sm:$0xf]  ;;  %v3807_v29 = vor.u32 %v4830_v43, %v3804_v61  ;;  %v3735_v20 = vor.u32 %v4812_v9, %v3732_v40  ;;  %v3500_v43 = vld [vmem:[%s5543_s28 + $0x78] sm:$0xf0]  ;;  %2708 = vmatpush.bf16.msra.mxu2 %v3863_v11  ;;  %7611 = vst [vmem:[#allocation19_spill] sm:$0xff] %v6480_v4 }
  0xeb   : > { %v6446_v12 = vadd.f32 %v2294_v52, %v2266_v7  ;;  %v2239_v14 = vadd.f32 %v2238_v21, %v2210_v13  ;;  %v3492_v7 = vld [vmem:[%s5543_s28 + $0x70] sm:$0xf0]  ;;  %v3498_v52 = vld [vmem:[%s5543_s28 + $0x38] sm:$0xf]  ;;  %v3927_v13 = vor.u32 %v4860_v63, %v3924_v6  ;;  %v4747_v21 = vld [vmem:[%s5543_s28 + $0x3c] sm:$0xf] }
  0xec   : > { %2678 = vmatpush.bf16.msra.mxu1 %v3807_v29  ;;  %2650 = vmatpush.bf16.msra.mxu0 %v3735_v20  ;;  %v6482_v55 = vor.u32 %v4746_v62, %v3492_v7  ;;  %v6484_v8 = vor.u32 %v4755_v30, %v3498_v52  ;;  %v6487_v9 = vor.u32 %v4747_v21, %v3500_v43  ;;  %v3724_v11 = vld [vmem:[%s7563_s1 + $0x38] sm:$0xf0]  ;;  %v4858_v63 = vld [vmem:[%s7563_s1 + $0x1b4] sm:$0xf] }
  0xed   : > { %2737 = vmatpush.bf16.msra.mxu3 %v3927_v13  ;;  %v3799_v62 = vor.u32 %v4828_v59, %v3796_v10  ;;  %v3916_v52 = vld [vmem:[%s7563_s1 + $0x1b8] sm:$0xf0]  ;;  %v4770_v59 = vld [vmem:[%s5543_s28 + $0xec] sm:$0xf0]  ;;  %v4826_v10 = vld [vmem:[%s7563_s1 + $0xb4] sm:$0xf] }
  0xee   : > { %7612 = vst [vmem:[#allocation20_spill] sm:$0xff] %v6482_v55  ;;  %v3919_v21 = vor.u32 %v4858_v63, %v3916_v52  ;;  %v3716_v63 = vld [vmem:[%s7563_s1 + $0x28] sm:$0xf0]  ;;  %v3556_v52 = vld [vmem:[%s5543_s28 + $0xf0] sm:$0xf0] }
  0xef   : > { %7613 = vst [vmem:[#allocation21_spill] sm:$0xff] %v6484_v8 }
  0xf0   : > { %v2267_v61 = vpop.f32.mrf.mxu2  ;;  %v2308_v42 = vpop.f32.mrf.mxu0  ;;  %7614 = vst [vmem:[#allocation22_spill] sm:$0xff] %v6487_v9  ;;  %2679 = vmatpush.bf16.msra.mxu1 %v3799_v62 }
  0xf1   : > { %v2268_v41 = vadd.f32 %v2267_v61, %v2239_v14  ;;  %v2296_v24 = vpop.f32.mrf.mxu3  ;;  %v2309_v31 = vadd.f32 %v2308_v42, %v6224_v22  ;;  %v2337_v29 = vpop.f32.mrf.mxu1  ;;  %v4842_v42 = vld [vmem:[%s7563_s1 + $0x134] sm:$0xf]  ;;  %v3852_v22 = vld [vmem:[%s7563_s1 + $0x138] sm:$0xf0]  ;;  %2738 = vmatpush.bf16.msra.mxu3 %v3919_v21 }
  0xf3   : > { %v6489_v40 = vadd.f32 %v2296_v24, %v2268_v41  ;;  %v2338_v14 = vadd.f32 %v2337_v29, %v2309_v31  ;;  %2539 = vmatmul.bf16.vlgmr.msrb.gmra.mxu0 %v6480_v4  ;;  %v3855_v24 = vor.u32 %v4842_v42, %v3852_v22  ;;  %v4810_v31 = vld [vmem:[%s7563_s1 + $0x34] sm:$0xf]  ;;  %v3554_v29 = vld [vmem:[%s5543_s28 + $0xb0] sm:$0xf]  ;;  %v4840_v22 = vld [vmem:[%s7563_s1 + $0x124] sm:$0xf] }
  0xf4   : > { %2568 = vmatmul.bf16.vlgmr.msrb.gmra.mxu1 %v6482_v55  ;;  %v3727_v7 = vor.u32 %v4810_v31, %v3724_v11  ;;  %v4808_v31 = vld [vmem:[%s7563_s1 + $0x24] sm:$0xf] }
  0xf5   : > { %2597 = vmatmul.bf16.vlgmr.msrb.gmra.mxu2 %v6484_v8 }
  0xf6   : > { %2626 = vmatmul.bf16.vlgmr.msrb.gmra.mxu3 %v6487_v9  ;;  %2709 = vmatpush.bf16.msra.mxu2 %v3855_v24  ;;  %v3844_v24 = vld [vmem:[%s7563_s1 + $0x128] sm:$0xf0] }
  0xf7   : > { %2651 = vmatpush.bf16.msra.mxu0 %v3727_v7  ;;  %v3847_v11 = vor.u32 %v4840_v22, %v3844_v24  ;;  %v3908_v7 = vld [vmem:[%s7563_s1 + $0x1a8] sm:$0xf0] }
  0xf8   : > { %v2366_v6 = vpop.f32.mrf.mxu2  ;;  %v2310_v13 = vpop.f32.mrf.mxu0 }
  0xf9   : > { %v2367_v30 = vadd.f32 %v2366_v6, %v2338_v14  ;;  %v2395_v20 = vpop.f32.mrf.mxu3  ;;  %v2311_v43 = vadd.f32 %v2310_v13, %v6267_v60  ;;  %v2339_v61 = vpop.f32.mrf.mxu1  ;;  %v3788_v14 = vld [vmem:[%s7563_s1 + $0xb8] sm:$0xf0]  ;;  %v4762_v60 = vld [vmem:[%s5543_s28 + $0xb4] sm:$0xf]  ;;  %v4856_v6 = vld [vmem:[%s7563_s1 + $0x1a4] sm:$0xf]  ;;  %v3719_v13 = vor.u32 %v4808_v31, %v3716_v63 }
  0xfa   : > { %v3791_v42 = vor.u32 %v4826_v10, %v3788_v14  ;;  %v3911_v21 = vor.u32 %v4856_v6, %v3908_v7  ;;  %2710 = vmatpush.bf16.msra.mxu2 %v3847_v11  ;;  %v6554_v14 = vor.u32 %v4770_v59, %v3554_v29  ;;  %v6556_v8 = vor.u32 %v4762_v60, %v3556_v52  ;;  %v4824_v29 = vld [vmem:[%s7563_s1 + $0xa4] sm:$0xf]  ;;  %v3780_v59 = vld [vmem:[%s7563_s1 + $0xa8] sm:$0xf0]  ;;  %v3708_v6 = vld [vmem:[%s7563_s1 + $0x18] sm:$0xf0] }
  0xfb   : > { %v6520_v41 = vadd.f32 %v2395_v20, %v2367_v30  ;;  %v2340_v62 = vadd.f32 %v2339_v61, %v2311_v43  ;;  %v3562_v30 = vld [vmem:[%s5543_s28 + $0xb8] sm:$0xf]  ;;  %v4763_v43 = vld [vmem:[%s5543_s28 + $0xbc] sm:$0xf]  ;;  %2652 = vmatpush.bf16.msra.mxu0 %v3719_v13  ;;  %v3783_v60 = vor.u32 %v4824_v29, %v3780_v59  ;;  %v4854_v7 = vld [vmem:[%s7563_s1 + $0x194] sm:$0xf] }
  0xfc   : > { %v4771_v20 = vld [vmem:[%s5543_s28 + $0xf4] sm:$0xf0]  ;;  %2680 = vmatpush.bf16.msra.mxu1 %v3791_v42  ;;  %v3564_v61 = vld [vmem:[%s5543_s28 + $0xf8] sm:$0xf0]  ;;  %7615 = vst [vmem:[#allocation23_spill] sm:$0xff] %v6554_v14  ;;  %2739 = vmatpush.bf16.msra.mxu3 %v3911_v21 }
  0xfd   : > { %7616 = vst [vmem:[#allocation24_spill] sm:$0xff] %v6556_v8  ;;  %v6558_v55 = vor.u32 %v4771_v20, %v3562_v30  ;;  %v6561_v31 = vor.u32 %v4763_v43, %v3564_v61  ;;  %v3900_v20 = vld [vmem:[%s7563_s1 + $0x198] sm:$0xf0]  ;;  %v4786_v29 = vld [vmem:[%s5543_s28 + $0x16c] sm:$0xf0] }
  0xfe   : > { %v3903_v61 = vor.u32 %v4854_v7, %v3900_v20  ;;  %v4822_v59 = vld [vmem:[%s7563_s1 + $0x94] sm:$0xf]  ;;  %v3700_v7 = vld [vmem:[%s7563_s1 + $0x8] sm:$0xf0] }
  0xff   : > { %7617 = vst [vmem:[#allocation25_spill] sm:$0xff] %v6558_v55  ;;  %v3620_v20 = vld [vmem:[%s5543_s28 + $0x170] sm:$0xf0] }
 0x100   : > { %v2368_v10 = vpop.f32.mrf.mxu2  ;;  %v2313_v9 = vpop.f32.mrf.mxu0  ;;  %7618 = vst [vmem:[#allocation26_spill] sm:$0xff] %v6561_v31  ;;  %2681 = vmatpush.bf16.msra.mxu1 %v3783_v60  ;;  %2740 = vmatpush.bf16.msra.mxu3 %v3903_v61 }
 0x101   : > { %v2369_v22 = vadd.f32 %v2368_v10, %v2340_v62  ;;  %v2397_v24 = vpop.f32.mrf.mxu3  ;;  %v2314_v4 = vadd.f32 %v2313_v9, %v6298_v58  ;;  %v2342_v42 = vpop.f32.mrf.mxu1  ;;  %v4838_v58 = vld [vmem:[%s7563_s1 + $0x114] sm:$0xf]  ;;  %v3836_v9 = vld [vmem:[%s7563_s1 + $0x118] sm:$0xf0] }
 0x102   : > { %v3839_v11 = vor.u32 %v4838_v58, %v3836_v9  ;;  %v4836_v9 = vld [vmem:[%s7563_s1 + $0x104] sm:$0xf] }
 0x103   : > { %v6563_v63 = vadd.f32 %v2397_v24, %v2369_v22  ;;  %v2343_v62 = vadd.f32 %v2342_v42, %v2314_v4  ;;  %2544 = vmatmul.bf16.gmra.mxu0 %v6554_v14  ;;  %v4806_v4 = vld [vmem:[%s7563_s1 + $0x14] sm:$0xf]  ;;  %v3618_v42 = vld [vmem:[%s5543_s28 + $0x130] sm:$0xf] }
 0x104   : > { %2573 = vmatmul.bf16.gmra.mxu1 %v6556_v8  ;;  %v3711_v30 = vor.u32 %v4806_v4, %v3708_v6  ;;  %2711 = vmatpush.bf16.msra.mxu2 %v3839_v11  ;;  %v3828_v11 = vld [vmem:[%s7563_s1 + $0x108] sm:$0xf0]  ;;  %v4804_v4 = vld [vmem:[%s7563_s1 + $0x4] sm:$0xf] }
 0x105   : > { %2602 = vmatmul.bf16.gmra.mxu2 %v6558_v55  ;;  %v3831_v6 = vor.u32 %v4836_v9, %v3828_v11  ;;  %v4820_v9 = vld [vmem:[%s7563_s1 + $0x84] sm:$0xf]  ;;  %v3764_v11 = vld [vmem:[%s7563_s1 + $0x88] sm:$0xf0] }
 0x106   : > { %2631 = vmatmul.bf16.gmra.mxu3 %v6561_v31  ;;  %2653 = vmatpush.bf16.msra.mxu0 %v3711_v30  ;;  %v3892_v30 = vld [vmem:[%s7563_s1 + $0x188] sm:$0xf0] }
 0x108   : > { %v2371_v52 = vpop.f32.mrf.mxu2  ;;  %v2315_v43 = vpop.f32.mrf.mxu0  ;;  %2712 = vmatpush.bf16.msra.mxu2 %v3831_v6  ;;  %v3767_v6 = vor.u32 %v4820_v9, %v3764_v11 }
 0x109   : > { %v2372_v13 = vadd.f32 %v2371_v52, %v2343_v62  ;;  %v2400_v21 = vpop.f32.mrf.mxu3  ;;  %v2316_v10 = vadd.f32 %v2315_v43, %v6347_v15  ;;  %v2344_v22 = vpop.f32.mrf.mxu1  ;;  %v3772_v62 = vld [vmem:[%s7563_s1 + $0x98] sm:$0xf0]  ;;  %v4778_v15 = vld [vmem:[%s5543_s28 + $0x134] sm:$0xf]  ;;  %v4852_v52 = vld [vmem:[%s7563_s1 + $0x184] sm:$0xf]  ;;  %v3703_v43 = vor.u32 %v4804_v4, %v3700_v7 }
 0x10a   : > { %v3775_v58 = vor.u32 %v4822_v59, %v3772_v62  ;;  %v3895_v61 = vor.u32 %v4852_v52, %v3892_v30  ;;  %v6628_v62 = vor.u32 %v4786_v29, %v3618_v42  ;;  %v6636_v7 = vor.u32 %v4778_v15, %v3620_v20  ;;  %v4012_v20 = vld [vmem:[%s7563_s1 + $0x278] sm:$0xf0] }
 0x10b   : > { %v6594_v24 = vadd.f32 %v2400_v21, %v2372_v13  ;;  %v2345_v60 = vadd.f32 %v2344_v22, %v2316_v10  ;;  %v3626_v13 = vld [vmem:[%s5543_s28 + $0x138] sm:$0xf]  ;;  %v4779_v10 = vld [vmem:[%s5543_s28 + $0x13c] sm:$0xf]  ;;  %2654 = vmatpush.bf16.msra.mxu0 %v3703_v43 }
 0x10c   : > { %v4787_v21 = vld [vmem:[%s5543_s28 + $0x174] sm:$0xf0]  ;;  %2682 = vmatpush.bf16.msra.mxu1 %v3775_v58  ;;  %v3628_v22 = vld [vmem:[%s5543_s28 + $0x178] sm:$0xf0]  ;;  %7619 = vst [vmem:[#allocation27_spill] sm:$0xff] %v6628_v62  ;;  %2741 = vmatpush.bf16.msra.mxu3 %v3895_v61 }
 0x10d   : > { %7620 = vst [vmem:[#allocation28_spill] sm:$0xff] %v6636_v7  ;;  %v6638_v52 = vor.u32 %v4787_v21, %v3626_v13  ;;  %v6641_v30 = vor.u32 %v4779_v10, %v3628_v22  ;;  %v4930_v13 = vld [vmem:[%s7563_s1 + $0x3f4] sm:$0xf]  ;;  %v4204_v21 = vld [vmem:[%s7563_s1 + $0x3f8] sm:$0xf0] }
 0x10f   : > { %7621 = vst [vmem:[#allocation29_spill] sm:$0xff] %v6638_v52 }
 0x110   : > { %v2373_v59 = vpop.f32.mrf.mxu2  ;;  %v2318_v4 = vpop.f32.mrf.mxu0  ;;  %7622 = vst [vmem:[#allocation30_spill] sm:$0xff] %v6641_v30  ;;  %2683 = vmatpush.bf16.msra.mxu1 %v3767_v6 }
 0x111   : > { %v2374_v31 = vadd.f32 %v2373_v59, %v2345_v60  ;;  %v2402_v58 = vpop.f32.mrf.mxu3  ;;  %v2319_v42 = vadd.f32 %v2318_v4, %v6372_v23  ;;  %v2347_v29 = vpop.f32.mrf.mxu1  ;;  %v4914_v60 = vld [vmem:[%s7563_s1 + $0x374] sm:$0xf]  ;;  %v4140_v23 = vld [vmem:[%s7563_s1 + $0x378] sm:$0xf0]  ;;  %v4207_v59 = vor.u32 %v4930_v13, %v4204_v21  ;;  %v4132_v13 = vld [vmem:[%s7563_s1 + $0x368] sm:$0xf0] }
 0x112   : > { %v4143_v15 = vor.u32 %v4914_v60, %v4140_v23  ;;  %v4802_v60 = vld [vmem:[%s5543_s28 + $0x1ec] sm:$0xf0]  ;;  %v4898_v23 = vld [vmem:[%s7563_s1 + $0x2f4] sm:$0xf]  ;;  %v4880_v21 = vld [vmem:[%s7563_s1 + $0x264] sm:$0xf] }
 0x113   : > { %v6643_v43 = vadd.f32 %v2402_v58, %v2374_v31  ;;  %v2348_v61 = vadd.f32 %v2347_v29, %v2319_v42  ;;  %2549 = vmatmul.bf16.gmra.mxu0 %v6628_v62  ;;  %v4882_v31 = vld [vmem:[%s7563_s1 + $0x274] sm:$0xf]  ;;  %2850 = vmatpush.bf16.msrb.mxu3 %v4207_v59  ;;  %v3682_v29 = vld [vmem:[%s5543_s28 + $0x1b0] sm:$0xf]  ;;  %v4928_v59 = vld [vmem:[%s7563_s1 + $0x3e4] sm:$0xf] }
 0x114   : > { %2578 = vmatmul.bf16.gmra.mxu1 %v6636_v7  ;;  %v4015_v22 = vor.u32 %v4882_v31, %v4012_v20  ;;  %2821 = vmatpush.bf16.msrb.mxu2 %v4143_v15  ;;  %v4912_v20 = vld [vmem:[%s7563_s1 + $0x364] sm:$0xf] }
 0x115   : > { %2607 = vmatmul.bf16.gmra.mxu2 %v6638_v52 }
 0x116   : > { %2636 = vmatmul.bf16.gmra.mxu3 %v6641_v30  ;;  %2763 = vmatpush.bf16.msrb.mxu0 %v4015_v22  ;;  %v4004_v22 = vld [vmem:[%s7563_s1 + $0x268] sm:$0xf0]  ;;  %v6702_v30 = vor.u32 %v4802_v60, %v3682_v29  ;;  %v4896_v29 = vld [vmem:[%s7563_s1 + $0x2e4] sm:$0xf] }
 0x117   : > { %v4068_v60 = vld [vmem:[%s7563_s1 + $0x2e8] sm:$0xf0] }
 0x118   : > { %v2376_v10 = vpop.f32.mrf.mxu2  ;;  %v2320_v58 = vpop.f32.mrf.mxu0 }
 0x119   : > { %v2377_v9 = vadd.f32 %v2376_v10, %v2348_v61  ;;  %v2405_v11 = vpop.f32.mrf.mxu3  ;;  %v2321_v4 = vadd.f32 %v2320_v58, %v6415_v5  ;;  %v2349_v6 = vpop.f32.mrf.mxu1  ;;  %v4076_v61 = vld [vmem:[%s7563_s1 + $0x2f8] sm:$0xf0]  ;;  %v4794_v5 = vld [vmem:[%s5543_s28 + $0x1b4] sm:$0xf]  ;;  %v4135_v10 = vor.u32 %v4912_v20, %v4132_v13  ;;  %v3690_v58 = vld [vmem:[%s5543_s28 + $0x1b8] sm:$0xf] }
 0x11a   : > { %v4079_v15 = vor.u32 %v4898_v23, %v4076_v61  ;;  %v4795_v61 = vld [vmem:[%s5543_s28 + $0x1bc] sm:$0xf] }
 0x11b   : > { %v6668_v42 = vadd.f32 %v2405_v11, %v2377_v9  ;;  %v2350_v31 = vadd.f32 %v2349_v6, %v2321_v4  ;;  %v4196_v9 = vld [vmem:[%s7563_s1 + $0x3e8] sm:$0xf0]  ;;  %v3684_v11 = vld [vmem:[%s5543_s28 + $0x1f0] sm:$0xf0]  ;;  %v4803_v4 = vld [vmem:[%s5543_s28 + $0x1f4] sm:$0xf0]  ;;  %v4007_v6 = vor.u32 %v4880_v21, %v4004_v22  ;;  %2822 = vmatpush.bf16.msrb.mxu2 %v4135_v10 }
 0x11c   : > { %2792 = vmatpush.bf16.msrb.mxu1 %v4079_v15  ;;  %v4199_v23 = vor.u32 %v4928_v59, %v4196_v9  ;;  %v3692_v20 = vld [vmem:[%s5543_s28 + $0x1f8] sm:$0xf0]  ;;  %v6704_v55 = vor.u32 %v4794_v5, %v3684_v11  ;;  %v6706_v8 = vor.u32 %v4803_v4, %v3690_v58  ;;  %v4071_v5 = vor.u32 %v4896_v29, %v4068_v60  ;;  %v4926_v10 = vld [vmem:[%s7563_s1 + $0x3d4] sm:$0xf]  ;;  %s3152_s28 = ssub.s32 (%p5326_p3), 9, %s5500_s9 }
 0x11d   : > { %2764 = vmatpush.bf16.msrb.mxu0 %v4007_v6  ;;  %v6709_v21 = vor.u32 %v4795_v61, %v3692_v20  ;;  %v4188_v59 = vld [vmem:[%s7563_s1 + $0x3d8] sm:$0xf0]  ;;  %p3153_p9 = scmp.lt.s32.totalorder (%p5326_p3), %s3152_s28, 8 }
 0x11e   : > { %2851 = vmatpush.bf16.msrb.mxu3 %v4199_v23  ;;  %v4191_v58 = vor.u32 %v4926_v10, %v4188_v59  ;;  %v4060_v29 = vld [vmem:[%s7563_s1 + $0x2d8] sm:$0xf0] }
 0x120   : > { %v2378_v13 = vpop.f32.mrf.mxu2  ;;  %v2323_v62 = vpop.f32.mrf.mxu0  ;;  %2793 = vmatpush.bf16.msrb.mxu1 %v4071_v5  ;;  %v4908_v5 = vld [vmem:[%s7563_s1 + $0x344] sm:$0xf] }
 0x121   : > { %v2379_v52 = vadd.f32 %v2378_v13, %v2350_v31  ;;  %v2407_v7 = vpop.f32.mrf.mxu3  ;;  %v2324_v14 = vadd.f32 %v2323_v62, %v6446_v12  ;;  %v2352_v15 = vpop.f32.mrf.mxu1  ;;  %v4910_v12 = vld [vmem:[%s7563_s1 + $0x354] sm:$0xf]  ;;  %v4124_v62 = vld [vmem:[%s7563_s1 + $0x358] sm:$0xf0] }
 0x122   : > { %2852 = vmatpush.bf16.msrb.mxu3 %v4191_v58 }
 0x123   : > { %v6711_v22 = vadd.f32 %v2407_v7, %v2379_v52  ;;  %v2353_v31 = vadd.f32 %v2352_v15, %v2324_v14  ;;  %2554 = vmatmul.bf16.gmra.mxu0 %v6702_v30  ;;  %v4878_v14 = vld [vmem:[%s7563_s1 + $0x254] sm:$0xf]  ;;  %v4127_v7 = vor.u32 %v4910_v12, %v4124_v62  ;;  %v3996_v52 = vld [vmem:[%s7563_s1 + $0x258] sm:$0xf0]  ;;  %v4876_v12 = vld [vmem:[%s7563_s1 + $0x244] sm:$0xf] }
 0x124   : > { %2583 = vmatmul.bf16.gmra.mxu1 %v6704_v55  ;;  %v3999_v11 = vor.u32 %v4878_v14, %v3996_v52  ;;  %v4894_v15 = vld [vmem:[%s7563_s1 + $0x2d4] sm:$0xf]  ;;  %v3988_v14 = vld [vmem:[%s7563_s1 + $0x248] sm:$0xf0] }
 0x125   : > { %2612 = vmatmul.bf16.gmra.mxu2 %v6706_v8  ;;  %v4180_v52 = vld [vmem:[%s7563_s1 + $0x3c8] sm:$0xf0]  ;;  %v3991_v10 = vor.u32 %v4876_v12, %v3988_v14 }
 0x126   : > { %2641 = vmatmul.bf16.gmra.mxu3 %v6709_v21  ;;  %2823 = vmatpush.bf16.msrb.mxu2 %v4127_v7  ;;  %v4924_v7 = vld [vmem:[%s7563_s1 + $0x3c4] sm:$0xf] }
 0x127   : > { %2765 = vmatpush.bf16.msrb.mxu0 %v3999_v11  ;;  %v4183_v59 = vor.u32 %v4924_v7, %v4180_v52 }
 0x128   : > { %v2381_v9 = vpop.f32.mrf.mxu2  ;;  %v2325_v23 = vpop.f32.mrf.mxu0 }
 0x129   : > { %v2382_v4 = vadd.f32 %v2381_v9, %v2353_v31  ;;  %v2410_v6 = vpop.f32.mrf.mxu3  ;;  %v2326_v61 = vadd.f32 %v2325_v23, %v6489_v40  ;;  %v2354_v20 = vpop.f32.mrf.mxu1  ;;  %v4063_v31 = vor.u32 %v4894_v15, %v4060_v29  ;;  %v4116_v40 = vld [vmem:[%s7563_s1 + $0x348] sm:$0xf0]  ;;  %2853 = vmatpush.bf16.msrb.mxu3 %v4183_v59 }
 0x12a   : > { %v4119_v62 = vor.u32 %v4908_v5, %v4116_v40  ;;  %v4052_v15 = vld [vmem:[%s7563_s1 + $0x2c8] sm:$0xf0] }
 0x12b   : > { %v6742_v13 = vadd.f32 %v2410_v6, %v2382_v4  ;;  %v2355_v60 = vadd.f32 %v2354_v20, %v2326_v61  ;;  %2794 = vmatpush.bf16.msrb.mxu1 %v4063_v31  ;;  %2766 = vmatpush.bf16.msrb.mxu0 %v3991_v10  ;;  %v4892_v20 = vld [vmem:[%s7563_s1 + $0x2c4] sm:$0xf] }
 0x12c   : > { %2824 = vmatpush.bf16.msrb.mxu2 %v4119_v62  ;;  %v4055_v31 = vor.u32 %v4892_v20, %v4052_v15  ;;  %v4872_v20 = vld [vmem:[%s7563_s1 + $0x224] sm:$0xf] }
 0x12f   : > { %2795 = vmatpush.bf16.msrb.mxu1 %v4055_v31  ;;  %v4920_v31 = vld [vmem:[%s7563_s1 + $0x3a4] sm:$0xf] }
 0x130   : > { %v2383_v9 = vpop.f32.mrf.mxu2  ;;  %v2424_v4 = vpop.f32.mrf.mxu0 }
 0x131   : > { %v2384_v11 = vadd.f32 %v2383_v9, %v2355_v60  ;;  %v2412_v58 = vpop.f32.mrf.mxu3  ;;  %v2425_v6 = vadd.f32 %v2424_v4, %v6520_v41  ;;  %v2453_v23 = vpop.f32.mrf.mxu1  ;;  %v4906_v41 = vld [vmem:[%s7563_s1 + $0x334] sm:$0xf]  ;;  %v4108_v60 = vld [vmem:[%s7563_s1 + $0x338] sm:$0xf0] }
 0x132   : > { %v4111_v5 = vor.u32 %v4906_v41, %v4108_v60  ;;  %v4164_v41 = vld [vmem:[%s7563_s1 + $0x3a8] sm:$0xf0] }
 0x133   : > { %v6769_v61 = vadd.f32 %v2412_v58, %v2384_v11  ;;  %v2454_v29 = vadd.f32 %v2453_v23, %v2425_v6  ;;  %2655 = vmatmul.bf16.vlgmr.msra.gmra.mxu0 %v5572_v48  ;;  %v4874_v48 = vld [vmem:[%s7563_s1 + $0x234] sm:$0xf]  ;;  %v4044_v58 = vld [vmem:[%s7563_s1 + $0x2b8] sm:$0xf0]  ;;  %v4904_v23 = vld [vmem:[%s7563_s1 + $0x324] sm:$0xf] }
 0x134   : > { %2684 = vmatmul.bf16.vlgmr.msra.gmra.mxu1 %v5579_v53  ;;  %v3980_v53 = vld [vmem:[%s7563_s1 + $0x238] sm:$0xf0]  ;;  %2825 = vmatpush.bf16.msrb.mxu2 %v4111_v5  ;;  %v4890_v11 = vld [vmem:[%s7563_s1 + $0x2b4] sm:$0xf] }
 0x135   : > { %2713 = vmatmul.bf16.vlgmr.msra.gmra.mxu2 %v5581_v54  ;;  %v4922_v54 = vld [vmem:[%s7563_s1 + $0x3b4] sm:$0xf]  ;;  %v3983_v12 = vor.u32 %v4874_v48, %v3980_v53  ;;  %v4047_v6 = vor.u32 %v4890_v11, %v4044_v58  ;;  %v4167_v48 = vor.u32 %v4920_v31, %v4164_v41 }
 0x136   : > { %2742 = vmatmul.bf16.vlgmr.msra.gmra.mxu3 %v5589_v57  ;;  %v4172_v57 = vld [vmem:[%s7563_s1 + $0x3b8] sm:$0xf0]  ;;  %v4886_v41 = vld [vmem:[%s7563_s1 + $0x294] sm:$0xf] }
 0x137   : > { %v4175_v62 = vor.u32 %v4922_v54, %v4172_v57  ;;  %2767 = vmatpush.bf16.msrb.mxu0 %v3983_v12  ;;  %2796 = vmatpush.bf16.msrb.mxu1 %v4047_v6 }
 0x138   : > { %v2482_v40 = vpop.f32.mrf.mxu2  ;;  %v2426_v52 = vpop.f32.mrf.mxu0 }
 0x139   : > { %v2483_v14 = vadd.f32 %v2482_v40, %v2454_v29  ;;  %v2511_v7 = vpop.f32.mrf.mxu3  ;;  %v2427_v10 = vadd.f32 %v2426_v52, %v6563_v63  ;;  %v2455_v59 = vpop.f32.mrf.mxu1  ;;  %2854 = vmatpush.bf16.msrb.mxu3 %v4175_v62  ;;  %v4100_v63 = vld [vmem:[%s7563_s1 + $0x328] sm:$0xf0] }
 0x13a   : > { %v4103_v15 = vor.u32 %v4904_v23, %v4100_v63  ;;  %v3972_v29 = vld [vmem:[%s7563_s1 + $0x228] sm:$0xf0] }
 0x13b   : > { %v6800_v9 = vadd.f32 %v2511_v7, %v2483_v14  ;;  %v2456_v4 = vadd.f32 %v2455_v59, %v2427_v10  ;;  %v3975_v60 = vor.u32 %v4872_v20, %v3972_v29  ;;  %v4888_v14 = vld [vmem:[%s7563_s1 + $0x2a4] sm:$0xf]  ;;  %v4036_v7 = vld [vmem:[%s7563_s1 + $0x2a8] sm:$0xf0]  ;;  %v4092_v59 = vld [vmem:[%s7563_s1 + $0x318] sm:$0xf0] }
 0x13c   : > { %2826 = vmatpush.bf16.msrb.mxu2 %v4103_v15  ;;  %v4039_v10 = vor.u32 %v4888_v14, %v4036_v7  ;;  %v4148_v14 = vld [vmem:[%s7563_s1 + $0x388] sm:$0xf0] }
 0x13d   : > { %2768 = vmatpush.bf16.msrb.mxu0 %v3975_v60  ;;  %2855 = vmatpush.bf16.msrb.mxu3 %v4167_v48  ;;  %v4028_v60 = vld [vmem:[%s7563_s1 + $0x298] sm:$0xf0] }
 0x13e   : > { %2797 = vmatpush.bf16.msrb.mxu1 %v4039_v10 }
 0x140   : > { %v2484_v5 = vpop.f32.mrf.mxu2  ;;  %v2429_v57 = vpop.f32.mrf.mxu0 }
 0x141   : > { %v2485_v53 = vadd.f32 %v2484_v5, %v2456_v4  ;;  %v2513_v54 = vpop.f32.mrf.mxu3  ;;  %v2430_v40 = vadd.f32 %v2429_v57, %v6594_v24  ;;  %v2458_v12 = vpop.f32.mrf.mxu1  ;;  %v4902_v24 = vld [vmem:[%s7563_s1 + $0x314] sm:$0xf]  ;;  %v4031_v5 = vor.u32 %v4886_v41, %v4028_v60 }
 0x142   : > { %v4095_v11 = vor.u32 %v4902_v24, %v4092_v59  ;;  %v4884_v24 = vld [vmem:[%s7563_s1 + $0x284] sm:$0xf]  ;;  %v4020_v59 = vld [vmem:[%s7563_s1 + $0x288] sm:$0xf0] }
 0x143   : > { %v6827_v62 = vadd.f32 %v2513_v54, %v2485_v53  ;;  %v2459_v52 = vadd.f32 %v2458_v12, %v2430_v40  ;;  %2660 = vmatmul.bf16.gmra.mxu0 %v5684_v44  ;;  %v4870_v44 = vld [vmem:[%s7563_s1 + $0x214] sm:$0xf]  ;;  %v4900_v53 = vld [vmem:[%s7563_s1 + $0x304] sm:$0xf]  ;;  %v3956_v40 = vld [vmem:[%s7563_s1 + $0x208] sm:$0xf0]  ;;  %2798 = vmatpush.bf16.msrb.mxu1 %v4031_v5 }
 0x144   : > { %2689 = vmatmul.bf16.gmra.mxu1 %v5695_v50  ;;  %v3964_v50 = vld [vmem:[%s7563_s1 + $0x218] sm:$0xf0]  ;;  %2827 = vmatpush.bf16.msrb.mxu2 %v4095_v11  ;;  %v4868_v54 = vld [vmem:[%s7563_s1 + $0x204] sm:$0xf] }
 0x145   : > { %2718 = vmatmul.bf16.gmra.mxu2 %v5697_v51  ;;  %v4918_v51 = vld [vmem:[%s7563_s1 + $0x394] sm:$0xf]  ;;  %v3967_v4 = vor.u32 %v4870_v44, %v3964_v50  ;;  %v4916_v12 = vld [vmem:[%s7563_s1 + $0x384] sm:$0xf]  ;;  %v3959_v7 = vor.u32 %v4868_v54, %v3956_v40  ;;  %v4332_v40 = vld [vmem:[%s7563_s1 + $0x4f8] sm:$0xf0] }
 0x146   : > { %2747 = vmatmul.bf16.gmra.mxu3 %v5705_v56  ;;  %v4156_v56 = vld [vmem:[%s7563_s1 + $0x398] sm:$0xf0] }
 0x147   : > { %v4159_v6 = vor.u32 %v4918_v51, %v4156_v56  ;;  %2769 = vmatpush.bf16.msrb.mxu0 %v3967_v4  ;;  %v4023_v51 = vor.u32 %v4884_v24, %v4020_v59  ;;  %v4992_v59 = vld [vmem:[%s7563_s1 + $0x5e4] sm:$0xf] }
 0x148   : > { %v2487_v58 = vpop.f32.mrf.mxu2  ;;  %v2431_v20 = vpop.f32.mrf.mxu0 }
 0x149   : > { %v2488_v23 = vadd.f32 %v2487_v58, %v2459_v52  ;;  %v2516_v63 = vpop.f32.mrf.mxu3  ;;  %v2432_v15 = vadd.f32 %v2431_v20, %v6643_v43  ;;  %v2460_v29 = vpop.f32.mrf.mxu1  ;;  %2856 = vmatpush.bf16.msrb.mxu3 %v4159_v6  ;;  %v4084_v43 = vld [vmem:[%s7563_s1 + $0x308] sm:$0xf0]  ;;  %v4151_v52 = vor.u32 %v4916_v12, %v4148_v14  ;;  %2799 = vmatpush.bf16.msrb.mxu1 %v4023_v51  ;;  %v4976_v12 = vld [vmem:[%s7563_s1 + $0x564] sm:$0xf] }
 0x14a   : > { %v4087_v57 = vor.u32 %v4900_v53, %v4084_v43 }
 0x14b   : > { %v6858_v31 = vadd.f32 %v2516_v63, %v2488_v23  ;;  %v2461_v48 = vadd.f32 %v2460_v29, %v2432_v15  ;;  %2770 = vmatpush.bf16.msrb.mxu0 %v3959_v7  ;;  %v4978_v23 = vld [vmem:[%s7563_s1 + $0x574] sm:$0xf]  ;;  %v4944_v7 = vld [vmem:[%s7563_s1 + $0x464] sm:$0xf] }
 0x14c   : > { %2828 = vmatpush.bf16.msrb.mxu2 %v4087_v57  ;;  %v4946_v63 = vld [vmem:[%s7563_s1 + $0x474] sm:$0xf] }
 0x14d   : > { %2857 = vmatpush.bf16.msrb.mxu3 %v4151_v52  ;;  %v4962_v57 = vld [vmem:[%s7563_s1 + $0x4f4] sm:$0xf]  ;;  %v4260_v52 = vld [vmem:[%s7563_s1 + $0x468] sm:$0xf0] }
 0x14e   : > { %v4335_v14 = vor.u32 %v4962_v57, %v4332_v40  ;;  %v4263_v24 = vor.u32 %v4944_v7, %v4260_v52  ;;  %v4940_v52 = vld [vmem:[%s7563_s1 + $0x444] sm:$0xf] }
 0x150   : > { %v2489_v10 = vpop.f32.mrf.mxu2  ;;  %v2434_v50 = vpop.f32.mrf.mxu0  ;;  %2908 = vmatpush.bf16.msra.mxu1 %v4335_v14  ;;  %v4316_v14 = vld [vmem:[%s7563_s1 + $0x4d8] sm:$0xf0] }
 0x151   : > { %v2490_v44 = vadd.f32 %v2489_v10, %v2461_v48  ;;  %v2518_v11 = vpop.f32.mrf.mxu3  ;;  %v2435_v56 = vadd.f32 %v2434_v50, %v6668_v42  ;;  %v2463_v58 = vpop.f32.mrf.mxu1  ;;  %v4396_v42 = vld [vmem:[%s7563_s1 + $0x578] sm:$0xf0] }
 0x152   : > { %v4399_v20 = vor.u32 %v4978_v23, %v4396_v42 }
 0x153   : > { %v6891_v4 = vadd.f32 %v2518_v11, %v2490_v44  ;;  %v2464_v6 = vadd.f32 %v2463_v58, %v2435_v56  ;;  %2665 = vmatmul.bf16.gmra.mxu0 %v5779_v36  ;;  %v4268_v36 = vld [vmem:[%s7563_s1 + $0x478] sm:$0xf0]  ;;  %v4452_v44 = vld [vmem:[%s7563_s1 + $0x5e8] sm:$0xf0] }
 0x154   : > { %2694 = vmatmul.bf16.gmra.mxu1 %v5781_v37  ;;  %v4994_v37 = vld [vmem:[%s7563_s1 + $0x5f4] sm:$0xf]  ;;  %v4271_v15 = vor.u32 %v4946_v63, %v4268_v36  ;;  %2937 = vmatpush.bf16.msra.mxu2 %v4399_v20  ;;  %v4455_v50 = vor.u32 %v4992_v59, %v4452_v44  ;;  %v4960_v20 = vld [vmem:[%s7563_s1 + $0x4e4] sm:$0xf]  ;;  %v4324_v36 = vld [vmem:[%s7563_s1 + $0x4e8] sm:$0xf0] }
 0x155   : > { %2723 = vmatmul.bf16.gmra.mxu2 %v5783_v38  ;;  %v4460_v38 = vld [vmem:[%s7563_s1 + $0x5f8] sm:$0xf0]  ;;  %v4988_v44 = vld [vmem:[%s7563_s1 + $0x5c4] sm:$0xf] }
 0x156   : > { %2752 = vmatmul.bf16.gmra.mxu3 %v5785_v39  ;;  %v4463_v29 = vor.u32 %v4994_v37, %v4460_v38  ;;  %2879 = vmatpush.bf16.msra.mxu0 %v4271_v15  ;;  %v4974_v37 = vld [vmem:[%s7563_s1 + $0x554] sm:$0xf]  ;;  %v4252_v38 = vld [vmem:[%s7563_s1 + $0x458] sm:$0xf0] }
 0x158   : > { %v2492_v39 = vpop.f32.mrf.mxu2  ;;  %v2436_v48 = vpop.f32.mrf.mxu0  ;;  %2966 = vmatpush.bf16.msra.mxu3 %v4463_v29 }
 0x159   : > { %v2493_v41 = vadd.f32 %v2492_v39, %v2464_v6  ;;  %v2521_v60 = vpop.f32.mrf.mxu3  ;;  %v2437_v5 = vadd.f32 %v2436_v48, %v6711_v22  ;;  %v2465_v53 = vpop.f32.mrf.mxu1  ;;  %v4388_v22 = vld [vmem:[%s7563_s1 + $0x568] sm:$0xf0]  ;;  %v4444_v39 = vld [vmem:[%s7563_s1 + $0x5d8] sm:$0xf0] }
 0x15a   : > { %v4391_v10 = vor.u32 %v4976_v12, %v4388_v22  ;;  %2880 = vmatpush.bf16.msra.mxu0 %v4263_v24  ;;  %v4958_v12 = vld [vmem:[%s7563_s1 + $0x4d4] sm:$0xf]  ;;  %v4972_v22 = vld [vmem:[%s7563_s1 + $0x544] sm:$0xf] }
 0x15b   : > { %v6916_v43 = vadd.f32 %v2521_v60, %v2493_v41  ;;  %v2466_v54 = vadd.f32 %v2465_v53, %v2437_v5  ;;  %v4319_v7 = vor.u32 %v4958_v12, %v4316_v14  ;;  %v4968_v14 = vld [vmem:[%s7563_s1 + $0x524] sm:$0xf] }
 0x15c   : > { %2938 = vmatpush.bf16.msra.mxu2 %v4391_v10  ;;  %2967 = vmatpush.bf16.msra.mxu3 %v4455_v50  ;;  %v4244_v10 = vld [vmem:[%s7563_s1 + $0x448] sm:$0xf0] }
 0x15d   : > { %v4247_v59 = vor.u32 %v4940_v52, %v4244_v10  ;;  %v4984_v52 = vld [vmem:[%s7563_s1 + $0x5a4] sm:$0xf]  ;;  %v4420_v10 = vld [vmem:[%s7563_s1 + $0x5a8] sm:$0xf0] }
 0x160   : > { %v2494_v11 = vpop.f32.mrf.mxu2  ;;  %v2439_v58 = vpop.f32.mrf.mxu0 }
 0x161   : > { %v2495_v51 = vadd.f32 %v2494_v11, %v2466_v54  ;;  %v2523_v56 = vpop.f32.mrf.mxu3  ;;  %v2440_v6 = vadd.f32 %v2439_v58, %v6742_v13  ;;  %v2468_v23 = vpop.f32.mrf.mxu1  ;;  %v4327_v13 = vor.u32 %v4960_v20, %v4324_v36  ;;  %v4436_v11 = vld [vmem:[%s7563_s1 + $0x5c8] sm:$0xf0] }
 0x163   : > { %v6943_v42 = vadd.f32 %v2523_v56, %v2495_v51  ;;  %v2469_v63 = vadd.f32 %v2468_v23, %v2440_v6  ;;  %2670 = vmatmul.bf16.gmra.mxu0 %v5847_v16  ;;  %v4380_v16 = vld [vmem:[%s7563_s1 + $0x558] sm:$0xf0]  ;;  %2909 = vmatpush.bf16.msra.mxu1 %v4327_v13  ;;  %v4439_v51 = vor.u32 %v4988_v44, %v4436_v11  ;;  %v4956_v13 = vld [vmem:[%s7563_s1 + $0x4c4] sm:$0xf] }
 0x164   : > { %2699 = vmatmul.bf16.gmra.mxu1 %v5849_v17  ;;  %v4942_v17 = vld [vmem:[%s7563_s1 + $0x454] sm:$0xf]  ;;  %v4423_v44 = vor.u32 %v4984_v52, %v4420_v10 }
 0x165   : > { %2728 = vmatmul.bf16.gmra.mxu2 %v5851_v18  ;;  %v4383_v18 = vor.u32 %v4974_v37, %v4380_v16  ;;  %v4255_v29 = vor.u32 %v4942_v17, %v4252_v38  ;;  %v4308_v37 = vld [vmem:[%s7563_s1 + $0x4c8] sm:$0xf0]  ;;  %v4970_v16 = vld [vmem:[%s7563_s1 + $0x534] sm:$0xf]  ;;  %v4236_v17 = vld [vmem:[%s7563_s1 + $0x438] sm:$0xf0] }
 0x166   : > { %2757 = vmatmul.bf16.gmra.mxu3 %v5853_v19  ;;  %v4990_v19 = vld [vmem:[%s7563_s1 + $0x5d4] sm:$0xf] }
 0x167   : > { %v4447_v41 = vor.u32 %v4990_v19, %v4444_v39  ;;  %2939 = vmatpush.bf16.msra.mxu2 %v4383_v18  ;;  %2881 = vmatpush.bf16.msra.mxu0 %v4255_v29  ;;  %v4428_v18 = vld [vmem:[%s7563_s1 + $0x5b8] sm:$0xf0] }
 0x168   : > { %v2497_v15 = vpop.f32.mrf.mxu2  ;;  %v2441_v5 = vpop.f32.mrf.mxu0  ;;  %2910 = vmatpush.bf16.msra.mxu1 %v4319_v7 }
 0x169   : > { %v2498_v60 = vadd.f32 %v2497_v15, %v2469_v63  ;;  %v2526_v48 = vpop.f32.mrf.mxu3  ;;  %v2442_v53 = vadd.f32 %v2441_v5, %v6769_v61  ;;  %v2470_v54 = vpop.f32.mrf.mxu1  ;;  %2968 = vmatpush.bf16.msra.mxu3 %v4447_v41  ;;  %v4372_v61 = vld [vmem:[%s7563_s1 + $0x548] sm:$0xf0] }
 0x16a   : > { %v4375_v24 = vor.u32 %v4972_v22, %v4372_v61  ;;  %v4936_v22 = vld [vmem:[%s7563_s1 + $0x424] sm:$0xf]  ;;  %v4228_v61 = vld [vmem:[%s7563_s1 + $0x428] sm:$0xf0] }
 0x16b   : > { %v6974_v57 = vadd.f32 %v2526_v48, %v2498_v60  ;;  %v2471_v40 = vadd.f32 %v2470_v54, %v2442_v53  ;;  %2882 = vmatpush.bf16.msra.mxu0 %v4247_v59  ;;  %v4954_v54 = vld [vmem:[%s7563_s1 + $0x4b4] sm:$0xf]  ;;  %v4231_v59 = vor.u32 %v4936_v22, %v4228_v61  ;;  %v4276_v61 = vld [vmem:[%s7563_s1 + $0x488] sm:$0xf0] }
 0x16c   : > { %2940 = vmatpush.bf16.msra.mxu2 %v4375_v24 }
 0x16d   : > { %2969 = vmatpush.bf16.msra.mxu3 %v4439_v51 }
 0x170   : > { %v2499_v50 = vpop.f32.mrf.mxu2  ;;  %v2540_v6 = vpop.f32.mrf.mxu0 }
 0x171   : > { %v2500_v56 = vadd.f32 %v2499_v50, %v2471_v40  ;;  %v2528_v58 = vpop.f32.mrf.mxu3  ;;  %v2541_v23 = vadd.f32 %v2540_v6, %v6800_v9  ;;  %v2569_v63 = vpop.f32.mrf.mxu1  ;;  %v4311_v9 = vor.u32 %v4956_v13, %v4308_v37  ;;  %v4300_v40 = vld [vmem:[%s7563_s1 + $0x4b8] sm:$0xf0]  ;;  %v4966_v13 = vld [vmem:[%s7563_s1 + $0x514] sm:$0xf] }
 0x172   : > { %v4303_v12 = vor.u32 %v4954_v54, %v4300_v40  ;;  %v4220_v37 = vld [vmem:[%s7563_s1 + $0x418] sm:$0xf0]  ;;  %v4212_v54 = vld [vmem:[%s7563_s1 + $0x408] sm:$0xf0]  ;;  %v4980_v40 = vld [vmem:[%s7563_s1 + $0x584] sm:$0xf] }
 0x173   : > { %v7001_v20 = vadd.f32 %v2528_v58, %v2500_v56  ;;  %v2570_v36 = vadd.f32 %v2569_v63, %v2541_v23  ;;  %2771 = vmatmul.bf16.vlgmr.msrb.gmra.mxu0 %v5915_v0  ;;  %v4364_v0 = vld [vmem:[%s7563_s1 + $0x538] sm:$0xf0]  ;;  %2911 = vmatpush.bf16.msra.mxu1 %v4311_v9  ;;  %v4952_v63 = vld [vmem:[%s7563_s1 + $0x4a4] sm:$0xf] }
 0x174   : > { %2800 = vmatmul.bf16.vlgmr.msrb.gmra.mxu1 %v5917_v1  ;;  %v4938_v1 = vld [vmem:[%s7563_s1 + $0x434] sm:$0xf]  ;;  %v4412_v9 = vld [vmem:[%s7563_s1 + $0x598] sm:$0xf0] }
 0x175   : > { %2829 = vmatmul.bf16.vlgmr.msrb.gmra.mxu2 %v5919_v2  ;;  %v4367_v2 = vor.u32 %v4970_v16, %v4364_v0  ;;  %v4239_v19 = vor.u32 %v4938_v1, %v4236_v17 }
 0x176   : > { %2858 = vmatmul.bf16.vlgmr.msrb.gmra.mxu3 %v5921_v3  ;;  %v4986_v3 = vld [vmem:[%s7563_s1 + $0x5b4] sm:$0xf] }
 0x177   : > { %v4431_v39 = vor.u32 %v4986_v3, %v4428_v18  ;;  %2941 = vmatpush.bf16.msra.mxu2 %v4367_v2  ;;  %2883 = vmatpush.bf16.msra.mxu0 %v4239_v19 }
 0x178   : > { %v2598_v38 = vpop.f32.mrf.mxu2  ;;  %v2542_v41 = vpop.f32.mrf.mxu0  ;;  %2912 = vmatpush.bf16.msra.mxu1 %v4303_v12 }
 0x179   : > { %v2599_v15 = vadd.f32 %v2598_v38, %v2570_v36  ;;  %v2627_v29 = vpop.f32.mrf.mxu3  ;;  %v2543_v60 = vadd.f32 %v2542_v41, %v6827_v62  ;;  %v2571_v48 = vpop.f32.mrf.mxu1  ;;  %2970 = vmatpush.bf16.msra.mxu3 %v4431_v39  ;;  %v4356_v62 = vld [vmem:[%s7563_s1 + $0x528] sm:$0xf0] }
 0x17a   : > { %v4359_v7 = vor.u32 %v4968_v14, %v4356_v62  ;;  %v4404_v14 = vld [vmem:[%s7563_s1 + $0x588] sm:$0xf0] }
 0x17b   : > { %v7032_v5 = vadd.f32 %v2627_v29, %v2599_v15  ;;  %v2572_v53 = vadd.f32 %v2571_v48, %v2543_v60  ;;  %2884 = vmatpush.bf16.msra.mxu0 %v4231_v59  ;;  %v4950_v15 = vld [vmem:[%s7563_s1 + $0x494] sm:$0xf]  ;;  %v4284_v29 = vld [vmem:[%s7563_s1 + $0x498] sm:$0xf0]  ;;  %v4964_v60 = vld [vmem:[%s7563_s1 + $0x504] sm:$0xf]  ;;  %v4407_v22 = vor.u32 %v4980_v40, %v4404_v14 }
 0x17c   : > { %2942 = vmatpush.bf16.msra.mxu2 %v4359_v7  ;;  %v4287_v41 = vor.u32 %v4950_v15, %v4284_v29  ;;  %v4948_v7 = vld [vmem:[%s7563_s1 + $0x484] sm:$0xf] }
 0x17d   : > { %2971 = vmatpush.bf16.msra.mxu3 %v4423_v44  ;;  %v4279_v59 = vor.u32 %v4948_v7, %v4276_v61  ;;  %v5024_v40 = vld [vmem:[%s7563_s1 + $0x6e4] sm:$0xf] }
 0x180   : > { %v2600_v24 = vpop.f32.mrf.mxu2  ;;  %v2545_v51 = vpop.f32.mrf.mxu0 }
 0x181   : > { %v2601_v11 = vadd.f32 %v2600_v24, %v2572_v53  ;;  %v2629_v50 = vpop.f32.mrf.mxu3  ;;  %v2546_v56 = vadd.f32 %v2545_v51, %v6858_v31  ;;  %v2574_v58 = vpop.f32.mrf.mxu1  ;;  %v4292_v31 = vld [vmem:[%s7563_s1 + $0x4a8] sm:$0xf0]  ;;  %v4932_v53 = vld [vmem:[%s7563_s1 + $0x404] sm:$0xf] }
 0x182   : > { %v4295_v36 = vor.u32 %v4952_v63, %v4292_v31  ;;  %v4215_v12 = vor.u32 %v4932_v53, %v4212_v54 }
 0x183   : > { %v7059_v6 = vadd.f32 %v2629_v50, %v2601_v11  ;;  %v2575_v23 = vadd.f32 %v2574_v58, %v2546_v56  ;;  %2776 = vmatmul.bf16.gmra.mxu0 %v5983_v45  ;;  %v4348_v45 = vld [vmem:[%s7563_s1 + $0x518] sm:$0xf0]  ;;  %v5042_v56 = vld [vmem:[%s7563_s1 + $0x774] sm:$0xf] }
 0x184   : > { %2805 = vmatmul.bf16.gmra.mxu1 %v5985_v46  ;;  %v4934_v46 = vld [vmem:[%s7563_s1 + $0x414] sm:$0xf] }
 0x185   : > { %2834 = vmatmul.bf16.gmra.mxu2 %v5987_v47  ;;  %v4351_v47 = vor.u32 %v4966_v13, %v4348_v45  ;;  %2913 = vmatpush.bf16.msra.mxu1 %v4295_v36  ;;  %v4223_v0 = vor.u32 %v4934_v46, %v4220_v37  ;;  %v5010_v58 = vld [vmem:[%s7563_s1 + $0x674] sm:$0xf] }
 0x186   : > { %2863 = vmatmul.bf16.gmra.mxu3 %v5989_v49  ;;  %v4982_v49 = vld [vmem:[%s7563_s1 + $0x594] sm:$0xf] }
 0x187   : > { %v4415_v1 = vor.u32 %v4982_v49, %v4412_v9  ;;  %2943 = vmatpush.bf16.msra.mxu2 %v4351_v47  ;;  %2885 = vmatpush.bf16.msra.mxu0 %v4223_v0  ;;  %v5026_v49 = vld [vmem:[%s7563_s1 + $0x6f4] sm:$0xf]  ;;  %v4588_v9 = vld [vmem:[%s7563_s1 + $0x6f8] sm:$0xf0] }
 0x188   : > { %v2603_v16 = vpop.f32.mrf.mxu2  ;;  %v2547_v3 = vpop.f32.mrf.mxu0  ;;  %v4591_v0 = vor.u32 %v5026_v49, %v4588_v9 }
 0x189   : > { %v2604_v2 = vadd.f32 %v2603_v16, %v2575_v23  ;;  %v2632_v17 = vpop.f32.mrf.mxu3  ;;  %v2548_v18 = vadd.f32 %v2547_v3, %v6891_v4  ;;  %v2576_v38 = vpop.f32.mrf.mxu1  ;;  %2972 = vmatpush.bf16.msra.mxu3 %v4415_v1  ;;  %v4340_v4 = vld [vmem:[%s7563_s1 + $0x508] sm:$0xf0]  ;;  %2914 = vmatpush.bf16.msra.mxu1 %v4287_v41  ;;  %v5040_v1 = vld [vmem:[%s7563_s1 + $0x764] sm:$0xf] }
 0x18a   : > { %v4343_v48 = vor.u32 %v4964_v60, %v4340_v4  ;;  %v4516_v3 = vld [vmem:[%s7563_s1 + $0x668] sm:$0xf0] }
 0x18b   : > { %v7090_v19 = vadd.f32 %v2632_v17, %v2604_v2  ;;  %v2577_v39 = vadd.f32 %v2576_v38, %v2548_v18  ;;  %2886 = vmatpush.bf16.msra.mxu0 %v4215_v12  ;;  %v5008_v2 = vld [vmem:[%s7563_s1 + $0x664] sm:$0xf]  ;;  %v4580_v12 = vld [vmem:[%s7563_s1 + $0x6e8] sm:$0xf0] }
 0x18c   : > { %2944 = vmatpush.bf16.msra.mxu2 %v4343_v48  ;;  %v5056_v18 = vld [vmem:[%s7563_s1 + $0x7e4] sm:$0xf]  ;;  %v4519_v38 = vor.u32 %v5008_v2, %v4516_v3  ;;  %v4564_v3 = vld [vmem:[%s7563_s1 + $0x6c8] sm:$0xf0] }
 0x18d   : > { %2973 = vmatpush.bf16.msra.mxu3 %v4407_v22  ;;  %2915 = vmatpush.bf16.msra.mxu1 %v4279_v59  ;;  %v4636_v22 = vld [vmem:[%s7563_s1 + $0x758] sm:$0xf0] }
 0x190   : > { %v2605_v62 = vpop.f32.mrf.mxu2  ;;  %v2550_v24 = vpop.f32.mrf.mxu0 }
 0x191   : > { %v2606_v52 = vadd.f32 %v2605_v62, %v2577_v39  ;;  %v2634_v10 = vpop.f32.mrf.mxu3  ;;  %v2551_v44 = vadd.f32 %v2550_v24, %v6916_v43  ;;  %v2579_v11 = vpop.f32.mrf.mxu1  ;;  %v4652_v43 = vld [vmem:[%s7563_s1 + $0x778] sm:$0xf0]  ;;  %3024 = vmatpush.bf16.msrb.mxu1 %v4591_v0  ;;  %v4708_v39 = vld [vmem:[%s7563_s1 + $0x7e8] sm:$0xf0]  ;;  %v4583_v62 = vor.u32 %v5024_v40, %v4580_v12  ;;  %v5050_v12 = vld [vmem:[%s7563_s1 + $0x7b4] sm:$0xf] }
 0x192   : > { %v4655_v23 = vor.u32 %v5042_v56, %v4652_v43  ;;  %v4711_v15 = vor.u32 %v5056_v18, %v4708_v39  ;;  %v5022_v43 = vld [vmem:[%s7563_s1 + $0x6d4] sm:$0xf]  ;;  %v4492_v40 = vld [vmem:[%s7563_s1 + $0x638] sm:$0xf0] }
 0x193   : > { %v7123_v50 = vadd.f32 %v2634_v10, %v2606_v52  ;;  %v2580_v51 = vadd.f32 %v2579_v11, %v2551_v44  ;;  %2781 = vmatmul.bf16.gmra.mxu0 %v6051_v32  ;;  %v4524_v32 = vld [vmem:[%s7563_s1 + $0x678] sm:$0xf0] }
 0x194   : > { %2810 = vmatmul.bf16.gmra.mxu1 %v6053_v33  ;;  %v5058_v33 = vld [vmem:[%s7563_s1 + $0x7f4] sm:$0xf]  ;;  %v4527_v63 = vor.u32 %v5010_v58, %v4524_v32  ;;  %3053 = vmatpush.bf16.msrb.mxu2 %v4655_v23  ;;  %v4572_v58 = vld [vmem:[%s7563_s1 + $0x6d8] sm:$0xf0] }
 0x195   : > { %2839 = vmatmul.bf16.gmra.mxu2 %v6055_v34  ;;  %v4716_v34 = vld [vmem:[%s7563_s1 + $0x7f8] sm:$0xf0]  ;;  %3025 = vmatpush.bf16.msrb.mxu1 %v4583_v62  ;;  %v4575_v32 = vor.u32 %v5022_v43, %v4572_v58  ;;  %v4484_v58 = vld [vmem:[%s7563_s1 + $0x628] sm:$0xf0] }
 0x196   : > { %2868 = vmatmul.bf16.gmra.mxu3 %v6057_v35  ;;  %v4719_v31 = vor.u32 %v5058_v33, %v4716_v34  ;;  %2995 = vmatpush.bf16.msrb.mxu0 %v4527_v63  ;;  %v5036_v33 = vld [vmem:[%s7563_s1 + $0x744] sm:$0xf]  ;;  %v4500_v63 = vld [vmem:[%s7563_s1 + $0x648] sm:$0xf0] }
 0x197   : > { %v5004_v34 = vld [vmem:[%s7563_s1 + $0x644] sm:$0xf] }
 0x198   : > { %v2608_v35 = vpop.f32.mrf.mxu2  ;;  %v2552_v45 = vpop.f32.mrf.mxu0  ;;  %3082 = vmatpush.bf16.msrb.mxu3 %v4719_v31  ;;  %v5052_v31 = vld [vmem:[%s7563_s1 + $0x7c4] sm:$0xf] }
 0x199   : > { %v2609_v36 = vadd.f32 %v2608_v35, %v2580_v51  ;;  %v2637_v13 = vpop.f32.mrf.mxu3  ;;  %v2553_v46 = vadd.f32 %v2552_v45, %v6943_v42  ;;  %v2581_v47 = vpop.f32.mrf.mxu1  ;;  %v4644_v42 = vld [vmem:[%s7563_s1 + $0x768] sm:$0xf0]  ;;  %3026 = vmatpush.bf16.msrb.mxu1 %v4575_v32  ;;  %v4503_v45 = vor.u32 %v5004_v34, %v4500_v63 }
 0x19a   : > { %v4647_v17 = vor.u32 %v5040_v1, %v4644_v42  ;;  %2996 = vmatpush.bf16.msrb.mxu0 %v4519_v38  ;;  %v7623_v38 = vld [vmem:[#allocation3_spill] sm:$0xff]  ;;  %v4676_v32 = vld [vmem:[%s7563_s1 + $0x7a8] sm:$0xf0] }
 0x19b   : > { %v7148_v37 = vadd.f32 %v2637_v13, %v2609_v36  ;;  %v2582_v16 = vadd.f32 %v2581_v47, %v2553_v46  ;;  %v5169_v36 = vld [vmem:[%s7564_s2] sm:$0x3]  ;;  %v4692_v46 = vld [vmem:[%s7563_s1 + $0x7c8] sm:$0xf0] }
 0x19c   : > { %3054 = vmatpush.bf16.msrb.mxu2 %v4647_v17  ;;  %3083 = vmatpush.bf16.msrb.mxu3 %v4711_v15  ;;  %v7232_v13 = vperm.slane %v5169_v36, 1  ;;  %v4695_v47 = vor.u32 %v5052_v31, %v4692_v46  ;;  %v5020_v17 = vld [vmem:[%s7563_s1 + $0x6c4] sm:$0xf]  ;;  %v7624_v15 = vld [vmem:[#allocation4_spill] sm:$0xff] }
 0x19d   : > { %v4567_v39 = vor.u32 %v5020_v17, %v4564_v3  ;;  %v7630_v17 = vld [vmem:[#allocation10_spill] sm:$0xff]  ;;  %v5030_v3 = vld [vmem:[%s7563_s1 + $0x714] sm:$0xf] }
 0x19f   : > { %3027 = vmatpush.bf16.msrb.mxu1 %v4567_v39 }
 0x1a0   : > { %v2610_v29 = vpop.f32.mrf.mxu2  ;;  %v2555_v4 = vpop.f32.mrf.mxu0 }
 0x1a1   : > { %v2611_v41 = vadd.f32 %v2610_v29, %v2582_v16  ;;  %v2639_v60 = vpop.f32.mrf.mxu3  ;;  %v2556_v48 = vadd.f32 %v2555_v4, %v6974_v57  ;;  %v2584_v53 = vpop.f32.mrf.mxu1  ;;  %v5038_v57 = vld [vmem:[%s7563_s1 + $0x754] sm:$0xf]  ;;  %v4620_v4 = vld [vmem:[%s7563_s1 + $0x738] sm:$0xf0] }
 0x1a2   : > { %v4639_v7 = vor.u32 %v5038_v57, %v4636_v22  ;;  %v7625_v29 = vld [vmem:[#allocation5_spill] sm:$0xff] }
 0x1a3   : > { %v7175_v54 = vadd.f32 %v2639_v60, %v2611_v41  ;;  %v2585_v14 = vadd.f32 %v2584_v53, %v2556_v48  ;;  %2786 = vmatmul.bf16.gmra.mxu0 %v6113_v25  ;;  %v5006_v25 = vld [vmem:[%s7563_s1 + $0x654] sm:$0xf]  ;;  %v7626_v41 = vld [vmem:[#allocation6_spill] sm:$0xff] }
 0x1a4   : > { %2815 = vmatmul.bf16.gmra.mxu1 %v6115_v26  ;;  %v4508_v26 = vld [vmem:[%s7563_s1 + $0x658] sm:$0xf0]  ;;  %3055 = vmatpush.bf16.msrb.mxu2 %v4639_v7  ;;  %v5034_v60 = vld [vmem:[%s7563_s1 + $0x734] sm:$0xf] }
 0x1a5   : > { %2844 = vmatmul.bf16.gmra.mxu2 %v6117_v27  ;;  %v5054_v27 = vld [vmem:[%s7563_s1 + $0x7d4] sm:$0xf]  ;;  %v4511_v52 = vor.u32 %v5006_v25, %v4508_v26  ;;  %v4623_v53 = vor.u32 %v5034_v60, %v4620_v4 }
 0x1a6   : > { %2873 = vmatmul.bf16.gmra.mxu3 %v6119_v28  ;;  %v4700_v28 = vld [vmem:[%s7563_s1 + $0x7d8] sm:$0xf0]  ;;  %v5002_v48 = vld [vmem:[%s7563_s1 + $0x634] sm:$0xf] }
 0x1a7   : > { %v4703_v10 = vor.u32 %v5054_v27, %v4700_v28  ;;  %2997 = vmatpush.bf16.msrb.mxu0 %v4511_v52  ;;  %v4495_v57 = vor.u32 %v5002_v48, %v4492_v40  ;;  %v5018_v52 = vld [vmem:[%s7563_s1 + $0x6b4] sm:$0xf] }
 0x1a8   : > { %v2613_v61 = vpop.f32.mrf.mxu2  ;;  %v2557_v44 = vpop.f32.mrf.mxu0 }
 0x1a9   : > { %v2614_v24 = vadd.f32 %v2613_v61, %v2585_v14  ;;  %v2642_v59 = vpop.f32.mrf.mxu3  ;;  %v2558_v11 = vadd.f32 %v2557_v44, %v7001_v20  ;;  %v2586_v51 = vpop.f32.mrf.mxu1  ;;  %3084 = vmatpush.bf16.msrb.mxu3 %v4703_v10  ;;  %v4628_v20 = vld [vmem:[%s7563_s1 + $0x748] sm:$0xf0]  ;;  %v4684_v14 = vld [vmem:[%s7563_s1 + $0x7b8] sm:$0xf0]  ;;  %v5032_v44 = vld [vmem:[%s7563_s1 + $0x724] sm:$0xf] }
 0x1aa   : > { %v4631_v35 = vor.u32 %v5036_v33, %v4628_v20  ;;  %v4687_v22 = vor.u32 %v5050_v12, %v4684_v14  ;;  %v4556_v10 = vld [vmem:[%s7563_s1 + $0x6b8] sm:$0xf0] }
 0x1ab   : > { %v7206_v56 = vadd.f32 %v2642_v59, %v2614_v24  ;;  %v2587_v23 = vadd.f32 %v2586_v51, %v2558_v11  ;;  %2998 = vmatpush.bf16.msrb.mxu0 %v4503_v45  ;;  %v4559_v59 = vor.u32 %v5018_v52, %v4556_v10  ;;  %v4612_v11 = vld [vmem:[%s7563_s1 + $0x728] sm:$0xf0]  ;;  %v5000_v51 = vld [vmem:[%s7563_s1 + $0x624] sm:$0xf] }
 0x1ac   : > { %3056 = vmatpush.bf16.msrb.mxu2 %v4631_v35  ;;  %v4615_v43 = vor.u32 %v5032_v44, %v4612_v11  ;;  %v4487_v33 = vor.u32 %v5000_v51, %v4484_v58  ;;  %v4996_v52 = vld [vmem:[%s7563_s1 + $0x604] sm:$0xf]  ;;  %v4660_v44 = vld [vmem:[%s7563_s1 + $0x788] sm:$0xf0] }
 0x1ad   : > { %3085 = vmatpush.bf16.msrb.mxu3 %v4695_v47  ;;  %3028 = vmatpush.bf16.msrb.mxu1 %v4559_v59  ;;  %v5016_v47 = vld [vmem:[%s7563_s1 + $0x6a4] sm:$0xf] }
 0x1ae   : > { %v5044_v59 = vld [vmem:[%s7563_s1 + $0x784] sm:$0xf] }
 0x1af   : > { %2999 = vmatpush.bf16.msrb.mxu0 %v4495_v57  ;;  %v4663_v51 = vor.u32 %v5044_v59, %v4660_v44  ;;  %v5012_v58 = vld [vmem:[%s7563_s1 + $0x684] sm:$0xf] }
 0x1b0   : > { %v2615_v49 = vpop.f32.mrf.mxu2  ;;  %v2656_v0 = vpop.f32.mrf.mxu0  ;;  %3057 = vmatpush.bf16.msrb.mxu2 %v4623_v53 }
 0x1b1   : > { %v2616_v9 = vadd.f32 %v2615_v49, %v2587_v23  ;;  %v2644_v16 = vpop.f32.mrf.mxu3  ;;  %v2657_v1 = vadd.f32 %v2656_v0, %v7232_v13  ;;  %v2685_v42 = vpop.f32.mrf.mxu1  ;;  %3086 = vmatpush.bf16.msrb.mxu3 %v4687_v22  ;;  %v5048_v23 = vld [vmem:[%s7563_s1 + $0x7a4] sm:$0xf]  ;;  %v4548_v49 = vld [vmem:[%s7563_s1 + $0x6a8] sm:$0xf0]  ;;  %v5014_v22 = vld [vmem:[%s7563_s1 + $0x694] sm:$0xf] }
 0x1b2   : > { %v4679_v20 = vor.u32 %v5048_v23, %v4676_v32  ;;  %v4551_v0 = vor.u32 %v5016_v47, %v4548_v49  ;;  %v4532_v23 = vld [vmem:[%s7563_s1 + $0x688] sm:$0xf0]  ;;  %v7633_v49 = vld [vmem:[#allocation13_spill] sm:$0xff] }
 0x1b3   : > { %v7238_v2 = vadd.f32 %v2644_v16, %v2616_v9  ;;  %v2686_v18 = vadd.f32 %v2685_v42, %v2657_v1  ;;  %2887 = vmatmul.bf16.vlgmr.msra.gmra.mxu0 %v7623_v38  ;;  %v7627_v16 = vld [vmem:[#allocation7_spill] sm:$0xff]  ;;  %v7628_v1 = vld [vmem:[#allocation8_spill] sm:$0xff]  ;;  %v7629_v42 = vld [vmem:[#allocation9_spill] sm:$0xff] }
 0x1b4   : > { %2916 = vmatmul.bf16.vlgmr.msra.gmra.mxu1 %v7624_v15  ;;  %3058 = vmatpush.bf16.msrb.mxu2 %v4615_v43  ;;  %v4998_v38 = vld [vmem:[%s7563_s1 + $0x614] sm:$0xf]  ;;  %v4476_v15 = vld [vmem:[%s7563_s1 + $0x618] sm:$0xf0]  ;;  %v7632_v47 = vld [vmem:[#allocation12_spill] sm:$0xff] }
 0x1b5   : > { %2945 = vmatmul.bf16.vlgmr.msra.gmra.mxu2 %v7625_v29  ;;  %3000 = vmatpush.bf16.msrb.mxu0 %v4487_v33  ;;  %v5046_v29 = vld [vmem:[%s7563_s1 + $0x794] sm:$0xf]  ;;  %v4479_v4 = vor.u32 %v4998_v38, %v4476_v15 }
 0x1b6   : > { %2974 = vmatmul.bf16.vlgmr.msra.gmra.mxu3 %v7626_v41  ;;  %3029 = vmatpush.bf16.msrb.mxu1 %v4551_v0  ;;  %v4668_v41 = vld [vmem:[%s7563_s1 + $0x798] sm:$0xf0] }
 0x1b7   : > { %3087 = vmatpush.bf16.msrb.mxu3 %v4679_v20  ;;  %v4671_v48 = vor.u32 %v5046_v29, %v4668_v41 }
 0x1b8   : > { %v2714_v62 = vpop.f32.mrf.mxu2  ;;  %v2658_v26 = vpop.f32.mrf.mxu0 }
 0x1b9   : > { %v2715_v25 = vadd.f32 %v2714_v62, %v2686_v18  ;;  %v2743_v7 = vpop.f32.mrf.mxu3  ;;  %v2659_v27 = vadd.f32 %v2658_v26, %v7232_v13  ;;  %v2687_v28 = vpop.f32.mrf.mxu1  ;;  %v4604_v18 = vld [vmem:[%s7563_s1 + $0x718] sm:$0xf0]  ;;  %3001 = vmatpush.bf16.msrb.mxu0 %v4479_v4 }
 0x1ba   : > { %v4607_v39 = vor.u32 %v5030_v3, %v4604_v18 }
 0x1bb   : > { %v7269_v61 = vadd.f32 %v2743_v7, %v2715_v25  ;;  %v2688_v24 = vadd.f32 %v2687_v28, %v2659_v27  ;;  %3088 = vmatpush.bf16.msrb.mxu3 %v4671_v48  ;;  %v4540_v25 = vld [vmem:[%s7563_s1 + $0x698] sm:$0xf0]  ;;  %v5028_v27 = vld [vmem:[%s7563_s1 + $0x704] sm:$0xf]  ;;  %v4596_v28 = vld [vmem:[%s7563_s1 + $0x708] sm:$0xf0] }
 0x1bc   : > { %3059 = vmatpush.bf16.msrb.mxu2 %v4607_v39  ;;  %v4543_v26 = vor.u32 %v5014_v22, %v4540_v25  ;;  %v4599_v10 = vor.u32 %v5028_v27, %v4596_v28 }
 0x1be   : > { %3030 = vmatpush.bf16.msrb.mxu1 %v4543_v26 }
 0x1bf   : > { %3089 = vmatpush.bf16.msrb.mxu3 %v4663_v51 }
 0x1c0   : > { %v2716_v34 = vpop.f32.mrf.mxu2  ;;  %v2661_v31 = vpop.f32.mrf.mxu0  ;;  %3060 = vmatpush.bf16.msrb.mxu2 %v4599_v10 }
 0x1c1   : > { %v2717_v35 = vadd.f32 %v2716_v34, %v2688_v24  ;;  %v2745_v63 = vpop.f32.mrf.mxu3  ;;  %v2662_v36 = vadd.f32 %v2661_v31, %v7232_v13  ;;  %v2690_v45 = vpop.f32.mrf.mxu1  ;;  %v4468_v24 = vld [vmem:[%s7563_s1 + $0x608] sm:$0xf0]  ;;  %v4535_v34 = vor.u32 %v5012_v58, %v4532_v23 }
 0x1c2   : > { %v4471_v11 = vor.u32 %v4996_v52, %v4468_v24 }
 0x1c3   : > { %v7296_v46 = vadd.f32 %v2745_v63, %v2717_v35  ;;  %v2691_v9 = vadd.f32 %v2690_v45, %v2662_v36  ;;  %2892 = vmatmul.bf16.gmra.mxu0 %v7627_v16  ;;  %3031 = vmatpush.bf16.msrb.mxu1 %v4535_v34  ;;  %v7631_v45 = vld [vmem:[#allocation11_spill] sm:$0xff] }
 0x1c4   : > { %2921 = vmatmul.bf16.gmra.mxu1 %v7628_v1  ;;  %3002 = vmatpush.bf16.msrb.mxu0 %v4471_v11 }
 0x1c5   : > { %2950 = vmatmul.bf16.gmra.mxu2 %v7629_v42 }
 0x1c6   : > { %2979 = vmatmul.bf16.gmra.mxu3 %v7630_v17 }
 0x1c8   : > { %v2719_v60 = vpop.f32.mrf.mxu2  ;;  %v2663_v12 = vpop.f32.mrf.mxu0 }
 0x1c9   : > { %v2720_v53 = vadd.f32 %v2719_v60, %v2691_v9  ;;  %v2748_v40 = vpop.f32.mrf.mxu3  ;;  %v2664_v14 = vadd.f32 %v2663_v12, %v7232_v13  ;;  %v2692_v62 = vpop.f32.mrf.mxu1  ;;  %v7634_v9 = vld [vmem:[#allocation14_spill] sm:$0xff]  ;;  %v7636_v12 = vld [vmem:[#allocation16_spill] sm:$0xff] }
 0x1cb   : > { %v7327_v57 = vadd.f32 %v2748_v40, %v2720_v53  ;;  %v2693_v7 = vadd.f32 %v2692_v62, %v2664_v14  ;;  %v7635_v40 = vld [vmem:[#allocation15_spill] sm:$0xff]  ;;  %v7637_v14 = vld [vmem:[#allocation17_spill] sm:$0xff]  ;;  %v7638_v62 = vld [vmem:[#allocation18_spill] sm:$0xff] }
 0x1d0   : > { %v2721_v43 = vpop.f32.mrf.mxu2  ;;  %v2666_v20 = vpop.f32.mrf.mxu0 }
 0x1d1   : > { %v2722_v32 = vadd.f32 %v2721_v43, %v2693_v7  ;;  %v2750_v33 = vpop.f32.mrf.mxu3  ;;  %v2667_v35 = vadd.f32 %v2666_v20, %v7232_v13  ;;  %v2695_v63 = vpop.f32.mrf.mxu1  ;;  %v7641_v20 = vld [vmem:[#allocation21_spill] sm:$0xff] }
 0x1d3   : > { %v7360_v31 = vadd.f32 %v2750_v33, %v2722_v32  ;;  %v2696_v36 = vadd.f32 %v2695_v63, %v2667_v35  ;;  %2897 = vmatmul.bf16.gmra.mxu0 %v7631_v45  ;;  %v7639_v32 = vld [vmem:[#allocation19_spill] sm:$0xff]  ;;  %v7640_v33 = vld [vmem:[#allocation20_spill] sm:$0xff] }
 0x1d4   : > { %2926 = vmatmul.bf16.gmra.mxu1 %v7632_v47 }
 0x1d5   : > { %2955 = vmatmul.bf16.gmra.mxu2 %v7633_v49 }
 0x1d6   : > { %2984 = vmatmul.bf16.gmra.mxu3 %v7634_v9 }
 0x1d8   : > { %v2724_v16 = vpop.f32.mrf.mxu2  ;;  %v2668_v42 = vpop.f32.mrf.mxu0 }
 0x1d9   : > { %v2725_v0 = vadd.f32 %v2724_v16, %v2696_v36  ;;  %v2753_v1 = vpop.f32.mrf.mxu3  ;;  %v2669_v17 = vadd.f32 %v2668_v42, %v7232_v13  ;;  %v2697_v3 = vpop.f32.mrf.mxu1 }
 0x1db   : > { %v7367_v18 = vadd.f32 %v2753_v1, %v2725_v0  ;;  %v2698_v38 = vadd.f32 %v2697_v3, %v2669_v17 }
 0x1e0   : > { %v2726_v39 = vpop.f32.mrf.mxu2  ;;  %v2671_v41 = vpop.f32.mrf.mxu0 }
 0x1e1   : > { %v2727_v15 = vadd.f32 %v2726_v39, %v2698_v38  ;;  %v2755_v29 = vpop.f32.mrf.mxu3  ;;  %v2672_v60 = vadd.f32 %v2671_v41, %v7232_v13  ;;  %v2700_v4 = vpop.f32.mrf.mxu1  ;;  %v7643_v39 = vld [vmem:[#allocation23_spill] sm:$0xff] }
 0x1e3   : > { %v7370_v48 = vadd.f32 %v2755_v29, %v2727_v15  ;;  %v2701_v53 = vadd.f32 %v2700_v4, %v2672_v60  ;;  %2902 = vmatmul.bf16.gmra.mxu0 %v7635_v40  ;;  %v7644_v15 = vld [vmem:[#allocation24_spill] sm:$0xff]  ;;  %v7645_v29 = vld [vmem:[#allocation25_spill] sm:$0xff] }
 0x1e4   : > { %2931 = vmatmul.bf16.gmra.mxu1 %v7636_v12 }
 0x1e5   : > { %2960 = vmatmul.bf16.gmra.mxu2 %v7637_v14 }
 0x1e6   : > { %2989 = vmatmul.bf16.gmra.mxu3 %v7638_v62 }
 0x1e8   : > { %v2729_v22 = vpop.f32.mrf.mxu2  ;;  %v2673_v26 = vpop.f32.mrf.mxu0 }
 0x1e9   : > { %v2730_v25 = vadd.f32 %v2729_v22, %v2701_v53  ;;  %v2758_v7 = vpop.f32.mrf.mxu3  ;;  %v2674_v27 = vadd.f32 %v2673_v26, %v7232_v13  ;;  %v2702_v28 = vpop.f32.mrf.mxu1  ;;  %v7642_v13 = vld [vmem:[#allocation22_spill] sm:$0xff] }
 0x1eb   : > { %v7377_v52 = vadd.f32 %v2758_v7, %v2730_v25  ;;  %v2703_v10 = vadd.f32 %v2702_v28, %v2674_v27 }
 0x1f0   : > { %v2731_v24 = vpop.f32.mrf.mxu2  ;;  %v2772_v11 = vpop.f32.mrf.mxu0 }
 0x1f1   : > { %v2732_v59 = vadd.f32 %v2731_v24, %v2703_v10  ;;  %v2760_v44 = vpop.f32.mrf.mxu3  ;;  %v2773_v51 = vadd.f32 %v2772_v11, %v7269_v61  ;;  %v2801_v43 = vpop.f32.mrf.mxu1  ;;  %v7647_v24 = vld [vmem:[#allocation27_spill] sm:$0xff] }
 0x1f3   : > { %v7380_v58 = vadd.f32 %v2760_v44, %v2732_v59  ;;  %v2802_v23 = vadd.f32 %v2801_v43, %v2773_v51  ;;  %3003 = vmatmul.bf16.vlgmr.msrb.gmra.mxu0 %v7639_v32  ;;  %v7648_v59 = vld [vmem:[#allocation28_spill] sm:$0xff]  ;;  %v7649_v44 = vld [vmem:[#allocation29_spill] sm:$0xff] }
 0x1f4   : > { %3032 = vmatmul.bf16.vlgmr.msrb.gmra.mxu1 %v7640_v33 }
 0x1f5   : > { %3061 = vmatmul.bf16.vlgmr.msrb.gmra.mxu2 %v7641_v20 }
 0x1f6   : > { %3090 = vmatmul.bf16.vlgmr.msrb.gmra.mxu3 %v7642_v13 }
 0x1f8   : > { %v2830_v34 = vpop.f32.mrf.mxu2  ;;  %v2774_v36 = vpop.f32.mrf.mxu0 }
 0x1f9   : > { %v2831_v35 = vadd.f32 %v2830_v34, %v2802_v23  ;;  %v2859_v63 = vpop.f32.mrf.mxu3  ;;  %v2775_v45 = vadd.f32 %v2774_v36, %v7296_v46  ;;  %v2803_v47 = vpop.f32.mrf.mxu1  ;;  %v7646_v46 = vld [vmem:[#allocation26_spill] sm:$0xff] }
 0x1fb   : > { %v7387_v61 = vadd.f32 %v2859_v63, %v2831_v35  ;;  %v2804_v49 = vadd.f32 %v2803_v47, %v2775_v45 }
 0x200   : > { %v2832_v9 = vpop.f32.mrf.mxu2  ;;  %v2777_v1 = vpop.f32.mrf.mxu0 }
 0x201   : > { %v2833_v16 = vadd.f32 %v2832_v9, %v2804_v49  ;;  %v2861_v0 = vpop.f32.mrf.mxu3  ;;  %v2778_v42 = vadd.f32 %v2777_v1, %v7327_v57  ;;  %v2806_v17 = vpop.f32.mrf.mxu1 }
 0x203   : > { %v7390_v3 = vadd.f32 %v2861_v0, %v2833_v16  ;;  %v2807_v38 = vadd.f32 %v2806_v17, %v2778_v42  ;;  %3008 = vmatmul.bf16.gmra.mxu0 %v7643_v39 }
 0x204   : > { %3037 = vmatmul.bf16.gmra.mxu1 %v7644_v15 }
 0x205   : > { %3066 = vmatmul.bf16.gmra.mxu2 %v7645_v29 }
 0x206   : > { %3095 = vmatmul.bf16.gmra.mxu3 %v7646_v46 }
 0x208   : > { %v2835_v41 = vpop.f32.mrf.mxu2  ;;  %v2779_v53 = vpop.f32.mrf.mxu0 }
 0x209   : > { %v2836_v60 = vadd.f32 %v2835_v41, %v2807_v38  ;;  %v2864_v4 = vpop.f32.mrf.mxu3  ;;  %v2780_v40 = vadd.f32 %v2779_v53, %v7360_v31  ;;  %v2808_v12 = vpop.f32.mrf.mxu1  ;;  %v7650_v31 = vld [vmem:[#allocation30_spill] sm:$0xff] }
 0x20b   : > { %v7397_v57 = vadd.f32 %v2864_v4, %v2836_v60  ;;  %v2809_v14 = vadd.f32 %v2808_v12, %v2780_v40 }
 0x210   : > { %v2837_v62 = vpop.f32.mrf.mxu2  ;;  %v2782_v7 = vpop.f32.mrf.mxu0 }
 0x211   : > { %v2838_v22 = vadd.f32 %v2837_v62, %v2809_v14  ;;  %v2866_v25 = vpop.f32.mrf.mxu3  ;;  %v2783_v26 = vadd.f32 %v2782_v7, %v7367_v18  ;;  %v2811_v27 = vpop.f32.mrf.mxu1 }
 0x213   : > { %v7400_v28 = vadd.f32 %v2866_v25, %v2838_v22  ;;  %v2812_v10 = vadd.f32 %v2811_v27, %v2783_v26  ;;  %3013 = vmatmul.bf16.gmra.mxu0 %v7647_v24 }
 0x214   : > { %3042 = vmatmul.bf16.gmra.mxu1 %v7648_v59 }
 0x215   : > { %3071 = vmatmul.bf16.gmra.mxu2 %v7649_v44 }
 0x216   : > { %3100 = vmatmul.bf16.gmra.mxu3 %v7650_v31 }
 0x218   : > { %v2840_v11 = vpop.f32.mrf.mxu2  ;;  %v2784_v23 = vpop.f32.mrf.mxu0 }
 0x219   : > { %v2841_v51 = vadd.f32 %v2840_v11, %v2812_v10  ;;  %v2869_v43 = vpop.f32.mrf.mxu3  ;;  %v2785_v32 = vadd.f32 %v2784_v23, %v7370_v48  ;;  %v2813_v33 = vpop.f32.mrf.mxu1 }
 0x21b   : > { %v7407_v18 = vadd.f32 %v2869_v43, %v2841_v51  ;;  %v2814_v20 = vadd.f32 %v2813_v33, %v2785_v32 }
 0x220   : > { %v2842_v13 = vpop.f32.mrf.mxu2  ;;  %v2787_v63 = vpop.f32.mrf.mxu0 }
 0x221   : > { %v2843_v34 = vadd.f32 %v2842_v13, %v2814_v20  ;;  %v2871_v35 = vpop.f32.mrf.mxu3  ;;  %v2788_v36 = vadd.f32 %v2787_v63, %v7377_v52  ;;  %v2816_v45 = vpop.f32.mrf.mxu1 }
 0x223   : > { %v7410_v47 = vadd.f32 %v2871_v35, %v2843_v34  ;;  %v2817_v49 = vadd.f32 %v2816_v45, %v2788_v36  ;;  %3018 = vmatmul.bf16.gmra.mxu0 %v6702_v30 }
 0x224   : > { %3047 = vmatmul.bf16.gmra.mxu1 %v6704_v55 }
 0x225   : > { %3076 = vmatmul.bf16.gmra.mxu2 %v6706_v8 }
 0x226   : > { %3105 = vmatmul.bf16.gmra.mxu3 %v6709_v21 }
 0x228   : > { %v2845_v48 = vpop.f32.mrf.mxu2  ;;  %v2789_v0 = vpop.f32.mrf.mxu0 }
 0x229   : > { %v2846_v9 = vadd.f32 %v2845_v48, %v2817_v49  ;;  %v2874_v16 = vpop.f32.mrf.mxu3  ;;  %v2790_v1 = vadd.f32 %v2789_v0, %v7380_v58  ;;  %v2818_v42 = vpop.f32.mrf.mxu1 }
 0x22b   : > { %v7417_v52 = vadd.f32 %v2874_v16, %v2846_v9  ;;  %v2819_v17 = vadd.f32 %v2818_v42, %v2790_v1 }
 0x230   : > { %v2847_v38 = vpop.f32.mrf.mxu2  ;;  %v2888_v30 = vpop.f32.mrf.mxu0 }
 0x231   : > { %v2848_v39 = vadd.f32 %v2847_v38, %v2819_v17  ;;  %v2876_v15 = vpop.f32.mrf.mxu3  ;;  %v2917_v29 = vpop.f32.mrf.mxu1  ;;  %v2889_v43 = vadd.f32 %v2888_v30, %v7387_v61 }
 0x233   : > { %v7419_v55 = vadd.f32 %v2876_v15, %v2848_v39  ;;  %v2918_v13 = vadd.f32 %v2917_v29, %v2889_v43 }
 0x238   : > { %v2946_v8 = vpop.f32.mrf.mxu2  ;;  %v2890_v21 = vpop.f32.mrf.mxu0 }
 0x239   : > { %v2975_v46 = vpop.f32.mrf.mxu3  ;;  %v2919_v41 = vpop.f32.mrf.mxu1  ;;  %v2947_v34 = vadd.f32 %v2946_v8, %v2918_v13  ;;  %v2891_v35 = vadd.f32 %v2890_v21, %v7390_v3 }
 0x23b   : > { %v2976_v36 = vadd.f32 %v2975_v46, %v2947_v34  ;;  %v2920_v48 = vadd.f32 %v2919_v41, %v2891_v35  ;;  %v3111_v46 = vmax.f32 %v7032_v5, 0.0 }
 0x240   : > { %v2948_v60 = vpop.f32.mrf.mxu2  ;;  %v2893_v53 = vpop.f32.mrf.mxu0 }
 0x241   : > { %v2977_v4 = vpop.f32.mrf.mxu3  ;;  %v2922_v40 = vpop.f32.mrf.mxu1  ;;  %v2949_v16 = vadd.f32 %v2948_v60, %v2920_v48  ;;  %v2894_v0 = vadd.f32 %v2893_v53, %v7397_v57 }
 0x243   : > { %v2978_v17 = vadd.f32 %v2977_v4, %v2949_v16  ;;  %v2923_v30 = vadd.f32 %v2922_v40, %v2894_v0 }
 0x248   : > { %v2951_v58 = vpop.f32.mrf.mxu2  ;;  %v2895_v14 = vpop.f32.mrf.mxu0 }
 0x249   : > { %v2980_v12 = vpop.f32.mrf.mxu3  ;;  %v2924_v62 = vpop.f32.mrf.mxu1  ;;  %v2952_v21 = vadd.f32 %v2951_v58, %v2923_v30  ;;  %v2896_v60 = vadd.f32 %v2895_v14, %v7400_v28  ;;  %v3113_v58 = vmax.f32 %v7059_v6, 0.0  ;;  %v3115_v6 = vmax.f32 %v7090_v19, 0.0 }
 0x24b   : > { %v2981_v13 = vadd.f32 %v2980_v12, %v2952_v21 }
 0x250   : > { %v2953_v22 = vpop.f32.mrf.mxu2  ;;  %v2898_v7 = vpop.f32.mrf.mxu0 }
 0x251   : > { %v7421_v25 = vpop.f32.mrf.mxu3  ;;  %v7423_v26 = vpop.f32.mrf.mxu1  ;;  %v2899_v14 = vadd.f32 %v2898_v7, %v7407_v18 }
 0x258   : > { %v7425_v27 = vpop.f32.mrf.mxu2  ;;  %v7429_v24 = vpop.f32.mrf.mxu0 }
 0x259   : > { %v7427_v10 = vpop.f32.mrf.mxu3  ;;  %v7431_v59 = vpop.f32.mrf.mxu1  ;;  %v2901_v7 = vadd.f32 %v7429_v24, %v7410_v47 }
 0x25b   : > { %v2930_v21 = vadd.f32 %v7431_v59, %v2901_v7 }
 0x260   : > { %v7433_v44 = vpop.f32.mrf.mxu2  ;;  %v7437_v11 = vpop.f32.mrf.mxu0 }
 0x261   : > { %v7435_v31 = vpop.f32.mrf.mxu3  ;;  %v7439_v51 = vpop.f32.mrf.mxu1  ;;  %v2904_v24 = vadd.f32 %v7437_v11, %v7417_v52 }
 0x268   : > { %v7442_v23 = vpop.f32.mrf.mxu2  ;;  %v7446_v33 = vpop.f32.mrf.mxu0 }
 0x269   : > { %v7444_v32 = vpop.f32.mrf.mxu3  ;;  %v7448_v20 = vpop.f32.mrf.mxu1  ;;  %v2906_v11 = vadd.f32 %v7446_v33, %v7419_v55 }
 0x270   : > { %v7451_v63 = vpop.f32.mrf.mxu2  ;;  %v3004_v49 = vpop.f32.mrf.mxu0 }
 0x271   : > { %v7453_v45 = vpop.f32.mrf.mxu3  ;;  %v3033_v61 = vpop.f32.mrf.mxu1  ;;  %v3005_v9 = vadd.f32 %v3004_v49, %v2976_v36  ;;  %v2925_v36 = vadd.f32 %v2924_v62, %v2896_v60  ;;  %v2928_v62 = vadd.f32 %v7423_v26, %v2899_v14  ;;  %v2959_v60 = vadd.f32 %v7433_v44, %v2930_v21 }
 0x272   : > { %v3119_v44 = vmax.f32 %v7148_v37, 0.0  ;;  %v2935_v14 = vadd.f32 %v7448_v20, %v2906_v11 }
 0x273   : > { %v3034_v1 = vadd.f32 %v3033_v61, %v3005_v9  ;;  %v2954_v61 = vadd.f32 %v2953_v22, %v2925_v36  ;;  %v2957_v22 = vadd.f32 %v7425_v27, %v2928_v62  ;;  %v3117_v27 = vmax.f32 %v7123_v50, 0.0 }
 0x275   : > { %v2983_v16 = vadd.f32 %v7421_v25, %v2954_v61  ;;  %v2986_v30 = vadd.f32 %v7427_v10, %v2957_v22 }
 0x278   : > { %v3062_v42 = vpop.f32.mrf.mxu2  ;;  %v3006_v15 = vpop.f32.mrf.mxu0 }
 0x279   : > { %v3063_v38 = vadd.f32 %v3062_v42, %v3034_v1  ;;  %v3091_v39 = vpop.f32.mrf.mxu3  ;;  %v3035_v3 = vpop.f32.mrf.mxu1  ;;  %v3007_v8 = vadd.f32 %v3006_v15, %v2978_v17 }
 0x27b   : > { %v3092_v29 = vadd.f32 %v3091_v39, %v3063_v38  ;;  %v3036_v57 = vadd.f32 %v3035_v3, %v3007_v8 }
 0x27d   : > { %v3112_v41 = vmax.f32 %v3092_v29, 0.0 }
 0x27f   : > { %v3127_v43 = vpack.c.bf16 %v3112_v41, %v3111_v46 }
 0x280   : > { %v3064_v53 = vpop.f32.mrf.mxu2  ;;  %v3009_v34 = vpop.f32.mrf.mxu0 }
 0x281   : > { %3135 = vst [vmem:[%s7459_s12] sm:$0xff] %v3127_v43  ;;  %v3065_v4 = vadd.f32 %v3064_v53, %v3036_v57  ;;  %v3093_v40 = vpop.f32.mrf.mxu3  ;;  %v3038_v35 = vpop.f32.mrf.mxu1  ;;  %v3010_v5 = vadd.f32 %v3009_v34, %v2981_v13  ;;  %v2988_v53 = vadd.f32 %v7435_v31, %v2959_v60  ;;  %v2933_v34 = vadd.f32 %v7439_v51, %v2904_v24 }
 0x283   : > { %v3094_v49 = vadd.f32 %v3093_v40, %v3065_v4  ;;  %v3039_v12 = vadd.f32 %v3038_v35, %v3010_v5  ;;  %v2962_v36 = vadd.f32 %v7442_v23, %v2933_v34  ;;  %v3121_v23 = vmax.f32 %v7175_v54, 0.0 }
 0x285   : > { %v3114_v28 = vmax.f32 %v3094_v49, 0.0 }
 0x287   : > { %v3128_v48 = vpack.c.bf16 %v3114_v28, %v3113_v58  ;;  %v2991_v58 = vadd.f32 %v7444_v32, %v2962_v36 }
 0x288   : > { %v3067_v9 = vpop.f32.mrf.mxu2  ;;  %v3011_v42 = vpop.f32.mrf.mxu0 }
 0x289   : > { %3136 = vst [vmem:[%s7459_s12 + $0x8] sm:$0xff] %v3128_v48  ;;  %v3068_v0 = vadd.f32 %v3067_v9, %v3039_v12  ;;  %v3096_v1 = vpop.f32.mrf.mxu3  ;;  %v3040_v17 = vpop.f32.mrf.mxu1  ;;  %v3012_v39 = vadd.f32 %v3011_v42, %v2983_v16  ;;  %v2964_v9 = vadd.f32 %v7451_v63, %v2935_v14 }
 0x28b   : > { %v3097_v38 = vadd.f32 %v3096_v1, %v3068_v0  ;;  %v3041_v25 = vadd.f32 %v3040_v17, %v3012_v39  ;;  %v2993_v32 = vadd.f32 %v7453_v45, %v2964_v9  ;;  %v3125_v45 = vmax.f32 %v7238_v2, 0.0 }
 0x28d   : > { %v3116_v18 = vmax.f32 %v3097_v38, 0.0  ;;  %v3123_v38 = vmax.f32 %v7206_v56, 0.0 }
 0x28f   : > { %v3129_v15 = vpack.c.bf16 %v3116_v18, %v3115_v6 }
 0x290   : > { %v3069_v3 = vpop.f32.mrf.mxu2  ;;  %v3014_v26 = vpop.f32.mrf.mxu0 }
 0x291   : > { %3137 = vst [vmem:[%s7459_s12 + $0x10] sm:$0xff] %v3129_v15  ;;  %v3070_v29 = vadd.f32 %v3069_v3, %v3041_v25  ;;  %v3098_v8 = vpop.f32.mrf.mxu3  ;;  %v3043_v46 = vpop.f32.mrf.mxu1  ;;  %v3015_v41 = vadd.f32 %v3014_v26, %v2986_v30 }
 0x293   : > { %v3099_v19 = vadd.f32 %v3098_v8, %v3070_v29  ;;  %v3044_v10 = vadd.f32 %v3043_v46, %v3015_v41 }
 0x295   : > { %v3118_v47 = vmax.f32 %v3099_v19, 0.0 }
 0x297   : > { %v3130_v43 = vpack.c.bf16 %v3118_v47, %v3117_v27 }
 0x298   : > { %v3072_v57 = vpop.f32.mrf.mxu2  ;;  %v3016_v59 = vpop.f32.mrf.mxu0 }
 0x299   : > { %3138 = vst [vmem:[%s7459_s12 + $0x18] sm:$0xff] %v3130_v43  ;;  %v3073_v13 = vadd.f32 %v3072_v57, %v3044_v10  ;;  %v3101_v4 = vpop.f32.mrf.mxu3  ;;  %v3045_v40 = vpop.f32.mrf.mxu1  ;;  %v3017_v35 = vadd.f32 %v3016_v59, %v2988_v53 }
 0x29b   : > { %v3102_v50 = vadd.f32 %v3101_v4, %v3073_v13  ;;  %v3046_v31 = vadd.f32 %v3045_v40, %v3017_v35 }
 0x29d   : > { %v3120_v52 = vmax.f32 %v3102_v50, 0.0 }
 0x29f   : > { %v3131_v49 = vpack.c.bf16 %v3120_v52, %v3119_v44 }
 0x2a0   : > { %v3074_v5 = vpop.f32.mrf.mxu2  ;;  %v3019_v51 = vpop.f32.mrf.mxu0 }
 0x2a1   : > { %3139 = vst [vmem:[%s7459_s12 + $0x20] sm:$0xff] %v3131_v49  ;;  %v3075_v61 = vadd.f32 %v3074_v5, %v3046_v31  ;;  %v3103_v28 = vpop.f32.mrf.mxu3  ;;  %v3020_v37 = vadd.f32 %v3019_v51, %v2991_v58  ;;  %v3048_v12 = vpop.f32.mrf.mxu1 }
 0x2a3   : > { %v3104_v48 = vadd.f32 %v3103_v28, %v3075_v61  ;;  %v3049_v16 = vadd.f32 %v3048_v12, %v3020_v37 }
 0x2a5   : > { %v3122_v55 = vmax.f32 %v3104_v48, 0.0 }
 0x2a7   : > { %v3132_v33 = vpack.c.bf16 %v3122_v55, %v3121_v23 }
 0x2a8   : > { %v3077_v0 = vpop.f32.mrf.mxu2  ;;  %v3021_v17 = vpop.f32.mrf.mxu0 }
 0x2a9   : > { %3140 = vst [vmem:[%s7459_s12 + $0x28] sm:$0xff] %v3132_v33  ;;  %v3078_v1 = vadd.f32 %v3077_v0, %v3049_v16  ;;  %v3106_v42 = vpop.f32.mrf.mxu3  ;;  %v3022_v62 = vadd.f32 %v3021_v17, %v2993_v32  ;;  %v3050_v54 = vpop.f32.mrf.mxu1 }
 0x2ab   : > { %v3107_v20 = vadd.f32 %v3106_v42, %v3078_v1  ;;  %v3051_v63 = vadd.f32 %v3050_v54, %v3022_v62 }
 0x2ad   : > { %v3124_v39 = vmax.f32 %v3107_v20, 0.0 }
 0x2af   : > { %v3133_v6 = vpack.c.bf16 %v3124_v39, %v3123_v38 }
 0x2b0   : > { %v3079_v22 = vpop.f32.mrf.mxu2 }
 0x2b1   : > { %3141 = vst [vmem:[%s7459_s12 + $0x30] sm:$0xff] %v3133_v6  ;;  %v3080_v18 = vadd.f32 %v3079_v22, %v3051_v63  ;;  %v3108_v7 = vpop.f32.mrf.mxu3 }
 0x2b3   : > { %v3109_v15 = vadd.f32 %v3108_v7, %v3080_v18 }
 0x2b5   : > { %v3126_v25 = vmax.f32 %v3109_v15, 0.0  ;;  %3149 = sbr.rel (!%p5326_p3) target bundleno = 740 (0x2e4), region = 36 }
 0x2b7   : > { %v3134_v3 = vpack.c.bf16 %v3126_v25, %v3125_v45 }
 0x2b9   : > { %3142 = vst [vmem:[%s7459_s12 + $0x38] sm:$0xff] %v3134_v3 }
 0x2ba   : > { %s7662_s28 = smov (!%p3153_p9, %s3152_s28), 8 }
 0x2bb   : > { %s5060_s26 = sshll.u32 %s7662_s28, 3 }
 0x2bc   : > { %p4727_p10 = scmp.eq.s32.totalorder %s5060_s26, 0 }
 0x2bd   : > { %s7509_s27 = sshrl.u32 (!%p4727_p10), %s7662_s28, 3 }
 0x2be   : > { %3164 = sbr.rel (%p4727_p10) target bundleno = 740 (0x2e4), region = 40  ;;  %p4728_p11 = scmp.le.s32.totalorder (!%p4727_p10), %s7509_s27, 0 }
 0x2c3   : > { %3359 = sbr.rel (%p4728_p11) target bundleno = 723 (0x2d3), region = 122  ;;  %s7651_s14 = smov (!%p4728_p11), %s7503_s25 }
 0x2c4   : > { %s7652_s20 = smov (!%p4728_p11), %s7459_s12  ;;  %s7518_s9 = smov (!%p4728_p11), 0  }
 0x2c5   : > { %s7520_s29 = smov (!%p4728_p11), 0  }
 0x2c8 LB: >> { %v3241_v56 = vld [vmem:[%s5248_s20] sm:$0xff]  ;;  %v3243_v2 = vld [vmem:[%s5248_s20 + $0x8] sm:$0xff]  ;;  %v3245_v30 = vld [vmem:[%s5248_s20 + $0x10] sm:$0xff]  ;;  %s3257_s30 = sadd.s32 1, %s5252_s9  ;;  %s3235_s29 = sadd.s32 1, %s5256_s29   ;;  %s5256_s29 = sphi %s7520_s29, %s3235_s29   ;;  %s5252_s9 = sphi %s7518_s9, %s7654_s9   ;;  %s5248_s20 = sphi %s7652_s20, %s3262_s20   ;;  %s5244_s14 = sphi %s7651_s14, %s7653_s14  }
 0x2c9   : >> { %3242 = vst [vmem:[%s5244_s14] sm:$0xff] %v3241_v56  ;;  %v3247_v29 = vld [vmem:[%s5248_s20 + $0x18] sm:$0xff]  ;;  %p3258_p12 = scmp.ge.s32.totalorder %s3257_s30, %s7509_s27  ;;  %v3249_v8 = vld [vmem:[%s5248_s20 + $0x20] sm:$0xff]  ;;  %v3251_v26 = vld [vmem:[%s5248_s20 + $0x28] sm:$0xff]  ;;  %p3234_p13 = scmp.ge.s32.totalorder %s3235_s29, %s7509_s27 }
 0x2ca   : >> { %3244 = vst [vmem:[%s5244_s14 + $0x8] sm:$0xff] %v3243_v2  ;;  %v3253_v46 = vld [vmem:[%s5248_s20 + $0x30] sm:$0xff]  ;;  %v3255_v21 = vld [vmem:[%s5248_s20 + $0x38] sm:$0xff] }
 0x2cb   : >> { %3246 = vst [vmem:[%s5244_s14 + $0x10] sm:$0xff] %v3245_v30  ;;  %s7664_s30 = smov (%p3258_p12, %s3257_s30), 0 }
 0x2cc   : >> { %3248 = vst [vmem:[%s5244_s14 + $0x18] sm:$0xff] %v3247_v29  ;;  %s4729_s4 = sshll.u32 %s7664_s30, 6  ;;  %s7654_s9 = smov %s7664_s30 }
 0x2cd   : >> { %3250 = vst [vmem:[%s5244_s14 + $0x20] sm:$0xff] %v3249_v8  ;;  %s3262_s20 = scalar_lea.vmem %s7459_s12, %s4729_s4 [#allocation2]   ;;  %s3263_s5 = scalar_lea.vmem %s7503_s25, %s4729_s4  }
 0x2ce   : >> { %3252 = vst [vmem:[%s5244_s14 + $0x28] sm:$0xff] %v3251_v26  ;;  %3237 = sbr.rel (!%p3234_p13) target bundleno = 712 (0x2c8), region = 128 }
 0x2cf   : >> { %3254 = vst [vmem:[%s5244_s14 + $0x30] sm:$0xff] %v3253_v46 }
 0x2d0   : >> { %3256 = vst [vmem:[%s5244_s14 + $0x38] sm:$0xff] %v3255_v21  ;;  %s7653_s14 = smov %s3263_s5 }
 0x2d3 PF: > { %s7539_s6 = sand.u32 7, %s7662_s28   ;;  %s5063_s7 = sshll.u32 %s7509_s27, 6 }
 0x2d4   : > { %s3268_s8 = scalar_lea.vmem %s7459_s12, %s5063_s7 [#allocation2]   ;;  %s3270_s10 = scalar_lea.vmem %s7503_s25, %s5063_s7  }
 0x2d5   : > { %p4734_p0 = scmp.le.s32.totalorder %s7539_s6, 0 }
 0x2d6   : > { %s5258_s11 = smov (!%p4734_p0), %s3270_s10   ;;  %s5262_s17 = smov (!%p4734_p0), %s3268_s8  }
 0x2d7   : > { %3373 = sbr.rel (%p4734_p0) target bundleno = 740 (0x2e4), region = 133  ;;  %s5266_s19 = smov (!%p4734_p0), 0  }
 0x2d8   : > { %s5270_s21 = smov (!%p4734_p0), 0  }
 0x2dc LB: >> { %v3280_v19 = vld [vmem:[%s5264_s17] sm:$0xff]  ;;  %s3282_s28 = sadd.s32 1, %s5268_s19  ;;  %s3274_s21 = sadd.s32 1, %s5272_s21   ;;  %s5272_s21 = sphi %s5270_s21, %s3274_s21   ;;  %s5268_s19 = sphi %s5266_s19, %s5267_s19   ;;  %s5264_s17 = sphi %s5262_s17, %s3287_s17   ;;  %s5260_s11 = sphi %s5258_s11, %s3288_s11  }
 0x2dd   : >> { %3281 = vst [vmem:[%s5260_s11] sm:$0xff] %v3280_v19  ;;  %p3283_p1 = scmp.ge.s32.totalorder %s3282_s28, %s7539_s6  ;;  %p3273_p2 = scmp.ge.s32.totalorder %s3274_s21, %s7539_s6 }
 0x2df   : >> { %s7666_s28 = smov (%p3283_p1, %s3282_s28), 0  ;;  %3276 = sbr.rel (!%p3273_p2) target bundleno = 732 (0x2dc), region = 139 }
 0x2e0   : >> { %s4735_s12 = sshll.u32 %s7666_s28, 3  ;;  %s5267_s19 = smov %s7666_s28  }
 0x2e1   : >> { %s3287_s17 = scalar_lea.vmem %s3268_s8, %s4735_s12 [#allocation2]   ;;  %s3288_s11 = scalar_lea.vmem %s3270_s10, %s4735_s12  }
 0x2e4 PF: > { %s13_s16 = sadd.s32 1, %s5240_s16   ;;  %s7655_s12 = smov %s5228_s13 }
 0x2e5   : > { %p10_p3 = scmp.ge.s32.totalorder %s13_s16, 4   ;;  %s7656_s13 = smov %s5335_s22 }
 0x2e6   : > { %s7657_s14 = smov %s5236_s15  ;;  %s7658_s15 = smov %s7660_s18 }
 0x2e7   :  { %12 = sbr.rel (!%p10_p3) target bundleno = 3 (0x3), region = 150 }

// kernel: encoder_forward.9
= control target key start
LH: loop header
LB: loop body
LE: loop exit
PB: predicated region body
PF: predicated region fallthrough
CT: control target
= control target key end

     0   :  { %s11608_s1 = inlined_call_operand.vmem [shape: bf16[9216,128], index: 1, kind: input, shape index: {}]   ;;  %s11609_s0 = inlined_call_operand.vmem [shape: bf16[16,9216], index: 0, kind: input, shape index: {}]   ;;  %s11610_s2 = inlined_call_operand.vmem [shape: f32[1,128], index: 2, kind: input, shape index: {}]   ;;  %s11611_s3 = inlined_call_operand.vmem [shape: f32[16,128], index: 3, kind: output, shape index: {}]  }
   0x1   :  { %v8743_v0 = vld [vmem:[%s11608_s1 + $0x38] sm:$0xff]  ;;  %v8742_v4 = vld [vmem:[%s11608_s1 + $0x30] sm:$0xff]  ;;  %v8741_v8 = vld [vmem:[%s11608_s1 + $0x28] sm:$0xff] }
   0x2   :  { %v8751_v1 = vld [vmem:[%s11608_s1 + $0x78] sm:$0xff]  ;;  %5058 = vmatpush.bf16.msra.mxu0 %v8743_v0  ;;  %v8750_v5 = vld [vmem:[%s11608_s1 + $0x70] sm:$0xff]  ;;  %v8749_v9 = vld [vmem:[%s11608_s1 + $0x68] sm:$0xff] }
   0x3   :  { %v8759_v2 = vld [vmem:[%s11608_s1 + $0xb8] sm:$0xff]  ;;  %5072 = vmatpush.bf16.msra.mxu1 %v8751_v1  ;;  %v8758_v6 = vld [vmem:[%s11608_s1 + $0xb0] sm:$0xff]  ;;  %v8757_v10 = vld [vmem:[%s11608_s1 + $0xa8] sm:$0xff] }
   0x4   :  { %v8767_v3 = vld [vmem:[%s11608_s1 + $0xf8] sm:$0xff]  ;;  %5086 = vmatpush.bf16.msra.mxu2 %v8759_v2  ;;  %v8766_v7 = vld [vmem:[%s11608_s1 + $0xf0] sm:$0xff]  ;;  %v8765_v11 = vld [vmem:[%s11608_s1 + $0xe8] sm:$0xff] }
   0x5   :  { %5100 = vmatpush.bf16.msra.mxu3 %v8767_v3  ;;  %v8740_v12 = vld [vmem:[%s11608_s1 + $0x20] sm:$0xff]  ;;  %v8739_v16 = vld [vmem:[%s11608_s1 + $0x18] sm:$0xff]  ;;  %v8738_v20 = vld [vmem:[%s11608_s1 + $0x10] sm:$0xff] }
   0x6   :  { %5059 = vmatpush.bf16.msra.mxu0 %v8742_v4  ;;  %v8748_v13 = vld [vmem:[%s11608_s1 + $0x60] sm:$0xff]  ;;  %v8747_v17 = vld [vmem:[%s11608_s1 + $0x58] sm:$0xff]  ;;  %v8746_v21 = vld [vmem:[%s11608_s1 + $0x50] sm:$0xff] }
   0x7   :  { %5073 = vmatpush.bf16.msra.mxu1 %v8750_v5  ;;  %v8756_v14 = vld [vmem:[%s11608_s1 + $0xa0] sm:$0xff]  ;;  %v8755_v18 = vld [vmem:[%s11608_s1 + $0x98] sm:$0xff]  ;;  %v8754_v22 = vld [vmem:[%s11608_s1 + $0x90] sm:$0xff] }
   0x8   :  { %5087 = vmatpush.bf16.msra.mxu2 %v8758_v6  ;;  %v8764_v15 = vld [vmem:[%s11608_s1 + $0xe0] sm:$0xff]  ;;  %v8763_v19 = vld [vmem:[%s11608_s1 + $0xd8] sm:$0xff]  ;;  %v8762_v23 = vld [vmem:[%s11608_s1 + $0xd0] sm:$0xff] }
   0x9   :  { %5101 = vmatpush.bf16.msra.mxu3 %v8766_v7  ;;  %v8737_v24 = vld [vmem:[%s11608_s1 + $0x8] sm:$0xff]  ;;  %v8736_v28 = vld [vmem:[%s11608_s1] sm:$0xff]  ;;  %v8775_v32 = vld [vmem:[%s11608_s1 + $0x138] sm:$0xff] }
   0xa   :  { %5060 = vmatpush.bf16.msra.mxu0 %v8741_v8  ;;  %v8745_v25 = vld [vmem:[%s11608_s1 + $0x48] sm:$0xff]  ;;  %v8744_v29 = vld [vmem:[%s11608_s1 + $0x40] sm:$0xff]  ;;  %v8783_v33 = vld [vmem:[%s11608_s1 + $0x178] sm:$0xff] }
   0xb   :  { %5074 = vmatpush.bf16.msra.mxu1 %v8749_v9  ;;  %v8753_v26 = vld [vmem:[%s11608_s1 + $0x88] sm:$0xff]  ;;  %v8752_v30 = vld [vmem:[%s11608_s1 + $0x80] sm:$0xff]  ;;  %v8791_v42 = vld [vmem:[%s11608_s1 + $0x1b8] sm:$0xff] }
   0xc   :  { %5088 = vmatpush.bf16.msra.mxu2 %v8757_v10  ;;  %v8761_v27 = vld [vmem:[%s11608_s1 + $0xc8] sm:$0xff]  ;;  %v8760_v31 = vld [vmem:[%s11608_s1 + $0xc0] sm:$0xff]  ;;  %v8799_v43 = vld [vmem:[%s11608_s1 + $0x1f8] sm:$0xff] }
   0xd   :  { %5102 = vmatpush.bf16.msra.mxu3 %v8765_v11  ;;  %v6074_v34 = vld [vmem:[%s11609_s0] sm:$0xf]  ;;  %v6082_v36 = vld [vmem:[%s11609_s0 + $0x8] sm:$0xf]  ;;  %v8664_v38 = vld [vmem:[%s11609_s0 + $0x4] sm:$0xf] }
   0xe   :  { %5061 = vmatpush.bf16.msra.mxu0 %v8740_v12  ;;  %v8700_v35 = vld [vmem:[%s11609_s0 + $0x11c] sm:$0xf0]  ;;  %v8701_v37 = vld [vmem:[%s11609_s0 + $0x124] sm:$0xf0]  ;;  %v6076_v39 = vld [vmem:[%s11609_s0 + $0x120] sm:$0xf0] }
   0xf   :  { %5075 = vmatpush.bf16.msra.mxu1 %v8748_v13  ;;  %v8665_v40 = vld [vmem:[%s11609_s0 + $0xc] sm:$0xf]  ;;  %v6075_v44 = vor.u32 %v8700_v35, %v6074_v34  ;;  %v6083_v45 = vor.u32 %v8701_v37, %v6082_v36  ;;  %v6079_v46 = vor.u32 %v8664_v38, %v6076_v39  ;;  %v8774_v48 = vld [vmem:[%s11608_s1 + $0x130] sm:$0xff]  ;;  %v8772_v56 = vld [vmem:[%s11608_s1 + $0x120] sm:$0xff] }
  0x10   :  { %5089 = vmatpush.bf16.msra.mxu2 %v8756_v14  ;;  %v6084_v41 = vld [vmem:[%s11609_s0 + $0x128] sm:$0xf0]  ;;  %v8782_v49 = vld [vmem:[%s11608_s1 + $0x170] sm:$0xff]  ;;  %v8780_v57 = vld [vmem:[%s11608_s1 + $0x160] sm:$0xff] }
  0x11   :  { %5103 = vmatpush.bf16.msra.mxu3 %v8764_v15  ;;  %v6087_v47 = vor.u32 %v8665_v40, %v6084_v41  ;;  %v8790_v50 = vld [vmem:[%s11608_s1 + $0x1b0] sm:$0xff]  ;;  %v8773_v52 = vld [vmem:[%s11608_s1 + $0x128] sm:$0xff]  ;;  %v8788_v58 = vld [vmem:[%s11608_s1 + $0x1a0] sm:$0xff] }
  0x12   :  { %5062 = vmatpush.bf16.msra.mxu0 %v8739_v16  ;;  %v8798_v51 = vld [vmem:[%s11608_s1 + $0x1f0] sm:$0xff]  ;;  %v8781_v53 = vld [vmem:[%s11608_s1 + $0x168] sm:$0xff]  ;;  %v8796_v59 = vld [vmem:[%s11608_s1 + $0x1e0] sm:$0xff] }
  0x13   :  { %5076 = vmatpush.bf16.msra.mxu1 %v8747_v17  ;;  %v8789_v54 = vld [vmem:[%s11608_s1 + $0x1a8] sm:$0xff]  ;;  %v8771_v60 = vld [vmem:[%s11608_s1 + $0x118] sm:$0xff]  ;;  %v8770_v0 = vld [vmem:[%s11608_s1 + $0x110] sm:$0xff] }
  0x14   :  { %5090 = vmatpush.bf16.msra.mxu2 %v8755_v18  ;;  %v8797_v55 = vld [vmem:[%s11608_s1 + $0x1e8] sm:$0xff]  ;;  %v8779_v61 = vld [vmem:[%s11608_s1 + $0x158] sm:$0xff]  ;;  %v8778_v1 = vld [vmem:[%s11608_s1 + $0x150] sm:$0xff] }
  0x15   :  { %5104 = vmatpush.bf16.msra.mxu3 %v8763_v19  ;;  %v8787_v62 = vld [vmem:[%s11608_s1 + $0x198] sm:$0xff]  ;;  %v8786_v2 = vld [vmem:[%s11608_s1 + $0x190] sm:$0xff]  ;;  %v8769_v4 = vld [vmem:[%s11608_s1 + $0x108] sm:$0xff] }
  0x16   :  { %5063 = vmatpush.bf16.msra.mxu0 %v8738_v20  ;;  %v8795_v63 = vld [vmem:[%s11608_s1 + $0x1d8] sm:$0xff]  ;;  %v8794_v3 = vld [vmem:[%s11608_s1 + $0x1d0] sm:$0xff]  ;;  %v8777_v5 = vld [vmem:[%s11608_s1 + $0x148] sm:$0xff] }
  0x17   :  { %5077 = vmatpush.bf16.msra.mxu1 %v8746_v21  ;;  %v8785_v6 = vld [vmem:[%s11608_s1 + $0x188] sm:$0xff]  ;;  %v8768_v8 = vld [vmem:[%s11608_s1 + $0x100] sm:$0xff]  ;;  %v8807_v12 = vld [vmem:[%s11608_s1 + $0x238] sm:$0xff] }
  0x18   :  { %5091 = vmatpush.bf16.msra.mxu2 %v8754_v22  ;;  %v8793_v7 = vld [vmem:[%s11608_s1 + $0x1c8] sm:$0xff]  ;;  %v8776_v9 = vld [vmem:[%s11608_s1 + $0x140] sm:$0xff]  ;;  %v8815_v13 = vld [vmem:[%s11608_s1 + $0x278] sm:$0xff] }
  0x19   :  { %5105 = vmatpush.bf16.msra.mxu3 %v8762_v23  ;;  %v8784_v10 = vld [vmem:[%s11608_s1 + $0x180] sm:$0xff]  ;;  %v6090_v14 = vld [vmem:[%s11609_s0 + $0x10] sm:$0xf]  ;;  %v6098_v16 = vld [vmem:[%s11609_s0 + $0x18] sm:$0xf] }
  0x1a   :  { %5064 = vmatpush.bf16.msra.mxu0 %v8737_v24  ;;  %v8792_v11 = vld [vmem:[%s11608_s1 + $0x1c0] sm:$0xff]  ;;  %v8702_v15 = vld [vmem:[%s11609_s0 + $0x12c] sm:$0xf0]  ;;  %v8703_v17 = vld [vmem:[%s11609_s0 + $0x134] sm:$0xf0] }
  0x1b   :  { %5078 = vmatpush.bf16.msra.mxu1 %v8745_v25  ;;  %v8666_v18 = vld [vmem:[%s11609_s0 + $0x14] sm:$0xf]  ;;  %v8667_v20 = vld [vmem:[%s11609_s0 + $0x1c] sm:$0xf]  ;;  %v6091_v24 = vor.u32 %v8702_v15, %v6090_v14  ;;  %v6099_v25 = vor.u32 %v8703_v17, %v6098_v16  ;;  %v8821_v34 = vld [vmem:[%s11608_s1 + $0x2a8] sm:$0xff] }
  0x1c   :  { %5092 = vmatpush.bf16.msra.mxu2 %v8753_v26  ;;  %v6092_v19 = vld [vmem:[%s11609_s0 + $0x130] sm:$0xf0]  ;;  %v6100_v21 = vld [vmem:[%s11609_s0 + $0x138] sm:$0xf0]  ;;  %v8829_v35 = vld [vmem:[%s11608_s1 + $0x2e8] sm:$0xff] }
  0x1d   :  { %5106 = vmatpush.bf16.msra.mxu3 %v8761_v27  ;;  %v8823_v22 = vld [vmem:[%s11608_s1 + $0x2b8] sm:$0xff]  ;;  %v6095_v26 = vor.u32 %v8666_v18, %v6092_v19  ;;  %v6103_v27 = vor.u32 %v8667_v20, %v6100_v21  ;;  %v8804_v36 = vld [vmem:[%s11608_s1 + $0x220] sm:$0xff]  ;;  %v8853_v14 = vld [vmem:[%s11608_s1 + $0x3a8] sm:$0xff] }
  0x1e   :  { %5065 = vmatpush.bf16.msra.mxu0 %v8736_v28  ;;  %v8831_v23 = vld [vmem:[%s11608_s1 + $0x2f8] sm:$0xff]  ;;  %v8806_v28 = vld [vmem:[%s11608_s1 + $0x230] sm:$0xff]  ;;  %v8812_v37 = vld [vmem:[%s11608_s1 + $0x260] sm:$0xff] }
  0x1f   :  { %5079 = vmatpush.bf16.msra.mxu1 %v8744_v29  ;;  %v8814_v29 = vld [vmem:[%s11608_s1 + $0x270] sm:$0xff]  ;;  %v8820_v38 = vld [vmem:[%s11608_s1 + $0x2a0] sm:$0xff]  ;;  %v8803_v40 = vld [vmem:[%s11608_s1 + $0x218] sm:$0xff] }
  0x20   :  { %5093 = vmatpush.bf16.msra.mxu2 %v8752_v30  ;;  %v8822_v30 = vld [vmem:[%s11608_s1 + $0x2b0] sm:$0xff]  ;;  %v8828_v39 = vld [vmem:[%s11608_s1 + $0x2e0] sm:$0xff]  ;;  %v8811_v41 = vld [vmem:[%s11608_s1 + $0x258] sm:$0xff] }
  0x21   :  { %5107 = vmatpush.bf16.msra.mxu3 %v8760_v31  ;;  %5066 = vmatmul.bf16.vlgmr.msra.gmra.mxu0 %v6075_v44  ;;  %v8830_v31 = vld [vmem:[%s11608_s1 + $0x2f0] sm:$0xff]  ;;  %v8861_v15 = vld [vmem:[%s11608_s1 + $0x3e8] sm:$0xff]  ;;  %v8836_v16 = vld [vmem:[%s11608_s1 + $0x320] sm:$0xff] }
  0x22   :  { %5114 = vmatpush.bf16.msrb.mxu0 %v8775_v32  ;;  %5080 = vmatmul.bf16.vlgmr.msra.gmra.mxu1 %v6079_v46  ;;  %v8805_v32 = vld [vmem:[%s11608_s1 + $0x228] sm:$0xff]  ;;  %v8802_v44 = vld [vmem:[%s11608_s1 + $0x210] sm:$0xff]  ;;  %v8844_v17 = vld [vmem:[%s11608_s1 + $0x360] sm:$0xff] }
  0x23   :  { %5128 = vmatpush.bf16.msrb.mxu1 %v8783_v33  ;;  %5094 = vmatmul.bf16.vlgmr.msra.gmra.mxu2 %v6083_v45  ;;  %v8813_v33 = vld [vmem:[%s11608_s1 + $0x268] sm:$0xff]  ;;  %v8810_v45 = vld [vmem:[%s11608_s1 + $0x250] sm:$0xff]  ;;  %v8852_v18 = vld [vmem:[%s11608_s1 + $0x3a0] sm:$0xff] }
  0x24   :  { %5142 = vmatpush.bf16.msrb.mxu2 %v8791_v42  ;;  %5108 = vmatmul.bf16.vlgmr.msra.gmra.mxu3 %v6087_v47  ;;  %v8819_v42 = vld [vmem:[%s11608_s1 + $0x298] sm:$0xff]  ;;  %v8818_v46 = vld [vmem:[%s11608_s1 + $0x290] sm:$0xff]  ;;  %v8860_v19 = vld [vmem:[%s11608_s1 + $0x3e0] sm:$0xff] }
  0x25   :  { %5156 = vmatpush.bf16.msrb.mxu3 %v8799_v43  ;;  %v8827_v43 = vld [vmem:[%s11608_s1 + $0x2d8] sm:$0xff]  ;;  %v8826_v47 = vld [vmem:[%s11608_s1 + $0x2d0] sm:$0xff] }
  0x26   :  { %5115 = vmatpush.bf16.msrb.mxu0 %v8774_v48  ;;  %v8801_v48 = vld [vmem:[%s11608_s1 + $0x208] sm:$0xff]  ;;  %v8835_v20 = vld [vmem:[%s11608_s1 + $0x318] sm:$0xff] }
  0x27   :  { %5129 = vmatpush.bf16.msrb.mxu1 %v8782_v49  ;;  %v8809_v49 = vld [vmem:[%s11608_s1 + $0x248] sm:$0xff]  ;;  %v8843_v21 = vld [vmem:[%s11608_s1 + $0x358] sm:$0xff] }
  0x28   :  { %5143 = vmatpush.bf16.msrb.mxu2 %v8790_v50  ;;  %v8817_v50 = vld [vmem:[%s11608_s1 + $0x288] sm:$0xff] }
  0x29   :  { %5157 = vmatpush.bf16.msrb.mxu3 %v8798_v51  ;;  %v8825_v51 = vld [vmem:[%s11608_s1 + $0x2c8] sm:$0xff] }
  0x2a   :  { %5116 = vmatpush.bf16.msrb.mxu0 %v8773_v52  ;;  %v8800_v52 = vld [vmem:[%s11608_s1 + $0x200] sm:$0xff] }
  0x2b   :  { %5130 = vmatpush.bf16.msrb.mxu1 %v8781_v53  ;;  %v8808_v53 = vld [vmem:[%s11608_s1 + $0x240] sm:$0xff] }
  0x2c   :  { %5144 = vmatpush.bf16.msrb.mxu2 %v8789_v54  ;;  %v8816_v54 = vld [vmem:[%s11608_s1 + $0x280] sm:$0xff] }
  0x2d   :  { %5158 = vmatpush.bf16.msrb.mxu3 %v8797_v55  ;;  %v8824_v55 = vld [vmem:[%s11608_s1 + $0x2c0] sm:$0xff] }
  0x2e   :  { %5117 = vmatpush.bf16.msrb.mxu0 %v8772_v56  ;;  %v8839_v56 = vld [vmem:[%s11608_s1 + $0x338] sm:$0xff] }
  0x2f   :  { %5131 = vmatpush.bf16.msrb.mxu1 %v8780_v57  ;;  %v8847_v57 = vld [vmem:[%s11608_s1 + $0x378] sm:$0xff] }
  0x30   :  { %5145 = vmatpush.bf16.msrb.mxu2 %v8788_v58  ;;  %v6106_v58 = vld [vmem:[%s11609_s0 + $0x20] sm:$0xf] }
  0x31   :  { %5159 = vmatpush.bf16.msrb.mxu3 %v8796_v59  ;;  %v8704_v59 = vld [vmem:[%s11609_s0 + $0x13c] sm:$0xf0] }
  0x32   :  { %5118 = vmatpush.bf16.msrb.mxu0 %v8771_v60  ;;  %v6114_v60 = vld [vmem:[%s11609_s0 + $0x28] sm:$0xf] }
  0x33   :  { %5132 = vmatpush.bf16.msrb.mxu1 %v8779_v61  ;;  %v8705_v61 = vld [vmem:[%s11609_s0 + $0x144] sm:$0xf0] }
  0x34   :  { %5146 = vmatpush.bf16.msrb.mxu2 %v8787_v62  ;;  %v8668_v62 = vld [vmem:[%s11609_s0 + $0x24] sm:$0xf] }
  0x35   :  { %5160 = vmatpush.bf16.msrb.mxu3 %v8795_v63  ;;  %v6108_v63 = vld [vmem:[%s11609_s0 + $0x140] sm:$0xf0] }
  0x36   :  { %5119 = vmatpush.bf16.msrb.mxu0 %v8770_v0  ;;  %v8669_v0 = vld [vmem:[%s11609_s0 + $0x2c] sm:$0xf] }
  0x37   :  { %5133 = vmatpush.bf16.msrb.mxu1 %v8778_v1  ;;  %v6116_v1 = vld [vmem:[%s11609_s0 + $0x148] sm:$0xf0] }
  0x38   :  { %5147 = vmatpush.bf16.msrb.mxu2 %v8786_v2  ;;  %v8855_v2 = vld [vmem:[%s11608_s1 + $0x3b8] sm:$0xff] }
  0x39   :  { %5161 = vmatpush.bf16.msrb.mxu3 %v8794_v3  ;;  %v8863_v3 = vld [vmem:[%s11608_s1 + $0x3f8] sm:$0xff] }
  0x3a   :  { %5120 = vmatpush.bf16.msrb.mxu0 %v8769_v4  ;;  %v6107_v4 = vor.u32 %v8704_v59, %v6106_v58  ;;  %v8885_v58 = vld [vmem:[%s11608_s1 + $0x4a8] sm:$0xff] }
  0x3b   :  { %5134 = vmatpush.bf16.msrb.mxu1 %v8777_v5  ;;  %v6115_v5 = vor.u32 %v8705_v61, %v6114_v60  ;;  %v8893_v59 = vld [vmem:[%s11608_s1 + $0x4e8] sm:$0xff]  ;;  %v8868_v60 = vld [vmem:[%s11608_s1 + $0x420] sm:$0xff] }
  0x3c   :  { %5148 = vmatpush.bf16.msrb.mxu2 %v8785_v6  ;;  %v6111_v6 = vor.u32 %v8668_v62, %v6108_v63  ;;  %v8876_v61 = vld [vmem:[%s11608_s1 + $0x460] sm:$0xff] }
  0x3d   :  { %5162 = vmatpush.bf16.msrb.mxu3 %v8793_v7  ;;  %v6119_v7 = vor.u32 %v8669_v0, %v6116_v1  ;;  %v8884_v62 = vld [vmem:[%s11608_s1 + $0x4a0] sm:$0xff]  ;;  %v8867_v0 = vld [vmem:[%s11608_s1 + $0x418] sm:$0xff] }
  0x3e   :  { %5121 = vmatpush.bf16.msrb.mxu0 %v8768_v8  ;;  %v8838_v8 = vld [vmem:[%s11608_s1 + $0x330] sm:$0xff]  ;;  %v8892_v63 = vld [vmem:[%s11608_s1 + $0x4e0] sm:$0xff]  ;;  %v8875_v1 = vld [vmem:[%s11608_s1 + $0x458] sm:$0xff] }
  0x3f   :  { %5135 = vmatpush.bf16.msrb.mxu1 %v8776_v9  ;;  %v8846_v9 = vld [vmem:[%s11608_s1 + $0x370] sm:$0xff] }
  0x40   :  { %5149 = vmatpush.bf16.msrb.mxu2 %v8784_v10  ;;  %v8854_v10 = vld [vmem:[%s11608_s1 + $0x3b0] sm:$0xff] }
  0x41   :  { %5163 = vmatpush.bf16.msrb.mxu3 %v8792_v11  ;;  %5122 = vmatmul.bf16.vlgmr.msrb.gmra.mxu0 %v6091_v24  ;;  %v8862_v11 = vld [vmem:[%s11608_s1 + $0x3f0] sm:$0xff] }
  0x42   :  { %5170 = vmatpush.bf16.msra.mxu0 %v8807_v12  ;;  %5136 = vmatmul.bf16.vlgmr.msrb.gmra.mxu1 %v6095_v26  ;;  %v8837_v12 = vld [vmem:[%s11608_s1 + $0x328] sm:$0xff]  ;;  %v8834_v24 = vld [vmem:[%s11608_s1 + $0x310] sm:$0xff] }
  0x43   :  { %5184 = vmatpush.bf16.msra.mxu1 %v8815_v13  ;;  %5150 = vmatmul.bf16.vlgmr.msrb.gmra.mxu2 %v6099_v25  ;;  %v8845_v13 = vld [vmem:[%s11608_s1 + $0x368] sm:$0xff]  ;;  %v8842_v25 = vld [vmem:[%s11608_s1 + $0x350] sm:$0xff] }
  0x44   :  { %5198 = vmatpush.bf16.msra.mxu2 %v8823_v22  ;;  %5164 = vmatmul.bf16.vlgmr.msrb.gmra.mxu3 %v6103_v27  ;;  %v8851_v22 = vld [vmem:[%s11608_s1 + $0x398] sm:$0xff]  ;;  %v8850_v26 = vld [vmem:[%s11608_s1 + $0x390] sm:$0xff] }
  0x45   :  { %5212 = vmatpush.bf16.msra.mxu3 %v8831_v23  ;;  %v8859_v23 = vld [vmem:[%s11608_s1 + $0x3d8] sm:$0xff]  ;;  %v8858_v27 = vld [vmem:[%s11608_s1 + $0x3d0] sm:$0xff] }
  0x46   :  { %5171 = vmatpush.bf16.msra.mxu0 %v8806_v28  ;;  %v8833_v28 = vld [vmem:[%s11608_s1 + $0x308] sm:$0xff] }
  0x47   :  { %5185 = vmatpush.bf16.msra.mxu1 %v8814_v29  ;;  %v8841_v29 = vld [vmem:[%s11608_s1 + $0x348] sm:$0xff] }
  0x48   :  { %5199 = vmatpush.bf16.msra.mxu2 %v8822_v30  ;;  %v8849_v30 = vld [vmem:[%s11608_s1 + $0x388] sm:$0xff] }
  0x49   :  { %5213 = vmatpush.bf16.msra.mxu3 %v8830_v31  ;;  %v8857_v31 = vld [vmem:[%s11608_s1 + $0x3c8] sm:$0xff] }
  0x4a   :  { %5172 = vmatpush.bf16.msra.mxu0 %v8805_v32  ;;  %v8832_v32 = vld [vmem:[%s11608_s1 + $0x300] sm:$0xff] }
  0x4b   :  { %5186 = vmatpush.bf16.msra.mxu1 %v8813_v33  ;;  %v8840_v33 = vld [vmem:[%s11608_s1 + $0x340] sm:$0xff] }
  0x4c   :  { %5200 = vmatpush.bf16.msra.mxu2 %v8821_v34  ;;  %v8848_v34 = vld [vmem:[%s11608_s1 + $0x380] sm:$0xff] }
  0x4d   :  { %5214 = vmatpush.bf16.msra.mxu3 %v8829_v35  ;;  %v8856_v35 = vld [vmem:[%s11608_s1 + $0x3c0] sm:$0xff] }
  0x4e   :  { %5173 = vmatpush.bf16.msra.mxu0 %v8804_v36  ;;  %v8871_v36 = vld [vmem:[%s11608_s1 + $0x438] sm:$0xff] }
  0x4f   :  { %5187 = vmatpush.bf16.msra.mxu1 %v8812_v37  ;;  %v8879_v37 = vld [vmem:[%s11608_s1 + $0x478] sm:$0xff] }
  0x50   :  { %5201 = vmatpush.bf16.msra.mxu2 %v8820_v38  ;;  %v6122_v38 = vld [vmem:[%s11609_s0 + $0x30] sm:$0xf] }
  0x51   :  { %5215 = vmatpush.bf16.msra.mxu3 %v8828_v39  ;;  %v8706_v39 = vld [vmem:[%s11609_s0 + $0x14c] sm:$0xf0] }
  0x52   :  { %5174 = vmatpush.bf16.msra.mxu0 %v8803_v40  ;;  %v6130_v40 = vld [vmem:[%s11609_s0 + $0x38] sm:$0xf] }
  0x53   :  { %5188 = vmatpush.bf16.msra.mxu1 %v8811_v41  ;;  %v8707_v41 = vld [vmem:[%s11609_s0 + $0x154] sm:$0xf0] }
  0x54   :  { %5202 = vmatpush.bf16.msra.mxu2 %v8819_v42  ;;  %v8670_v42 = vld [vmem:[%s11609_s0 + $0x34] sm:$0xf] }
  0x55   :  { %5216 = vmatpush.bf16.msra.mxu3 %v8827_v43  ;;  %v6124_v43 = vld [vmem:[%s11609_s0 + $0x150] sm:$0xf0] }
  0x56   :  { %5175 = vmatpush.bf16.msra.mxu0 %v8802_v44  ;;  %v8671_v44 = vld [vmem:[%s11609_s0 + $0x3c] sm:$0xf] }
  0x57   :  { %5189 = vmatpush.bf16.msra.mxu1 %v8810_v45  ;;  %v6132_v45 = vld [vmem:[%s11609_s0 + $0x158] sm:$0xf0] }
  0x58   :  { %5203 = vmatpush.bf16.msra.mxu2 %v8818_v46  ;;  %v8887_v46 = vld [vmem:[%s11608_s1 + $0x4b8] sm:$0xff] }
  0x59   :  { %5217 = vmatpush.bf16.msra.mxu3 %v8826_v47  ;;  %v8895_v47 = vld [vmem:[%s11608_s1 + $0x4f8] sm:$0xff] }
  0x5a   :  { %5176 = vmatpush.bf16.msra.mxu0 %v8801_v48  ;;  %v6123_v48 = vor.u32 %v8706_v39, %v6122_v38  ;;  %v9966_v38 = vld [vmem:[%s11610_s2] ss:$0 sm:$0xff]  ;;  %v8917_v39 = vld [vmem:[%s11608_s1 + $0x5a8] sm:$0xff] }
  0x5b   :  { %5190 = vmatpush.bf16.msra.mxu1 %v8809_v49  ;;  %v6131_v49 = vor.u32 %v8707_v41, %v6130_v40  ;;  %v8925_v40 = vld [vmem:[%s11608_s1 + $0x5e8] sm:$0xff] }
  0x5c   :  { %5204 = vmatpush.bf16.msra.mxu2 %v8817_v50  ;;  %v6127_v50 = vor.u32 %v8670_v42, %v6124_v43  ;;  %v8900_v42 = vld [vmem:[%s11608_s1 + $0x520] sm:$0xff] }
  0x5d   :  { %5218 = vmatpush.bf16.msra.mxu3 %v8825_v51  ;;  %v6135_v51 = vor.u32 %v8671_v44, %v6132_v45  ;;  %v8908_v43 = vld [vmem:[%s11608_s1 + $0x560] sm:$0xff] }
  0x5e   :  { %5177 = vmatpush.bf16.msra.mxu0 %v8800_v52  ;;  %v8870_v52 = vld [vmem:[%s11608_s1 + $0x430] sm:$0xff]  ;;  %v8916_v45 = vld [vmem:[%s11608_s1 + $0x5a0] sm:$0xff] }
  0x5f   :  { %5191 = vmatpush.bf16.msra.mxu1 %v8808_v53  ;;  %v8878_v53 = vld [vmem:[%s11608_s1 + $0x470] sm:$0xff] }
  0x60   :  { %5205 = vmatpush.bf16.msra.mxu2 %v8816_v54  ;;  %v8886_v54 = vld [vmem:[%s11608_s1 + $0x4b0] sm:$0xff] }
  0x61   :  { %5219 = vmatpush.bf16.msra.mxu3 %v8824_v55  ;;  %5178 = vmatmul.bf16.vlgmr.msra.gmra.mxu0 %v6107_v4  ;;  %v8894_v55 = vld [vmem:[%s11608_s1 + $0x4f0] sm:$0xff] }
  0x62   :  { %5226 = vmatpush.bf16.msrb.mxu0 %v8839_v56  ;;  %5192 = vmatmul.bf16.vlgmr.msra.gmra.mxu1 %v6111_v6  ;;  %v8869_v56 = vld [vmem:[%s11608_s1 + $0x428] sm:$0xff]  ;;  %v8866_v4 = vld [vmem:[%s11608_s1 + $0x410] sm:$0xff] }
  0x63   :  { %5240 = vmatpush.bf16.msrb.mxu1 %v8847_v57  ;;  %5206 = vmatmul.bf16.vlgmr.msra.gmra.mxu2 %v6115_v5  ;;  %v8877_v57 = vld [vmem:[%s11608_s1 + $0x468] sm:$0xff]  ;;  %v8874_v5 = vld [vmem:[%s11608_s1 + $0x450] sm:$0xff] }
  0x64   :  { %5254 = vmatpush.bf16.msrb.mxu2 %v8855_v2  ;;  %5220 = vmatmul.bf16.vlgmr.msra.gmra.mxu3 %v6119_v7  ;;  %v8883_v2 = vld [vmem:[%s11608_s1 + $0x498] sm:$0xff]  ;;  %v8882_v6 = vld [vmem:[%s11608_s1 + $0x490] sm:$0xff] }
  0x65   :  { %5268 = vmatpush.bf16.msrb.mxu3 %v8863_v3  ;;  %v8891_v3 = vld [vmem:[%s11608_s1 + $0x4d8] sm:$0xff]  ;;  %v8890_v7 = vld [vmem:[%s11608_s1 + $0x4d0] sm:$0xff] }
  0x66   :  { %5227 = vmatpush.bf16.msrb.mxu0 %v8838_v8  ;;  %v8865_v8 = vld [vmem:[%s11608_s1 + $0x408] sm:$0xff] }
  0x67   :  { %5241 = vmatpush.bf16.msrb.mxu1 %v8846_v9  ;;  %v8873_v9 = vld [vmem:[%s11608_s1 + $0x448] sm:$0xff] }
  0x68   :  { %5255 = vmatpush.bf16.msrb.mxu2 %v8854_v10  ;;  %v8881_v10 = vld [vmem:[%s11608_s1 + $0x488] sm:$0xff] }
  0x69   :  { %5269 = vmatpush.bf16.msrb.mxu3 %v8862_v11  ;;  %v8889_v11 = vld [vmem:[%s11608_s1 + $0x4c8] sm:$0xff] }
  0x6a   :  { %5228 = vmatpush.bf16.msrb.mxu0 %v8837_v12  ;;  %v8864_v12 = vld [vmem:[%s11608_s1 + $0x400] sm:$0xff] }
  0x6b   :  { %5242 = vmatpush.bf16.msrb.mxu1 %v8845_v13  ;;  %v8872_v13 = vld [vmem:[%s11608_s1 + $0x440] sm:$0xff] }
  0x6c   :  { %5256 = vmatpush.bf16.msrb.mxu2 %v8853_v14  ;;  %v8880_v14 = vld [vmem:[%s11608_s1 + $0x480] sm:$0xff] }
  0x6d   :  { %5270 = vmatpush.bf16.msrb.mxu3 %v8861_v15  ;;  %v8888_v15 = vld [vmem:[%s11608_s1 + $0x4c0] sm:$0xff] }
  0x6e   :  { %5229 = vmatpush.bf16.msrb.mxu0 %v8836_v16  ;;  %v8903_v16 = vld [vmem:[%s11608_s1 + $0x538] sm:$0xff] }
  0x6f   :  { %5243 = vmatpush.bf16.msrb.mxu1 %v8844_v17  ;;  %v8911_v17 = vld [vmem:[%s11608_s1 + $0x578] sm:$0xff] }
  0x70   :  { %5257 = vmatpush.bf16.msrb.mxu2 %v8852_v18  ;;  %v6138_v18 = vld [vmem:[%s11609_s0 + $0x40] sm:$0xf] }
  0x71   :  { %5271 = vmatpush.bf16.msrb.mxu3 %v8860_v19  ;;  %v8708_v19 = vld [vmem:[%s11609_s0 + $0x15c] sm:$0xf0] }
  0x72   :  { %5230 = vmatpush.bf16.msrb.mxu0 %v8835_v20  ;;  %v6146_v20 = vld [vmem:[%s11609_s0 + $0x48] sm:$0xf] }
  0x73   :  { %5244 = vmatpush.bf16.msrb.mxu1 %v8843_v21  ;;  %v8709_v21 = vld [vmem:[%s11609_s0 + $0x164] sm:$0xf0] }
  0x74   :  { %5258 = vmatpush.bf16.msrb.mxu2 %v8851_v22  ;;  %v8672_v22 = vld [vmem:[%s11609_s0 + $0x44] sm:$0xf] }
  0x75   :  { %5272 = vmatpush.bf16.msrb.mxu3 %v8859_v23  ;;  %v6140_v23 = vld [vmem:[%s11609_s0 + $0x160] sm:$0xf0] }
  0x76   :  { %5231 = vmatpush.bf16.msrb.mxu0 %v8834_v24  ;;  %v8673_v24 = vld [vmem:[%s11609_s0 + $0x4c] sm:$0xf] }
  0x77   :  { %5245 = vmatpush.bf16.msrb.mxu1 %v8842_v25  ;;  %v6148_v25 = vld [vmem:[%s11609_s0 + $0x168] sm:$0xf0] }
  0x78   :  { %5259 = vmatpush.bf16.msrb.mxu2 %v8850_v26  ;;  %v8919_v26 = vld [vmem:[%s11608_s1 + $0x5b8] sm:$0xff] }
  0x79   :  { %5273 = vmatpush.bf16.msrb.mxu3 %v8858_v27  ;;  %v8927_v27 = vld [vmem:[%s11608_s1 + $0x5f8] sm:$0xff] }
  0x7a   :  { %5232 = vmatpush.bf16.msrb.mxu0 %v8833_v28  ;;  %v6139_v28 = vor.u32 %v8708_v19, %v6138_v18 }
  0x7b   :  { %5246 = vmatpush.bf16.msrb.mxu1 %v8841_v29  ;;  %v6147_v29 = vor.u32 %v8709_v21, %v6146_v20 }
  0x7c   :  { %5260 = vmatpush.bf16.msrb.mxu2 %v8849_v30  ;;  %v6143_v30 = vor.u32 %v8672_v22, %v6140_v23  ;;  %v8934_v23 = vld [vmem:[%s11608_s1 + $0x630] sm:$0xff] }
  0x7d   :  { %5274 = vmatpush.bf16.msrb.mxu3 %v8857_v31  ;;  %v6151_v31 = vor.u32 %v8673_v24, %v6148_v25  ;;  %v8942_v24 = vld [vmem:[%s11608_s1 + $0x670] sm:$0xff] }
  0x7e   :  { %5233 = vmatpush.bf16.msrb.mxu0 %v8832_v32  ;;  %v8902_v32 = vld [vmem:[%s11608_s1 + $0x530] sm:$0xff] }
  0x7f   :  { %5247 = vmatpush.bf16.msrb.mxu1 %v8840_v33  ;;  %v8910_v33 = vld [vmem:[%s11608_s1 + $0x570] sm:$0xff] }
  0x80   :  { %5261 = vmatpush.bf16.msrb.mxu2 %v8848_v34  ;;  %v8918_v34 = vld [vmem:[%s11608_s1 + $0x5b0] sm:$0xff] }
  0x81   :  { %5275 = vmatpush.bf16.msrb.mxu3 %v8856_v35  ;;  %5234 = vmatmul.bf16.vlgmr.msrb.gmra.mxu0 %v6123_v48  ;;  %v8926_v35 = vld [vmem:[%s11608_s1 + $0x5f0] sm:$0xff] }
  0x82   :  { %5282 = vmatpush.bf16.msra.mxu0 %v8871_v36  ;;  %5248 = vmatmul.bf16.vlgmr.msrb.gmra.mxu1 %v6127_v50  ;;  %v8901_v36 = vld [vmem:[%s11608_s1 + $0x528] sm:$0xff]  ;;  %v8907_v50 = vld [vmem:[%s11608_s1 + $0x558] sm:$0xff]  ;;  %v8950_v25 = vld [vmem:[%s11608_s1 + $0x6b0] sm:$0xff] }
  0x83   :  { %5296 = vmatpush.bf16.msra.mxu1 %v8879_v37  ;;  %5262 = vmatmul.bf16.vlgmr.msrb.gmra.mxu2 %v6131_v49  ;;  %v8909_v37 = vld [vmem:[%s11608_s1 + $0x568] sm:$0xff]  ;;  %v8899_v49 = vld [vmem:[%s11608_s1 + $0x518] sm:$0xff] }
  0x84   :  { %5310 = vmatpush.bf16.msra.mxu2 %v8887_v46  ;;  %5276 = vmatmul.bf16.vlgmr.msrb.gmra.mxu3 %v6135_v51  ;;  %v8924_v46 = vld [vmem:[%s11608_s1 + $0x5e0] sm:$0xff]  ;;  %v8915_v51 = vld [vmem:[%s11608_s1 + $0x598] sm:$0xff] }
  0x85   :  { %5324 = vmatpush.bf16.msra.mxu3 %v8895_v47 }
  0x86   :  { %5283 = vmatpush.bf16.msra.mxu0 %v8870_v52  ;;  %v8923_v52 = vld [vmem:[%s11608_s1 + $0x5d8] sm:$0xff] }
  0x87   :  { %5297 = vmatpush.bf16.msra.mxu1 %v8878_v53 }
  0x88   :  { %5311 = vmatpush.bf16.msra.mxu2 %v8886_v54 }
  0x89   :  { %5325 = vmatpush.bf16.msra.mxu3 %v8894_v55 }
  0x8a   :  { %5284 = vmatpush.bf16.msra.mxu0 %v8869_v56  ;;  %v8898_v56 = vld [vmem:[%s11608_s1 + $0x510] sm:$0xff] }
  0x8b   :  { %5298 = vmatpush.bf16.msra.mxu1 %v8877_v57  ;;  %v8906_v57 = vld [vmem:[%s11608_s1 + $0x550] sm:$0xff] }
  0x8c   :  { %5312 = vmatpush.bf16.msra.mxu2 %v8885_v58 }
  0x8d   :  { %5326 = vmatpush.bf16.msra.mxu3 %v8893_v59  ;;  %v8914_v59 = vld [vmem:[%s11608_s1 + $0x590] sm:$0xff] }
  0x8e   :  { %5285 = vmatpush.bf16.msra.mxu0 %v8868_v60  ;;  %v8922_v60 = vld [vmem:[%s11608_s1 + $0x5d0] sm:$0xff] }
  0x8f   :  { %5299 = vmatpush.bf16.msra.mxu1 %v8876_v61  ;;  %v8897_v61 = vld [vmem:[%s11608_s1 + $0x508] sm:$0xff] }
  0x90   :  { %5313 = vmatpush.bf16.msra.mxu2 %v8884_v62  ;;  %v8905_v62 = vld [vmem:[%s11608_s1 + $0x548] sm:$0xff] }
  0x91   :  { %5327 = vmatpush.bf16.msra.mxu3 %v8892_v63  ;;  %v8913_v63 = vld [vmem:[%s11608_s1 + $0x588] sm:$0xff] }
  0x92   :  { %5286 = vmatpush.bf16.msra.mxu0 %v8867_v0  ;;  %v8921_v0 = vld [vmem:[%s11608_s1 + $0x5c8] sm:$0xff] }
  0x93   :  { %5300 = vmatpush.bf16.msra.mxu1 %v8875_v1  ;;  %v8896_v1 = vld [vmem:[%s11608_s1 + $0x500] sm:$0xff] }
  0x94   :  { %5314 = vmatpush.bf16.msra.mxu2 %v8883_v2  ;;  %v8904_v2 = vld [vmem:[%s11608_s1 + $0x540] sm:$0xff] }
  0x95   :  { %5328 = vmatpush.bf16.msra.mxu3 %v8891_v3  ;;  %v8912_v3 = vld [vmem:[%s11608_s1 + $0x580] sm:$0xff] }
  0x96   :  { %5287 = vmatpush.bf16.msra.mxu0 %v8866_v4  ;;  %v8920_v4 = vld [vmem:[%s11608_s1 + $0x5c0] sm:$0xff] }
  0x97   :  { %5301 = vmatpush.bf16.msra.mxu1 %v8874_v5  ;;  %v8935_v5 = vld [vmem:[%s11608_s1 + $0x638] sm:$0xff] }
  0x98   :  { %5315 = vmatpush.bf16.msra.mxu2 %v8882_v6  ;;  %v8943_v6 = vld [vmem:[%s11608_s1 + $0x678] sm:$0xff] }
  0x99   :  { %5329 = vmatpush.bf16.msra.mxu3 %v8890_v7  ;;  %v6154_v7 = vld [vmem:[%s11609_s0 + $0x50] sm:$0xf] }
  0x9a   :  { %5288 = vmatpush.bf16.msra.mxu0 %v8865_v8  ;;  %v8710_v8 = vld [vmem:[%s11609_s0 + $0x16c] sm:$0xf0] }
  0x9b   :  { %5302 = vmatpush.bf16.msra.mxu1 %v8873_v9  ;;  %v6162_v9 = vld [vmem:[%s11609_s0 + $0x58] sm:$0xf]  ;;  %v6155_v18 = vor.u32 %v8710_v8, %v6154_v7  ;;  %v6180_v7 = vld [vmem:[%s11609_s0 + $0x188] sm:$0xf0] }
  0x9c   :  { %5316 = vmatpush.bf16.msra.mxu2 %v8881_v10  ;;  %v8711_v10 = vld [vmem:[%s11609_s0 + $0x174] sm:$0xf0] }
  0x9d   :  { %5330 = vmatpush.bf16.msra.mxu3 %v8889_v11  ;;  %v8674_v11 = vld [vmem:[%s11609_s0 + $0x54] sm:$0xf]  ;;  %v6163_v19 = vor.u32 %v8711_v10, %v6162_v9  ;;  %v8983_v8 = vld [vmem:[%s11608_s1 + $0x7b8] sm:$0xff] }
  0x9e   :  { %5289 = vmatpush.bf16.msra.mxu0 %v8864_v12  ;;  %v5067_v41 = vpop.f32.mrf.mxu0  ;;  %v6156_v12 = vld [vmem:[%s11609_s0 + $0x170] sm:$0xf0]  ;;  %v8991_v9 = vld [vmem:[%s11608_s1 + $0x7f8] sm:$0xff] }
  0x9f   :  { %5303 = vmatpush.bf16.msra.mxu1 %v8872_v13  ;;  %v5068_v44 = vadd.f32 %v9966_v38, %v5067_v41  ;;  %v5081_v47 = vpop.f32.mrf.mxu1  ;;  %v8675_v13 = vld [vmem:[%s11609_s0 + $0x5c] sm:$0xf]  ;;  %v6159_v20 = vor.u32 %v8674_v11, %v6156_v12 }
  0xa0   :  { %5317 = vmatpush.bf16.msra.mxu2 %v8880_v14  ;;  %v6164_v14 = vld [vmem:[%s11609_s0 + $0x178] sm:$0xf0] }
  0xa1   :  { %5331 = vmatpush.bf16.msra.mxu3 %v8888_v15  ;;  %5290 = vmatmul.bf16.vlgmr.msra.gmra.mxu0 %v6139_v28  ;;  %v5082_v48 = vadd.f32 %v5081_v47, %v5068_v44  ;;  %v8951_v15 = vld [vmem:[%s11608_s1 + $0x6b8] sm:$0xff]  ;;  %v6167_v21 = vor.u32 %v8675_v13, %v6164_v14  ;;  %v8933_v28 = vld [vmem:[%s11608_s1 + $0x628] sm:$0xff] }
  0xa2   :  { %5338 = vmatpush.bf16.msrb.mxu0 %v8903_v16  ;;  %5304 = vmatmul.bf16.vlgmr.msra.gmra.mxu1 %v6143_v30  ;;  %v8959_v16 = vld [vmem:[%s11608_s1 + $0x6f8] sm:$0xff]  ;;  %v8949_v30 = vld [vmem:[%s11608_s1 + $0x6a8] sm:$0xff] }
  0xa3   :  { %5352 = vmatpush.bf16.msrb.mxu1 %v8911_v17  ;;  %5318 = vmatmul.bf16.vlgmr.msra.gmra.mxu2 %v6147_v29  ;;  %v8941_v29 = vld [vmem:[%s11608_s1 + $0x668] sm:$0xff]  ;;  %v8947_v44 = vld [vmem:[%s11608_s1 + $0x698] sm:$0xff] }
  0xa4   :  { %5366 = vmatpush.bf16.msrb.mxu2 %v8919_v26  ;;  %5332 = vmatmul.bf16.vlgmr.msra.gmra.mxu3 %v6151_v31  ;;  %v8958_v26 = vld [vmem:[%s11608_s1 + $0x6f0] sm:$0xff]  ;;  %v8957_v31 = vld [vmem:[%s11608_s1 + $0x6e8] sm:$0xff] }
  0xa5   :  { %5380 = vmatpush.bf16.msrb.mxu3 %v8927_v27 }
  0xa6   :  { %5339 = vmatpush.bf16.msrb.mxu0 %v8902_v32  ;;  %v5095_v53 = vpop.f32.mrf.mxu2  ;;  %v10073_v17 = vpop.f32.mrf.mxu0 }
  0xa7   :  { %5353 = vmatpush.bf16.msrb.mxu1 %v8910_v33  ;;  %v5096_v54 = vadd.f32 %v5095_v53, %v5082_v48  ;;  %v5109_v55 = vpop.f32.mrf.mxu3  ;;  %v10075_v22 = vpop.f32.mrf.mxu1  ;;  %v8954_v53 = vld [vmem:[%s11608_s1 + $0x6d0] sm:$0xff] }
  0xa8   :  { %5367 = vmatpush.bf16.msrb.mxu2 %v8918_v34 }
  0xa9   :  { %5381 = vmatpush.bf16.msrb.mxu3 %v8926_v35  ;;  %v10005_v58 = vadd.f32 %v5109_v55, %v5096_v54  ;;  %v8932_v35 = vld [vmem:[%s11608_s1 + $0x620] sm:$0xff]  ;;  %v8929_v54 = vld [vmem:[%s11608_s1 + $0x608] sm:$0xff] }
  0xaa   :  { %5340 = vmatpush.bf16.msrb.mxu0 %v8901_v36  ;;  %v8940_v36 = vld [vmem:[%s11608_s1 + $0x660] sm:$0xff]  ;;  %v8937_v55 = vld [vmem:[%s11608_s1 + $0x648] sm:$0xff] }
  0xab   :  { %5354 = vmatpush.bf16.msrb.mxu1 %v8909_v37  ;;  %v8948_v37 = vld [vmem:[%s11608_s1 + $0x6a0] sm:$0xff] }
  0xac   :  { %5368 = vmatpush.bf16.msrb.mxu2 %v8917_v39  ;;  %v8956_v39 = vld [vmem:[%s11608_s1 + $0x6e0] sm:$0xff] }
  0xad   :  { %5382 = vmatpush.bf16.msrb.mxu3 %v8925_v40 }
  0xae   :  { %5341 = vmatpush.bf16.msrb.mxu0 %v8900_v42  ;;  %v10089_v27 = vpop.f32.mrf.mxu2  ;;  %v8931_v42 = vld [vmem:[%s11608_s1 + $0x618] sm:$0xff] }
  0xaf   :  { %5355 = vmatpush.bf16.msrb.mxu1 %v8908_v43  ;;  %v10103_v32 = vpop.f32.mrf.mxu3  ;;  %v8939_v43 = vld [vmem:[%s11608_s1 + $0x658] sm:$0xff] }
  0xb0   :  { %5369 = vmatpush.bf16.msrb.mxu2 %v8916_v45  ;;  %v8955_v45 = vld [vmem:[%s11608_s1 + $0x6d8] sm:$0xff] }
  0xb1   :  { %5383 = vmatpush.bf16.msrb.mxu3 %v8924_v46 }
  0xb2   :  { %5342 = vmatpush.bf16.msrb.mxu0 %v8899_v49 }
  0xb3   :  { %5356 = vmatpush.bf16.msrb.mxu1 %v8907_v50  ;;  %v8930_v50 = vld [vmem:[%s11608_s1 + $0x610] sm:$0xff] }
  0xb4   :  { %5370 = vmatpush.bf16.msrb.mxu2 %v8915_v51  ;;  %v8938_v51 = vld [vmem:[%s11608_s1 + $0x650] sm:$0xff] }
  0xb5   :  { %5384 = vmatpush.bf16.msrb.mxu3 %v8923_v52  ;;  %v8946_v52 = vld [vmem:[%s11608_s1 + $0x690] sm:$0xff] }
  0xb6   :  { %5343 = vmatpush.bf16.msrb.mxu0 %v8898_v56  ;;  %v8945_v56 = vld [vmem:[%s11608_s1 + $0x688] sm:$0xff] }
  0xb7   :  { %5357 = vmatpush.bf16.msrb.mxu1 %v8906_v57  ;;  %v8953_v57 = vld [vmem:[%s11608_s1 + $0x6c8] sm:$0xff] }
  0xb8   :  { %5371 = vmatpush.bf16.msrb.mxu2 %v8914_v59  ;;  %v8936_v59 = vld [vmem:[%s11608_s1 + $0x640] sm:$0xff] }
  0xb9   :  { %5385 = vmatpush.bf16.msrb.mxu3 %v8922_v60  ;;  %v8944_v60 = vld [vmem:[%s11608_s1 + $0x680] sm:$0xff] }
  0xba   :  { %5344 = vmatpush.bf16.msrb.mxu0 %v8897_v61  ;;  %v8952_v61 = vld [vmem:[%s11608_s1 + $0x6c0] sm:$0xff] }
  0xbb   :  { %5358 = vmatpush.bf16.msrb.mxu1 %v8905_v62  ;;  %v8967_v62 = vld [vmem:[%s11608_s1 + $0x738] sm:$0xff] }
  0xbc   :  { %5372 = vmatpush.bf16.msrb.mxu2 %v8913_v63  ;;  %v8975_v63 = vld [vmem:[%s11608_s1 + $0x778] sm:$0xff] }
  0xbd   :  { %5386 = vmatpush.bf16.msrb.mxu3 %v8921_v0  ;;  %v6170_v0 = vld [vmem:[%s11609_s0 + $0x60] sm:$0xf] }
  0xbe   :  { %5345 = vmatpush.bf16.msrb.mxu0 %v8896_v1  ;;  %v5123_v33 = vpop.f32.mrf.mxu0  ;;  %v8712_v1 = vld [vmem:[%s11609_s0 + $0x17c] sm:$0xf0] }
  0xbf   :  { %5359 = vmatpush.bf16.msrb.mxu1 %v8904_v2  ;;  %v5124_v34 = vadd.f32 %v5123_v33, %v10005_v58  ;;  %v5137_v40 = vpop.f32.mrf.mxu1  ;;  %v8928_v58 = vld [vmem:[%s11608_s1 + $0x600] sm:$0xff]  ;;  %v6178_v2 = vld [vmem:[%s11609_s0 + $0x68] sm:$0xf]  ;;  %v6171_v10 = vor.u32 %v8712_v1, %v6170_v0  ;;  %v8715_v0 = vld [vmem:[%s11609_s0 + $0x194] sm:$0xf0] }
  0xc0   :  { %5373 = vmatpush.bf16.msrb.mxu2 %v8912_v3  ;;  %v8713_v3 = vld [vmem:[%s11609_s0 + $0x184] sm:$0xf0]  ;;  %v8972_v33 = vld [vmem:[%s11608_s1 + $0x760] sm:$0xff]  ;;  %v8678_v1 = vld [vmem:[%s11609_s0 + $0x74] sm:$0xf] }
  0xc1   :  { %5387 = vmatpush.bf16.msrb.mxu3 %v8920_v4  ;;  %5346 = vmatmul.bf16.vlgmr.msrb.gmra.mxu0 %v6155_v18  ;;  %v5138_v41 = vadd.f32 %v5137_v40, %v5124_v34  ;;  %v8676_v4 = vld [vmem:[%s11609_s0 + $0x64] sm:$0xf]  ;;  %v6179_v11 = vor.u32 %v8713_v3, %v6178_v2  ;;  %v8974_v18 = vld [vmem:[%s11608_s1 + $0x770] sm:$0xff]  ;;  %v8971_v40 = vld [vmem:[%s11608_s1 + $0x758] sm:$0xff] }
  0xc2   :  { %5394 = vmatpush.bf16.msra.mxu0 %v8935_v5  ;;  %5360 = vmatmul.bf16.vlgmr.msrb.gmra.mxu1 %v6159_v20  ;;  %v6172_v5 = vld [vmem:[%s11609_s0 + $0x180] sm:$0xf0]  ;;  %v8990_v20 = vld [vmem:[%s11608_s1 + $0x7f0] sm:$0xff]  ;;  %v8679_v3 = vld [vmem:[%s11609_s0 + $0x7c] sm:$0xf] }
  0xc3   :  { %5408 = vmatpush.bf16.msra.mxu1 %v8943_v6  ;;  %5374 = vmatmul.bf16.vlgmr.msrb.gmra.mxu2 %v6163_v19  ;;  %v8677_v6 = vld [vmem:[%s11609_s0 + $0x6c] sm:$0xf]  ;;  %v6175_v13 = vor.u32 %v8676_v4, %v6172_v5  ;;  %v8982_v19 = vld [vmem:[%s11608_s1 + $0x7b0] sm:$0xff]  ;;  %v6196_v4 = vld [vmem:[%s11609_s0 + $0x198] sm:$0xf0] }
  0xc4   :  { %5422 = vmatpush.bf16.msra.mxu2 %v8951_v15  ;;  %5388 = vmatmul.bf16.vlgmr.msrb.gmra.mxu3 %v6167_v21  ;;  %v6183_v14 = vor.u32 %v8677_v6, %v6180_v7  ;;  %v8965_v21 = vld [vmem:[%s11608_s1 + $0x728] sm:$0xff]  ;;  %v6188_v2 = vld [vmem:[%s11609_s0 + $0x190] sm:$0xf0]  ;;  %v9015_v5 = vld [vmem:[%s11608_s1 + $0x8b8] sm:$0xff] }
  0xc5   :  { %5436 = vmatpush.bf16.msra.mxu3 %v8959_v16  ;;  %v8966_v16 = vld [vmem:[%s11608_s1 + $0x730] sm:$0xff]  ;;  %v9023_v6 = vld [vmem:[%s11608_s1 + $0x8f8] sm:$0xff] }
  0xc6   :  { %5395 = vmatpush.bf16.msra.mxu0 %v8934_v23  ;;  %v5151_v46 = vpop.f32.mrf.mxu2  ;;  %v10204_v12 = vpop.f32.mrf.mxu0  ;;  %v8973_v23 = vld [vmem:[%s11608_s1 + $0x768] sm:$0xff] }
  0xc7   :  { %5409 = vmatpush.bf16.msra.mxu1 %v8942_v24  ;;  %v5152_v47 = vadd.f32 %v5151_v46, %v5138_v41  ;;  %v5165_v48 = vpop.f32.mrf.mxu3  ;;  %v10206_v15 = vpop.f32.mrf.mxu1  ;;  %v8979_v41 = vld [vmem:[%s11608_s1 + $0x798] sm:$0xff] }
  0xc8   :  { %5423 = vmatpush.bf16.msra.mxu2 %v8950_v25  ;;  %v8981_v25 = vld [vmem:[%s11608_s1 + $0x7a8] sm:$0xff] }
  0xc9   :  { %5437 = vmatpush.bf16.msra.mxu3 %v8958_v26  ;;  %v10130_v49 = vadd.f32 %v5165_v48, %v5152_v47  ;;  %v8989_v26 = vld [vmem:[%s11608_s1 + $0x7e8] sm:$0xff]  ;;  %v8962_v47 = vld [vmem:[%s11608_s1 + $0x710] sm:$0xff] }
  0xca   :  { %5396 = vmatpush.bf16.msra.mxu0 %v8933_v28  ;;  %v8970_v48 = vld [vmem:[%s11608_s1 + $0x750] sm:$0xff] }
  0xcb   :  { %5410 = vmatpush.bf16.msra.mxu1 %v8941_v29 }
  0xcc   :  { %5424 = vmatpush.bf16.msra.mxu2 %v8949_v30 }
  0xcd   :  { %5438 = vmatpush.bf16.msra.mxu3 %v8957_v31  ;;  %v8964_v31 = vld [vmem:[%s11608_s1 + $0x720] sm:$0xff] }
  0xce   :  { %5397 = vmatpush.bf16.msra.mxu0 %v8932_v35  ;;  %v10226_v24 = vpop.f32.mrf.mxu2  ;;  %v8980_v35 = vld [vmem:[%s11608_s1 + $0x7a0] sm:$0xff] }
  0xcf   :  { %5411 = vmatpush.bf16.msra.mxu1 %v8940_v36  ;;  %v10234_v28 = vpop.f32.mrf.mxu3  ;;  %v8988_v36 = vld [vmem:[%s11608_s1 + $0x7e0] sm:$0xff] }
  0xd0   :  { %5425 = vmatpush.bf16.msra.mxu2 %v8948_v37 }
  0xd1   :  { %5439 = vmatpush.bf16.msra.mxu3 %v8956_v39  ;;  %v8963_v39 = vld [vmem:[%s11608_s1 + $0x718] sm:$0xff] }
  0xd2   :  { %5398 = vmatpush.bf16.msra.mxu0 %v8931_v42  ;;  %v8987_v42 = vld [vmem:[%s11608_s1 + $0x7d8] sm:$0xff] }
  0xd3   :  { %5412 = vmatpush.bf16.msra.mxu1 %v8939_v43 }
  0xd4   :  { %5426 = vmatpush.bf16.msra.mxu2 %v8947_v44 }
  0xd5   :  { %5440 = vmatpush.bf16.msra.mxu3 %v8955_v45 }
  0xd6   :  { %5399 = vmatpush.bf16.msra.mxu0 %v8930_v50  ;;  %v8986_v50 = vld [vmem:[%s11608_s1 + $0x7d0] sm:$0xff] }
  0xd7   :  { %5413 = vmatpush.bf16.msra.mxu1 %v8938_v51  ;;  %v8961_v51 = vld [vmem:[%s11608_s1 + $0x708] sm:$0xff] }
  0xd8   :  { %5427 = vmatpush.bf16.msra.mxu2 %v8946_v52  ;;  %v8969_v52 = vld [vmem:[%s11608_s1 + $0x748] sm:$0xff] }
  0xd9   :  { %5441 = vmatpush.bf16.msra.mxu3 %v8954_v53  ;;  %v8977_v53 = vld [vmem:[%s11608_s1 + $0x788] sm:$0xff] }
  0xda   :  { %5400 = vmatpush.bf16.msra.mxu0 %v8929_v54  ;;  %v8985_v54 = vld [vmem:[%s11608_s1 + $0x7c8] sm:$0xff] }
  0xdb   :  { %5414 = vmatpush.bf16.msra.mxu1 %v8937_v55  ;;  %v8960_v55 = vld [vmem:[%s11608_s1 + $0x700] sm:$0xff] }
  0xdc   :  { %5428 = vmatpush.bf16.msra.mxu2 %v8945_v56  ;;  %v8968_v56 = vld [vmem:[%s11608_s1 + $0x740] sm:$0xff] }
  0xdd   :  { %5442 = vmatpush.bf16.msra.mxu3 %v8953_v57  ;;  %v8976_v57 = vld [vmem:[%s11608_s1 + $0x780] sm:$0xff] }
  0xde   :  { %5401 = vmatpush.bf16.msra.mxu0 %v8928_v58  ;;  %v5179_v29 = vpop.f32.mrf.mxu0  ;;  %v8984_v58 = vld [vmem:[%s11608_s1 + $0x7c0] sm:$0xff] }
  0xdf   :  { %5415 = vmatpush.bf16.msra.mxu1 %v8936_v59  ;;  %v5180_v30 = vadd.f32 %v5179_v29, %v10130_v49  ;;  %v5193_v34 = vpop.f32.mrf.mxu1  ;;  %v8978_v49 = vld [vmem:[%s11608_s1 + $0x790] sm:$0xff]  ;;  %v8999_v59 = vld [vmem:[%s11608_s1 + $0x838] sm:$0xff] }
  0xe0   :  { %5429 = vmatpush.bf16.msra.mxu2 %v8944_v60  ;;  %v9007_v60 = vld [vmem:[%s11608_s1 + $0x878] sm:$0xff] }
  0xe1   :  { %5443 = vmatpush.bf16.msra.mxu3 %v8952_v61  ;;  %5402 = vmatmul.bf16.vlgmr.msra.gmra.mxu0 %v6171_v10  ;;  %v5194_v37 = vadd.f32 %v5193_v34, %v5180_v30  ;;  %v6186_v61 = vld [vmem:[%s11609_s0 + $0x70] sm:$0xf]  ;;  %v6191_v10 = vor.u32 %v8678_v1, %v6188_v2  ;;  %v9004_v34 = vld [vmem:[%s11608_s1 + $0x860] sm:$0xff]  ;;  %v8717_v1 = vld [vmem:[%s11609_s0 + $0x1a4] sm:$0xf0] }
  0xe2   :  { %5450 = vmatpush.bf16.msrb.mxu0 %v8967_v62  ;;  %5416 = vmatmul.bf16.vlgmr.msra.gmra.mxu1 %v6175_v13  ;;  %v8714_v62 = vld [vmem:[%s11609_s0 + $0x18c] sm:$0xf0]  ;;  %v8680_v2 = vld [vmem:[%s11609_s0 + $0x84] sm:$0xf] }
  0xe3   :  { %5464 = vmatpush.bf16.msrb.mxu1 %v8975_v63  ;;  %5430 = vmatmul.bf16.vlgmr.msra.gmra.mxu2 %v6179_v11  ;;  %v6194_v63 = vld [vmem:[%s11609_s0 + $0x78] sm:$0xf]  ;;  %v6187_v7 = vor.u32 %v8714_v62, %v6186_v61  ;;  %v6199_v11 = vor.u32 %v8679_v3, %v6196_v4  ;;  %v6202_v62 = vld [vmem:[%s11609_s0 + $0x80] sm:$0xf]  ;;  %v6204_v3 = vld [vmem:[%s11609_s0 + $0x1a0] sm:$0xf0] }
  0xe4   :  { %5478 = vmatpush.bf16.msrb.mxu2 %v8983_v8  ;;  %5444 = vmatmul.bf16.vlgmr.msra.gmra.mxu3 %v6183_v14  ;;  %v6195_v8 = vor.u32 %v8715_v0, %v6194_v63  ;;  %v8998_v14 = vld [vmem:[%s11608_s1 + $0x830] sm:$0xff]  ;;  %v9039_v61 = vld [vmem:[%s11608_s1 + $0x978] sm:$0xff]  ;;  %v8716_v63 = vld [vmem:[%s11609_s0 + $0x19c] sm:$0xf0] }
  0xe5   :  { %5492 = vmatpush.bf16.msrb.mxu3 %v8991_v9  ;;  %v6210_v0 = vld [vmem:[%s11609_s0 + $0x88] sm:$0xf]  ;;  %v8681_v4 = vld [vmem:[%s11609_s0 + $0x8c] sm:$0xf] }
  0xe6   :  { %5451 = vmatpush.bf16.msrb.mxu0 %v8966_v16  ;;  %v5207_v43 = vpop.f32.mrf.mxu2  ;;  %v10335_v9 = vpop.f32.mrf.mxu0  ;;  %v9006_v16 = vld [vmem:[%s11608_s1 + $0x870] sm:$0xff] }
  0xe7   :  { %5465 = vmatpush.bf16.msrb.mxu1 %v8974_v18  ;;  %v5208_v44 = vadd.f32 %v5207_v43, %v5194_v37  ;;  %v5221_v45 = vpop.f32.mrf.mxu3  ;;  %v10337_v13 = vpop.f32.mrf.mxu1  ;;  %v9014_v18 = vld [vmem:[%s11608_s1 + $0x8b0] sm:$0xff]  ;;  %v9020_v37 = vld [vmem:[%s11608_s1 + $0x8e0] sm:$0xff]  ;;  %v9019_v43 = vld [vmem:[%s11608_s1 + $0x8d8] sm:$0xff] }
  0xe8   :  { %5479 = vmatpush.bf16.msrb.mxu2 %v8982_v19  ;;  %v9022_v19 = vld [vmem:[%s11608_s1 + $0x8f0] sm:$0xff] }
  0xe9   :  { %5493 = vmatpush.bf16.msrb.mxu3 %v8990_v20  ;;  %v10261_v46 = vadd.f32 %v5221_v45, %v5208_v44  ;;  %v8997_v20 = vld [vmem:[%s11608_s1 + $0x828] sm:$0xff] }
  0xea   :  { %5452 = vmatpush.bf16.msrb.mxu0 %v8965_v21  ;;  %v9005_v21 = vld [vmem:[%s11608_s1 + $0x868] sm:$0xff] }
  0xeb   :  { %5466 = vmatpush.bf16.msrb.mxu1 %v8973_v23 }
  0xec   :  { %5480 = vmatpush.bf16.msrb.mxu2 %v8981_v25  ;;  %v9013_v25 = vld [vmem:[%s11608_s1 + $0x8a8] sm:$0xff] }
  0xed   :  { %5494 = vmatpush.bf16.msrb.mxu3 %v8989_v26  ;;  %v9021_v26 = vld [vmem:[%s11608_s1 + $0x8e8] sm:$0xff] }
  0xee   :  { %5453 = vmatpush.bf16.msrb.mxu0 %v8964_v31  ;;  %v10357_v23 = vpop.f32.mrf.mxu2 }
  0xef   :  { %5467 = vmatpush.bf16.msrb.mxu1 %v8972_v33  ;;  %v10365_v29 = vpop.f32.mrf.mxu3  ;;  %v8996_v33 = vld [vmem:[%s11608_s1 + $0x820] sm:$0xff] }
  0xf0   :  { %5481 = vmatpush.bf16.msrb.mxu2 %v8980_v35 }
  0xf1   :  { %5495 = vmatpush.bf16.msrb.mxu3 %v8988_v36  ;;  %v9012_v36 = vld [vmem:[%s11608_s1 + $0x8a0] sm:$0xff] }
  0xf2   :  { %5454 = vmatpush.bf16.msrb.mxu0 %v8963_v39 }
  0xf3   :  { %5468 = vmatpush.bf16.msrb.mxu1 %v8971_v40  ;;  %v8995_v40 = vld [vmem:[%s11608_s1 + $0x818] sm:$0xff] }
  0xf4   :  { %5482 = vmatpush.bf16.msrb.mxu2 %v8979_v41  ;;  %v9003_v41 = vld [vmem:[%s11608_s1 + $0x858] sm:$0xff] }
  0xf5   :  { %5496 = vmatpush.bf16.msrb.mxu3 %v8987_v42  ;;  %v9011_v42 = vld [vmem:[%s11608_s1 + $0x898] sm:$0xff] }
  0xf6   :  { %5455 = vmatpush.bf16.msrb.mxu0 %v8962_v47 }
  0xf7   :  { %5469 = vmatpush.bf16.msrb.mxu1 %v8970_v48  ;;  %v8994_v48 = vld [vmem:[%s11608_s1 + $0x810] sm:$0xff] }
  0xf8   :  { %5483 = vmatpush.bf16.msrb.mxu2 %v8978_v49  ;;  %v9002_v49 = vld [vmem:[%s11608_s1 + $0x850] sm:$0xff] }
  0xf9   :  { %5497 = vmatpush.bf16.msrb.mxu3 %v8986_v50  ;;  %v9010_v50 = vld [vmem:[%s11608_s1 + $0x890] sm:$0xff] }
  0xfa   :  { %5456 = vmatpush.bf16.msrb.mxu0 %v8961_v51  ;;  %v9018_v51 = vld [vmem:[%s11608_s1 + $0x8d0] sm:$0xff] }
  0xfb   :  { %5470 = vmatpush.bf16.msrb.mxu1 %v8969_v52  ;;  %v8993_v52 = vld [vmem:[%s11608_s1 + $0x808] sm:$0xff] }
  0xfc   :  { %5484 = vmatpush.bf16.msrb.mxu2 %v8977_v53  ;;  %v9001_v53 = vld [vmem:[%s11608_s1 + $0x848] sm:$0xff] }
  0xfd   :  { %5498 = vmatpush.bf16.msrb.mxu3 %v8985_v54  ;;  %v9009_v54 = vld [vmem:[%s11608_s1 + $0x888] sm:$0xff] }
  0xfe   :  { %5457 = vmatpush.bf16.msrb.mxu0 %v8960_v55  ;;  %v5235_v30 = vpop.f32.mrf.mxu0  ;;  %v9017_v55 = vld [vmem:[%s11608_s1 + $0x8c8] sm:$0xff] }
  0xff   :  { %5471 = vmatpush.bf16.msrb.mxu1 %v8968_v56  ;;  %v5236_v31 = vadd.f32 %v5235_v30, %v10261_v46  ;;  %v5249_v35 = vpop.f32.mrf.mxu1  ;;  %v8992_v56 = vld [vmem:[%s11608_s1 + $0x800] sm:$0xff]  ;;  %v9037_v30 = vld [vmem:[%s11608_s1 + $0x968] sm:$0xff] }
 0x100   :  { %5485 = vmatpush.bf16.msrb.mxu2 %v8976_v57  ;;  %v9000_v57 = vld [vmem:[%s11608_s1 + $0x840] sm:$0xff] }
 0x101   :  { %5499 = vmatpush.bf16.msrb.mxu3 %v8984_v58  ;;  %5458 = vmatmul.bf16.vlgmr.msrb.gmra.mxu0 %v6187_v7  ;;  %v5250_v39 = vadd.f32 %v5249_v35, %v5236_v31  ;;  %v9008_v58 = vld [vmem:[%s11608_s1 + $0x880] sm:$0xff]  ;;  %v9055_v7 = vld [vmem:[%s11608_s1 + $0x9f8] sm:$0xff] }
 0x102   :  { %5506 = vmatpush.bf16.msra.mxu0 %v8999_v59  ;;  %5472 = vmatmul.bf16.vlgmr.msrb.gmra.mxu1 %v6191_v10  ;;  %v9016_v59 = vld [vmem:[%s11608_s1 + $0x8c0] sm:$0xff]  ;;  %v6211_v10 = vor.u32 %v8717_v1, %v6210_v0  ;;  %v9071_v1 = vld [vmem:[%s11608_s1 + $0xa78] sm:$0xff] }
 0x103   :  { %5520 = vmatpush.bf16.msra.mxu1 %v9007_v60  ;;  %5486 = vmatmul.bf16.vlgmr.msrb.gmra.mxu2 %v6195_v8  ;;  %v9031_v60 = vld [vmem:[%s11608_s1 + $0x938] sm:$0xff]  ;;  %v6203_v8 = vor.u32 %v8716_v63, %v6202_v62  ;;  %v9032_v62 = vld [vmem:[%s11608_s1 + $0x940] sm:$0xff] }
 0x104   :  { %5534 = vmatpush.bf16.msra.mxu2 %v9015_v5  ;;  %5500 = vmatmul.bf16.vlgmr.msrb.gmra.mxu3 %v6199_v11  ;;  %v6212_v5 = vld [vmem:[%s11609_s0 + $0x1a8] sm:$0xf0]  ;;  %v9040_v63 = vld [vmem:[%s11608_s1 + $0x980] sm:$0xff] }
 0x105   :  { %5548 = vmatpush.bf16.msra.mxu3 %v9023_v6  ;;  %v9047_v6 = vld [vmem:[%s11608_s1 + $0x9b8] sm:$0xff]  ;;  %v9048_v0 = vld [vmem:[%s11608_s1 + $0x9c0] sm:$0xff] }
 0x106   :  { %5507 = vmatpush.bf16.msra.mxu0 %v8998_v14  ;;  %v5263_v44 = vpop.f32.mrf.mxu2  ;;  %v10466_v11 = vpop.f32.mrf.mxu0  ;;  %v6207_v14 = vor.u32 %v8680_v2, %v6204_v3  ;;  %v6218_v2 = vld [vmem:[%s11609_s0 + $0x90] sm:$0xf] }
 0x107   :  { %5521 = vmatpush.bf16.msra.mxu1 %v9006_v16  ;;  %v5264_v45 = vadd.f32 %v5263_v44, %v5250_v39  ;;  %v5277_v46 = vpop.f32.mrf.mxu3  ;;  %v6215_v16 = vor.u32 %v8681_v4, %v6212_v5  ;;  %v9028_v39 = vld [vmem:[%s11608_s1 + $0x920] sm:$0xff]  ;;  %v8718_v3 = vld [vmem:[%s11609_s0 + $0x1ac] sm:$0xf0]  ;;  %v6226_v4 = vld [vmem:[%s11609_s0 + $0x98] sm:$0xf] }
 0x108   :  { %5535 = vmatpush.bf16.msra.mxu2 %v9014_v18  ;;  %v5070_v18 = vadd.f32 %v9966_v38, %v10073_v17  ;;  %v9054_v38 = vld [vmem:[%s11608_s1 + $0x9f0] sm:$0xff]  ;;  %v8719_v5 = vld [vmem:[%s11609_s0 + $0x1b4] sm:$0xf0] }
 0x109   :  { %5549 = vmatpush.bf16.msra.mxu3 %v9022_v19  ;;  %v10392_v47 = vadd.f32 %v5277_v46, %v5264_v45  ;;  %v10470_v19 = vpop.f32.mrf.mxu1  ;;  %v9027_v45 = vld [vmem:[%s11608_s1 + $0x918] sm:$0xff] }
 0x10a   :  { %5508 = vmatpush.bf16.msra.mxu0 %v8997_v20  ;;  %v9030_v20 = vld [vmem:[%s11608_s1 + $0x930] sm:$0xff]  ;;  %v5084_v17 = vadd.f32 %v10075_v22, %v5070_v18  ;;  %v9053_v22 = vld [vmem:[%s11608_s1 + $0x9e8] sm:$0xff]  ;;  %v9035_v46 = vld [vmem:[%s11608_s1 + $0x958] sm:$0xff] }
 0x10b   :  { %5522 = vmatpush.bf16.msra.mxu1 %v9005_v21  ;;  %v9038_v21 = vld [vmem:[%s11608_s1 + $0x970] sm:$0xff] }
 0x10c   :  { %5536 = vmatpush.bf16.msra.mxu2 %v9013_v25  ;;  %v9046_v25 = vld [vmem:[%s11608_s1 + $0x9b0] sm:$0xff] }
 0x10d   :  { %5550 = vmatpush.bf16.msra.mxu3 %v9021_v26  ;;  %v9029_v26 = vld [vmem:[%s11608_s1 + $0x928] sm:$0xff] }
 0x10e   :  { %5509 = vmatpush.bf16.msra.mxu0 %v8996_v33  ;;  %v10491_v31 = vpop.f32.mrf.mxu2  ;;  %v9045_v33 = vld [vmem:[%s11608_s1 + $0x9a8] sm:$0xff] }
 0x10f   :  { %5523 = vmatpush.bf16.msra.mxu1 %v9004_v34  ;;  %v10499_v34 = vpop.f32.mrf.mxu3 }
 0x110   :  { %5537 = vmatpush.bf16.msra.mxu2 %v9012_v36  ;;  %v5098_v36 = vadd.f32 %v10089_v27, %v5084_v17  ;;  %v9052_v27 = vld [vmem:[%s11608_s1 + $0x9e0] sm:$0xff] }
 0x111   :  { %5551 = vmatpush.bf16.msra.mxu3 %v9020_v37 }
 0x112   :  { %5510 = vmatpush.bf16.msra.mxu0 %v8995_v40  ;;  %v9036_v40 = vld [vmem:[%s11608_s1 + $0x960] sm:$0xff]  ;;  %v5112_v44 = vadd.f32 %v10103_v32, %v5098_v36  ;;  %v9051_v32 = vld [vmem:[%s11608_s1 + $0x9d8] sm:$0xff] }
 0x113   :  { %5524 = vmatpush.bf16.msra.mxu1 %v9003_v41 }
 0x114   :  { %5538 = vmatpush.bf16.msra.mxu2 %v9011_v42  ;;  %v9044_v42 = vld [vmem:[%s11608_s1 + $0x9a0] sm:$0xff] }
 0x115   :  { %5552 = vmatpush.bf16.msra.mxu3 %v9019_v43 }
 0x116   :  { %5511 = vmatpush.bf16.msra.mxu0 %v8994_v48 }
 0x117   :  { %5525 = vmatpush.bf16.msra.mxu1 %v9002_v49 }
 0x118   :  { %5539 = vmatpush.bf16.msra.mxu2 %v9010_v50 }
 0x119   :  { %5553 = vmatpush.bf16.msra.mxu3 %v9018_v51  ;;  %v5126_v51 = vadd.f32 %v10204_v12, %v5112_v44  ;;  %v9050_v12 = vld [vmem:[%s11608_s1 + $0x9d0] sm:$0xff]  ;;  %v9060_v44 = vld [vmem:[%s11608_s1 + $0xa20] sm:$0xff] }
 0x11a   :  { %5512 = vmatpush.bf16.msra.mxu0 %v8993_v52 }
 0x11b   :  { %5526 = vmatpush.bf16.msra.mxu1 %v9001_v53  ;;  %v9026_v53 = vld [vmem:[%s11608_s1 + $0x910] sm:$0xff] }
 0x11c   :  { %5540 = vmatpush.bf16.msra.mxu2 %v9009_v54  ;;  %v9034_v54 = vld [vmem:[%s11608_s1 + $0x950] sm:$0xff] }
 0x11d   :  { %5554 = vmatpush.bf16.msra.mxu3 %v9017_v55  ;;  %v9042_v55 = vld [vmem:[%s11608_s1 + $0x990] sm:$0xff] }
 0x11e   :  { %5513 = vmatpush.bf16.msra.mxu0 %v8992_v56  ;;  %v5291_v35 = vpop.f32.mrf.mxu0  ;;  %v5140_v56 = vadd.f32 %v10206_v15, %v5126_v51  ;;  %v9049_v15 = vld [vmem:[%s11608_s1 + $0x9c8] sm:$0xff]  ;;  %v9075_v51 = vld [vmem:[%s11608_s1 + $0xa98] sm:$0xff] }
 0x11f   :  { %5527 = vmatpush.bf16.msra.mxu1 %v9000_v57  ;;  %v5292_v37 = vadd.f32 %v5291_v35, %v10392_v47  ;;  %v5305_v41 = vpop.f32.mrf.mxu1  ;;  %v9043_v47 = vld [vmem:[%s11608_s1 + $0x998] sm:$0xff]  ;;  %v9025_v57 = vld [vmem:[%s11608_s1 + $0x908] sm:$0xff] }
 0x120   :  { %5541 = vmatpush.bf16.msra.mxu2 %v9008_v58  ;;  %v9033_v58 = vld [vmem:[%s11608_s1 + $0x948] sm:$0xff] }
 0x121   :  { %5555 = vmatpush.bf16.msra.mxu3 %v9016_v59  ;;  %5514 = vmatmul.bf16.vlgmr.msra.gmra.mxu0 %v6203_v8  ;;  %v5306_v43 = vadd.f32 %v5305_v41, %v5292_v37  ;;  %v9041_v59 = vld [vmem:[%s11608_s1 + $0x988] sm:$0xff]  ;;  %v6220_v8 = vld [vmem:[%s11609_s0 + $0x1b0] sm:$0xf0] }
 0x122   :  { %5562 = vmatpush.bf16.msrb.mxu0 %v9031_v60  ;;  %5528 = vmatmul.bf16.vlgmr.msra.gmra.mxu1 %v6207_v14  ;;  %v5154_v60 = vadd.f32 %v10226_v24, %v5140_v56  ;;  %v9063_v24 = vld [vmem:[%s11608_s1 + $0xa38] sm:$0xff]  ;;  %v9061_v37 = vld [vmem:[%s11608_s1 + $0xa28] sm:$0xff] }
 0x123   :  { %5576 = vmatpush.bf16.msrb.mxu1 %v9039_v61  ;;  %5542 = vmatmul.bf16.vlgmr.msra.gmra.mxu2 %v6211_v10  ;;  %v9024_v61 = vld [vmem:[%s11608_s1 + $0x900] sm:$0xff]  ;;  %v8683_v10 = vld [vmem:[%s11609_s0 + $0x9c] sm:$0xf] }
 0x124   :  { %5590 = vmatpush.bf16.msrb.mxu2 %v9047_v6  ;;  %5556 = vmatmul.bf16.vlgmr.msra.gmra.mxu3 %v6215_v16  ;;  %v8682_v6 = vld [vmem:[%s11609_s0 + $0x94] sm:$0xf]  ;;  %v6228_v14 = vld [vmem:[%s11609_s0 + $0x1b8] sm:$0xf0] }
 0x125   :  { %5604 = vmatpush.bf16.msrb.mxu3 %v9055_v7  ;;  %v5168_v7 = vadd.f32 %v10234_v28, %v5154_v60  ;;  %v9079_v16 = vld [vmem:[%s11608_s1 + $0xab8] sm:$0xff]  ;;  %v6231_v17 = vor.u32 %v8683_v10, %v6228_v14  ;;  %v9065_v60 = vld [vmem:[%s11608_s1 + $0xa48] sm:$0xff]  ;;  %v6236_v14 = vld [vmem:[%s11609_s0 + $0x1c0] sm:$0xf0] }
 0x126   :  { %5563 = vmatpush.bf16.msrb.mxu0 %v9030_v20  ;;  %v5319_v48 = vpop.f32.mrf.mxu2  ;;  %v9087_v28 = vld [vmem:[%s11608_s1 + $0xaf8] sm:$0xff]  ;;  %v6219_v20 = vor.u32 %v8718_v3, %v6218_v2 }
 0x127   :  { %5577 = vmatpush.bf16.msrb.mxu1 %v9038_v21  ;;  %v5320_v49 = vadd.f32 %v5319_v48, %v5306_v43  ;;  %v5333_v50 = vpop.f32.mrf.mxu3  ;;  %v5182_v18 = vadd.f32 %v10335_v9, %v5168_v7  ;;  %v6227_v21 = vor.u32 %v8719_v5, %v6226_v4  ;;  %v9070_v9 = vld [vmem:[%s11608_s1 + $0xa70] sm:$0xff]  ;;  %v9095_v2 = vld [vmem:[%s11608_s1 + $0xb38] sm:$0xff]  ;;  %v6234_v4 = vld [vmem:[%s11609_s0 + $0xa0] sm:$0xf] }
 0x128   :  { %5591 = vmatpush.bf16.msrb.mxu2 %v9046_v25  ;;  %v10607_v25 = vpop.f32.mrf.mxu0  ;;  %v9103_v3 = vld [vmem:[%s11608_s1 + $0xb78] sm:$0xff]  ;;  %v8720_v5 = vld [vmem:[%s11609_s0 + $0x1bc] sm:$0xf0]  ;;  %v8721_v7 = vld [vmem:[%s11609_s0 + $0x1c4] sm:$0xf0] }
 0x129   :  { %5605 = vmatpush.bf16.msrb.mxu3 %v9054_v38  ;;  %v10529_v52 = vadd.f32 %v5333_v50, %v5320_v49  ;;  %v6223_v38 = vor.u32 %v8682_v6, %v6220_v8  ;;  %v5196_v35 = vadd.f32 %v10337_v13, %v5182_v18  ;;  %v9077_v13 = vld [vmem:[%s11608_s1 + $0xaa8] sm:$0xff]  ;;  %v9059_v49 = vld [vmem:[%s11608_s1 + $0xa18] sm:$0xff]  ;;  %v8684_v8 = vld [vmem:[%s11609_s0 + $0xa4] sm:$0xf] }
 0x12a   :  { %5564 = vmatpush.bf16.msrb.mxu0 %v9029_v26  ;;  %v10609_v26 = vpop.f32.mrf.mxu1  ;;  %v9067_v50 = vld [vmem:[%s11608_s1 + $0xa58] sm:$0xff]  ;;  %v6242_v6 = vld [vmem:[%s11609_s0 + $0xa8] sm:$0xf] }
 0x12b   :  { %5578 = vmatpush.bf16.msrb.mxu1 %v9037_v30  ;;  %v9062_v30 = vld [vmem:[%s11608_s1 + $0xa30] sm:$0xff]  ;;  %v5210_v36 = vadd.f32 %v10357_v23, %v5196_v35  ;;  %v9085_v23 = vld [vmem:[%s11608_s1 + $0xae8] sm:$0xff]  ;;  %v9111_v18 = vld [vmem:[%s11608_s1 + $0xbb8] sm:$0xff] }
 0x12c   :  { %5592 = vmatpush.bf16.msrb.mxu2 %v9045_v33  ;;  %v9078_v33 = vld [vmem:[%s11608_s1 + $0xab0] sm:$0xff] }
 0x12d   :  { %5606 = vmatpush.bf16.msrb.mxu3 %v9053_v22  ;;  %v9086_v22 = vld [vmem:[%s11608_s1 + $0xaf0] sm:$0xff] }
 0x12e   :  { %5565 = vmatpush.bf16.msrb.mxu0 %v9028_v39  ;;  %v9069_v39 = vld [vmem:[%s11608_s1 + $0xa68] sm:$0xff]  ;;  %v9110_v35 = vld [vmem:[%s11608_s1 + $0xbb0] sm:$0xff] }
 0x12f   :  { %5579 = vmatpush.bf16.msrb.mxu1 %v9036_v40  ;;  %v10631_v40 = vpop.f32.mrf.mxu2  ;;  %v10639_v41 = vpop.f32.mrf.mxu3 }
 0x130   :  { %5593 = vmatpush.bf16.msrb.mxu2 %v9044_v42 }
 0x131   :  { %5607 = vmatpush.bf16.msrb.mxu3 %v9052_v27  ;;  %v5224_v27 = vadd.f32 %v10365_v29, %v5210_v36  ;;  %v9084_v29 = vld [vmem:[%s11608_s1 + $0xae0] sm:$0xff]  ;;  %v9118_v36 = vld [vmem:[%s11608_s1 + $0xbf0] sm:$0xff] }
 0x132   :  { %5566 = vmatpush.bf16.msrb.mxu0 %v9027_v45  ;;  %v9068_v45 = vld [vmem:[%s11608_s1 + $0xa60] sm:$0xff] }
 0x133   :  { %5580 = vmatpush.bf16.msrb.mxu1 %v9035_v46 }
 0x134   :  { %5594 = vmatpush.bf16.msrb.mxu2 %v9043_v47  ;;  %v9076_v47 = vld [vmem:[%s11608_s1 + $0xaa0] sm:$0xff] }
 0x135   :  { %5608 = vmatpush.bf16.msrb.mxu3 %v9051_v32  ;;  %v5238_v32 = vadd.f32 %v10466_v11, %v5224_v27  ;;  %v9083_v11 = vld [vmem:[%s11608_s1 + $0xad8] sm:$0xff] }
 0x136   :  { %5567 = vmatpush.bf16.msrb.mxu0 %v9026_v53 }
 0x137   :  { %5581 = vmatpush.bf16.msrb.mxu1 %v9034_v54  ;;  %v5252_v53 = vadd.f32 %v10470_v19, %v5238_v32  ;;  %v9074_v19 = vld [vmem:[%s11608_s1 + $0xa90] sm:$0xff]  ;;  %v9108_v32 = vld [vmem:[%s11608_s1 + $0xba0] sm:$0xff] }
 0x138   :  { %5595 = vmatpush.bf16.msrb.mxu2 %v9042_v55 }
 0x139   :  { %5609 = vmatpush.bf16.msrb.mxu3 %v9050_v12  ;;  %v5266_v12 = vadd.f32 %v10491_v31, %v5252_v53  ;;  %v9082_v31 = vld [vmem:[%s11608_s1 + $0xad0] sm:$0xff]  ;;  %v9115_v53 = vld [vmem:[%s11608_s1 + $0xbd8] sm:$0xff] }
 0x13a   :  { %5568 = vmatpush.bf16.msrb.mxu0 %v9025_v57  ;;  %v9058_v57 = vld [vmem:[%s11608_s1 + $0xa10] sm:$0xff] }
 0x13b   :  { %5582 = vmatpush.bf16.msrb.mxu1 %v9033_v58  ;;  %v9066_v58 = vld [vmem:[%s11608_s1 + $0xa50] sm:$0xff] }
 0x13c   :  { %5596 = vmatpush.bf16.msrb.mxu2 %v9041_v59  ;;  %v5280_v59 = vadd.f32 %v10499_v34, %v5266_v12  ;;  %v9081_v34 = vld [vmem:[%s11608_s1 + $0xac8] sm:$0xff] }
 0x13d   :  { %5610 = vmatpush.bf16.msrb.mxu3 %v9049_v15  ;;  %v9057_v15 = vld [vmem:[%s11608_s1 + $0xa08] sm:$0xff] }
 0x13e   :  { %5569 = vmatpush.bf16.msrb.mxu0 %v9024_v61  ;;  %v5347_v42 = vpop.f32.mrf.mxu0  ;;  %v9073_v61 = vld [vmem:[%s11608_s1 + $0xa88] sm:$0xff] }
 0x13f   :  { %5583 = vmatpush.bf16.msrb.mxu1 %v9032_v62  ;;  %v5348_v43 = vadd.f32 %v5347_v42, %v10529_v52  ;;  %v5361_v46 = vpop.f32.mrf.mxu1  ;;  %v5294_v62 = vadd.f32 %v10607_v25, %v5280_v59  ;;  %v6235_v25 = vor.u32 %v8720_v5, %v6234_v4  ;;  %v9117_v42 = vld [vmem:[%s11608_s1 + $0xbe8] sm:$0xff]  ;;  %v9098_v59 = vld [vmem:[%s11608_s1 + $0xb50] sm:$0xff]  ;;  %v9088_v4 = vld [vmem:[%s11608_s1 + $0xb00] sm:$0xff] }
 0x140   :  { %5597 = vmatpush.bf16.msrb.mxu2 %v9040_v63  ;;  %v9056_v63 = vld [vmem:[%s11608_s1 + $0xa00] sm:$0xff] }
 0x141   :  { %5611 = vmatpush.bf16.msrb.mxu3 %v9048_v0  ;;  %5570 = vmatmul.bf16.vlgmr.msrb.gmra.mxu0 %v6219_v20  ;;  %v5362_v48 = vadd.f32 %v5361_v46, %v5348_v43  ;;  %v9064_v0 = vld [vmem:[%s11608_s1 + $0xa40] sm:$0xff]  ;;  %v5308_v10 = vadd.f32 %v10609_v26, %v5294_v62  ;;  %v9119_v20 = vld [vmem:[%s11608_s1 + $0xbf8] sm:$0xff]  ;;  %v6239_v26 = vor.u32 %v8684_v8, %v6236_v14  ;;  %v9089_v62 = vld [vmem:[%s11608_s1 + $0xb08] sm:$0xff] }
 0x142   :  { %5618 = vmatpush.bf16.msra.mxu0 %v9063_v24  ;;  %5584 = vmatmul.bf16.vlgmr.msrb.gmra.mxu1 %v6223_v38  ;;  %v9072_v24 = vld [vmem:[%s11608_s1 + $0xa80] sm:$0xff]  ;;  %v6243_v38 = vor.u32 %v8721_v7, %v6242_v6  ;;  %v9135_v14 = vld [vmem:[%s11608_s1 + $0xc78] sm:$0xff] }
 0x143   :  { %5632 = vmatpush.bf16.msra.mxu1 %v9071_v1  ;;  %5598 = vmatmul.bf16.vlgmr.msrb.gmra.mxu2 %v6227_v21  ;;  %v9080_v1 = vld [vmem:[%s11608_s1 + $0xac0] sm:$0xff]  ;;  %v5322_v21 = vadd.f32 %v10631_v40, %v5308_v10  ;;  %v9093_v40 = vld [vmem:[%s11608_s1 + $0xb28] sm:$0xff]  ;;  %v9127_v10 = vld [vmem:[%s11608_s1 + $0xc38] sm:$0xff] }
 0x144   :  { %5646 = vmatpush.bf16.msra.mxu2 %v9079_v16  ;;  %5612 = vmatmul.bf16.vlgmr.msrb.gmra.mxu3 %v6231_v17  ;;  %v8685_v16 = vld [vmem:[%s11609_s0 + $0xac] sm:$0xf]  ;;  %v9092_v46 = vld [vmem:[%s11608_s1 + $0xb20] sm:$0xff] }
 0x145   :  { %5660 = vmatpush.bf16.msra.mxu3 %v9087_v28  ;;  %v6244_v28 = vld [vmem:[%s11609_s0 + $0x1c8] sm:$0xf0]  ;;  %v9096_v5 = vld [vmem:[%s11608_s1 + $0xb40] sm:$0xff] }
 0x146   :  { %5619 = vmatpush.bf16.msra.mxu0 %v9062_v30  ;;  %v5375_v52 = vpop.f32.mrf.mxu2  ;;  %v5349_v17 = vpop.f32.mrf.mxu0  ;;  %v6247_v30 = vor.u32 %v8685_v16, %v6244_v28  ;;  %v9104_v6 = vld [vmem:[%s11608_s1 + $0xb80] sm:$0xff]  ;;  %v6250_v16 = vld [vmem:[%s11609_s0 + $0xb0] sm:$0xf] }
 0x147   :  { %5633 = vmatpush.bf16.msra.mxu1 %v9070_v9  ;;  %v5376_v54 = vadd.f32 %v5375_v52, %v5362_v48  ;;  %v5389_v55 = vpop.f32.mrf.mxu3  ;;  %v5363_v9 = vpop.f32.mrf.mxu1  ;;  %v9116_v48 = vld [vmem:[%s11608_s1 + $0xbe0] sm:$0xff]  ;;  %v9107_v52 = vld [vmem:[%s11608_s1 + $0xb98] sm:$0xff]  ;;  %v8722_v28 = vld [vmem:[%s11609_s0 + $0x1cc] sm:$0xf0] }
 0x148   :  { %5647 = vmatpush.bf16.msra.mxu2 %v9078_v33  ;;  %v9094_v33 = vld [vmem:[%s11608_s1 + $0xb30] sm:$0xff]  ;;  %v9112_v7 = vld [vmem:[%s11608_s1 + $0xbc0] sm:$0xff] }
 0x149   :  { %5661 = vmatpush.bf16.msra.mxu3 %v9086_v22  ;;  %v10670_v56 = vadd.f32 %v5389_v55, %v5376_v54  ;;  %v9102_v22 = vld [vmem:[%s11608_s1 + $0xb70] sm:$0xff] }
 0x14a   :  { %5620 = vmatpush.bf16.msra.mxu0 %v9061_v37  ;;  %v5336_v37 = vadd.f32 %v10639_v41, %v5322_v21  ;;  %v9109_v41 = vld [vmem:[%s11608_s1 + $0xba8] sm:$0xff]  ;;  %v8686_v21 = vld [vmem:[%s11609_s0 + $0xb4] sm:$0xf] }
 0x14b   :  { %5634 = vmatpush.bf16.msra.mxu1 %v9069_v39 }
 0x14c   :  { %5648 = vmatpush.bf16.msra.mxu2 %v9077_v13  ;;  %v5350_v39 = vadd.f32 %v5349_v17, %v5336_v37  ;;  %v9101_v13 = vld [vmem:[%s11608_s1 + $0xb68] sm:$0xff]  ;;  %v6260_v17 = vld [vmem:[%s11609_s0 + $0x1d8] sm:$0xf0]  ;;  %v9134_v37 = vld [vmem:[%s11608_s1 + $0xc70] sm:$0xff] }
 0x14d   :  { %5662 = vmatpush.bf16.msra.mxu3 %v9085_v23 }
 0x14e   :  { %5621 = vmatpush.bf16.msra.mxu0 %v9060_v44  ;;  %v5377_v23 = vpop.f32.mrf.mxu2  ;;  %v5364_v44 = vadd.f32 %v5363_v9, %v5350_v39  ;;  %v6251_v9 = vor.u32 %v8722_v28, %v6250_v16  ;;  %v9142_v39 = vld [vmem:[%s11608_s1 + $0xcb0] sm:$0xff]  ;;  %v8688_v16 = vld [vmem:[%s11609_s0 + $0xc4] sm:$0xf] }
 0x14f   :  { %5635 = vmatpush.bf16.msra.mxu1 %v9068_v45  ;;  %v5391_v27 = vpop.f32.mrf.mxu3  ;;  %v6268_v28 = vld [vmem:[%s11609_s0 + $0x1e0] sm:$0xf0] }
 0x150   :  { %5649 = vmatpush.bf16.msra.mxu2 %v9076_v47  ;;  %v9100_v47 = vld [vmem:[%s11608_s1 + $0xb60] sm:$0xff] }
 0x151   :  { %5663 = vmatpush.bf16.msra.mxu3 %v9084_v29 }
 0x152   :  { %5622 = vmatpush.bf16.msra.mxu0 %v9059_v49  ;;  %v5378_v49 = vadd.f32 %v5377_v23, %v5364_v44  ;;  %v9133_v23 = vld [vmem:[%s11608_s1 + $0xc68] sm:$0xff]  ;;  %v9124_v44 = vld [vmem:[%s11608_s1 + $0xc20] sm:$0xff] }
 0x153   :  { %5636 = vmatpush.bf16.msra.mxu1 %v9067_v50 }
 0x154   :  { %5650 = vmatpush.bf16.msra.mxu2 %v9075_v51  ;;  %v9091_v51 = vld [vmem:[%s11608_s1 + $0xb18] sm:$0xff]  ;;  %v5392_v55 = vadd.f32 %v5391_v27, %v5378_v49 }
 0x155   :  { %5664 = vmatpush.bf16.msra.mxu3 %v9083_v11  ;;  %v9099_v11 = vld [vmem:[%s11608_s1 + $0xb58] sm:$0xff] }
 0x156   :  { %5623 = vmatpush.bf16.msra.mxu0 %v9058_v57  ;;  %v9131_v49 = vld [vmem:[%s11608_s1 + $0xc58] sm:$0xff] }
 0x157   :  { %5637 = vmatpush.bf16.msra.mxu1 %v9066_v58 }
 0x158   :  { %5651 = vmatpush.bf16.msra.mxu2 %v9074_v19 }
 0x159   :  { %5665 = vmatpush.bf16.msra.mxu3 %v9082_v31  ;;  %v9090_v31 = vld [vmem:[%s11608_s1 + $0xb10] sm:$0xff] }
 0x15a   :  { %5624 = vmatpush.bf16.msra.mxu0 %v9057_v15 }
 0x15b   :  { %5638 = vmatpush.bf16.msra.mxu1 %v9065_v60  ;;  %v9106_v60 = vld [vmem:[%s11608_s1 + $0xb90] sm:$0xff] }
 0x15c   :  { %5652 = vmatpush.bf16.msra.mxu2 %v9073_v61  ;;  %v9114_v61 = vld [vmem:[%s11608_s1 + $0xbd0] sm:$0xff] }
 0x15d   :  { %5666 = vmatpush.bf16.msra.mxu3 %v9081_v34 }
 0x15e   :  { %5625 = vmatpush.bf16.msra.mxu0 %v9056_v63  ;;  %v5403_v43 = vpop.f32.mrf.mxu0  ;;  %v9097_v63 = vld [vmem:[%s11608_s1 + $0xb48] sm:$0xff] }
 0x15f   :  { %5639 = vmatpush.bf16.msra.mxu1 %v9064_v0  ;;  %v5404_v45 = vadd.f32 %v5403_v43, %v10670_v56  ;;  %v5417_v29 = vpop.f32.mrf.mxu1  ;;  %v9105_v0 = vld [vmem:[%s11608_s1 + $0xb88] sm:$0xff] }
 0x160   :  { %5653 = vmatpush.bf16.msra.mxu2 %v9072_v24  ;;  %v9113_v24 = vld [vmem:[%s11608_s1 + $0xbc8] sm:$0xff] }
 0x161   :  { %5667 = vmatpush.bf16.msra.mxu3 %v9080_v1  ;;  %5626 = vmatmul.bf16.vlgmr.msra.gmra.mxu0 %v6235_v25  ;;  %v5418_v50 = vadd.f32 %v5417_v29, %v5404_v45  ;;  %v6252_v25 = vld [vmem:[%s11609_s0 + $0x1d0] sm:$0xf0]  ;;  %v9132_v45 = vld [vmem:[%s11608_s1 + $0xc60] sm:$0xff] }
 0x162   :  { %5674 = vmatpush.bf16.msrb.mxu0 %v9095_v2  ;;  %5640 = vmatmul.bf16.vlgmr.msra.gmra.mxu1 %v6239_v26  ;;  %v9143_v26 = vld [vmem:[%s11608_s1 + $0xcb8] sm:$0xff]  ;;  %v9148_v29 = vld [vmem:[%s11608_s1 + $0xce0] sm:$0xff] }
 0x163   :  { %5688 = vmatpush.bf16.msrb.mxu1 %v9103_v3  ;;  %5654 = vmatmul.bf16.vlgmr.msra.gmra.mxu2 %v6243_v38  ;;  %v8687_v38 = vld [vmem:[%s11609_s0 + $0xbc] sm:$0xf] }
 0x164   :  { %5702 = vmatpush.bf16.msrb.mxu2 %v9111_v18  ;;  %5668 = vmatmul.bf16.vlgmr.msra.gmra.mxu3 %v6247_v30  ;;  %v6258_v18 = vld [vmem:[%s11609_s0 + $0xb8] sm:$0xf] }
 0x165   :  { %5716 = vmatpush.bf16.msrb.mxu3 %v9119_v20  ;;  %v8723_v20 = vld [vmem:[%s11609_s0 + $0x1d4] sm:$0xf0] }
 0x166   :  { %5675 = vmatpush.bf16.msrb.mxu0 %v9094_v33  ;;  %v5431_v54 = vpop.f32.mrf.mxu2  ;;  %v5405_v57 = vpop.f32.mrf.mxu0  ;;  %v9151_v30 = vld [vmem:[%s11608_s1 + $0xcf8] sm:$0xff]  ;;  %v6259_v33 = vor.u32 %v8723_v20, %v6258_v18  ;;  %v8689_v18 = vld [vmem:[%s11609_s0 + $0xcc] sm:$0xf] }
 0x167   :  { %5689 = vmatpush.bf16.msrb.mxu1 %v9102_v22  ;;  %v5432_v12 = vadd.f32 %v5431_v54, %v5418_v50  ;;  %v5445_v56 = vpop.f32.mrf.mxu3  ;;  %v5406_v58 = vadd.f32 %v5405_v57, %v5392_v55  ;;  %v5419_v15 = vpop.f32.mrf.mxu1  ;;  %v6255_v22 = vor.u32 %v8686_v21, %v6252_v25  ;;  %v9139_v50 = vld [vmem:[%s11608_s1 + $0xc98] sm:$0xff]  ;;  %v9130_v57 = vld [vmem:[%s11608_s1 + $0xc50] sm:$0xff]  ;;  %v6276_v20 = vld [vmem:[%s11609_s0 + $0x1e8] sm:$0xf0] }
 0x168   :  { %5703 = vmatpush.bf16.msrb.mxu2 %v9110_v35  ;;  %v6263_v35 = vor.u32 %v8687_v38, %v6260_v17  ;;  %v9175_v21 = vld [vmem:[%s11608_s1 + $0xdb8] sm:$0xff] }
 0x169   :  { %5717 = vmatpush.bf16.msrb.mxu3 %v9118_v36  ;;  %v10798_v19 = vadd.f32 %v5445_v56, %v5432_v12  ;;  %v5420_v34 = vadd.f32 %v5419_v15, %v5406_v58  ;;  %v9126_v36 = vld [vmem:[%s11608_s1 + $0xc30] sm:$0xff]  ;;  %v9121_v15 = vld [vmem:[%s11608_s1 + $0xc08] sm:$0xff]  ;;  %v9183_v25 = vld [vmem:[%s11608_s1 + $0xdf8] sm:$0xff] }
 0x16a   :  { %5676 = vmatpush.bf16.msrb.mxu0 %v9093_v40  ;;  %v9150_v40 = vld [vmem:[%s11608_s1 + $0xcf0] sm:$0xff] }
 0x16b   :  { %5690 = vmatpush.bf16.msrb.mxu1 %v9101_v13  ;;  %v9125_v13 = vld [vmem:[%s11608_s1 + $0xc28] sm:$0xff]  ;;  %v9122_v56 = vld [vmem:[%s11608_s1 + $0xc10] sm:$0xff] }
 0x16c   :  { %5704 = vmatpush.bf16.msrb.mxu2 %v9109_v41  ;;  %v9141_v41 = vld [vmem:[%s11608_s1 + $0xca8] sm:$0xff] }
 0x16d   :  { %5718 = vmatpush.bf16.msrb.mxu3 %v9117_v42  ;;  %v9149_v42 = vld [vmem:[%s11608_s1 + $0xce8] sm:$0xff] }
 0x16e   :  { %5677 = vmatpush.bf16.msrb.mxu0 %v9092_v46  ;;  %v5433_v1 = vpop.f32.mrf.mxu2 }
 0x16f   :  { %5691 = vmatpush.bf16.msrb.mxu1 %v9100_v47  ;;  %v5434_v2 = vadd.f32 %v5433_v1, %v5420_v34  ;;  %v5447_v3 = vpop.f32.mrf.mxu3  ;;  %v9140_v47 = vld [vmem:[%s11608_s1 + $0xca0] sm:$0xff]  ;;  %v9145_v34 = vld [vmem:[%s11608_s1 + $0xcc8] sm:$0xff] }
 0x170   :  { %5705 = vmatpush.bf16.msrb.mxu2 %v9108_v32  ;;  %v9128_v1 = vld [vmem:[%s11608_s1 + $0xc40] sm:$0xff] }
 0x171   :  { %5719 = vmatpush.bf16.msrb.mxu3 %v9116_v48  ;;  %v10836_v8 = vadd.f32 %v5447_v3, %v5434_v2  ;;  %v9123_v48 = vld [vmem:[%s11608_s1 + $0xc18] sm:$0xff]  ;;  %v9136_v2 = vld [vmem:[%s11608_s1 + $0xc80] sm:$0xff] }
 0x172   :  { %5678 = vmatpush.bf16.msrb.mxu0 %v9091_v51  ;;  %v9147_v51 = vld [vmem:[%s11608_s1 + $0xcd8] sm:$0xff]  ;;  %v9144_v3 = vld [vmem:[%s11608_s1 + $0xcc0] sm:$0xff] }
 0x173   :  { %5692 = vmatpush.bf16.msrb.mxu1 %v9099_v11 }
 0x174   :  { %5706 = vmatpush.bf16.msrb.mxu2 %v9107_v52 }
 0x175   :  { %5720 = vmatpush.bf16.msrb.mxu3 %v9115_v53 }
 0x176   :  { %5679 = vmatpush.bf16.msrb.mxu0 %v9090_v31  ;;  %v9146_v31 = vld [vmem:[%s11608_s1 + $0xcd0] sm:$0xff] }
 0x177   :  { %5693 = vmatpush.bf16.msrb.mxu1 %v9098_v59 }
 0x178   :  { %5707 = vmatpush.bf16.msrb.mxu2 %v9106_v60  ;;  %v9129_v60 = vld [vmem:[%s11608_s1 + $0xc48] sm:$0xff] }
 0x179   :  { %5721 = vmatpush.bf16.msrb.mxu3 %v9114_v61  ;;  %v9137_v61 = vld [vmem:[%s11608_s1 + $0xc88] sm:$0xff] }
 0x17a   :  { %5680 = vmatpush.bf16.msrb.mxu0 %v9089_v62 }
 0x17b   :  { %5694 = vmatpush.bf16.msrb.mxu1 %v9097_v63 }
 0x17c   :  { %5708 = vmatpush.bf16.msrb.mxu2 %v9105_v0 }
 0x17d   :  { %5722 = vmatpush.bf16.msrb.mxu3 %v9113_v24  ;;  %v9120_v24 = vld [vmem:[%s11608_s1 + $0xc00] sm:$0xff] }
 0x17e   :  { %5681 = vmatpush.bf16.msrb.mxu0 %v9088_v4  ;;  %v5459_v27 = vpop.f32.mrf.mxu0 }
 0x17f   :  { %5695 = vmatpush.bf16.msrb.mxu1 %v9096_v5  ;;  %v5460_v43 = vadd.f32 %v5459_v27, %v10798_v19  ;;  %v5473_v46 = vpop.f32.mrf.mxu1  ;;  %v9138_v19 = vld [vmem:[%s11608_s1 + $0xc90] sm:$0xff]  ;;  %v9159_v5 = vld [vmem:[%s11608_s1 + $0xd38] sm:$0xff] }
 0x180   :  { %5709 = vmatpush.bf16.msrb.mxu2 %v9104_v6  ;;  %v9167_v6 = vld [vmem:[%s11608_s1 + $0xd78] sm:$0xff] }
 0x181   :  { %5723 = vmatpush.bf16.msrb.mxu3 %v9112_v7  ;;  %5682 = vmatmul.bf16.vlgmr.msrb.gmra.mxu0 %v6251_v9  ;;  %v5474_v32 = vadd.f32 %v5473_v46, %v5460_v43  ;;  %v6266_v7 = vld [vmem:[%s11609_s0 + $0xc0] sm:$0xf]  ;;  %v9158_v9 = vld [vmem:[%s11608_s1 + $0xd30] sm:$0xff]  ;;  %v9155_v46 = vld [vmem:[%s11608_s1 + $0xd18] sm:$0xff] }
 0x182   :  { %5730 = vmatpush.bf16.msra.mxu0 %v9127_v10  ;;  %5696 = vmatmul.bf16.vlgmr.msrb.gmra.mxu1 %v6255_v22  ;;  %v6274_v10 = vld [vmem:[%s11609_s0 + $0xc8] sm:$0xf]  ;;  %v9174_v22 = vld [vmem:[%s11608_s1 + $0xdb0] sm:$0xff]  ;;  %v9172_v43 = vld [vmem:[%s11608_s1 + $0xda0] sm:$0xff] }
 0x183   :  { %5744 = vmatpush.bf16.msra.mxu1 %v9135_v14  ;;  %5710 = vmatmul.bf16.vlgmr.msrb.gmra.mxu2 %v6259_v33  ;;  %v8725_v14 = vld [vmem:[%s11609_s0 + $0x1e4] sm:$0xf0]  ;;  %v9166_v33 = vld [vmem:[%s11608_s1 + $0xd70] sm:$0xff] }
 0x184   :  { %5758 = vmatpush.bf16.msra.mxu2 %v9143_v26  ;;  %5724 = vmatmul.bf16.vlgmr.msrb.gmra.mxu3 %v6263_v35  ;;  %v6275_v17 = vor.u32 %v8725_v14, %v6274_v10  ;;  %v6271_v26 = vor.u32 %v8688_v16, %v6268_v28  ;;  %v9182_v35 = vld [vmem:[%s11608_s1 + $0xdf0] sm:$0xff]  ;;  %v8691_v10 = vld [vmem:[%s11609_s0 + $0xdc] sm:$0xf] }
 0x185   :  { %5772 = vmatpush.bf16.msra.mxu3 %v9151_v30  ;;  %v6279_v30 = vor.u32 %v8689_v18, %v6276_v20  ;;  %v6292_v14 = vld [vmem:[%s11609_s0 + $0x1f8] sm:$0xf0] }
 0x186   :  { %5731 = vmatpush.bf16.msra.mxu0 %v9126_v36  ;;  %v5487_v11 = vpop.f32.mrf.mxu2  ;;  %v5461_v54 = vpop.f32.mrf.mxu0  ;;  %v9157_v36 = vld [vmem:[%s11608_s1 + $0xd28] sm:$0xff]  ;;  %v9207_v16 = vld [vmem:[%s11608_s1 + $0xeb8] sm:$0xff] }
 0x187   :  { %5745 = vmatpush.bf16.msra.mxu1 %v9134_v37  ;;  %v5488_v52 = vadd.f32 %v5487_v11, %v5474_v32  ;;  %v5501_v53 = vpop.f32.mrf.mxu3  ;;  %v5462_v55 = vadd.f32 %v5461_v54, %v10836_v8  ;;  %v5475_v58 = vpop.f32.mrf.mxu1  ;;  %v8724_v8 = vld [vmem:[%s11609_s0 + $0x1dc] sm:$0xf0]  ;;  %v9165_v37 = vld [vmem:[%s11608_s1 + $0xd68] sm:$0xff]  ;;  %v9179_v32 = vld [vmem:[%s11608_s1 + $0xdd8] sm:$0xff] }
 0x188   :  { %5759 = vmatpush.bf16.msra.mxu2 %v9142_v39  ;;  %v6267_v38 = vor.u32 %v8724_v8, %v6266_v7  ;;  %v9173_v39 = vld [vmem:[%s11608_s1 + $0xda8] sm:$0xff]  ;;  %v9162_v54 = vld [vmem:[%s11608_s1 + $0xd50] sm:$0xff]  ;;  %v9215_v28 = vld [vmem:[%s11608_s1 + $0xef8] sm:$0xff] }
 0x189   :  { %5773 = vmatpush.bf16.msra.mxu3 %v9150_v40  ;;  %v10924_v12 = vadd.f32 %v5501_v53, %v5488_v52  ;;  %v5476_v59 = vadd.f32 %v5475_v58, %v5462_v55  ;;  %v9181_v40 = vld [vmem:[%s11608_s1 + $0xde8] sm:$0xff]  ;;  %v9154_v53 = vld [vmem:[%s11608_s1 + $0xd10] sm:$0xff] }
 0x18a   :  { %5732 = vmatpush.bf16.msra.mxu0 %v9125_v13  ;;  %v9153_v58 = vld [vmem:[%s11608_s1 + $0xd08] sm:$0xff]  ;;  %v8690_v7 = vld [vmem:[%s11609_s0 + $0xd4] sm:$0xf] }
 0x18b   :  { %5746 = vmatpush.bf16.msra.mxu1 %v9133_v23  ;;  %v6284_v8 = vld [vmem:[%s11609_s0 + $0x1f0] sm:$0xf0] }
 0x18c   :  { %5760 = vmatpush.bf16.msra.mxu2 %v9141_v41  ;;  %v9156_v41 = vld [vmem:[%s11608_s1 + $0xd20] sm:$0xff] }
 0x18d   :  { %5774 = vmatpush.bf16.msra.mxu3 %v9149_v42  ;;  %v9164_v42 = vld [vmem:[%s11608_s1 + $0xd60] sm:$0xff] }
 0x18e   :  { %5733 = vmatpush.bf16.msra.mxu0 %v9124_v44  ;;  %v5489_v62 = vpop.f32.mrf.mxu2  ;;  %v9180_v44 = vld [vmem:[%s11608_s1 + $0xde0] sm:$0xff] }
 0x18f   :  { %5747 = vmatpush.bf16.msra.mxu1 %v9132_v45  ;;  %v5490_v63 = vadd.f32 %v5489_v62, %v5476_v59  ;;  %v5503_v0 = vpop.f32.mrf.mxu3  ;;  %v9177_v59 = vld [vmem:[%s11608_s1 + $0xdc8] sm:$0xff]  ;;  %v9160_v62 = vld [vmem:[%s11608_s1 + $0xd40] sm:$0xff] }
 0x190   :  { %5761 = vmatpush.bf16.msra.mxu2 %v9140_v47  ;;  %v9163_v47 = vld [vmem:[%s11608_s1 + $0xd58] sm:$0xff] }
 0x191   :  { %5775 = vmatpush.bf16.msra.mxu3 %v9148_v29  ;;  %v10962_v4 = vadd.f32 %v5503_v0, %v5490_v63  ;;  %v9171_v29 = vld [vmem:[%s11608_s1 + $0xd98] sm:$0xff]  ;;  %v9168_v63 = vld [vmem:[%s11608_s1 + $0xd80] sm:$0xff] }
 0x192   :  { %5734 = vmatpush.bf16.msra.mxu0 %v9123_v48  ;;  %v9176_v0 = vld [vmem:[%s11608_s1 + $0xdc0] sm:$0xff] }
 0x193   :  { %5748 = vmatpush.bf16.msra.mxu1 %v9131_v49 }
 0x194   :  { %5762 = vmatpush.bf16.msra.mxu2 %v9139_v50 }
 0x195   :  { %5776 = vmatpush.bf16.msra.mxu3 %v9147_v51 }
 0x196   :  { %5735 = vmatpush.bf16.msra.mxu0 %v9122_v56  ;;  %v9178_v56 = vld [vmem:[%s11608_s1 + $0xdd0] sm:$0xff] }
 0x197   :  { %5749 = vmatpush.bf16.msra.mxu1 %v9130_v57 }
 0x198   :  { %5763 = vmatpush.bf16.msra.mxu2 %v9138_v19  ;;  %v9161_v19 = vld [vmem:[%s11608_s1 + $0xd48] sm:$0xff] }
 0x199   :  { %5777 = vmatpush.bf16.msra.mxu3 %v9146_v31  ;;  %v9169_v31 = vld [vmem:[%s11608_s1 + $0xd88] sm:$0xff] }
 0x19a   :  { %5736 = vmatpush.bf16.msra.mxu0 %v9121_v15 }
 0x19b   :  { %5750 = vmatpush.bf16.msra.mxu1 %v9129_v60 }
 0x19c   :  { %5764 = vmatpush.bf16.msra.mxu2 %v9137_v61 }
 0x19d   :  { %5778 = vmatpush.bf16.msra.mxu3 %v9145_v34  ;;  %v9152_v34 = vld [vmem:[%s11608_s1 + $0xd00] sm:$0xff] }
 0x19e   :  { %5737 = vmatpush.bf16.msra.mxu0 %v9120_v24  ;;  %v5515_v13 = vpop.f32.mrf.mxu0 }
 0x19f   :  { %5751 = vmatpush.bf16.msra.mxu1 %v9128_v1  ;;  %v5516_v23 = vadd.f32 %v5515_v13, %v10924_v12  ;;  %v5529_v27 = vpop.f32.mrf.mxu1  ;;  %v9170_v12 = vld [vmem:[%s11608_s1 + $0xd90] sm:$0xff]  ;;  %v9191_v1 = vld [vmem:[%s11608_s1 + $0xe38] sm:$0xff] }
 0x1a0   :  { %5765 = vmatpush.bf16.msra.mxu2 %v9136_v2  ;;  %v9199_v2 = vld [vmem:[%s11608_s1 + $0xe78] sm:$0xff] }
 0x1a1   :  { %5779 = vmatpush.bf16.msra.mxu3 %v9144_v3  ;;  %5738 = vmatmul.bf16.vlgmr.msra.gmra.mxu0 %v6267_v38  ;;  %v5530_v45 = vadd.f32 %v5529_v27, %v5516_v23  ;;  %v6282_v3 = vld [vmem:[%s11609_s0 + $0xd0] sm:$0xf]  ;;  %v9204_v23 = vld [vmem:[%s11608_s1 + $0xea0] sm:$0xff]  ;;  %v9187_v27 = vld [vmem:[%s11608_s1 + $0xe18] sm:$0xff] }
 0x1a2   :  { %5786 = vmatpush.bf16.msrb.mxu0 %v9159_v5  ;;  %5752 = vmatmul.bf16.vlgmr.msra.gmra.mxu1 %v6271_v26  ;;  %v6290_v5 = vld [vmem:[%s11609_s0 + $0xd8] sm:$0xf]  ;;  %v9190_v38 = vld [vmem:[%s11608_s1 + $0xe30] sm:$0xff] }
 0x1a3   :  { %5800 = vmatpush.bf16.msrb.mxu1 %v9167_v6  ;;  %5766 = vmatmul.bf16.vlgmr.msra.gmra.mxu2 %v6275_v17  ;;  %v8727_v6 = vld [vmem:[%s11609_s0 + $0x1f4] sm:$0xf0]  ;;  %v9198_v17 = vld [vmem:[%s11608_s1 + $0xe70] sm:$0xff] }
 0x1a4   :  { %5814 = vmatpush.bf16.msrb.mxu2 %v9175_v21  ;;  %5780 = vmatmul.bf16.vlgmr.msra.gmra.mxu3 %v6279_v30  ;;  %v6291_v20 = vor.u32 %v8727_v6, %v6290_v5  ;;  %v6287_v21 = vor.u32 %v8690_v7, %v6284_v8  ;;  %v9206_v26 = vld [vmem:[%s11608_s1 + $0xeb0] sm:$0xff]  ;;  %v8693_v5 = vld [vmem:[%s11609_s0 + $0xec] sm:$0xf]  ;;  %v9239_v7 = vld [vmem:[%s11608_s1 + $0xfb8] sm:$0xff] }
 0x1a5   :  { %5828 = vmatpush.bf16.msrb.mxu3 %v9183_v25  ;;  %v6295_v25 = vor.u32 %v8691_v10, %v6292_v14  ;;  %v9214_v30 = vld [vmem:[%s11608_s1 + $0xef0] sm:$0xff]  ;;  %v6308_v6 = vld [vmem:[%s11609_s0 + $0x208] sm:$0xf0]  ;;  %v9247_v8 = vld [vmem:[%s11608_s1 + $0xff8] sm:$0xff] }
 0x1a6   :  { %5787 = vmatpush.bf16.msrb.mxu0 %v9158_v9  ;;  %v5543_v48 = vpop.f32.mrf.mxu2  ;;  %v5517_v51 = vpop.f32.mrf.mxu0  ;;  %v9189_v9 = vld [vmem:[%s11608_s1 + $0xe28] sm:$0xff] }
 0x1a7   :  { %5801 = vmatpush.bf16.msrb.mxu1 %v9166_v33  ;;  %v5544_v49 = vadd.f32 %v5543_v48, %v5530_v45  ;;  %v5557_v50 = vpop.f32.mrf.mxu3  ;;  %v5518_v11 = vadd.f32 %v5517_v51, %v10962_v4  ;;  %v5531_v55 = vpop.f32.mrf.mxu1  ;;  %v8726_v4 = vld [vmem:[%s11609_s0 + $0x1ec] sm:$0xf0]  ;;  %v9197_v33 = vld [vmem:[%s11608_s1 + $0xe68] sm:$0xff]  ;;  %v9211_v45 = vld [vmem:[%s11608_s1 + $0xed8] sm:$0xff] }
 0x1a8   :  { %5815 = vmatpush.bf16.msrb.mxu2 %v9174_v22  ;;  %v6283_v18 = vor.u32 %v8726_v4, %v6282_v3  ;;  %v9205_v22 = vld [vmem:[%s11608_s1 + $0xea8] sm:$0xff]  ;;  %v9194_v51 = vld [vmem:[%s11608_s1 + $0xe50] sm:$0xff]  ;;  %v8692_v3 = vld [vmem:[%s11609_s0 + $0xe4] sm:$0xf] }
 0x1a9   :  { %5829 = vmatpush.bf16.msrb.mxu3 %v9182_v35  ;;  %v11050_v52 = vadd.f32 %v5557_v50, %v5544_v49  ;;  %v5532_v57 = vadd.f32 %v5531_v55, %v5518_v11  ;;  %v9213_v35 = vld [vmem:[%s11608_s1 + $0xee8] sm:$0xff]  ;;  %v9186_v50 = vld [vmem:[%s11608_s1 + $0xe10] sm:$0xff]  ;;  %v6300_v4 = vld [vmem:[%s11609_s0 + $0x200] sm:$0xf0] }
 0x1aa   :  { %5788 = vmatpush.bf16.msrb.mxu0 %v9157_v36  ;;  %v9185_v55 = vld [vmem:[%s11608_s1 + $0xe08] sm:$0xff] }
 0x1ab   :  { %5802 = vmatpush.bf16.msrb.mxu1 %v9165_v37 }
 0x1ac   :  { %5816 = vmatpush.bf16.msrb.mxu2 %v9173_v39  ;;  %v9188_v39 = vld [vmem:[%s11608_s1 + $0xe20] sm:$0xff] }
 0x1ad   :  { %5830 = vmatpush.bf16.msrb.mxu3 %v9181_v40  ;;  %v9196_v40 = vld [vmem:[%s11608_s1 + $0xe60] sm:$0xff] }
 0x1ae   :  { %5789 = vmatpush.bf16.msrb.mxu0 %v9156_v41  ;;  %v5545_v15 = vpop.f32.mrf.mxu2  ;;  %v9212_v41 = vld [vmem:[%s11608_s1 + $0xee0] sm:$0xff] }
 0x1af   :  { %5803 = vmatpush.bf16.msrb.mxu1 %v9164_v42  ;;  %v5546_v60 = vadd.f32 %v5545_v15, %v5532_v57  ;;  %v5559_v61 = vpop.f32.mrf.mxu3  ;;  %v9209_v57 = vld [vmem:[%s11608_s1 + $0xec8] sm:$0xff]  ;;  %v9192_v15 = vld [vmem:[%s11608_s1 + $0xe40] sm:$0xff] }
 0x1b0   :  { %5817 = vmatpush.bf16.msrb.mxu2 %v9172_v43  ;;  %v9195_v43 = vld [vmem:[%s11608_s1 + $0xe58] sm:$0xff] }
 0x1b1   :  { %5831 = vmatpush.bf16.msrb.mxu3 %v9180_v44  ;;  %v11088_v24 = vadd.f32 %v5559_v61, %v5546_v60  ;;  %v9203_v44 = vld [vmem:[%s11608_s1 + $0xe98] sm:$0xff]  ;;  %v9200_v60 = vld [vmem:[%s11608_s1 + $0xe80] sm:$0xff] }
 0x1b2   :  { %5790 = vmatpush.bf16.msrb.mxu0 %v9155_v46  ;;  %v9208_v61 = vld [vmem:[%s11608_s1 + $0xec0] sm:$0xff] }
 0x1b3   :  { %5804 = vmatpush.bf16.msrb.mxu1 %v9163_v47 }
 0x1b4   :  { %5818 = vmatpush.bf16.msrb.mxu2 %v9171_v29 }
 0x1b5   :  { %5832 = vmatpush.bf16.msrb.mxu3 %v9179_v32 }
 0x1b6   :  { %5791 = vmatpush.bf16.msrb.mxu0 %v9154_v53  ;;  %v9210_v53 = vld [vmem:[%s11608_s1 + $0xed0] sm:$0xff] }
 0x1b7   :  { %5805 = vmatpush.bf16.msrb.mxu1 %v9162_v54 }
 0x1b8   :  { %5819 = vmatpush.bf16.msrb.mxu2 %v9170_v12  ;;  %v9193_v12 = vld [vmem:[%s11608_s1 + $0xe48] sm:$0xff] }
 0x1b9   :  { %5833 = vmatpush.bf16.msrb.mxu3 %v9178_v56  ;;  %v9201_v56 = vld [vmem:[%s11608_s1 + $0xe88] sm:$0xff] }
 0x1ba   :  { %5792 = vmatpush.bf16.msrb.mxu0 %v9153_v58 }
 0x1bb   :  { %5806 = vmatpush.bf16.msrb.mxu1 %v9161_v19 }
 0x1bc   :  { %5820 = vmatpush.bf16.msrb.mxu2 %v9169_v31 }
 0x1bd   :  { %5834 = vmatpush.bf16.msrb.mxu3 %v9177_v59  ;;  %v9184_v59 = vld [vmem:[%s11608_s1 + $0xe00] sm:$0xff] }
 0x1be   :  { %5793 = vmatpush.bf16.msrb.mxu0 %v9152_v34  ;;  %v5571_v36 = vpop.f32.mrf.mxu0 }
 0x1bf   :  { %5807 = vmatpush.bf16.msrb.mxu1 %v9160_v62  ;;  %v5572_v37 = vadd.f32 %v5571_v36, %v11050_v52  ;;  %v5585_v13 = vpop.f32.mrf.mxu1  ;;  %v9202_v52 = vld [vmem:[%s11608_s1 + $0xe90] sm:$0xff]  ;;  %v9223_v62 = vld [vmem:[%s11608_s1 + $0xf38] sm:$0xff] }
 0x1c0   :  { %5821 = vmatpush.bf16.msrb.mxu2 %v9168_v63  ;;  %v9231_v63 = vld [vmem:[%s11608_s1 + $0xf78] sm:$0xff] }
 0x1c1   :  { %5835 = vmatpush.bf16.msrb.mxu3 %v9176_v0  ;;  %5794 = vmatmul.bf16.vlgmr.msrb.gmra.mxu0 %v6283_v18  ;;  %v5586_v42 = vadd.f32 %v5585_v13, %v5572_v37  ;;  %v6298_v0 = vld [vmem:[%s11609_s0 + $0xe0] sm:$0xf]  ;;  %v9222_v18 = vld [vmem:[%s11608_s1 + $0xf30] sm:$0xff]  ;;  %v9219_v36 = vld [vmem:[%s11608_s1 + $0xf18] sm:$0xff] }
 0x1c2   :  { %5842 = vmatpush.bf16.msra.mxu0 %v9191_v1  ;;  %5808 = vmatmul.bf16.vlgmr.msrb.gmra.mxu1 %v6287_v21  ;;  %v6306_v1 = vld [vmem:[%s11609_s0 + $0xe8] sm:$0xf]  ;;  %v9238_v21 = vld [vmem:[%s11608_s1 + $0xfb0] sm:$0xff]  ;;  %v9227_v37 = vld [vmem:[%s11608_s1 + $0xf58] sm:$0xff] }
 0x1c3   :  { %5856 = vmatpush.bf16.msra.mxu1 %v9199_v2  ;;  %5822 = vmatmul.bf16.vlgmr.msrb.gmra.mxu2 %v6291_v20  ;;  %v8729_v2 = vld [vmem:[%s11609_s0 + $0x204] sm:$0xf0]  ;;  %v9230_v20 = vld [vmem:[%s11608_s1 + $0xf70] sm:$0xff] }
 0x1c4   :  { %5870 = vmatpush.bf16.msra.mxu2 %v9207_v16  ;;  %5836 = vmatmul.bf16.vlgmr.msrb.gmra.mxu3 %v6295_v25  ;;  %v6307_v14 = vor.u32 %v8729_v2, %v6306_v1  ;;  %v6303_v16 = vor.u32 %v8692_v3, %v6300_v4  ;;  %v9246_v25 = vld [vmem:[%s11608_s1 + $0xff0] sm:$0xff]  ;;  %v9269_v1 = vld [vmem:[%s11608_s1 + $0x10a8] sm:$0xff]  ;;  %v9252_v3 = vld [vmem:[%s11608_s1 + $0x1020] sm:$0xff] }
 0x1c5   :  { %5884 = vmatpush.bf16.msra.mxu3 %v9215_v28  ;;  %v6311_v28 = vor.u32 %v8693_v5, %v6308_v6  ;;  %v9218_v13 = vld [vmem:[%s11608_s1 + $0xf10] sm:$0xff]  ;;  %v9277_v2 = vld [vmem:[%s11608_s1 + $0x10e8] sm:$0xff]  ;;  %v9260_v4 = vld [vmem:[%s11608_s1 + $0x1060] sm:$0xff] }
 0x1c6   :  { %5843 = vmatpush.bf16.msra.mxu0 %v9190_v38  ;;  %v5599_v46 = vpop.f32.mrf.mxu2  ;;  %v5573_v32 = vpop.f32.mrf.mxu0  ;;  %v9221_v38 = vld [vmem:[%s11608_s1 + $0xf28] sm:$0xff]  ;;  %v9268_v5 = vld [vmem:[%s11608_s1 + $0x10a0] sm:$0xff] }
 0x1c7   :  { %5857 = vmatpush.bf16.msra.mxu1 %v9198_v17  ;;  %v5600_v47 = vadd.f32 %v5599_v46, %v5586_v42  ;;  %v5613_v29 = vpop.f32.mrf.mxu3  ;;  %v5574_v48 = vadd.f32 %v5573_v32, %v11088_v24  ;;  %v5587_v11 = vpop.f32.mrf.mxu1  ;;  %v8728_v24 = vld [vmem:[%s11609_s0 + $0x1fc] sm:$0xf0]  ;;  %v9229_v17 = vld [vmem:[%s11608_s1 + $0xf68] sm:$0xff]  ;;  %v9242_v42 = vld [vmem:[%s11608_s1 + $0xfd0] sm:$0xff] }
 0x1c8   :  { %5871 = vmatpush.bf16.msra.mxu2 %v9206_v26  ;;  %v6299_v10 = vor.u32 %v8728_v24, %v6298_v0  ;;  %v9237_v26 = vld [vmem:[%s11608_s1 + $0xfa8] sm:$0xff]  ;;  %v9216_v46 = vld [vmem:[%s11608_s1 + $0xf00] sm:$0xff] }
 0x1c9   :  { %5885 = vmatpush.bf16.msra.mxu3 %v9214_v30  ;;  %v11176_v49 = vadd.f32 %v5613_v29, %v5600_v47  ;;  %v5588_v54 = vadd.f32 %v5587_v11, %v5574_v48  ;;  %v9245_v30 = vld [vmem:[%s11608_s1 + $0xfe8] sm:$0xff]  ;;  %v9224_v47 = vld [vmem:[%s11608_s1 + $0xf40] sm:$0xff]  ;;  %v9255_v48 = vld [vmem:[%s11608_s1 + $0x1038] sm:$0xff] }
 0x1ca   :  { %5844 = vmatpush.bf16.msra.mxu0 %v9189_v9  ;;  %v9220_v9 = vld [vmem:[%s11608_s1 + $0xf20] sm:$0xff]  ;;  %v8730_v11 = vld [vmem:[%s11609_s0 + $0x20c] sm:$0xf0]  ;;  %v9253_v0 = vld [vmem:[%s11608_s1 + $0x1028] sm:$0xff] }
 0x1cb   :  { %5858 = vmatpush.bf16.msra.mxu1 %v9197_v33  ;;  %v9228_v33 = vld [vmem:[%s11608_s1 + $0xf60] sm:$0xff]  ;;  %v9261_v24 = vld [vmem:[%s11608_s1 + $0x1068] sm:$0xff] }
 0x1cc   :  { %5872 = vmatpush.bf16.msra.mxu2 %v9205_v22  ;;  %v9236_v22 = vld [vmem:[%s11608_s1 + $0xfa0] sm:$0xff] }
 0x1cd   :  { %5886 = vmatpush.bf16.msra.mxu3 %v9213_v35  ;;  %v9244_v35 = vld [vmem:[%s11608_s1 + $0xfe0] sm:$0xff] }
 0x1ce   :  { %5845 = vmatpush.bf16.msra.mxu0 %v9188_v39  ;;  %v5601_v58 = vpop.f32.mrf.mxu2  ;;  %v9235_v39 = vld [vmem:[%s11608_s1 + $0xf98] sm:$0xff]  ;;  %v9232_v29 = vld [vmem:[%s11608_s1 + $0xf80] sm:$0xff] }
 0x1cf   :  { %5859 = vmatpush.bf16.msra.mxu1 %v9196_v40  ;;  %v5602_v19 = vadd.f32 %v5601_v58, %v5588_v54  ;;  %v5615_v31 = vpop.f32.mrf.mxu3  ;;  %v9243_v40 = vld [vmem:[%s11608_s1 + $0xfd8] sm:$0xff]  ;;  %v9240_v32 = vld [vmem:[%s11608_s1 + $0xfc0] sm:$0xff]  ;;  %v8694_v54 = vld [vmem:[%s11609_s0 + $0xf4] sm:$0xf] }
 0x1d0   :  { %5873 = vmatpush.bf16.msra.mxu2 %v9204_v23  ;;  %v9226_v23 = vld [vmem:[%s11608_s1 + $0xf50] sm:$0xff]  ;;  %v9279_v58 = vld [vmem:[%s11608_s1 + $0x10f8] sm:$0xff]  ;;  %v9276_v6 = vld [vmem:[%s11608_s1 + $0x10e0] sm:$0xff] }
 0x1d1   :  { %5887 = vmatpush.bf16.msra.mxu3 %v9212_v41  ;;  %v11214_v34 = vadd.f32 %v5615_v31, %v5602_v19  ;;  %v9234_v41 = vld [vmem:[%s11608_s1 + $0xf90] sm:$0xff] }
 0x1d2   :  { %5846 = vmatpush.bf16.msra.mxu0 %v9187_v27  ;;  %v9217_v27 = vld [vmem:[%s11608_s1 + $0xf08] sm:$0xff] }
 0x1d3   :  { %5860 = vmatpush.bf16.msra.mxu1 %v9195_v43  ;;  %v9225_v43 = vld [vmem:[%s11608_s1 + $0xf48] sm:$0xff] }
 0x1d4   :  { %5874 = vmatpush.bf16.msra.mxu2 %v9203_v44  ;;  %v9233_v44 = vld [vmem:[%s11608_s1 + $0xf88] sm:$0xff] }
 0x1d5   :  { %5888 = vmatpush.bf16.msra.mxu3 %v9211_v45  ;;  %v9241_v45 = vld [vmem:[%s11608_s1 + $0xfc8] sm:$0xff] }
 0x1d6   :  { %5847 = vmatpush.bf16.msra.mxu0 %v9186_v50  ;;  %v9263_v50 = vld [vmem:[%s11608_s1 + $0x1078] sm:$0xff] }
 0x1d7   :  { %5861 = vmatpush.bf16.msra.mxu1 %v9194_v51  ;;  %v6314_v51 = vld [vmem:[%s11609_s0 + $0xf0] sm:$0xf] }
 0x1d8   :  { %5875 = vmatpush.bf16.msra.mxu2 %v9202_v52  ;;  %v6322_v52 = vld [vmem:[%s11609_s0 + $0xf8] sm:$0xf]  ;;  %v6315_v19 = vor.u32 %v8730_v11, %v6314_v51  ;;  %v9285_v51 = vld [vmem:[%s11608_s1 + $0x1128] sm:$0xff] }
 0x1d9   :  { %5889 = vmatpush.bf16.msra.mxu3 %v9210_v53  ;;  %v8731_v53 = vld [vmem:[%s11609_s0 + $0x214] sm:$0xf0]  ;;  %v9293_v11 = vld [vmem:[%s11608_s1 + $0x1168] sm:$0xff] }
 0x1da   :  { %5848 = vmatpush.bf16.msra.mxu0 %v9185_v55  ;;  %v6316_v55 = vld [vmem:[%s11609_s0 + $0x210] sm:$0xf0]  ;;  %v6323_v31 = vor.u32 %v8731_v53, %v6322_v52  ;;  %v9301_v52 = vld [vmem:[%s11608_s1 + $0x11a8] sm:$0xff] }
 0x1db   :  { %5862 = vmatpush.bf16.msra.mxu1 %v9193_v12  ;;  %v8695_v12 = vld [vmem:[%s11609_s0 + $0xfc] sm:$0xf]  ;;  %v9309_v53 = vld [vmem:[%s11608_s1 + $0x11e8] sm:$0xff] }
 0x1dc   :  { %5876 = vmatpush.bf16.msra.mxu2 %v9201_v56  ;;  %v6324_v56 = vld [vmem:[%s11609_s0 + $0x218] sm:$0xf0] }
 0x1dd   :  { %5890 = vmatpush.bf16.msra.mxu3 %v9209_v57  ;;  %v9271_v57 = vld [vmem:[%s11608_s1 + $0x10b8] sm:$0xff] }
 0x1de   :  { %5849 = vmatpush.bf16.msra.mxu0 %v9184_v59  ;;  %v6319_v59 = vor.u32 %v8694_v54, %v6316_v55  ;;  %v9284_v54 = vld [vmem:[%s11608_s1 + $0x1120] sm:$0xff] }
 0x1df   :  { %5863 = vmatpush.bf16.msra.mxu1 %v9192_v15  ;;  %v6327_v15 = vor.u32 %v8695_v12, %v6324_v56  ;;  %v9292_v55 = vld [vmem:[%s11608_s1 + $0x1160] sm:$0xff] }
 0x1e0   :  { %5877 = vmatpush.bf16.msra.mxu2 %v9200_v60  ;;  %v9254_v60 = vld [vmem:[%s11608_s1 + $0x1030] sm:$0xff]  ;;  %v9300_v12 = vld [vmem:[%s11608_s1 + $0x11a0] sm:$0xff] }
 0x1e1   :  { %5891 = vmatpush.bf16.msra.mxu3 %v9208_v61  ;;  %5850 = vmatmul.bf16.vlgmr.msra.gmra.mxu0 %v6299_v10  ;;  %v9262_v61 = vld [vmem:[%s11608_s1 + $0x1070] sm:$0xff]  ;;  %v9267_v10 = vld [vmem:[%s11608_s1 + $0x1098] sm:$0xff]  ;;  %v9308_v56 = vld [vmem:[%s11608_s1 + $0x11e0] sm:$0xff] }
 0x1e2   :  { %5898 = vmatpush.bf16.msrb.mxu0 %v9223_v62  ;;  %5864 = vmatmul.bf16.vlgmr.msra.gmra.mxu1 %v6303_v16  ;;  %v9270_v62 = vld [vmem:[%s11608_s1 + $0x10b0] sm:$0xff] }
 0x1e3   :  { %5912 = vmatpush.bf16.msrb.mxu1 %v9231_v63  ;;  %5878 = vmatmul.bf16.vlgmr.msra.gmra.mxu2 %v6307_v14  ;;  %v9278_v63 = vld [vmem:[%s11608_s1 + $0x10f0] sm:$0xff]  ;;  %v9275_v14 = vld [vmem:[%s11608_s1 + $0x10d8] sm:$0xff] }
 0x1e4   :  { %5926 = vmatpush.bf16.msrb.mxu2 %v9239_v7  ;;  %5892 = vmatmul.bf16.vlgmr.msra.gmra.mxu3 %v6311_v28  ;;  %v9251_v7 = vld [vmem:[%s11608_s1 + $0x1018] sm:$0xff]  ;;  %v9250_v16 = vld [vmem:[%s11608_s1 + $0x1010] sm:$0xff] }
 0x1e5   :  { %5940 = vmatpush.bf16.msrb.mxu3 %v9247_v8  ;;  %v9259_v8 = vld [vmem:[%s11608_s1 + $0x1058] sm:$0xff]  ;;  %v9258_v28 = vld [vmem:[%s11608_s1 + $0x1050] sm:$0xff] }
 0x1e6   :  { %5899 = vmatpush.bf16.msrb.mxu0 %v9222_v18  ;;  %v9266_v18 = vld [vmem:[%s11608_s1 + $0x1090] sm:$0xff] }
 0x1e7   :  { %5913 = vmatpush.bf16.msrb.mxu1 %v9230_v20  ;;  %v9274_v20 = vld [vmem:[%s11608_s1 + $0x10d0] sm:$0xff] }
 0x1e8   :  { %5927 = vmatpush.bf16.msrb.mxu2 %v9238_v21  ;;  %v9249_v21 = vld [vmem:[%s11608_s1 + $0x1008] sm:$0xff] }
 0x1e9   :  { %5941 = vmatpush.bf16.msrb.mxu3 %v9246_v25  ;;  %v9257_v25 = vld [vmem:[%s11608_s1 + $0x1048] sm:$0xff] }
 0x1ea   :  { %5900 = vmatpush.bf16.msrb.mxu0 %v9221_v38  ;;  %v9265_v38 = vld [vmem:[%s11608_s1 + $0x1088] sm:$0xff] }
 0x1eb   :  { %5914 = vmatpush.bf16.msrb.mxu1 %v9229_v17  ;;  %v9273_v17 = vld [vmem:[%s11608_s1 + $0x10c8] sm:$0xff] }
 0x1ec   :  { %5928 = vmatpush.bf16.msrb.mxu2 %v9237_v26  ;;  %v9248_v26 = vld [vmem:[%s11608_s1 + $0x1000] sm:$0xff] }
 0x1ed   :  { %5942 = vmatpush.bf16.msrb.mxu3 %v9245_v30  ;;  %v9256_v30 = vld [vmem:[%s11608_s1 + $0x1040] sm:$0xff] }
 0x1ee   :  { %5901 = vmatpush.bf16.msrb.mxu0 %v9220_v9  ;;  %v9264_v9 = vld [vmem:[%s11608_s1 + $0x1080] sm:$0xff] }
 0x1ef   :  { %5915 = vmatpush.bf16.msrb.mxu1 %v9228_v33  ;;  %v9272_v33 = vld [vmem:[%s11608_s1 + $0x10c0] sm:$0xff] }
 0x1f0   :  { %5929 = vmatpush.bf16.msrb.mxu2 %v9236_v22  ;;  %v9287_v22 = vld [vmem:[%s11608_s1 + $0x1138] sm:$0xff] }
 0x1f1   :  { %5943 = vmatpush.bf16.msrb.mxu3 %v9244_v35  ;;  %v9295_v35 = vld [vmem:[%s11608_s1 + $0x1178] sm:$0xff] }
 0x1f2   :  { %5902 = vmatpush.bf16.msrb.mxu0 %v9219_v36  ;;  %v6330_v36 = vld [vmem:[%s11609_s0 + $0x100] sm:$0xf] }
 0x1f3   :  { %5916 = vmatpush.bf16.msrb.mxu1 %v9227_v37  ;;  %v8732_v37 = vld [vmem:[%s11609_s0 + $0x21c] sm:$0xf0] }
 0x1f4   :  { %5930 = vmatpush.bf16.msrb.mxu2 %v9235_v39  ;;  %v6338_v39 = vld [vmem:[%s11609_s0 + $0x108] sm:$0xf] }
 0x1f5   :  { %5944 = vmatpush.bf16.msrb.mxu3 %v9243_v40  ;;  %v8733_v40 = vld [vmem:[%s11609_s0 + $0x224] sm:$0xf0] }
 0x1f6   :  { %5903 = vmatpush.bf16.msrb.mxu0 %v9218_v13  ;;  %v8696_v13 = vld [vmem:[%s11609_s0 + $0x104] sm:$0xf] }
 0x1f7   :  { %5917 = vmatpush.bf16.msrb.mxu1 %v9226_v23  ;;  %v6332_v23 = vld [vmem:[%s11609_s0 + $0x220] sm:$0xf0] }
 0x1f8   :  { %5931 = vmatpush.bf16.msrb.mxu2 %v9234_v41  ;;  %v8697_v41 = vld [vmem:[%s11609_s0 + $0x10c] sm:$0xf] }
 0x1f9   :  { %5945 = vmatpush.bf16.msrb.mxu3 %v9242_v42  ;;  %v6340_v42 = vld [vmem:[%s11609_s0 + $0x228] sm:$0xf0] }
 0x1fa   :  { %5904 = vmatpush.bf16.msrb.mxu0 %v9217_v27  ;;  %v9303_v27 = vld [vmem:[%s11608_s1 + $0x11b8] sm:$0xff] }
 0x1fb   :  { %5918 = vmatpush.bf16.msrb.mxu1 %v9225_v43  ;;  %v9311_v43 = vld [vmem:[%s11608_s1 + $0x11f8] sm:$0xff] }
 0x1fc   :  { %5932 = vmatpush.bf16.msrb.mxu2 %v9233_v44  ;;  %v6331_v44 = vor.u32 %v8732_v37, %v6330_v36 }
 0x1fd   :  { %5946 = vmatpush.bf16.msrb.mxu3 %v9241_v45  ;;  %v6339_v45 = vor.u32 %v8733_v40, %v6338_v39 }
 0x1fe   :  { %5905 = vmatpush.bf16.msrb.mxu0 %v9216_v46  ;;  %v6335_v46 = vor.u32 %v8696_v13, %v6332_v23 }
 0x1ff   :  { %5919 = vmatpush.bf16.msrb.mxu1 %v9224_v47  ;;  %v6343_v47 = vor.u32 %v8697_v41, %v6340_v42 }
 0x200   :  { %5933 = vmatpush.bf16.msrb.mxu2 %v9232_v29  ;;  %v9286_v29 = vld [vmem:[%s11608_s1 + $0x1130] sm:$0xff] }
 0x201   :  { %5947 = vmatpush.bf16.msrb.mxu3 %v9240_v32  ;;  %5906 = vmatmul.bf16.vlgmr.msrb.gmra.mxu0 %v6315_v19  ;;  %v9294_v32 = vld [vmem:[%s11608_s1 + $0x1170] sm:$0xff]  ;;  %v9299_v19 = vld [vmem:[%s11608_s1 + $0x1198] sm:$0xff] }
 0x202   :  { %5954 = vmatpush.bf16.msra.mxu0 %v9255_v48  ;;  %5920 = vmatmul.bf16.vlgmr.msrb.gmra.mxu1 %v6319_v59  ;;  %v9302_v48 = vld [vmem:[%s11608_s1 + $0x11b0] sm:$0xff] }
 0x203   :  { %5968 = vmatpush.bf16.msra.mxu1 %v9263_v50  ;;  %5934 = vmatmul.bf16.vlgmr.msrb.gmra.mxu2 %v6323_v31  ;;  %v9310_v50 = vld [vmem:[%s11608_s1 + $0x11f0] sm:$0xff]  ;;  %v9307_v31 = vld [vmem:[%s11608_s1 + $0x11d8] sm:$0xff] }
 0x204   :  { %5982 = vmatpush.bf16.msra.mxu2 %v9271_v57  ;;  %5948 = vmatmul.bf16.vlgmr.msrb.gmra.mxu3 %v6327_v15  ;;  %v9283_v57 = vld [vmem:[%s11608_s1 + $0x1118] sm:$0xff]  ;;  %v9282_v59 = vld [vmem:[%s11608_s1 + $0x1110] sm:$0xff] }
 0x205   :  { %5996 = vmatpush.bf16.msra.mxu3 %v9279_v58  ;;  %v9291_v58 = vld [vmem:[%s11608_s1 + $0x1158] sm:$0xff]  ;;  %v9290_v15 = vld [vmem:[%s11608_s1 + $0x1150] sm:$0xff] }
 0x206   :  { %5955 = vmatpush.bf16.msra.mxu0 %v9254_v60  ;;  %v9298_v60 = vld [vmem:[%s11608_s1 + $0x1190] sm:$0xff] }
 0x207   :  { %5969 = vmatpush.bf16.msra.mxu1 %v9262_v61  ;;  %v9306_v61 = vld [vmem:[%s11608_s1 + $0x11d0] sm:$0xff] }
 0x208   :  { %5983 = vmatpush.bf16.msra.mxu2 %v9270_v62  ;;  %v9281_v62 = vld [vmem:[%s11608_s1 + $0x1108] sm:$0xff] }
 0x209   :  { %5997 = vmatpush.bf16.msra.mxu3 %v9278_v63  ;;  %v9289_v63 = vld [vmem:[%s11608_s1 + $0x1148] sm:$0xff] }
 0x20a   :  { %5956 = vmatpush.bf16.msra.mxu0 %v9253_v0  ;;  %v9297_v0 = vld [vmem:[%s11608_s1 + $0x1188] sm:$0xff] }
 0x20b   :  { %5970 = vmatpush.bf16.msra.mxu1 %v9261_v24  ;;  %v9305_v24 = vld [vmem:[%s11608_s1 + $0x11c8] sm:$0xff] }
 0x20c   :  { %5984 = vmatpush.bf16.msra.mxu2 %v9269_v1  ;;  %v9280_v1 = vld [vmem:[%s11608_s1 + $0x1100] sm:$0xff] }
 0x20d   :  { %5998 = vmatpush.bf16.msra.mxu3 %v9277_v2  ;;  %v9288_v2 = vld [vmem:[%s11608_s1 + $0x1140] sm:$0xff] }
 0x20e   :  { %5957 = vmatpush.bf16.msra.mxu0 %v9252_v3  ;;  %v9296_v3 = vld [vmem:[%s11608_s1 + $0x1180] sm:$0xff] }
 0x20f   :  { %5971 = vmatpush.bf16.msra.mxu1 %v9260_v4  ;;  %v9304_v4 = vld [vmem:[%s11608_s1 + $0x11c0] sm:$0xff] }
 0x210   :  { %5985 = vmatpush.bf16.msra.mxu2 %v9268_v5  ;;  %v6346_v5 = vld [vmem:[%s11609_s0 + $0x110] sm:$0xf] }
 0x211   :  { %5999 = vmatpush.bf16.msra.mxu3 %v9276_v6  ;;  %v8734_v6 = vld [vmem:[%s11609_s0 + $0x22c] sm:$0xf0] }
 0x212   :  { %5958 = vmatpush.bf16.msra.mxu0 %v9251_v7  ;;  %v8698_v7 = vld [vmem:[%s11609_s0 + $0x114] sm:$0xf] }
 0x213   :  { %5972 = vmatpush.bf16.msra.mxu1 %v9259_v8  ;;  %v6348_v8 = vld [vmem:[%s11609_s0 + $0x230] sm:$0xf0] }
 0x214   :  { %5986 = vmatpush.bf16.msra.mxu2 %v9267_v10  ;;  %v6354_v10 = vld [vmem:[%s11609_s0 + $0x118] sm:$0xf] }
 0x215   :  { %6000 = vmatpush.bf16.msra.mxu3 %v9275_v14  ;;  %v8735_v14 = vld [vmem:[%s11609_s0 + $0x234] sm:$0xf0] }
 0x216   :  { %5959 = vmatpush.bf16.msra.mxu0 %v9250_v16  ;;  %v8699_v16 = vld [vmem:[%s11609_s0 + $0x11c] sm:$0xf] }
 0x217   :  { %5973 = vmatpush.bf16.msra.mxu1 %v9258_v28  ;;  %v6356_v28 = vld [vmem:[%s11609_s0 + $0x238] sm:$0xf0] }
 0x218   :  { %5987 = vmatpush.bf16.msra.mxu2 %v9266_v18  ;;  %v6347_v18 = vor.u32 %v8734_v6, %v6346_v5 }
 0x219   :  { %6001 = vmatpush.bf16.msra.mxu3 %v9274_v20  ;;  %v6351_v20 = vor.u32 %v8698_v7, %v6348_v8 }
 0x21a   :  { %5960 = vmatpush.bf16.msra.mxu0 %v9249_v21  ;;  %v6355_v21 = vor.u32 %v8735_v14, %v6354_v10 }
 0x21b   :  { %5974 = vmatpush.bf16.msra.mxu1 %v9257_v25  ;;  %v6359_v25 = vor.u32 %v8699_v16, %v6356_v28 }
 0x21c   :  { %5988 = vmatpush.bf16.msra.mxu2 %v9265_v38  ;;  %v5627_v38 = vpop.f32.mrf.mxu0 }
 0x21d   :  { %6002 = vmatpush.bf16.msra.mxu3 %v9273_v17  ;;  %v5641_v17 = vpop.f32.mrf.mxu1 }
 0x21e   :  { %5961 = vmatpush.bf16.msra.mxu0 %v9248_v26  ;;  %v5655_v26 = vpop.f32.mrf.mxu2 }
 0x21f   :  { %5975 = vmatpush.bf16.msra.mxu1 %v9256_v30  ;;  %v5669_v30 = vpop.f32.mrf.mxu3 }
 0x220   :  { %5989 = vmatpush.bf16.msra.mxu2 %v9264_v9 }
 0x221   :  { %6003 = vmatpush.bf16.msra.mxu3 %v9272_v33  ;;  %5962 = vmatmul.bf16.vlgmr.msra.gmra.mxu0 %v6331_v44 }
 0x222   :  { %6010 = vmatpush.bf16.msrb.mxu0 %v9287_v22  ;;  %5976 = vmatmul.bf16.vlgmr.msra.gmra.mxu1 %v6335_v46  ;;  %v5628_v46 = vadd.f32 %v5627_v38, %v11176_v49 }
 0x223   :  { %6024 = vmatpush.bf16.msrb.mxu1 %v9295_v35  ;;  %5990 = vmatmul.bf16.vlgmr.msra.gmra.mxu2 %v6339_v45 }
 0x224   :  { %6038 = vmatpush.bf16.msrb.mxu2 %v9303_v27  ;;  %6004 = vmatmul.bf16.vlgmr.msra.gmra.mxu3 %v6343_v47  ;;  %v5629_v9 = vpop.f32.mrf.mxu0 }
 0x225   :  { %6052 = vmatpush.bf16.msrb.mxu3 %v9311_v43  ;;  %v5643_v33 = vpop.f32.mrf.mxu1 }
 0x226   :  { %6011 = vmatpush.bf16.msrb.mxu0 %v9286_v29  ;;  %v5657_v22 = vpop.f32.mrf.mxu2  ;;  %v5642_v29 = vadd.f32 %v5641_v17, %v5628_v46 }
 0x227   :  { %6025 = vmatpush.bf16.msrb.mxu1 %v9294_v32  ;;  %v5671_v35 = vpop.f32.mrf.mxu3 }
 0x228   :  { %6039 = vmatpush.bf16.msrb.mxu2 %v9302_v48  ;;  %v5656_v48 = vadd.f32 %v5655_v26, %v5642_v29 }
 0x229   :  { %6053 = vmatpush.bf16.msrb.mxu3 %v9310_v50  ;;  %v5630_v50 = vadd.f32 %v5629_v9, %v11214_v34 }
 0x22a   :  { %6012 = vmatpush.bf16.msrb.mxu0 %v9285_v51 }
 0x22b   :  { %6026 = vmatpush.bf16.msrb.mxu1 %v9293_v11 }
 0x22c   :  { %6040 = vmatpush.bf16.msrb.mxu2 %v9301_v52  ;;  %v5683_v36 = vpop.f32.mrf.mxu0  ;;  %v5670_v52 = vadd.f32 %v5669_v30, %v5656_v48 }
 0x22d   :  { %6054 = vmatpush.bf16.msrb.mxu3 %v9309_v53  ;;  %v5697_v37 = vpop.f32.mrf.mxu1 }
 0x22e   :  { %6013 = vmatpush.bf16.msrb.mxu0 %v9284_v54  ;;  %v5711_v39 = vpop.f32.mrf.mxu2  ;;  %v5644_v54 = vadd.f32 %v5643_v33, %v5630_v50 }
 0x22f   :  { %6027 = vmatpush.bf16.msrb.mxu1 %v9292_v55  ;;  %v5725_v40 = vpop.f32.mrf.mxu3  ;;  %v5684_v55 = vadd.f32 %v5683_v36, %v5670_v52 }
 0x230   :  { %6041 = vmatpush.bf16.msrb.mxu2 %v9300_v12 }
 0x231   :  { %6055 = vmatpush.bf16.msrb.mxu3 %v9308_v56  ;;  %v5658_v56 = vadd.f32 %v5657_v22, %v5644_v54 }
 0x232   :  { %6014 = vmatpush.bf16.msrb.mxu0 %v9283_v57  ;;  %v5698_v57 = vadd.f32 %v5697_v37, %v5684_v55 }
 0x233   :  { %6028 = vmatpush.bf16.msrb.mxu1 %v9291_v58 }
 0x234   :  { %6042 = vmatpush.bf16.msrb.mxu2 %v9299_v19  ;;  %v5685_v13 = vpop.f32.mrf.mxu0 }
 0x235   :  { %6056 = vmatpush.bf16.msrb.mxu3 %v9307_v31  ;;  %v5699_v23 = vpop.f32.mrf.mxu1  ;;  %v5672_v31 = vadd.f32 %v5671_v35, %v5658_v56 }
 0x236   :  { %6015 = vmatpush.bf16.msrb.mxu0 %v9282_v59  ;;  %v5713_v41 = vpop.f32.mrf.mxu2  ;;  %v5712_v59 = vadd.f32 %v5711_v39, %v5698_v57 }
 0x237   :  { %6029 = vmatpush.bf16.msrb.mxu1 %v9290_v15  ;;  %v5727_v42 = vpop.f32.mrf.mxu3  ;;  %v5686_v49 = vadd.f32 %v5685_v13, %v5672_v31 }
 0x238   :  { %6043 = vmatpush.bf16.msrb.mxu2 %v9298_v60  ;;  %v5726_v60 = vadd.f32 %v5725_v40, %v5712_v59 }
 0x239   :  { %6057 = vmatpush.bf16.msrb.mxu3 %v9306_v61 }
 0x23a   :  { %6016 = vmatpush.bf16.msrb.mxu0 %v9281_v62  ;;  %v5700_v62 = vadd.f32 %v5699_v23, %v5686_v49 }
 0x23b   :  { %6030 = vmatpush.bf16.msrb.mxu1 %v9289_v63 }
 0x23c   :  { %6044 = vmatpush.bf16.msrb.mxu2 %v9297_v0  ;;  %v5739_v27 = vpop.f32.mrf.mxu0  ;;  %v5714_v34 = vadd.f32 %v5713_v41, %v5700_v62 }
 0x23d   :  { %6058 = vmatpush.bf16.msrb.mxu3 %v9305_v24  ;;  %v5753_v43 = vpop.f32.mrf.mxu1  ;;  %v5740_v63 = vadd.f32 %v5739_v27, %v5726_v60 }
 0x23e   :  { %6017 = vmatpush.bf16.msrb.mxu0 %v9280_v1  ;;  %v5767_v44 = vpop.f32.mrf.mxu2 }
 0x23f   :  { %6031 = vmatpush.bf16.msrb.mxu1 %v9288_v2  ;;  %v5781_v45 = vpop.f32.mrf.mxu3  ;;  %v5754_v1 = vadd.f32 %v5753_v43, %v5740_v63 }
 0x240   :  { %6045 = vmatpush.bf16.msrb.mxu2 %v9296_v3  ;;  %v5728_v3 = vadd.f32 %v5727_v42, %v5714_v34 }
 0x241   :  { %6059 = vmatpush.bf16.msrb.mxu3 %v9304_v4  ;;  %6018 = vmatmul.bf16.vlgmr.msrb.gmra.mxu0 %v6347_v18  ;;  %v5768_v4 = vadd.f32 %v5767_v44, %v5754_v1 }
 0x242   :  { %6032 = vmatmul.bf16.vlgmr.msrb.gmra.mxu1 %v6351_v20 }
 0x243   :  { %6046 = vmatmul.bf16.vlgmr.msrb.gmra.mxu2 %v6355_v21  ;;  %v5782_v7 = vadd.f32 %v5781_v45, %v5768_v4 }
 0x244   :  { %6060 = vmatmul.bf16.vlgmr.msrb.gmra.mxu3 %v6359_v25  ;;  %v5741_v47 = vpop.f32.mrf.mxu0 }
 0x245   :  { %v5755_v32 = vpop.f32.mrf.mxu1  ;;  %v5742_v6 = vadd.f32 %v5741_v47, %v5728_v3 }
 0x246   :  { %v5769_v51 = vpop.f32.mrf.mxu2 }
 0x247   :  { %v5783_v11 = vpop.f32.mrf.mxu3  ;;  %v5756_v14 = vadd.f32 %v5755_v32, %v5742_v6 }
 0x249   :  { %v5770_v28 = vadd.f32 %v5769_v51, %v5756_v14 }
 0x24b   :  { %v5784_v25 = vadd.f32 %v5783_v11, %v5770_v28 }
 0x24c   :  { %v5795_v53 = vpop.f32.mrf.mxu0 }
 0x24d   :  { %v5809_v12 = vpop.f32.mrf.mxu1  ;;  %v5796_v16 = vadd.f32 %v5795_v53, %v5782_v7 }
 0x24e   :  { %v5823_v58 = vpop.f32.mrf.mxu2 }
 0x24f   :  { %v5837_v19 = vpop.f32.mrf.mxu3  ;;  %v5810_v20 = vadd.f32 %v5809_v12, %v5796_v16 }
 0x251   :  { %v5824_v38 = vadd.f32 %v5823_v58, %v5810_v20 }
 0x253   :  { %v5838_v9 = vadd.f32 %v5837_v19, %v5824_v38 }
 0x254   :  { %v5797_v15 = vpop.f32.mrf.mxu0 }
 0x255   :  { %v5811_v61 = vpop.f32.mrf.mxu1  ;;  %v5798_v17 = vadd.f32 %v5797_v15, %v5784_v25 }
 0x256   :  { %v5825_v0 = vpop.f32.mrf.mxu2 }
 0x257   :  { %v5839_v24 = vpop.f32.mrf.mxu3  ;;  %v5812_v22 = vadd.f32 %v5811_v61, %v5798_v17 }
 0x259   :  { %v5826_v37 = vadd.f32 %v5825_v0, %v5812_v22 }
 0x25b   :  { %v5840_v23 = vadd.f32 %v5839_v24, %v5826_v37 }
 0x25e   :  { %v5851_v2 = vpop.f32.mrf.mxu0 }
 0x25f   :  { %v5865_v5 = vpop.f32.mrf.mxu1  ;;  %v5852_v35 = vadd.f32 %v5851_v2, %v5838_v9 }
 0x261   :  { %v5866_v39 = vadd.f32 %v5865_v5, %v5852_v35 }
 0x266   :  { %v5879_v8 = vpop.f32.mrf.mxu2  ;;  %v5853_v18 = vpop.f32.mrf.mxu0 }
 0x267   :  { %v5893_v10 = vpop.f32.mrf.mxu3  ;;  %v5867_v21 = vpop.f32.mrf.mxu1  ;;  %v5880_v41 = vadd.f32 %v5879_v8, %v5866_v39  ;;  %v5854_v42 = vadd.f32 %v5853_v18, %v5840_v23 }
 0x269   :  { %v5894_v43 = vadd.f32 %v5893_v10, %v5880_v41  ;;  %v5868_v45 = vadd.f32 %v5867_v21, %v5854_v42 }
 0x26e   :  { %v5881_v26 = vpop.f32.mrf.mxu2 }
 0x26f   :  { %v5895_v30 = vpop.f32.mrf.mxu3  ;;  %v5882_v47 = vadd.f32 %v5881_v26, %v5868_v45 }
 0x271   :  { %v5896_v51 = vadd.f32 %v5895_v30, %v5882_v47 }
 0x27e   :  { %v5907_v33 = vpop.f32.mrf.mxu0 }
 0x27f   :  { %v5921_v36 = vpop.f32.mrf.mxu1  ;;  %v5908_v46 = vadd.f32 %v5907_v33, %v5894_v43 }
 0x281   :  { %v5922_v48 = vadd.f32 %v5921_v36, %v5908_v46 }
 0x286   :  { %v5935_v40 = vpop.f32.mrf.mxu2  ;;  %v5909_v27 = vpop.f32.mrf.mxu0 }
 0x287   :  { %v5949_v13 = vpop.f32.mrf.mxu3  ;;  %v5923_v44 = vpop.f32.mrf.mxu1  ;;  %v5936_v11 = vadd.f32 %v5935_v40, %v5922_v48  ;;  %v5910_v53 = vadd.f32 %v5909_v27, %v5896_v51 }
 0x289   :  { %v5950_v54 = vadd.f32 %v5949_v13, %v5936_v11  ;;  %v5924_v56 = vadd.f32 %v5923_v44, %v5910_v53 }
 0x28e   :  { %v5937_v29 = vpop.f32.mrf.mxu2 }
 0x28f   :  { %v5951_v32 = vpop.f32.mrf.mxu3  ;;  %v5938_v58 = vadd.f32 %v5937_v29, %v5924_v56 }
 0x291   :  { %v5952_v49 = vadd.f32 %v5951_v32, %v5938_v58 }
 0x29e   :  { %v5963_v50 = vpop.f32.mrf.mxu0 }
 0x29f   :  { %v5977_v52 = vpop.f32.mrf.mxu1  ;;  %v5964_v57 = vadd.f32 %v5963_v50, %v5950_v54 }
 0x2a1   :  { %v5978_v31 = vadd.f32 %v5977_v52, %v5964_v57 }
 0x2a6   :  { %v5991_v55 = vpop.f32.mrf.mxu2  ;;  %v5965_v19 = vpop.f32.mrf.mxu0 }
 0x2a7   :  { %v6005_v12 = vpop.f32.mrf.mxu3  ;;  %v5979_v59 = vpop.f32.mrf.mxu1  ;;  %v5992_v15 = vadd.f32 %v5991_v55, %v5978_v31  ;;  %v5966_v60 = vadd.f32 %v5965_v19, %v5952_v49 }
 0x2a9   :  { %v6006_v63 = vadd.f32 %v6005_v12, %v5992_v15  ;;  %v5980_v0 = vadd.f32 %v5979_v59, %v5966_v60 }
 0x2ae   :  { %v5993_v61 = vpop.f32.mrf.mxu2 }
 0x2af   :  { %v6007_v62 = vpop.f32.mrf.mxu3  ;;  %v5994_v2 = vadd.f32 %v5993_v61, %v5980_v0 }
 0x2b1   :  { %v6008_v6 = vadd.f32 %v6007_v62, %v5994_v2 }
 0x2be   :  { %v6019_v34 = vpop.f32.mrf.mxu0 }
 0x2bf   :  { %v6020_v24 = vadd.f32 %v6019_v34, %v6006_v63  ;;  %v6033_v1 = vpop.f32.mrf.mxu1 }
 0x2c1   :  { %v6034_v3 = vadd.f32 %v6033_v1, %v6020_v24 }
 0x2c6   :  { %v6047_v4 = vpop.f32.mrf.mxu2  ;;  %v6021_v8 = vpop.f32.mrf.mxu0 }
 0x2c7   :  { %v6061_v5 = vpop.f32.mrf.mxu3  ;;  %v6048_v7 = vadd.f32 %v6047_v4, %v6034_v3  ;;  %v6022_v14 = vadd.f32 %v6021_v8, %v6008_v6  ;;  %v6035_v16 = vpop.f32.mrf.mxu1 }
 0x2c9   :  { %v6062_v10 = vadd.f32 %v6061_v5, %v6048_v7  ;;  %v6036_v28 = vadd.f32 %v6035_v16, %v6022_v14 }
 0x2cb   :  { %6066 = vst [vmem:[%s11611_s3] sm:$0xff] %v6062_v10 }
 0x2ce   :  { %v6049_v18 = vpop.f32.mrf.mxu2 }
 0x2cf   :  { %v6050_v20 = vadd.f32 %v6049_v18, %v6036_v28  ;;  %v6063_v21 = vpop.f32.mrf.mxu3 }
 0x2d1   :  { %v6064_v25 = vadd.f32 %v6063_v21, %v6050_v20 }
 0x2d3   :  { %6067 = vst [vmem:[%s11611_s3 + $0x8] sm:$0xff] %v6064_v25 }

</bundles_post_ra>
